<compile_context>
chip_gen: v7x
topology: tpu7x:2x2x1
jax: 0.10.0
libtpu: 0.0.40
codegen_flags: <defaults>
</compile_context>

<pallas_src>
import functools
import numpy as np

import jax
import jax.numpy as jnp
from jax.experimental import pallas as pl
from jax.experimental.pallas import tpu as pltpu

LN_EPS = 1e-5        # nn.LayerNorm default
ATTN_EPS = 1e-15     # PRAttention.eps


# ----------------------------------------------------------------------------
# In-kernel helpers
# ----------------------------------------------------------------------------
def _ln(x, g, b):
    mu = jnp.mean(x, axis=-1, keepdims=True)
    xc = x - mu
    var = jnp.mean(xc * xc, axis=-1, keepdims=True)
    return xc * jax.lax.rsqrt(var + LN_EPS) * g + b


def _erf(x):
    # Abramowitz & Stegun 7.1.26 (|err| < 1.5e-7), exact divides only
    # (no approx reciprocal, per correctness review).
    a1, a2, a3, a4, a5 = 0.254829592, -0.284496736, 1.421413741, -1.453152027, 1.061405429
    p = 0.3275911
    s = jnp.where(x >= 0.0, 1.0, -1.0)
    ax = jnp.abs(x)
    t = 1.0 / (1.0 + p * ax)
    poly = ((((a5 * t + a4) * t + a3) * t + a2) * t + a1) * t
    return s * (1.0 - poly * jnp.exp(-ax * ax))


def _gelu(x):
    # exact (erf-based) GELU, matching nn.GELU() default
    return 0.5 * x * (1.0 + _erf(x * 0.7071067811865476))


# ----------------------------------------------------------------------------
# The fused Block kernel (one grid step per batch-block of `bb` elements)
# ----------------------------------------------------------------------------
def _block_kernel(x_ref, pall_ref, convw_ref, convb_ref,
                  n1g_ref, n1b_ref,
                  qw_ref, ang_ref, anb_ref, kvw_ref, pjw_ref, pjb_ref,
                  n2g_ref, n2b_ref,
                  w1_ref, b1_ref, w2_ref, b2_ref,
                  o_ref, *, bb, n, c, heads, hd, ptot, pp, compute_dtype):
    f32 = jnp.float32
    mx = lambda a: a.astype(compute_dtype)            # MXU operand cast (no-op in f32 mode)

    x = x_ref[...].reshape(bb * n, c)                 # (bb*N, C), minor dims untouched

    # ---- norm1 on all rows at once ----
    xn = _ln(x, n1g_ref[...], n1b_ref[...])

    # ---- full-width q projection + ReLU: one MXU push for the whole batch ----
    q_all = jnp.maximum(
        jnp.dot(mx(xn), mx(qw_ref[...]), preferred_element_type=f32), 0.0)   # (bb*N, C)

    # pad-row mask for the PP-aligned pool block (LN of an all-zero pad row
    # would return the LN bias, which must not leak into k/v/kvm).
    pool_mask = jax.lax.broadcasted_iota(jnp.int32, (pp, 1), 0) < ptot
    ones_col = jnp.ones((pp, 1), f32)
    pall = mx(pall_ref[...])
    kvw = mx(kvw_ref[...])

    attn_parts = []
    for b in range(bb):                               # static unroll, bb is tiny
        xn_b = xn[b * n:(b + 1) * n]                  # (N, C); N % 8 == 0 → aligned

        # ---- multi-scale adaptive pool + depthwise 3x3 conv (stacked matmul) ----
        y = jnp.dot(pall, mx(xn_b), preferred_element_type=f32)              # (10*PP, C)
        pooled = y[0:pp] + convb_ref[...]                                     # pool + bias
        for t in range(9):                                                    # + dwconv taps
            pooled = pooled + y[(t + 1) * pp:(t + 2) * pp] * convw_ref[t]
        pools = _ln(pooled, ang_ref[...], anb_ref[...])                       # (PP, C)
        pools = jnp.where(pool_mask, pools, 0.0)                              # zero pad rows

        # ---- fused k|v projection: one (PP,C)@(C,2C) push ----
        kv = jnp.dot(mx(pools), kvw, preferred_element_type=f32)             # (PP, 2C)
        k_all = jnp.maximum(kv[:, :c], 0.0)
        v_all = kv[:, c:]

        q_b = q_all[b * n:(b + 1) * n]
        outs = []
        for h in range(heads):
            k_h = k_all[:, h * hd:(h + 1) * hd]                              # (PP, hd)
            # ones column folds ksum (denominator) into the same kvm matmul
            v_aug = jnp.concatenate(
                [v_all[:, h * hd:(h + 1) * hd], ones_col], axis=-1)          # (PP, hd+1)
            kvm = jax.lax.dot_general(k_h, v_aug, (((0,), (0,)), ((), ())),
                                      preferred_element_type=f32)            # (hd, hd+1)
            oa = jnp.dot(q_b[:, h * hd:(h + 1) * hd], kvm,
                         preferred_element_type=f32)                         # (N, hd+1)
            outs.append(oa[:, :hd] / (oa[:, hd:hd + 1] + ATTN_EPS))
        attn_parts.append(jnp.concatenate(outs, axis=-1))                    # (N, C)

    attn = attn_parts[0] if bb == 1 else jnp.concatenate(attn_parts, axis=0)  # (bb*N, C)

    # ---- output projection fused across heads and batch, residual fused ----
    x1 = x + jnp.dot(mx(attn), mx(pjw_ref[...]),
                     preferred_element_type=f32) + pjb_ref[...]

    # ---- MLP with fused residual ----
    xn2 = _ln(x1, n2g_ref[...], n2b_ref[...])
    h1 = _gelu(jnp.dot(mx(xn2), mx(w1_ref[...]),
                       preferred_element_type=f32) + b1_ref[...])
    out = x1 + jnp.dot(mx(h1), mx(w2_ref[...]),
                       preferred_element_type=f32) + b2_ref[...]
    o_ref[...] = out.reshape(bb, n, c)


# ----------------------------------------------------------------------------
# Host-side constant pooling / shift matrices (pure index math)
# ----------------------------------------------------------------------------
def _adaptive_pool_matrix(H, W, oh, ow):
    P = np.zeros((oh * ow, H * W), dtype=np.float32)
    for oi in range(oh):
        hs, he = (oi * H) // oh, -(-((oi + 1) * H) // oh)
        for oj in range(ow):
            ws, we = (oj * W) // ow, -(-((oj + 1) * W) // ow)
            inv = 1.0 / ((he - hs) * (we - ws))
            for i in range(hs, he):
                for j in range(ws, we):
                    P[oi * ow + oj, i * W + j] = inv
    return P


@functools.lru_cache(maxsize=None)
def _build_stacked_pool_mats(H, W, pool_ratios):
    """Tap-major stacked [pool | 9 x shift∘pool] matrices for all scales.

    Returns (pall_flat (10*PP, H*W), Ptot, PP, ohws); PP = Ptot rounded up to
    a multiple of 8 (pad rows are all-zero) so in-kernel slices at multiples
    of PP are sublane-tile aligned."""
    HW = H * W
    per_scale, ohws = [], []
    for r in pool_ratios:
        oh, ow = round(H / r), round(W / r)
        ohws.append(oh * ow)
        P = _adaptive_pool_matrix(H, W, oh, ow)
        taps = [P]
        for kh in range(3):
            for kw in range(3):
                di, dj = kh - 1, kw - 1
                S = np.zeros((oh * ow, oh * ow), np.float32)
                for oi in range(oh):
                    for oj in range(ow):
                        ii, jj = oi + di, oj + dj
                        if 0 <= ii < oh and 0 <= jj < ow:
                            S[oi * ow + oj, ii * ow + jj] = 1.0
                taps.append(S @ P)
        per_scale.append(np.stack(taps, 0))                    # (10, ohw, HW)
    Ptot = int(sum(ohws))
    PP = ((Ptot + 7) // 8) * 8
    pall = np.zeros((10, PP, HW), np.float32)
    off = 0
    for mats, ohw in zip(per_scale, ohws):
        pall[:, off:off + ohw, :] = mats
        off += ohw
    return pall.reshape(10 * PP, HW), Ptot, PP, tuple(ohws)


def _broadcast_conv_params(conv_w_list, conv_b_list, ohws, PP, C):
    """Depthwise conv taps/bias broadcast to per-pool-row (PP, C) layout."""
    convw = np.zeros((9, PP, C), np.float32)
    convb = np.zeros((PP, C), np.float32)
    off = 0
    for w, b, ohw in zip(conv_w_list, conv_b_list, ohws):
        convw[:, off:off + ohw, :] = np.asarray(w)[:, None, :]
        convb[off:off + ohw, :] = np.asarray(b)[None, :]
        off += ohw
    return jnp.asarray(convw), jnp.asarray(convb)


# ----------------------------------------------------------------------------
# Block forward wrapper (single pallas_call)
# ----------------------------------------------------------------------------
def block_forward(x, params, *, num=0, heads=2, pool_ratios=(1, 2, 3, 6),
                  batch_block=None, mxu_bf16=False):
    B, N, C = x.shape
    H = W = int(round((N - num) ** 0.5))
    # TODO(synk): cls-token branch (N == H*W + num + 2) of PRAttention is not implemented.
    assert num == 0 and N == H * W, "only the plain-grid (else) path is implemented"
    hd = C // heads
    Hh = params["fc1_w"].shape[1]

    # Whole batch per grid step by default (best on 1-TC v5e/v6e); on v7x pass
    # batch_block = B // 2 so the "parallel" grid axis shards across the 2 TCs.
    bb = B if batch_block is None else int(batch_block)
    assert B % bb == 0

    pall_np, Ptot, PP, ohws = _build_stacked_pool_mats(H, W, tuple(pool_ratios))
    pall = jnp.asarray(pall_np)
    convw, convb = _broadcast_conv_params(params["conv_w"], params["conv_b"], ohws, PP, C)

    kernel = functools.partial(
        _block_kernel, bb=bb, n=N, c=C, heads=heads, hd=hd, ptot=Ptot, pp=PP,
        compute_dtype=jnp.bfloat16 if mxu_bf16 else jnp.float32)

    vec = lambda v: v.reshape(1, -1)
    xb = lambda i: (i, 0, 0)
    c2 = lambda i: (0, 0)
    c3 = lambda i: (0, 0, 0)

    return pl.pallas_call(
        kernel,
        out_shape=jax.ShapeDtypeStruct((B, N, C), jnp.float32),
        grid=(B // bb,),
        in_specs=[
            pl.BlockSpec((bb, N, C), xb),                # x
            pl.BlockSpec((10 * PP, H * W), c2),          # stacked pool/shift mats
            pl.BlockSpec((9, PP, C), c3),                # dwconv taps (broadcast)
            pl.BlockSpec((PP, C), c2),                   # dwconv bias (broadcast)
            pl.BlockSpec((1, C), c2), pl.BlockSpec((1, C), c2),        # norm1 g/b
            pl.BlockSpec((C, C), c2),                    # q weight (full width)
            pl.BlockSpec((1, C), c2), pl.BlockSpec((1, C), c2),        # attn norm g/b
            pl.BlockSpec((C, 2 * C), c2),                # kv weight (k|v fused)
            pl.BlockSpec((C, C), c2),                    # proj weight (full width)
            pl.BlockSpec((1, C), c2),                    # proj bias
            pl.BlockSpec((1, C), c2), pl.BlockSpec((1, C), c2),        # norm2 g/b
            pl.BlockSpec((C, Hh), c2), pl.BlockSpec((1, Hh), c2),      # fc1 w/b
            pl.BlockSpec((Hh, C), c2), pl.BlockSpec((1, C), c2),       # fc2 w/b
        ],
        out_specs=pl.BlockSpec((bb, N, C), xb),
        compiler_params=pltpu.CompilerParams(
            dimension_semantics=("parallel",)),
    )(x, pall, convw, convb,
      vec(params["norm1_g"]), vec(params["norm1_b"]),
      params["q_w"], vec(params["attn_norm_g"]), vec(params["attn_norm_b"]),
      params["kv_w"], params["proj_w"], vec(params["proj_b"]),
      vec(params["norm2_g"]), vec(params["norm2_b"]),
      params["fc1_w"], vec(params["fc1_b"]),
      params["fc2_w"], vec(params["fc2_b"]))


# ----------------------------------------------------------------------------
if __name__ == "__main__":
    B, H, W, C = 2, 8, 8, 32
    N = H * W
    num = 0
    heads = 2
    mlp_hidden = int(C * 4.0)
    pool_ratios = (1, 2, 3, 6)

    key = jax.random.PRNGKey(0)
    ks = jax.random.split(key, 20)

    def nrm(k, shape, scale=0.05):
        return jax.random.normal(k, shape, jnp.float32) * scale

    params = {
        "norm1_g": jnp.ones((C,), jnp.float32), "norm1_b": jnp.zeros((C,), jnp.float32),
        # weights stored in "math" orientation (x @ W); kv columns are
        # [k heads | v heads], matching the PyTorch reshape convention.
        "q_w":  nrm(ks[1], (C, C)),
        "kv_w": nrm(ks[2], (C, 2 * C)),
        "attn_norm_g": jnp.ones((C,), jnp.float32), "attn_norm_b": jnp.zeros((C,), jnp.float32),
        "proj_w": nrm(ks[3], (C, C)), "proj_b": nrm(ks[4], (C,)),
        "norm2_g": jnp.ones((C,), jnp.float32), "norm2_b": jnp.zeros((C,), jnp.float32),
        "fc1_w": nrm(ks[5], (C, mlp_hidden)), "fc1_b": nrm(ks[6], (mlp_hidden,)),
        "fc2_w": nrm(ks[7], (mlp_hidden, C)), "fc2_b": nrm(ks[8], (C,)),
        # depthwise 3x3 taps, layout (9, C): t = kh*3 + kw  ==  weight[c,0,kh,kw]
        "conv_w": [nrm(ks[9 + i], (9, C)) for i in range(4)],
        "conv_b": [nrm(ks[13 + i], (C,)) for i in range(4)],
    }

    x = jax.random.normal(ks[0], (B, N, C), jnp.float32)

    out = block_forward(x, params, num=num, heads=heads, pool_ratios=pool_ratios)
    out = jax.block_until_ready(out)
    assert out.shape == (B, N, C)
    assert bool(jnp.all(jnp.isfinite(out)))
    print("KERNEL_OK")
</pallas_src>

<mosaic_0001>
module attributes {stable_mosaic.version = 11 : i64} {
  func.func @_block_kernel(%arg0: i32, %arg1: memref<2x64x32xf32, #tpu.memory_space<vmem>>, %arg2: memref<960x64xf32, #tpu.memory_space<vmem>>, %arg3: memref<9x96x32xf32, #tpu.memory_space<vmem>>, %arg4: memref<96x32xf32, #tpu.memory_space<vmem>>, %arg5: memref<1x32xf32, #tpu.memory_space<vmem>>, %arg6: memref<1x32xf32, #tpu.memory_space<vmem>>, %arg7: memref<32x32xf32, #tpu.memory_space<vmem>>, %arg8: memref<1x32xf32, #tpu.memory_space<vmem>>, %arg9: memref<1x32xf32, #tpu.memory_space<vmem>>, %arg10: memref<32x64xf32, #tpu.memory_space<vmem>>, %arg11: memref<32x32xf32, #tpu.memory_space<vmem>>, %arg12: memref<1x32xf32, #tpu.memory_space<vmem>>, %arg13: memref<1x32xf32, #tpu.memory_space<vmem>>, %arg14: memref<1x32xf32, #tpu.memory_space<vmem>>, %arg15: memref<32x128xf32, #tpu.memory_space<vmem>>, %arg16: memref<1x128xf32, #tpu.memory_space<vmem>>, %arg17: memref<128x32xf32, #tpu.memory_space<vmem>>, %arg18: memref<1x32xf32, #tpu.memory_space<vmem>>, %arg19: memref<2x64x32xf32, #tpu.memory_space<vmem>>) attributes {dimension_semantics = [#tpu.dimension_semantics<parallel>], iteration_bounds = array<i64: 1>, scalar_prefetch = 0 : i64, scratch_operands = 0 : i64, tpu.core_type = #tpu.core_type<tc>, window_params = [{transform_indices = @transform_0, window_bounds = array<i64: 2, 64, 32>}, {pipeline_mode = #tpu.pipeline_mode<synchronous>, transform_indices = @transform_1, window_bounds = array<i64: 960, 64>}, {pipeline_mode = #tpu.pipeline_mode<synchronous>, transform_indices = @transform_2, window_bounds = array<i64: 9, 96, 32>}, {pipeline_mode = #tpu.pipeline_mode<synchronous>, transform_indices = @transform_3, window_bounds = array<i64: 96, 32>}, {pipeline_mode = #tpu.pipeline_mode<synchronous>, transform_indices = @transform_4, window_bounds = array<i64: 1, 32>}, {pipeline_mode = #tpu.pipeline_mode<synchronous>, transform_indices = @transform_5, window_bounds = array<i64: 1, 32>}, {pipeline_mode = #tpu.pipeline_mode<synchronous>, transform_indices = @transform_6, window_bounds = array<i64: 32, 32>}, {pipeline_mode = #tpu.pipeline_mode<synchronous>, transform_indices = @transform_7, window_bounds = array<i64: 1, 32>}, {pipeline_mode = #tpu.pipeline_mode<synchronous>, transform_indices = @transform_8, window_bounds = array<i64: 1, 32>}, {pipeline_mode = #tpu.pipeline_mode<synchronous>, transform_indices = @transform_9, window_bounds = array<i64: 32, 64>}, {pipeline_mode = #tpu.pipeline_mode<synchronous>, transform_indices = @transform_10, window_bounds = array<i64: 32, 32>}, {pipeline_mode = #tpu.pipeline_mode<synchronous>, transform_indices = @transform_11, window_bounds = array<i64: 1, 32>}, {pipeline_mode = #tpu.pipeline_mode<synchronous>, transform_indices = @transform_12, window_bounds = array<i64: 1, 32>}, {pipeline_mode = #tpu.pipeline_mode<synchronous>, transform_indices = @transform_13, window_bounds = array<i64: 1, 32>}, {pipeline_mode = #tpu.pipeline_mode<synchronous>, transform_indices = @transform_14, window_bounds = array<i64: 32, 128>}, {pipeline_mode = #tpu.pipeline_mode<synchronous>, transform_indices = @transform_15, window_bounds = array<i64: 1, 128>}, {pipeline_mode = #tpu.pipeline_mode<synchronous>, transform_indices = @transform_16, window_bounds = array<i64: 128, 32>}, {pipeline_mode = #tpu.pipeline_mode<synchronous>, transform_indices = @transform_17, window_bounds = array<i64: 1, 32>}, {transform_indices = @transform_18, window_bounds = array<i64: 2, 64, 32>}]} {
    %c0 = arith.constant 0 : index
    %c0_0 = arith.constant 0 : index
    %c0_1 = arith.constant 0 : index
    %0 = vector.load %arg1[%c0, %c0_0, %c0_1] : memref<2x64x32xf32, #tpu.memory_space<vmem>>, vector<2x64x32xf32>
    %1 = vector.shape_cast %0 : vector<2x64x32xf32> to vector<128x32xf32>
    %c0_2 = arith.constant 0 : index
    %c0_3 = arith.constant 0 : index
    %2 = vector.load %arg5[%c0_2, %c0_3] : memref<1x32xf32, #tpu.memory_space<vmem>>, vector<1x32xf32>
    %c0_4 = arith.constant 0 : index
    %c0_5 = arith.constant 0 : index
    %3 = vector.load %arg6[%c0_4, %c0_5] : memref<1x32xf32, #tpu.memory_space<vmem>>, vector<1x32xf32>
    %cst = arith.constant dense<0.000000e+00> : vector<128xf32>
    %4 = vector.multi_reduction <add>, %1, %cst [1] : vector<128x32xf32> to vector<128xf32>
    %5 = vector.shape_cast %4 : vector<128xf32> to vector<128x1xf32>
    %cst_6 = arith.constant 3.200000e+01 : f32
    %6 = vector.broadcast %cst_6 : f32 to vector<128x1xf32>
    %7 = arith.divf %5, %6 : vector<128x1xf32>
    %8 = vector.broadcast %7 : vector<128x1xf32> to vector<128x32xf32>
    %9 = arith.subf %1, %8 : vector<128x32xf32>
    %10 = arith.mulf %9, %9 : vector<128x32xf32>
    %cst_7 = arith.constant dense<0.000000e+00> : vector<128xf32>
    %11 = vector.multi_reduction <add>, %10, %cst_7 [1] : vector<128x32xf32> to vector<128xf32>
    %12 = vector.shape_cast %11 : vector<128xf32> to vector<128x1xf32>
    %cst_8 = arith.constant 3.200000e+01 : f32
    %13 = vector.broadcast %cst_8 : f32 to vector<128x1xf32>
    %14 = arith.divf %12, %13 : vector<128x1xf32>
    %cst_9 = arith.constant 9.99999974E-6 : f32
    %15 = vector.broadcast %cst_9 : f32 to vector<128x1xf32>
    %16 = arith.addf %14, %15 : vector<128x1xf32>
    %17 = math.rsqrt %16 : vector<128x1xf32>
    %18 = vector.broadcast %17 : vector<128x1xf32> to vector<128x32xf32>
    %19 = arith.mulf %9, %18 : vector<128x32xf32>
    %20 = vector.broadcast %2 : vector<1x32xf32> to vector<128x32xf32>
    %21 = arith.mulf %19, %20 : vector<128x32xf32>
    %22 = vector.broadcast %3 : vector<1x32xf32> to vector<128x32xf32>
    %23 = arith.addf %21, %22 : vector<128x32xf32>
    %c0_10 = arith.constant 0 : index
    %c0_11 = arith.constant 0 : index
    %24 = vector.load %arg7[%c0_10, %c0_11] : memref<32x32xf32, #tpu.memory_space<vmem>>, vector<32x32xf32>
    %cst_12 = arith.constant dense<0.000000e+00> : vector<128x32xf32>
    %25 = tpu.matmul %23, %24, %cst_12 {dimension_numbers = #tpu.dot_dimension_numbers<[1], [0], [0], [1], [0, 0, 1, 1], [], []>} : vector<128x32xf32>, vector<32x32xf32>, vector<128x32xf32> -> vector<128x32xf32>
    %cst_13 = arith.constant 0.000000e+00 : f32
    %26 = vector.broadcast %cst_13 : f32 to vector<128x32xf32>
    %27 = arith.maximumf %25, %26 : vector<128x32xf32>
    %28 = tpu.iota {dimensions = array<i32: 0>} : vector<96x1xi32>
    %c90_i32 = arith.constant 90 : i32
    %29 = vector.broadcast %c90_i32 : i32 to vector<96x1xi32>
    %30 = arith.cmpi slt, %28, %29 : vector<96x1xi32>
    %cst_14 = arith.constant 1.000000e+00 : f32
    %31 = vector.broadcast %cst_14 : f32 to vector<96x1xf32>
    %c0_15 = arith.constant 0 : index
    %c0_16 = arith.constant 0 : index
    %32 = vector.load %arg2[%c0_15, %c0_16] : memref<960x64xf32, #tpu.memory_space<vmem>>, vector<960x64xf32>
    %c0_17 = arith.constant 0 : index
    %c0_18 = arith.constant 0 : index
    %33 = vector.load %arg10[%c0_17, %c0_18] : memref<32x64xf32, #tpu.memory_space<vmem>>, vector<32x64xf32>
    %34 = vector.extract_strided_slice %23 {offsets = [0, 0], sizes = [64, 32], strides = [1, 1]} : vector<128x32xf32> to vector<64x32xf32>
    %cst_19 = arith.constant dense<0.000000e+00> : vector<960x32xf32>
    %35 = tpu.matmul %32, %34, %cst_19 {dimension_numbers = #tpu.dot_dimension_numbers<[1], [0], [0], [1], [0, 0, 1, 1], [], []>} : vector<960x64xf32>, vector<64x32xf32>, vector<960x32xf32> -> vector<960x32xf32>
    %36 = vector.extract_strided_slice %35 {offsets = [0, 0], sizes = [96, 32], strides = [1, 1]} : vector<960x32xf32> to vector<96x32xf32>
    %c0_20 = arith.constant 0 : index
    %c0_21 = arith.constant 0 : index
    %37 = vector.load %arg4[%c0_20, %c0_21] : memref<96x32xf32, #tpu.memory_space<vmem>>, vector<96x32xf32>
    %38 = arith.addf %36, %37 : vector<96x32xf32>
    %39 = vector.extract_strided_slice %35 {offsets = [96, 0], sizes = [96, 32], strides = [1, 1]} : vector<960x32xf32> to vector<96x32xf32>
    %c0_22 = arith.constant 0 : index
    %c0_23 = arith.constant 0 : index
    %c0_24 = arith.constant 0 : index
    %40 = vector.load %arg3[%c0_22, %c0_23, %c0_24] : memref<9x96x32xf32, #tpu.memory_space<vmem>>, vector<1x96x32xf32>
    %41 = vector.shape_cast %40 : vector<1x96x32xf32> to vector<96x32xf32>
    %42 = arith.mulf %39, %41 : vector<96x32xf32>
    %43 = arith.addf %38, %42 : vector<96x32xf32>
    %44 = vector.extract_strided_slice %35 {offsets = [192, 0], sizes = [96, 32], strides = [1, 1]} : vector<960x32xf32> to vector<96x32xf32>
    %c1 = arith.constant 1 : index
    %c0_25 = arith.constant 0 : index
    %c0_26 = arith.constant 0 : index
    %45 = vector.load %arg3[%c1, %c0_25, %c0_26] : memref<9x96x32xf32, #tpu.memory_space<vmem>>, vector<1x96x32xf32>
    %46 = vector.shape_cast %45 : vector<1x96x32xf32> to vector<96x32xf32>
    %47 = arith.mulf %44, %46 : vector<96x32xf32>
    %48 = arith.addf %43, %47 : vector<96x32xf32>
    %49 = vector.extract_strided_slice %35 {offsets = [288, 0], sizes = [96, 32], strides = [1, 1]} : vector<960x32xf32> to vector<96x32xf32>
    %c2 = arith.constant 2 : index
    %c0_27 = arith.constant 0 : index
    %c0_28 = arith.constant 0 : index
    %50 = vector.load %arg3[%c2, %c0_27, %c0_28] : memref<9x96x32xf32, #tpu.memory_space<vmem>>, vector<1x96x32xf32>
    %51 = vector.shape_cast %50 : vector<1x96x32xf32> to vector<96x32xf32>
    %52 = arith.mulf %49, %51 : vector<96x32xf32>
    %53 = arith.addf %48, %52 : vector<96x32xf32>
    %54 = vector.extract_strided_slice %35 {offsets = [384, 0], sizes = [96, 32], strides = [1, 1]} : vector<960x32xf32> to vector<96x32xf32>
    %c3 = arith.constant 3 : index
    %c0_29 = arith.constant 0 : index
    %c0_30 = arith.constant 0 : index
    %55 = vector.load %arg3[%c3, %c0_29, %c0_30] : memref<9x96x32xf32, #tpu.memory_space<vmem>>, vector<1x96x32xf32>
    %56 = vector.shape_cast %55 : vector<1x96x32xf32> to vector<96x32xf32>
    %57 = arith.mulf %54, %56 : vector<96x32xf32>
    %58 = arith.addf %53, %57 : vector<96x32xf32>
    %59 = vector.extract_strided_slice %35 {offsets = [480, 0], sizes = [96, 32], strides = [1, 1]} : vector<960x32xf32> to vector<96x32xf32>
    %c4 = arith.constant 4 : index
    %c0_31 = arith.constant 0 : index
    %c0_32 = arith.constant 0 : index
    %60 = vector.load %arg3[%c4, %c0_31, %c0_32] : memref<9x96x32xf32, #tpu.memory_space<vmem>>, vector<1x96x32xf32>
    %61 = vector.shape_cast %60 : vector<1x96x32xf32> to vector<96x32xf32>
    %62 = arith.mulf %59, %61 : vector<96x32xf32>
    %63 = arith.addf %58, %62 : vector<96x32xf32>
    %64 = vector.extract_strided_slice %35 {offsets = [576, 0], sizes = [96, 32], strides = [1, 1]} : vector<960x32xf32> to vector<96x32xf32>
    %c5 = arith.constant 5 : index
    %c0_33 = arith.constant 0 : index
    %c0_34 = arith.constant 0 : index
    %65 = vector.load %arg3[%c5, %c0_33, %c0_34] : memref<9x96x32xf32, #tpu.memory_space<vmem>>, vector<1x96x32xf32>
    %66 = vector.shape_cast %65 : vector<1x96x32xf32> to vector<96x32xf32>
    %67 = arith.mulf %64, %66 : vector<96x32xf32>
    %68 = arith.addf %63, %67 : vector<96x32xf32>
    %69 = vector.extract_strided_slice %35 {offsets = [672, 0], sizes = [96, 32], strides = [1, 1]} : vector<960x32xf32> to vector<96x32xf32>
    %c6 = arith.constant 6 : index
    %c0_35 = arith.constant 0 : index
    %c0_36 = arith.constant 0 : index
    %70 = vector.load %arg3[%c6, %c0_35, %c0_36] : memref<9x96x32xf32, #tpu.memory_space<vmem>>, vector<1x96x32xf32>
    %71 = vector.shape_cast %70 : vector<1x96x32xf32> to vector<96x32xf32>
    %72 = arith.mulf %69, %71 : vector<96x32xf32>
    %73 = arith.addf %68, %72 : vector<96x32xf32>
    %74 = vector.extract_strided_slice %35 {offsets = [768, 0], sizes = [96, 32], strides = [1, 1]} : vector<960x32xf32> to vector<96x32xf32>
    %c7 = arith.constant 7 : index
    %c0_37 = arith.constant 0 : index
    %c0_38 = arith.constant 0 : index
    %75 = vector.load %arg3[%c7, %c0_37, %c0_38] : memref<9x96x32xf32, #tpu.memory_space<vmem>>, vector<1x96x32xf32>
    %76 = vector.shape_cast %75 : vector<1x96x32xf32> to vector<96x32xf32>
    %77 = arith.mulf %74, %76 : vector<96x32xf32>
    %78 = arith.addf %73, %77 : vector<96x32xf32>
    %79 = vector.extract_strided_slice %35 {offsets = [864, 0], sizes = [96, 32], strides = [1, 1]} : vector<960x32xf32> to vector<96x32xf32>
    %c8 = arith.constant 8 : index
    %c0_39 = arith.constant 0 : index
    %c0_40 = arith.constant 0 : index
    %80 = vector.load %arg3[%c8, %c0_39, %c0_40] : memref<9x96x32xf32, #tpu.memory_space<vmem>>, vector<1x96x32xf32>
    %81 = vector.shape_cast %80 : vector<1x96x32xf32> to vector<96x32xf32>
    %82 = arith.mulf %79, %81 : vector<96x32xf32>
    %83 = arith.addf %78, %82 : vector<96x32xf32>
    %c0_41 = arith.constant 0 : index
    %c0_42 = arith.constant 0 : index
    %84 = vector.load %arg8[%c0_41, %c0_42] : memref<1x32xf32, #tpu.memory_space<vmem>>, vector<1x32xf32>
    %c0_43 = arith.constant 0 : index
    %c0_44 = arith.constant 0 : index
    %85 = vector.load %arg9[%c0_43, %c0_44] : memref<1x32xf32, #tpu.memory_space<vmem>>, vector<1x32xf32>
    %cst_45 = arith.constant dense<0.000000e+00> : vector<96xf32>
    %86 = vector.multi_reduction <add>, %83, %cst_45 [1] : vector<96x32xf32> to vector<96xf32>
    %87 = vector.shape_cast %86 : vector<96xf32> to vector<96x1xf32>
    %cst_46 = arith.constant 3.200000e+01 : f32
    %88 = vector.broadcast %cst_46 : f32 to vector<96x1xf32>
    %89 = arith.divf %87, %88 : vector<96x1xf32>
    %90 = vector.broadcast %89 : vector<96x1xf32> to vector<96x32xf32>
    %91 = arith.subf %83, %90 : vector<96x32xf32>
    %92 = arith.mulf %91, %91 : vector<96x32xf32>
    %cst_47 = arith.constant dense<0.000000e+00> : vector<96xf32>
    %93 = vector.multi_reduction <add>, %92, %cst_47 [1] : vector<96x32xf32> to vector<96xf32>
    %94 = vector.shape_cast %93 : vector<96xf32> to vector<96x1xf32>
    %cst_48 = arith.constant 3.200000e+01 : f32
    %95 = vector.broadcast %cst_48 : f32 to vector<96x1xf32>
    %96 = arith.divf %94, %95 : vector<96x1xf32>
    %cst_49 = arith.constant 9.99999974E-6 : f32
    %97 = vector.broadcast %cst_49 : f32 to vector<96x1xf32>
    %98 = arith.addf %96, %97 : vector<96x1xf32>
    %99 = math.rsqrt %98 : vector<96x1xf32>
    %100 = vector.broadcast %99 : vector<96x1xf32> to vector<96x32xf32>
    %101 = arith.mulf %91, %100 : vector<96x32xf32>
    %102 = vector.broadcast %84 : vector<1x32xf32> to vector<96x32xf32>
    %103 = arith.mulf %101, %102 : vector<96x32xf32>
    %104 = vector.broadcast %85 : vector<1x32xf32> to vector<96x32xf32>
    %105 = arith.addf %103, %104 : vector<96x32xf32>
    %cst_50 = arith.constant 0.000000e+00 : f32
    %106 = vector.shape_cast %30 : vector<96x1xi1> to vector<96x1xi1>
    %107 = vector.broadcast %106 : vector<96x1xi1> to vector<96x32xi1>
    %108 = vector.broadcast %cst_50 : f32 to vector<96x32xf32>
    %109 = arith.select %107, %105, %108 : vector<96x32xi1>, vector<96x32xf32>
    %cst_51 = arith.constant dense<0.000000e+00> : vector<96x64xf32>
    %110 = tpu.matmul %109, %33, %cst_51 {dimension_numbers = #tpu.dot_dimension_numbers<[1], [0], [0], [1], [0, 0, 1, 1], [], []>} : vector<96x32xf32>, vector<32x64xf32>, vector<96x64xf32> -> vector<96x64xf32>
    %111 = vector.extract_strided_slice %110 {offsets = [0, 0], sizes = [96, 32], strides = [1, 1]} : vector<96x64xf32> to vector<96x32xf32>
    %cst_52 = arith.constant 0.000000e+00 : f32
    %112 = vector.broadcast %cst_52 : f32 to vector<96x32xf32>
    %113 = arith.maximumf %111, %112 : vector<96x32xf32>
    %114 = vector.extract_strided_slice %110 {offsets = [0, 32], sizes = [96, 32], strides = [1, 1]} : vector<96x64xf32> to vector<96x32xf32>
    %115 = vector.extract_strided_slice %27 {offsets = [0, 0], sizes = [64, 32], strides = [1, 1]} : vector<128x32xf32> to vector<64x32xf32>
    %116 = vector.extract_strided_slice %113 {offsets = [0, 0], sizes = [96, 16], strides = [1, 1]} : vector<96x32xf32> to vector<96x16xf32>
    %117 = vector.extract_strided_slice %114 {offsets = [0, 0], sizes = [96, 16], strides = [1, 1]} : vector<96x32xf32> to vector<96x16xf32>
    %118 = tpu.concatenate %117, %31 in 1 : vector<96x16xf32>, vector<96x1xf32> -> vector<96x17xf32>
    %cst_53 = arith.constant dense<0.000000e+00> : vector<16x17xf32>
    %119 = tpu.matmul %116, %118, %cst_53 {dimension_numbers = #tpu.dot_dimension_numbers<[0], [0], [1], [1], [0, 1, 1, 1], [], []>} : vector<96x16xf32>, vector<96x17xf32>, vector<16x17xf32> -> vector<16x17xf32>
    %120 = vector.extract_strided_slice %115 {offsets = [0, 0], sizes = [64, 16], strides = [1, 1]} : vector<64x32xf32> to vector<64x16xf32>
    %cst_54 = arith.constant dense<0.000000e+00> : vector<64x17xf32>
    %121 = tpu.matmul %120, %119, %cst_54 {dimension_numbers = #tpu.dot_dimension_numbers<[1], [0], [0], [1], [0, 0, 1, 1], [], []>} : vector<64x16xf32>, vector<16x17xf32>, vector<64x17xf32> -> vector<64x17xf32>
    %122 = vector.extract_strided_slice %121 {offsets = [0, 0], sizes = [64, 16], strides = [1, 1]} : vector<64x17xf32> to vector<64x16xf32>
    %123 = vector.extract_strided_slice %121 {offsets = [0, 16], sizes = [64, 1], strides = [1, 1]} : vector<64x17xf32> to vector<64x1xf32>
    %cst_55 = arith.constant 1.000000e-15 : f32
    %124 = vector.broadcast %cst_55 : f32 to vector<64x1xf32>
    %125 = arith.addf %123, %124 : vector<64x1xf32>
    %126 = vector.broadcast %125 : vector<64x1xf32> to vector<64x16xf32>
    %127 = arith.divf %122, %126 : vector<64x16xf32>
    %128 = vector.extract_strided_slice %113 {offsets = [0, 16], sizes = [96, 16], strides = [1, 1]} : vector<96x32xf32> to vector<96x16xf32>
    %129 = vector.extract_strided_slice %114 {offsets = [0, 16], sizes = [96, 16], strides = [1, 1]} : vector<96x32xf32> to vector<96x16xf32>
    %130 = tpu.concatenate %129, %31 in 1 : vector<96x16xf32>, vector<96x1xf32> -> vector<96x17xf32>
    %cst_56 = arith.constant dense<0.000000e+00> : vector<16x17xf32>
    %131 = tpu.matmul %128, %130, %cst_56 {dimension_numbers = #tpu.dot_dimension_numbers<[0], [0], [1], [1], [0, 1, 1, 1], [], []>} : vector<96x16xf32>, vector<96x17xf32>, vector<16x17xf32> -> vector<16x17xf32>
    %132 = vector.extract_strided_slice %115 {offsets = [0, 16], sizes = [64, 16], strides = [1, 1]} : vector<64x32xf32> to vector<64x16xf32>
    %cst_57 = arith.constant dense<0.000000e+00> : vector<64x17xf32>
    %133 = tpu.matmul %132, %131, %cst_57 {dimension_numbers = #tpu.dot_dimension_numbers<[1], [0], [0], [1], [0, 0, 1, 1], [], []>} : vector<64x16xf32>, vector<16x17xf32>, vector<64x17xf32> -> vector<64x17xf32>
    %134 = vector.extract_strided_slice %133 {offsets = [0, 0], sizes = [64, 16], strides = [1, 1]} : vector<64x17xf32> to vector<64x16xf32>
    %135 = vector.extract_strided_slice %133 {offsets = [0, 16], sizes = [64, 1], strides = [1, 1]} : vector<64x17xf32> to vector<64x1xf32>
    %cst_58 = arith.constant 1.000000e-15 : f32
    %136 = vector.broadcast %cst_58 : f32 to vector<64x1xf32>
    %137 = arith.addf %135, %136 : vector<64x1xf32>
    %138 = vector.broadcast %137 : vector<64x1xf32> to vector<64x16xf32>
    %139 = arith.divf %134, %138 : vector<64x16xf32>
    %140 = tpu.concatenate %127, %139 in 1 : vector<64x16xf32>, vector<64x16xf32> -> vector<64x32xf32>
    %141 = vector.extract_strided_slice %23 {offsets = [64, 0], sizes = [64, 32], strides = [1, 1]} : vector<128x32xf32> to vector<64x32xf32>
    %cst_59 = arith.constant dense<0.000000e+00> : vector<960x32xf32>
    %142 = tpu.matmul %32, %141, %cst_59 {dimension_numbers = #tpu.dot_dimension_numbers<[1], [0], [0], [1], [0, 0, 1, 1], [], []>} : vector<960x64xf32>, vector<64x32xf32>, vector<960x32xf32> -> vector<960x32xf32>
    %143 = vector.extract_strided_slice %142 {offsets = [0, 0], sizes = [96, 32], strides = [1, 1]} : vector<960x32xf32> to vector<96x32xf32>
    %c0_60 = arith.constant 0 : index
    %c0_61 = arith.constant 0 : index
    %144 = vector.load %arg4[%c0_60, %c0_61] : memref<96x32xf32, #tpu.memory_space<vmem>>, vector<96x32xf32>
    %145 = arith.addf %143, %144 : vector<96x32xf32>
    %146 = vector.extract_strided_slice %142 {offsets = [96, 0], sizes = [96, 32], strides = [1, 1]} : vector<960x32xf32> to vector<96x32xf32>
    %c0_62 = arith.constant 0 : index
    %c0_63 = arith.constant 0 : index
    %c0_64 = arith.constant 0 : index
    %147 = vector.load %arg3[%c0_62, %c0_63, %c0_64] : memref<9x96x32xf32, #tpu.memory_space<vmem>>, vector<1x96x32xf32>
    %148 = vector.shape_cast %147 : vector<1x96x32xf32> to vector<96x32xf32>
    %149 = arith.mulf %146, %148 : vector<96x32xf32>
    %150 = arith.addf %145, %149 : vector<96x32xf32>
    %151 = vector.extract_strided_slice %142 {offsets = [192, 0], sizes = [96, 32], strides = [1, 1]} : vector<960x32xf32> to vector<96x32xf32>
    %c1_65 = arith.constant 1 : index
    %c0_66 = arith.constant 0 : index
    %c0_67 = arith.constant 0 : index
    %152 = vector.load %arg3[%c1_65, %c0_66, %c0_67] : memref<9x96x32xf32, #tpu.memory_space<vmem>>, vector<1x96x32xf32>
    %153 = vector.shape_cast %152 : vector<1x96x32xf32> to vector<96x32xf32>
    %154 = arith.mulf %151, %153 : vector<96x32xf32>
    %155 = arith.addf %150, %154 : vector<96x32xf32>
    %156 = vector.extract_strided_slice %142 {offsets = [288, 0], sizes = [96, 32], strides = [1, 1]} : vector<960x32xf32> to vector<96x32xf32>
    %c2_68 = arith.constant 2 : index
    %c0_69 = arith.constant 0 : index
    %c0_70 = arith.constant 0 : index
    %157 = vector.load %arg3[%c2_68, %c0_69, %c0_70] : memref<9x96x32xf32, #tpu.memory_space<vmem>>, vector<1x96x32xf32>
    %158 = vector.shape_cast %157 : vector<1x96x32xf32> to vector<96x32xf32>
    %159 = arith.mulf %156, %158 : vector<96x32xf32>
    %160 = arith.addf %155, %159 : vector<96x32xf32>
    %161 = vector.extract_strided_slice %142 {offsets = [384, 0], sizes = [96, 32], strides = [1, 1]} : vector<960x32xf32> to vector<96x32xf32>
    %c3_71 = arith.constant 3 : index
    %c0_72 = arith.constant 0 : index
    %c0_73 = arith.constant 0 : index
    %162 = vector.load %arg3[%c3_71, %c0_72, %c0_73] : memref<9x96x32xf32, #tpu.memory_space<vmem>>, vector<1x96x32xf32>
    %163 = vector.shape_cast %162 : vector<1x96x32xf32> to vector<96x32xf32>
    %164 = arith.mulf %161, %163 : vector<96x32xf32>
    %165 = arith.addf %160, %164 : vector<96x32xf32>
    %166 = vector.extract_strided_slice %142 {offsets = [480, 0], sizes = [96, 32], strides = [1, 1]} : vector<960x32xf32> to vector<96x32xf32>
    %c4_74 = arith.constant 4 : index
    %c0_75 = arith.constant 0 : index
    %c0_76 = arith.constant 0 : index
    %167 = vector.load %arg3[%c4_74, %c0_75, %c0_76] : memref<9x96x32xf32, #tpu.memory_space<vmem>>, vector<1x96x32xf32>
    %168 = vector.shape_cast %167 : vector<1x96x32xf32> to vector<96x32xf32>
    %169 = arith.mulf %166, %168 : vector<96x32xf32>
    %170 = arith.addf %165, %169 : vector<96x32xf32>
    %171 = vector.extract_strided_slice %142 {offsets = [576, 0], sizes = [96, 32], strides = [1, 1]} : vector<960x32xf32> to vector<96x32xf32>
    %c5_77 = arith.constant 5 : index
    %c0_78 = arith.constant 0 : index
    %c0_79 = arith.constant 0 : index
    %172 = vector.load %arg3[%c5_77, %c0_78, %c0_79] : memref<9x96x32xf32, #tpu.memory_space<vmem>>, vector<1x96x32xf32>
    %173 = vector.shape_cast %172 : vector<1x96x32xf32> to vector<96x32xf32>
    %174 = arith.mulf %171, %173 : vector<96x32xf32>
    %175 = arith.addf %170, %174 : vector<96x32xf32>
    %176 = vector.extract_strided_slice %142 {offsets = [672, 0], sizes = [96, 32], strides = [1, 1]} : vector<960x32xf32> to vector<96x32xf32>
    %c6_80 = arith.constant 6 : index
    %c0_81 = arith.constant 0 : index
    %c0_82 = arith.constant 0 : index
    %177 = vector.load %arg3[%c6_80, %c0_81, %c0_82] : memref<9x96x32xf32, #tpu.memory_space<vmem>>, vector<1x96x32xf32>
    %178 = vector.shape_cast %177 : vector<1x96x32xf32> to vector<96x32xf32>
    %179 = arith.mulf %176, %178 : vector<96x32xf32>
    %180 = arith.addf %175, %179 : vector<96x32xf32>
    %181 = vector.extract_strided_slice %142 {offsets = [768, 0], sizes = [96, 32], strides = [1, 1]} : vector<960x32xf32> to vector<96x32xf32>
    %c7_83 = arith.constant 7 : index
    %c0_84 = arith.constant 0 : index
    %c0_85 = arith.constant 0 : index
    %182 = vector.load %arg3[%c7_83, %c0_84, %c0_85] : memref<9x96x32xf32, #tpu.memory_space<vmem>>, vector<1x96x32xf32>
    %183 = vector.shape_cast %182 : vector<1x96x32xf32> to vector<96x32xf32>
    %184 = arith.mulf %181, %183 : vector<96x32xf32>
    %185 = arith.addf %180, %184 : vector<96x32xf32>
    %186 = vector.extract_strided_slice %142 {offsets = [864, 0], sizes = [96, 32], strides = [1, 1]} : vector<960x32xf32> to vector<96x32xf32>
    %c8_86 = arith.constant 8 : index
    %c0_87 = arith.constant 0 : index
    %c0_88 = arith.constant 0 : index
    %187 = vector.load %arg3[%c8_86, %c0_87, %c0_88] : memref<9x96x32xf32, #tpu.memory_space<vmem>>, vector<1x96x32xf32>
    %188 = vector.shape_cast %187 : vector<1x96x32xf32> to vector<96x32xf32>
    %189 = arith.mulf %186, %188 : vector<96x32xf32>
    %190 = arith.addf %185, %189 : vector<96x32xf32>
    %c0_89 = arith.constant 0 : index
    %c0_90 = arith.constant 0 : index
    %191 = vector.load %arg8[%c0_89, %c0_90] : memref<1x32xf32, #tpu.memory_space<vmem>>, vector<1x32xf32>
    %c0_91 = arith.constant 0 : index
    %c0_92 = arith.constant 0 : index
    %192 = vector.load %arg9[%c0_91, %c0_92] : memref<1x32xf32, #tpu.memory_space<vmem>>, vector<1x32xf32>
    %cst_93 = arith.constant dense<0.000000e+00> : vector<96xf32>
    %193 = vector.multi_reduction <add>, %190, %cst_93 [1] : vector<96x32xf32> to vector<96xf32>
    %194 = vector.shape_cast %193 : vector<96xf32> to vector<96x1xf32>
    %cst_94 = arith.constant 3.200000e+01 : f32
    %195 = vector.broadcast %cst_94 : f32 to vector<96x1xf32>
    %196 = arith.divf %194, %195 : vector<96x1xf32>
    %197 = vector.broadcast %196 : vector<96x1xf32> to vector<96x32xf32>
    %198 = arith.subf %190, %197 : vector<96x32xf32>
    %199 = arith.mulf %198, %198 : vector<96x32xf32>
    %cst_95 = arith.constant dense<0.000000e+00> : vector<96xf32>
    %200 = vector.multi_reduction <add>, %199, %cst_95 [1] : vector<96x32xf32> to vector<96xf32>
    %201 = vector.shape_cast %200 : vector<96xf32> to vector<96x1xf32>
    %cst_96 = arith.constant 3.200000e+01 : f32
    %202 = vector.broadcast %cst_96 : f32 to vector<96x1xf32>
    %203 = arith.divf %201, %202 : vector<96x1xf32>
    %cst_97 = arith.constant 9.99999974E-6 : f32
    %204 = vector.broadcast %cst_97 : f32 to vector<96x1xf32>
    %205 = arith.addf %203, %204 : vector<96x1xf32>
    %206 = math.rsqrt %205 : vector<96x1xf32>
    %207 = vector.broadcast %206 : vector<96x1xf32> to vector<96x32xf32>
    %208 = arith.mulf %198, %207 : vector<96x32xf32>
    %209 = vector.broadcast %191 : vector<1x32xf32> to vector<96x32xf32>
    %210 = arith.mulf %208, %209 : vector<96x32xf32>
    %211 = vector.broadcast %192 : vector<1x32xf32> to vector<96x32xf32>
    %212 = arith.addf %210, %211 : vector<96x32xf32>
    %cst_98 = arith.constant 0.000000e+00 : f32
    %213 = vector.shape_cast %30 : vector<96x1xi1> to vector<96x1xi1>
    %214 = vector.broadcast %213 : vector<96x1xi1> to vector<96x32xi1>
    %215 = vector.broadcast %cst_98 : f32 to vector<96x32xf32>
    %216 = arith.select %214, %212, %215 : vector<96x32xi1>, vector<96x32xf32>
    %cst_99 = arith.constant dense<0.000000e+00> : vector<96x64xf32>
    %217 = tpu.matmul %216, %33, %cst_99 {dimension_numbers = #tpu.dot_dimension_numbers<[1], [0], [0], [1], [0, 0, 1, 1], [], []>} : vector<96x32xf32>, vector<32x64xf32>, vector<96x64xf32> -> vector<96x64xf32>
    %218 = vector.extract_strided_slice %217 {offsets = [0, 0], sizes = [96, 32], strides = [1, 1]} : vector<96x64xf32> to vector<96x32xf32>
    %cst_100 = arith.constant 0.000000e+00 : f32
    %219 = vector.broadcast %cst_100 : f32 to vector<96x32xf32>
    %220 = arith.maximumf %218, %219 : vector<96x32xf32>
    %221 = vector.extract_strided_slice %217 {offsets = [0, 32], sizes = [96, 32], strides = [1, 1]} : vector<96x64xf32> to vector<96x32xf32>
    %222 = vector.extract_strided_slice %27 {offsets = [64, 0], sizes = [64, 32], strides = [1, 1]} : vector<128x32xf32> to vector<64x32xf32>
    %223 = vector.extract_strided_slice %220 {offsets = [0, 0], sizes = [96, 16], strides = [1, 1]} : vector<96x32xf32> to vector<96x16xf32>
    %224 = vector.extract_strided_slice %221 {offsets = [0, 0], sizes = [96, 16], strides = [1, 1]} : vector<96x32xf32> to vector<96x16xf32>
    %225 = tpu.concatenate %224, %31 in 1 : vector<96x16xf32>, vector<96x1xf32> -> vector<96x17xf32>
    %cst_101 = arith.constant dense<0.000000e+00> : vector<16x17xf32>
    %226 = tpu.matmul %223, %225, %cst_101 {dimension_numbers = #tpu.dot_dimension_numbers<[0], [0], [1], [1], [0, 1, 1, 1], [], []>} : vector<96x16xf32>, vector<96x17xf32>, vector<16x17xf32> -> vector<16x17xf32>
    %227 = vector.extract_strided_slice %222 {offsets = [0, 0], sizes = [64, 16], strides = [1, 1]} : vector<64x32xf32> to vector<64x16xf32>
    %cst_102 = arith.constant dense<0.000000e+00> : vector<64x17xf32>
    %228 = tpu.matmul %227, %226, %cst_102 {dimension_numbers = #tpu.dot_dimension_numbers<[1], [0], [0], [1], [0, 0, 1, 1], [], []>} : vector<64x16xf32>, vector<16x17xf32>, vector<64x17xf32> -> vector<64x17xf32>
    %229 = vector.extract_strided_slice %228 {offsets = [0, 0], sizes = [64, 16], strides = [1, 1]} : vector<64x17xf32> to vector<64x16xf32>
    %230 = vector.extract_strided_slice %228 {offsets = [0, 16], sizes = [64, 1], strides = [1, 1]} : vector<64x17xf32> to vector<64x1xf32>
    %cst_103 = arith.constant 1.000000e-15 : f32
    %231 = vector.broadcast %cst_103 : f32 to vector<64x1xf32>
    %232 = arith.addf %230, %231 : vector<64x1xf32>
    %233 = vector.broadcast %232 : vector<64x1xf32> to vector<64x16xf32>
    %234 = arith.divf %229, %233 : vector<64x16xf32>
    %235 = vector.extract_strided_slice %220 {offsets = [0, 16], sizes = [96, 16], strides = [1, 1]} : vector<96x32xf32> to vector<96x16xf32>
    %236 = vector.extract_strided_slice %221 {offsets = [0, 16], sizes = [96, 16], strides = [1, 1]} : vector<96x32xf32> to vector<96x16xf32>
    %237 = tpu.concatenate %236, %31 in 1 : vector<96x16xf32>, vector<96x1xf32> -> vector<96x17xf32>
    %cst_104 = arith.constant dense<0.000000e+00> : vector<16x17xf32>
    %238 = tpu.matmul %235, %237, %cst_104 {dimension_numbers = #tpu.dot_dimension_numbers<[0], [0], [1], [1], [0, 1, 1, 1], [], []>} : vector<96x16xf32>, vector<96x17xf32>, vector<16x17xf32> -> vector<16x17xf32>
    %239 = vector.extract_strided_slice %222 {offsets = [0, 16], sizes = [64, 16], strides = [1, 1]} : vector<64x32xf32> to vector<64x16xf32>
    %cst_105 = arith.constant dense<0.000000e+00> : vector<64x17xf32>
    %240 = tpu.matmul %239, %238, %cst_105 {dimension_numbers = #tpu.dot_dimension_numbers<[1], [0], [0], [1], [0, 0, 1, 1], [], []>} : vector<64x16xf32>, vector<16x17xf32>, vector<64x17xf32> -> vector<64x17xf32>
    %241 = vector.extract_strided_slice %240 {offsets = [0, 0], sizes = [64, 16], strides = [1, 1]} : vector<64x17xf32> to vector<64x16xf32>
    %242 = vector.extract_strided_slice %240 {offsets = [0, 16], sizes = [64, 1], strides = [1, 1]} : vector<64x17xf32> to vector<64x1xf32>
    %cst_106 = arith.constant 1.000000e-15 : f32
    %243 = vector.broadcast %cst_106 : f32 to vector<64x1xf32>
    %244 = arith.addf %242, %243 : vector<64x1xf32>
    %245 = vector.broadcast %244 : vector<64x1xf32> to vector<64x16xf32>
    %246 = arith.divf %241, %245 : vector<64x16xf32>
    %247 = tpu.concatenate %234, %246 in 1 : vector<64x16xf32>, vector<64x16xf32> -> vector<64x32xf32>
    %248 = tpu.concatenate %140, %247 in 0 : vector<64x32xf32>, vector<64x32xf32> -> vector<128x32xf32>
    %c0_107 = arith.constant 0 : index
    %c0_108 = arith.constant 0 : index
    %249 = vector.load %arg11[%c0_107, %c0_108] : memref<32x32xf32, #tpu.memory_space<vmem>>, vector<32x32xf32>
    %cst_109 = arith.constant dense<0.000000e+00> : vector<128x32xf32>
    %250 = tpu.matmul %248, %249, %cst_109 {dimension_numbers = #tpu.dot_dimension_numbers<[1], [0], [0], [1], [0, 0, 1, 1], [], []>} : vector<128x32xf32>, vector<32x32xf32>, vector<128x32xf32> -> vector<128x32xf32>
    %251 = arith.addf %1, %250 : vector<128x32xf32>
    %c0_110 = arith.constant 0 : index
    %c0_111 = arith.constant 0 : index
    %252 = vector.load %arg12[%c0_110, %c0_111] : memref<1x32xf32, #tpu.memory_space<vmem>>, vector<1x32xf32>
    %253 = vector.broadcast %252 : vector<1x32xf32> to vector<128x32xf32>
    %254 = arith.addf %251, %253 : vector<128x32xf32>
    %c0_112 = arith.constant 0 : index
    %c0_113 = arith.constant 0 : index
    %255 = vector.load %arg13[%c0_112, %c0_113] : memref<1x32xf32, #tpu.memory_space<vmem>>, vector<1x32xf32>
    %c0_114 = arith.constant 0 : index
    %c0_115 = arith.constant 0 : index
    %256 = vector.load %arg14[%c0_114, %c0_115] : memref<1x32xf32, #tpu.memory_space<vmem>>, vector<1x32xf32>
    %cst_116 = arith.constant dense<0.000000e+00> : vector<128xf32>
    %257 = vector.multi_reduction <add>, %254, %cst_116 [1] : vector<128x32xf32> to vector<128xf32>
    %258 = vector.shape_cast %257 : vector<128xf32> to vector<128x1xf32>
    %cst_117 = arith.constant 3.200000e+01 : f32
    %259 = vector.broadcast %cst_117 : f32 to vector<128x1xf32>
    %260 = arith.divf %258, %259 : vector<128x1xf32>
    %261 = vector.broadcast %260 : vector<128x1xf32> to vector<128x32xf32>
    %262 = arith.subf %254, %261 : vector<128x32xf32>
    %263 = arith.mulf %262, %262 : vector<128x32xf32>
    %cst_118 = arith.constant dense<0.000000e+00> : vector<128xf32>
    %264 = vector.multi_reduction <add>, %263, %cst_118 [1] : vector<128x32xf32> to vector<128xf32>
    %265 = vector.shape_cast %264 : vector<128xf32> to vector<128x1xf32>
    %cst_119 = arith.constant 3.200000e+01 : f32
    %266 = vector.broadcast %cst_119 : f32 to vector<128x1xf32>
    %267 = arith.divf %265, %266 : vector<128x1xf32>
    %cst_120 = arith.constant 9.99999974E-6 : f32
    %268 = vector.broadcast %cst_120 : f32 to vector<128x1xf32>
    %269 = arith.addf %267, %268 : vector<128x1xf32>
    %270 = math.rsqrt %269 : vector<128x1xf32>
    %271 = vector.broadcast %270 : vector<128x1xf32> to vector<128x32xf32>
    %272 = arith.mulf %262, %271 : vector<128x32xf32>
    %273 = vector.broadcast %255 : vector<1x32xf32> to vector<128x32xf32>
    %274 = arith.mulf %272, %273 : vector<128x32xf32>
    %275 = vector.broadcast %256 : vector<1x32xf32> to vector<128x32xf32>
    %276 = arith.addf %274, %275 : vector<128x32xf32>
    %c0_121 = arith.constant 0 : index
    %c0_122 = arith.constant 0 : index
    %277 = vector.load %arg15[%c0_121, %c0_122] : memref<32x128xf32, #tpu.memory_space<vmem>>, vector<32x128xf32>
    %cst_123 = arith.constant dense<0.000000e+00> : vector<128x128xf32>
    %278 = tpu.matmul %276, %277, %cst_123 {dimension_numbers = #tpu.dot_dimension_numbers<[1], [0], [0], [1], [0, 0, 1, 1], [], []>} : vector<128x32xf32>, vector<32x128xf32>, vector<128x128xf32> -> vector<128x128xf32>
    %c0_124 = arith.constant 0 : index
    %c0_125 = arith.constant 0 : index
    %279 = vector.load %arg16[%c0_124, %c0_125] : memref<1x128xf32, #tpu.memory_space<vmem>>, vector<1x128xf32>
    %280 = vector.broadcast %279 : vector<1x128xf32> to vector<128x128xf32>
    %281 = arith.addf %278, %280 : vector<128x128xf32>
    %cst_126 = arith.constant 5.000000e-01 : f32
    %282 = vector.broadcast %cst_126 : f32 to vector<128x128xf32>
    %283 = arith.mulf %282, %281 : vector<128x128xf32>
    %cst_127 = arith.constant 0.707106769 : f32
    %284 = vector.broadcast %cst_127 : f32 to vector<128x128xf32>
    %285 = arith.mulf %281, %284 : vector<128x128xf32>
    %cst_128 = arith.constant 0.000000e+00 : f32
    %286 = vector.broadcast %cst_128 : f32 to vector<128x128xf32>
    %287 = arith.cmpf oge, %285, %286 : vector<128x128xf32>
    %cst_129 = arith.constant 1.000000e+00 : f32
    %cst_130 = arith.constant -1.000000e+00 : f32
    %288 = vector.broadcast %cst_129 : f32 to vector<128x128xf32>
    %289 = vector.broadcast %cst_130 : f32 to vector<128x128xf32>
    %290 = arith.select %287, %288, %289 : vector<128x128xi1>, vector<128x128xf32>
    %291 = math.absf %285 : vector<128x128xf32>
    %cst_131 = arith.constant 0.327591091 : f32
    %292 = vector.broadcast %cst_131 : f32 to vector<128x128xf32>
    %293 = arith.mulf %292, %291 : vector<128x128xf32>
    %cst_132 = arith.constant 1.000000e+00 : f32
    %294 = vector.broadcast %cst_132 : f32 to vector<128x128xf32>
    %295 = arith.addf %294, %293 : vector<128x128xf32>
    %cst_133 = arith.constant 1.000000e+00 : f32
    %296 = vector.broadcast %cst_133 : f32 to vector<128x128xf32>
    %297 = arith.divf %296, %295 : vector<128x128xf32>
    %cst_134 = arith.constant 1.06140542 : f32
    %298 = vector.broadcast %cst_134 : f32 to vector<128x128xf32>
    %299 = arith.mulf %298, %297 : vector<128x128xf32>
    %cst_135 = arith.constant -1.45315206 : f32
    %300 = vector.broadcast %cst_135 : f32 to vector<128x128xf32>
    %301 = arith.addf %299, %300 : vector<128x128xf32>
    %302 = arith.mulf %301, %297 : vector<128x128xf32>
    %cst_136 = arith.constant 1.42141378 : f32
    %303 = vector.broadcast %cst_136 : f32 to vector<128x128xf32>
    %304 = arith.addf %302, %303 : vector<128x128xf32>
    %305 = arith.mulf %304, %297 : vector<128x128xf32>
    %cst_137 = arith.constant -0.284496725 : f32
    %306 = vector.broadcast %cst_137 : f32 to vector<128x128xf32>
    %307 = arith.addf %305, %306 : vector<128x128xf32>
    %308 = arith.mulf %307, %297 : vector<128x128xf32>
    %cst_138 = arith.constant 0.254829586 : f32
    %309 = vector.broadcast %cst_138 : f32 to vector<128x128xf32>
    %310 = arith.addf %308, %309 : vector<128x128xf32>
    %311 = arith.mulf %310, %297 : vector<128x128xf32>
    %cst_139 = arith.constant 0.000000e+00 : f32
    %312 = vector.broadcast %cst_139 : f32 to vector<128x128xf32>
    %313 = arith.subf %312, %291 : vector<128x128xf32>
    %314 = arith.mulf %313, %291 : vector<128x128xf32>
    %315 = math.exp %314 : vector<128x128xf32>
    %316 = arith.mulf %311, %315 : vector<128x128xf32>
    %cst_140 = arith.constant 1.000000e+00 : f32
    %317 = vector.broadcast %cst_140 : f32 to vector<128x128xf32>
    %318 = arith.subf %317, %316 : vector<128x128xf32>
    %319 = arith.mulf %290, %318 : vector<128x128xf32>
    %cst_141 = arith.constant 1.000000e+00 : f32
    %320 = vector.broadcast %cst_141 : f32 to vector<128x128xf32>
    %321 = arith.addf %320, %319 : vector<128x128xf32>
    %322 = arith.mulf %283, %321 : vector<128x128xf32>
    %c0_142 = arith.constant 0 : index
    %c0_143 = arith.constant 0 : index
    %323 = vector.load %arg17[%c0_142, %c0_143] : memref<128x32xf32, #tpu.memory_space<vmem>>, vector<128x32xf32>
    %cst_144 = arith.constant dense<0.000000e+00> : vector<128x32xf32>
    %324 = tpu.matmul %322, %323, %cst_144 {dimension_numbers = #tpu.dot_dimension_numbers<[1], [0], [0], [1], [0, 0, 1, 1], [], []>} : vector<128x128xf32>, vector<128x32xf32>, vector<128x32xf32> -> vector<128x32xf32>
    %325 = arith.addf %254, %324 : vector<128x32xf32>
    %c0_145 = arith.constant 0 : index
    %c0_146 = arith.constant 0 : index
    %326 = vector.load %arg18[%c0_145, %c0_146] : memref<1x32xf32, #tpu.memory_space<vmem>>, vector<1x32xf32>
    %327 = vector.broadcast %326 : vector<1x32xf32> to vector<128x32xf32>
    %328 = arith.addf %325, %327 : vector<128x32xf32>
    %329 = vector.shape_cast %328 : vector<128x32xf32> to vector<2x64x32xf32>
    %c0_147 = arith.constant 0 : index
    %c0_148 = arith.constant 0 : index
    %c0_149 = arith.constant 0 : index
    %330 = vector.load %arg19[%c0_147, %c0_148, %c0_149] : memref<2x64x32xf32, #tpu.memory_space<vmem>>, vector<2x64x32xf32>
    tpu.vector_store %arg19[%c0_147, %c0_148, %c0_149], %329 {strides = array<i32>} : memref<2x64x32xf32, #tpu.memory_space<vmem>>, vector<2x64x32xf32>,
    return
  }
  func.func @transform_0(%arg0: i32) -> (i32, i32, i32) {
    %c0_i32 = arith.constant 0 : i32
    %c0_i32_0 = arith.constant 0 : i32
    %c0_i32_1 = arith.constant 0 : i32
    return %arg0, %c0_i32, %c0_i32_0 : i32, i32, i32
  }
  func.func @transform_1(%arg0: i32) -> (i32, i32) {
    %c0_i32 = arith.constant 0 : i32
    %c0_i32_0 = arith.constant 0 : i32
    %c0_i32_1 = arith.constant 0 : i32
    return %c0_i32, %c0_i32_0 : i32, i32
  }
  func.func @transform_2(%arg0: i32) -> (i32, i32, i32) {
    %c0_i32 = arith.constant 0 : i32
    %c0_i32_0 = arith.constant 0 : i32
    %c0_i32_1 = arith.constant 0 : i32
    %c0_i32_2 = arith.constant 0 : i32
    return %c0_i32, %c0_i32_0, %c0_i32_1 : i32, i32, i32
  }
  func.func @transform_3(%arg0: i32) -> (i32, i32) {
    %c0_i32 = arith.constant 0 : i32
    %c0_i32_0 = arith.constant 0 : i32
    %c0_i32_1 = arith.constant 0 : i32
    return %c0_i32, %c0_i32_0 : i32, i32
  }
  func.func @transform_4(%arg0: i32) -> (i32, i32) {
    %c0_i32 = arith.constant 0 : i32
    %c0_i32_0 = arith.constant 0 : i32
    %c0_i32_1 = arith.constant 0 : i32
    return %c0_i32, %c0_i32_0 : i32, i32
  }
  func.func @transform_5(%arg0: i32) -> (i32, i32) {
    %c0_i32 = arith.constant 0 : i32
    %c0_i32_0 = arith.constant 0 : i32
    %c0_i32_1 = arith.constant 0 : i32
    return %c0_i32, %c0_i32_0 : i32, i32
  }
  func.func @transform_6(%arg0: i32) -> (i32, i32) {
    %c0_i32 = arith.constant 0 : i32
    %c0_i32_0 = arith.constant 0 : i32
    %c0_i32_1 = arith.constant 0 : i32
    return %c0_i32, %c0_i32_0 : i32, i32
  }
  func.func @transform_7(%arg0: i32) -> (i32, i32) {
    %c0_i32 = arith.constant 0 : i32
    %c0_i32_0 = arith.constant 0 : i32
    %c0_i32_1 = arith.constant 0 : i32
    return %c0_i32, %c0_i32_0 : i32, i32
  }
  func.func @transform_8(%arg0: i32) -> (i32, i32) {
    %c0_i32 = arith.constant 0 : i32
    %c0_i32_0 = arith.constant 0 : i32
    %c0_i32_1 = arith.constant 0 : i32
    return %c0_i32, %c0_i32_0 : i32, i32
  }
  func.func @transform_9(%arg0: i32) -> (i32, i32) {
    %c0_i32 = arith.constant 0 : i32
    %c0_i32_0 = arith.constant 0 : i32
    %c0_i32_1 = arith.constant 0 : i32
    return %c0_i32, %c0_i32_0 : i32, i32
  }
  func.func @transform_10(%arg0: i32) -> (i32, i32) {
    %c0_i32 = arith.constant 0 : i32
    %c0_i32_0 = arith.constant 0 : i32
    %c0_i32_1 = arith.constant 0 : i32
    return %c0_i32, %c0_i32_0 : i32, i32
  }
  func.func @transform_11(%arg0: i32) -> (i32, i32) {
    %c0_i32 = arith.constant 0 : i32
    %c0_i32_0 = arith.constant 0 : i32
    %c0_i32_1 = arith.constant 0 : i32
    return %c0_i32, %c0_i32_0 : i32, i32
  }
  func.func @transform_12(%arg0: i32) -> (i32, i32) {
    %c0_i32 = arith.constant 0 : i32
    %c0_i32_0 = arith.constant 0 : i32
    %c0_i32_1 = arith.constant 0 : i32
    return %c0_i32, %c0_i32_0 : i32, i32
  }
  func.func @transform_13(%arg0: i32) -> (i32, i32) {
    %c0_i32 = arith.constant 0 : i32
    %c0_i32_0 = arith.constant 0 : i32
    %c0_i32_1 = arith.constant 0 : i32
    return %c0_i32, %c0_i32_0 : i32, i32
  }
  func.func @transform_14(%arg0: i32) -> (i32, i32) {
    %c0_i32 = arith.constant 0 : i32
    %c0_i32_0 = arith.constant 0 : i32
    %c0_i32_1 = arith.constant 0 : i32
    return %c0_i32, %c0_i32_0 : i32, i32
  }
  func.func @transform_15(%arg0: i32) -> (i32, i32) {
    %c0_i32 = arith.constant 0 : i32
    %c0_i32_0 = arith.constant 0 : i32
    %c0_i32_1 = arith.constant 0 : i32
    return %c0_i32, %c0_i32_0 : i32, i32
  }
  func.func @transform_16(%arg0: i32) -> (i32, i32) {
    %c0_i32 = arith.constant 0 : i32
    %c0_i32_0 = arith.constant 0 : i32
    %c0_i32_1 = arith.constant 0 : i32
    return %c0_i32, %c0_i32_0 : i32, i32
  }
  func.func @transform_17(%arg0: i32) -> (i32, i32) {
    %c0_i32 = arith.constant 0 : i32
    %c0_i32_0 = arith.constant 0 : i32
    %c0_i32_1 = arith.constant 0 : i32
    return %c0_i32, %c0_i32_0 : i32, i32
  }
  func.func @transform_18(%arg0: i32) -> (i32, i32, i32) {
    %c0_i32 = arith.constant 0 : i32
    %c0_i32_0 = arith.constant 0 : i32
    %c0_i32_1 = arith.constant 0 : i32
    return %arg0, %c0_i32, %c0_i32_0 : i32, i32, i32
  }
}

</mosaic_0001>

<bundles_post_ra>
// kernel: tpu_custom_call.1
= control target key start
LH: loop header
LB: loop body
LE: loop exit
PB: predicated region body
PF: predicated region fallthrough
CT: control target
= control target key end

     0   :  { %vm77_vm0 = vcmask 261120   ;;  %vm693_vm1 = vcmask 523264   ;;  %s9286_s21 = smov 96   ;;  %s9287_s22 = smov 112   ;;  %vm2526_vm3 = vcmask 130048   ;;  %vm2571_vm4 = vcmask 785408   ;;  %s12954_s0 = inlined_call_operand.vmem [shape: f32[2,64,32], index: 0, kind: input, shape index: {}]   ;;  %s12955_s6 = inlined_call_operand.vmem [shape: f32[32,32], index: 6, kind: input, shape index: {}]   ;;  %s12956_s1 = inlined_call_operand.vmem [shape: f32[960,64], index: 1, kind: input, shape index: {}]   ;;  %s12957_s4 = inlined_call_operand.vmem [shape: f32[1,32], index: 4, kind: input, shape index: {}]   ;;  %s12958_s5 = inlined_call_operand.vmem [shape: f32[1,32], index: 5, kind: input, shape index: {}]   ;;  %s12959_s3 = inlined_call_operand.vmem [shape: f32[96,32], index: 3, kind: input, shape index: {}]   ;;  %s12960_s2 = inlined_call_operand.vmem [shape: f32[9,96,32], index: 2, kind: input, shape index: {}]   ;;  %s12961_s9 = inlined_call_operand.vmem [shape: f32[32,64], index: 9, kind: input, shape index: {}]   ;;  %s12962_s7 = inlined_call_operand.vmem [shape: f32[1,32], index: 7, kind: input, shape index: {}]   ;;  %s12963_s8 = inlined_call_operand.vmem [shape: f32[1,32], index: 8, kind: input, shape index: {}]   ;;  %s12964_s10 = inlined_call_operand.vmem [shape: f32[32,32], index: 10, kind: input, shape index: {}]   ;;  %s12965_s11 = inlined_call_operand.vmem [shape: f32[1,32], index: 11, kind: input, shape index: {}]   ;;  %s12966_s14 = inlined_call_operand.vmem [shape: f32[32,128], index: 14, kind: input, shape index: {}]   ;;  %s12967_s12 = inlined_call_operand.vmem [shape: f32[1,32], index: 12, kind: input, shape index: {}]   ;;  %s12968_s13 = inlined_call_operand.vmem [shape: f32[1,32], index: 13, kind: input, shape index: {}]   ;;  %s12969_s16 = inlined_call_operand.vmem [shape: f32[128,32], index: 16, kind: input, shape index: {}]   ;;  %s12970_s15 = inlined_call_operand.vmem [shape: f32[1,128], index: 15, kind: input, shape index: {}]   ;;  %s12971_s17 = inlined_call_operand.vmem [shape: f32[1,32], index: 17, kind: input, shape index: {}]   ;;  %s12972_s18 = inlined_call_operand.vmem [shape: f32[2,64,32], index: 18, kind: output, shape index: {}]  }
   0x1   :  { %12979 = sst [smem:[#allocation3_spill]] %s12954_s0  ;;  %s9290_s25 = smov 16  }
   0x2   :  { %12980 = sst [smem:[#allocation4_spill]] %s12955_s6  ;;  %s12982_s29 = sld [smem:[#allocation3_spill]] }
   0x3   :  { %12981 = sst [smem:[#allocation5_spill]] %s12956_s1  ;;  %s12983_s19 = sld [smem:[#allocation4_spill]] }
   0x4   :  { %s12984_s26 = sld [smem:[#allocation5_spill]]  ;;  %s9288_s1 = smov 80  }
   0x8   :  { %v59_v0 = vld [vmem:[%s12982_s29] sm:$0xff]  ;;  %v61_v1 = vld [vmem:[%s12982_s29 + $0x10] sm:$0xff]  ;;  %v60_v2 = vld [vmem:[%s12982_s29 + $0x8] sm:$0xff] }
   0x9   :  { %v78_v3 = vsel %vm77_vm0, %v59_v0, 0.0  ;;  %v84_v4 = vsel %vm77_vm0, %v61_v1, 0.0  ;;  %v62_v5 = vld [vmem:[%s12982_s29 + $0x18] sm:$0xff]  ;;  %v81_v6 = vsel %vm77_vm0, %v60_v2, 0.0  ;;  %v63_v8 = vld [vmem:[%s12982_s29 + $0x20] sm:$0xff]  ;;  %v64_v9 = vld [vmem:[%s12982_s29 + $0x28] sm:$0xff] }
   0xa   :  { %79 = vadd.xlane.f32.xlu0 %v78_v3  ;;  %85 = vadd.xlane.f32.xlu1 %v84_v4  ;;  %v87_v7 = vsel %vm77_vm0, %v62_v5, 0.0  ;;  %v90_v10 = vsel %vm77_vm0, %v63_v8, 0.0  ;;  %v93_v11 = vsel %vm77_vm0, %v64_v9, 0.0  ;;  %v65_v12 = vld [vmem:[%s12982_s29 + $0x30] sm:$0xff]  ;;  %v66_v13 = vld [vmem:[%s12982_s29 + $0x38] sm:$0xff]  ;;  %v331_v56 = vld [vmem:[%s12983_s19] sm:$0xff] }
   0xb   :  { %v96_v14 = vsel %vm77_vm0, %v65_v12, 0.0  ;;  %v99_v15 = vsel %vm77_vm0, %v66_v13, 0.0  ;;  %v332_v57 = vld [vmem:[%s12983_s19 + $0x8] sm:$0xff]  ;;  %v333_v59 = vld [vmem:[%s12983_s19 + $0x10] sm:$0xff]  ;;  %v334_v60 = vld [vmem:[%s12983_s19 + $0x18] sm:$0xff] }
   0xc   :  { %v8417_v58 = vpack.c.bf16 %v332_v57, %v331_v56  ;;  %v8421_v61 = vpack.c.bf16 %v334_v60, %v333_v59  ;;  %v569_v62 = vld [vmem:[%s12984_s26] sm:$0xff] }
   0xd   :  { %7697 = vmatprep.mubr.msk.f32.mxu1 %vm693_vm1, %v569_v62  ;;  %v571_v62 = vld [vmem:[%s12984_s26 + $0x10] sm:$0xff] }
   0xe   :  { %82 = vadd.xlane.f32.xlu0 %v81_v6  ;;  %88 = vadd.xlane.f32.xlu1 %v87_v7 }
   0xf   :  { %8418 = vmatprep.subr.bf16.mxu0 %v8417_v58 }
  0x10   :  { %8420 = vmatpush3.bf16.msra.mxu0 %v8417_v58 }
  0x11   :  { %8422 = vmatprep.subr.bf16.mxu0 %v8421_v61 }
  0x12   :  { %91 = vadd.xlane.f32.xlu0 %v90_v10  ;;  %94 = vadd.xlane.f32.xlu1 %v93_v11 }
  0x14   :  { %8424 = vmatpush3.bf16.msra.mxu0 %v8421_v61 }
  0x16   :  { %97 = vadd.xlane.f32.xlu0 %v96_v14  ;;  %100 = vadd.xlane.f32.xlu1 %v99_v15 }
  0x97   :  { %v80_v16 = vpop.xlane.xlu0 %79  ;;  %v86_v17 = vpop.xlane.xlu1 %85 }
  0x98   :  { %v127_v18 = vmul.f32 0.03125, %v80_v16  ;;  %v129_v19 = vmul.f32 0.03125, %v86_v17 }
  0x9a   :  { %v9419_v20 = vsub.f32 %v59_v0, %v127_v18  ;;  %v9421_v21 = vsub.f32 %v61_v1, %v129_v19 }
  0x9b   :  { %v83_v22 = vpop.xlane.xlu0 %82  ;;  %v89_v23 = vpop.xlane.xlu1 %88 }
  0x9c   :  { %v128_v24 = vmul.f32 0.03125, %v83_v22  ;;  %v130_v25 = vmul.f32 0.03125, %v89_v23  ;;  %v159_v26 = vmul.f32 %v9419_v20, %v9419_v20  ;;  %v161_v27 = vmul.f32 %v9421_v21, %v9421_v21  ;;  %v6716_v23 = vld [vmem:[%s12957_s4] ss:$0 sm:$0xff] }
  0x9e   :  { %v9427_v28 = vsub.f32 %v60_v2, %v128_v24  ;;  %v9429_v29 = vsub.f32 %v62_v5, %v130_v25  ;;  %v175_v30 = vsel %vm77_vm0, %v159_v26, 0.0  ;;  %v181_v33 = vsel %vm77_vm0, %v161_v27, 0.0  ;;  %v6717_v27 = vld [vmem:[%s12958_s5] ss:$0 sm:$0xff] }
  0x9f   :  { %176 = vadd.xlane.f32.xlu0 %v175_v30  ;;  %v92_v31 = vpop.xlane.xlu0 %91  ;;  %v95_v32 = vpop.xlane.xlu1 %94 }
  0xa0   :  { %v131_v34 = vmul.f32 0.03125, %v92_v31  ;;  %v132_v35 = vmul.f32 0.03125, %v95_v32  ;;  %v160_v36 = vmul.f32 %v9427_v28, %v9427_v28  ;;  %v162_v37 = vmul.f32 %v9429_v29, %v9429_v29 }
  0xa2   :  { %v9437_v38 = vsub.f32 %v63_v8, %v131_v34  ;;  %v9439_v39 = vsub.f32 %v64_v9, %v132_v35  ;;  %v178_v40 = vsel %vm77_vm0, %v160_v36, 0.0  ;;  %v184_v43 = vsel %vm77_vm0, %v162_v37, 0.0 }
  0xa3   :  { %182 = vadd.xlane.f32.xlu0 %v181_v33  ;;  %179 = vadd.xlane.f32.xlu1 %v178_v40  ;;  %v98_v41 = vpop.xlane.xlu0 %97  ;;  %v101_v42 = vpop.xlane.xlu1 %100 }
  0xa4   :  { %v133_v44 = vmul.f32 0.03125, %v98_v41  ;;  %v134_v45 = vmul.f32 0.03125, %v101_v42  ;;  %v163_v46 = vmul.f32 %v9437_v38, %v9437_v38  ;;  %v164_v47 = vmul.f32 %v9439_v39, %v9439_v39 }
  0xa6   :  { %v9447_v48 = vsub.f32 %v65_v12, %v133_v44  ;;  %v9449_v49 = vsub.f32 %v66_v13, %v134_v45  ;;  %v187_v50 = vsel %vm77_vm0, %v163_v46, 0.0  ;;  %v190_v51 = vsel %vm77_vm0, %v164_v47, 0.0 }
  0xa7   :  { %185 = vadd.xlane.f32.xlu1 %v184_v43  ;;  %188 = vadd.xlane.f32.xlu0 %v187_v50 }
  0xa8   :  { %v165_v52 = vmul.f32 %v9447_v48, %v9447_v48  ;;  %v166_v53 = vmul.f32 %v9449_v49, %v9449_v49 }
  0xaa   :  { %v193_v54 = vsel %vm77_vm0, %v165_v52, 0.0  ;;  %v196_v55 = vsel %vm77_vm0, %v166_v53, 0.0 }
  0xab   :  { %191 = vadd.xlane.f32.xlu1 %v190_v51  ;;  %194 = vadd.xlane.f32.xlu0 %v193_v54 }
  0xaf   :  { %197 = vadd.xlane.f32.xlu1 %v196_v55 }
 0x12c   :  { %v177_v63 = vpop.xlane.xlu0 %176 }
 0x12d   :  { %v223_v0 = vmul.f32 0.03125, %v177_v63  ;;  %v572_v63 = vld [vmem:[%s12984_s26 + $0x18] sm:$0xff] }
 0x12f   :  { %v239_v1 = vadd.f32 1e-05, %v223_v0  ;;  %v573_v0 = vld [vmem:[%s12984_s26 + $0x20] sm:$0xff] }
 0x130   :  { %v180_v2 = vpop.xlane.xlu1 %179  ;;  %v183_v3 = vpop.xlane.xlu0 %182 }
 0x131   :  { %8778 = vrsqrt.f32 %v239_v1  ;;  %v224_v4 = vmul.f32 0.03125, %v180_v2  ;;  %v225_v5 = vmul.f32 0.03125, %v183_v3  ;;  %v574_v1 = vld [vmem:[%s12984_s26 + $0x28] sm:$0xff]  ;;  %v575_v2 = vld [vmem:[%s12984_s26 + $0x30] sm:$0xff]  ;;  %v576_v3 = vld [vmem:[%s12984_s26 + $0x38] sm:$0xff] }
 0x133   :  { %v240_v6 = vadd.f32 1e-05, %v224_v4  ;;  %v241_v7 = vadd.f32 1e-05, %v225_v5  ;;  %v577_v4 = vld [vmem:[%s12984_s26 + $0x40] sm:$0xff]  ;;  %v578_v5 = vld [vmem:[%s12984_s26 + $0x48] sm:$0xff] }
 0x134   :  { %v186_v8 = vpop.xlane.xlu1 %185  ;;  %v189_v9 = vpop.xlane.xlu0 %188 }
 0x135   :  { %8780 = vrsqrt.f32 %v240_v6  ;;  %v226_v10 = vmul.f32 0.03125, %v186_v8  ;;  %v227_v11 = vmul.f32 0.03125, %v189_v9  ;;  %v579_v6 = vld [vmem:[%s12984_s26 + $0x50] sm:$0xff]  ;;  %v581_v8 = vld [vmem:[%s12984_s26 + $0x60] sm:$0xff]  ;;  %v582_v9 = vld [vmem:[%s12984_s26 + $0x68] sm:$0xff] }
 0x136   :  { %8782 = vrsqrt.f32 %v241_v7  ;;  %v580_v7 = vld [vmem:[%s12984_s26 + $0x58] sm:$0xff] }
 0x137   :  { %v242_v12 = vadd.f32 1e-05, %v226_v10  ;;  %v243_v13 = vadd.f32 1e-05, %v227_v11  ;;  %v583_v10 = vld [vmem:[%s12984_s26 + $0x70] sm:$0xff]  ;;  %v584_v11 = vld [vmem:[%s12984_s26 + $0x78] sm:$0xff] }
 0x138   :  { %v192_v14 = vpop.xlane.xlu1 %191  ;;  %v195_v15 = vpop.xlane.xlu0 %194 }
 0x139   :  { %8784 = vrsqrt.f32 %v242_v12  ;;  %v228_v16 = vmul.f32 0.03125, %v192_v14  ;;  %v229_v17 = vmul.f32 0.03125, %v195_v15  ;;  %v585_v12 = vld [vmem:[%s12984_s26 + $0x80] sm:$0xff]  ;;  %v587_v14 = vld [vmem:[%s12984_s26 + $0x90] sm:$0xff]  ;;  %v588_v15 = vld [vmem:[%s12984_s26 + $0x98] sm:$0xff] }
 0x13a   :  { %8786 = vrsqrt.f32 %v243_v13  ;;  %v586_v13 = vld [vmem:[%s12984_s26 + $0x88] sm:$0xff] }
 0x13b   :  { %v8779_v18 = vpop.eup %8778  ;;  %v244_v19 = vadd.f32 1e-05, %v228_v16  ;;  %v245_v22 = vadd.f32 1e-05, %v229_v17  ;;  %v589_v16 = vld [vmem:[%s12984_s26 + $0xa0] sm:$0xff]  ;;  %v590_v17 = vld [vmem:[%s12984_s26 + $0xa8] sm:$0xff] }
 0x13c   :  { %v198_v24 = vpop.xlane.xlu1 %197  ;;  %v271_v25 = vmul.f32 %v8779_v18, %v9419_v20  ;;  %v591_v18 = vld [vmem:[%s12984_s26 + $0xb0] sm:$0xff] }
 0x13d   :  { %8788 = vrsqrt.f32 %v244_v19  ;;  %v230_v26 = vmul.f32 0.03125, %v198_v24  ;;  %v592_v19 = vld [vmem:[%s12984_s26 + $0xb8] sm:$0xff]  ;;  %v595_v24 = vld [vmem:[%s12984_s26 + $0xd0] sm:$0xff] }
 0x13e   :  { %8790 = vrsqrt.f32 %v245_v22  ;;  %v293_v30 = vmul.f32 %v6716_v23, %v271_v25  ;;  %v593_v22 = vld [vmem:[%s12984_s26 + $0xc0] sm:$0xff]  ;;  %v596_v25 = vld [vmem:[%s12984_s26 + $0xd8] sm:$0xff] }
 0x13f   :  { %v8781_v31 = vpop.eup %8780  ;;  %v246_v32 = vadd.f32 1e-05, %v230_v26  ;;  %v597_v26 = vld [vmem:[%s12984_s26 + $0xe0] sm:$0xff] }
 0x140   :  { %v8783_v33 = vpop.eup %8782  ;;  %v315_v34 = vadd.f32 %v6717_v27, %v293_v30  ;;  %v272_v35 = vmul.f32 %v8781_v31, %v9427_v28  ;;  %v599_v30 = vld [vmem:[%s12984_s26 + $0xf0] sm:$0xff]  ;;  %v600_v31 = vld [vmem:[%s12984_s26 + $0xf8] sm:$0xff] }
 0x141   :  { %8792 = vrsqrt.f32 %v246_v32  ;;  %v273_v36 = vmul.f32 %v8783_v33, %v9421_v21  ;;  %v601_v32 = vld [vmem:[%s12984_s26 + $0x100] sm:$0xff]  ;;  %v602_v33 = vld [vmem:[%s12984_s26 + $0x108] sm:$0xff] }
 0x142   :  { %7657 = vmatprep.mubr.msk.f32.mxu0 %vm77_vm0, %v315_v34  ;;  %v294_v20 = vmul.f32 %v6716_v23, %v272_v35  ;;  %v604_v35 = vld [vmem:[%s12984_s26 + $0x118] sm:$0xff] }
 0x143   :  { %v8785_v37 = vpop.eup %8784  ;;  %v295_v40 = vmul.f32 %v6716_v23, %v273_v36  ;;  %v605_v36 = vld [vmem:[%s12984_s26 + $0x120] sm:$0xff] }
 0x144   :  { %v8787_v41 = vpop.eup %8786  ;;  %v316_v42 = vadd.f32 %v6717_v27, %v294_v20  ;;  %v274_v43 = vmul.f32 %v8785_v37, %v9429_v29  ;;  %v606_v20 = vld [vmem:[%s12984_s26 + $0x128] sm:$0xff]  ;;  %v607_v37 = vld [vmem:[%s12984_s26 + $0x130] sm:$0xff] }
 0x145   :  { %v317_v44 = vadd.f32 %v6717_v27, %v295_v40  ;;  %v275_v45 = vmul.f32 %v8787_v41, %v9437_v38  ;;  %v608_v40 = vld [vmem:[%s12984_s26 + $0x138] sm:$0xff]  ;;  %v609_v41 = vld [vmem:[%s12984_s26 + $0x140] sm:$0xff] }
 0x146   :  { %7658 = vmatmul.mubr.msk.f32.vlgmr.msra.gmra.mrb[0].mxu0 %vm77_vm0, %v316_v42  ;;  %v8425_v46 = vpack.c.bf16 %v316_v42, %v315_v34  ;;  %v296_v47 = vmul.f32 %v6716_v23, %v274_v43  ;;  %v603_v34 = vld [vmem:[%s12984_s26 + $0x110] sm:$0xff]  ;;  %v610_v42 = vld [vmem:[%s12984_s26 + $0x148] sm:$0xff] }
 0x147   :  { %v8789_v28 = vpop.eup %8788  ;;  %7660 = vmatprep.mubr.msk.f32.mxu0 %vm77_vm0, %v317_v44  ;;  %v297_v21 = vmul.f32 %v6716_v23, %v275_v45  ;;  %v611_v43 = vld [vmem:[%s12984_s26 + $0x150] sm:$0xff]  ;;  %v613_v45 = vld [vmem:[%s12984_s26 + $0x160] sm:$0xff] }
 0x148   :  { %v8791_v50 = vpop.eup %8790  ;;  %8426 = vmatprep.subr.bf16.mxu1 %v8425_v46  ;;  %v318_v51 = vadd.f32 %v6717_v27, %v296_v47  ;;  %v276_v52 = vmul.f32 %v8789_v28, %v9439_v39  ;;  %v615_v47 = vld [vmem:[%s12984_s26 + $0x170] sm:$0xff]  ;;  %v616_v28 = vld [vmem:[%s12984_s26 + $0x178] sm:$0xff] }
 0x149   :  { %8428 = vmatpush3.bf16.msra.mxu1 %v8425_v46  ;;  %v319_v53 = vadd.f32 %v6717_v27, %v297_v21  ;;  %v277_v29 = vmul.f32 %v8791_v50, %v9447_v48  ;;  %v614_v46 = vld [vmem:[%s12984_s26 + $0x168] sm:$0xff]  ;;  %v617_v21 = vld [vmem:[%s12984_s26 + $0x180] sm:$0xff] }
 0x14a   :  { %7661 = vmatmul.mubr.msk.f32.gmra.mrb[2].mxu0 %vm77_vm0, %v318_v51  ;;  %v8429_v38 = vpack.c.bf16 %v318_v51, %v317_v44  ;;  %v298_v54 = vmul.f32 %v6716_v23, %v276_v52  ;;  %v612_v44 = vld [vmem:[%s12984_s26 + $0x158] sm:$0xff]  ;;  %v618_v50 = vld [vmem:[%s12984_s26 + $0x188] sm:$0xff]  ;;  %v619_v51 = vld [vmem:[%s12984_s26 + $0x190] sm:$0xff] }
 0x14b   :  { %v8793_v55 = vpop.eup %8792  ;;  %7663 = vmatprep.mubr.msk.f32.mxu0 %vm77_vm0, %v319_v53  ;;  %v299_v56 = vmul.f32 %v6716_v23, %v277_v29  ;;  %v620_v52 = vld [vmem:[%s12984_s26 + $0x198] sm:$0xff]  ;;  %v622_v29 = vld [vmem:[%s12984_s26 + $0x1a8] sm:$0xff] }
 0x14c   :  { %8430 = vmatprep.subr.bf16.mxu1 %v8429_v38  ;;  %v320_v57 = vadd.f32 %v6717_v27, %v298_v54  ;;  %v278_v58 = vmul.f32 %v8793_v55, %v9449_v49  ;;  %v570_v49 = vld [vmem:[%s12984_s26 + $0x8] sm:$0xff]  ;;  %v624_v54 = vld [vmem:[%s12984_s26 + $0x1b8] sm:$0xff]  ;;  %v625_v55 = vld [vmem:[%s12984_s26 + $0x1c0] sm:$0xff] }
 0x14d   :  { %8432 = vmatpush3.bf16.msra.mxu1 %v8429_v38  ;;  %v321_v59 = vadd.f32 %v6717_v27, %v299_v56  ;;  %v623_v38 = vld [vmem:[%s12984_s26 + $0x1b0] sm:$0xff]  ;;  %v626_v56 = vld [vmem:[%s12984_s26 + $0x1c8] sm:$0xff] }
 0x14e   :  { %7664 = vmatmul.mubr.msk.f32.gmra.mrb[4].mxu0 %vm77_vm0, %v320_v57  ;;  %v8433_v39 = vpack.c.bf16 %v320_v57, %v319_v53  ;;  %v300_v60 = vmul.f32 %v6716_v23, %v278_v58  ;;  %v594_v23 = vld [vmem:[%s12984_s26 + $0xc8] sm:$0xff]  ;;  %v621_v53 = vld [vmem:[%s12984_s26 + $0x1a0] sm:$0xff]  ;;  %v627_v57 = vld [vmem:[%s12984_s26 + $0x1d0] sm:$0xff] }
 0x14f   :  { %7666 = vmatprep.mubr.msk.f32.mxu0 %vm77_vm0, %v321_v59  ;;  %v628_v58 = vld [vmem:[%s12984_s26 + $0x1d8] sm:$0xff] }
 0x150   :  { %8434 = vmatprep.subr.bf16.mxu1 %v8433_v39  ;;  %v322_v48 = vadd.f32 %v6717_v27, %v300_v60  ;;  %v598_v27 = vld [vmem:[%s12984_s26 + $0xe8] sm:$0xff]  ;;  %v631_v60 = vld [vmem:[%s12984_s26 + $0x1f0] sm:$0xff] }
 0x151   :  { %8436 = vmatpush3.bf16.msra.mxu1 %v8433_v39  ;;  %v630_v39 = vld [vmem:[%s12984_s26 + $0x1e8] sm:$0xff] }
 0x152   :  { %7667 = vmatmul.mubr.msk.f32.gmra.mrb[6].mxu0 %vm77_vm0, %v322_v48  ;;  %v8437_v61 = vpack.c.bf16 %v322_v48, %v321_v59  ;;  %v629_v59 = vld [vmem:[%s12984_s26 + $0x1e0] sm:$0xff]  ;;  %v632_v48 = vld [vmem:[%s12984_s26 + $0x1f8] sm:$0xff] }
 0x154   :  { %8438 = vmatprep.subr.bf16.mxu1 %v8437_v61 }
 0x155   :  { %8440 = vmatpush3.bf16.msra.mxu1 %v8437_v61  ;;  %v633_v61 = vld [vmem:[%s12984_s26 + $0x200] sm:$0xff] }
 0x158   :  { %7698 = vmatmul.mubr.msk.f32.vlgmr.msra.gmra.mrb[0].mxu1 %vm693_vm1, %v570_v49  ;;  %v634_v49 = vld [vmem:[%s12984_s26 + $0x208] sm:$0xff] }
 0x159   :  { %7700 = vmatprep.mubr.msk.f32.mxu1 %vm693_vm1, %v571_v62  ;;  %v635_v62 = vld [vmem:[%s12984_s26 + $0x210] sm:$0xff] }
 0x15c   :  { %7701 = vmatmul.mubr.msk.f32.gmra.mrb[2].mxu1 %vm693_vm1, %v572_v63  ;;  %v636_v63 = vld [vmem:[%s12984_s26 + $0x218] sm:$0xff] }
 0x15d   :  { %7703 = vmatprep.mubr.msk.f32.mxu1 %vm693_vm1, %v573_v0  ;;  %v637_v0 = vld [vmem:[%s12984_s26 + $0x220] sm:$0xff] }
 0x160   :  { %7704 = vmatmul.mubr.msk.f32.gmra.mrb[4].mxu1 %vm693_vm1, %v574_v1  ;;  %v638_v1 = vld [vmem:[%s12984_s26 + $0x228] sm:$0xff] }
 0x161   :  { %7706 = vmatprep.mubr.msk.f32.mxu1 %vm693_vm1, %v575_v2  ;;  %v639_v2 = vld [vmem:[%s12984_s26 + $0x230] sm:$0xff] }
 0x164   :  { %7707 = vmatmul.mubr.msk.f32.gmra.mrb[6].mxu1 %vm693_vm1, %v576_v3  ;;  %v640_v3 = vld [vmem:[%s12984_s26 + $0x238] sm:$0xff] }
 0x165   :  { %7709 = vmatprep.mubr.msk.f32.mxu1 %vm693_vm1, %v577_v4  ;;  %v641_v4 = vld [vmem:[%s12984_s26 + $0x240] sm:$0xff] }
 0x168   :  { %7710 = vmatmul.mubr.msk.f32.gmra.mrb[8].mxu1 %vm693_vm1, %v578_v5  ;;  %v642_v5 = vld [vmem:[%s12984_s26 + $0x248] sm:$0xff] }
 0x169   :  { %7712 = vmatprep.mubr.msk.f32.mxu1 %vm693_vm1, %v579_v6  ;;  %v643_v6 = vld [vmem:[%s12984_s26 + $0x250] sm:$0xff] }
 0x16c   :  { %7713 = vmatmul.mubr.msk.f32.gmra.mrb[10].mxu1 %vm693_vm1, %v580_v7  ;;  %v644_v7 = vld [vmem:[%s12984_s26 + $0x258] sm:$0xff] }
 0x16d   :  { %7715 = vmatprep.mubr.msk.f32.mxu1 %vm693_vm1, %v581_v8  ;;  %v645_v8 = vld [vmem:[%s12984_s26 + $0x260] sm:$0xff] }
 0x170   :  { %7716 = vmatmul.mubr.msk.f32.gmra.mrb[12].mxu1 %vm693_vm1, %v582_v9  ;;  %v646_v9 = vld [vmem:[%s12984_s26 + $0x268] sm:$0xff] }
 0x171   :  { %7718 = vmatprep.mubr.msk.f32.mxu1 %vm693_vm1, %v583_v10  ;;  %v647_v10 = vld [vmem:[%s12984_s26 + $0x270] sm:$0xff] }
 0x174   :  { %7719 = vmatmul.mubr.msk.f32.gmra.mrb[14].mxu1 %vm693_vm1, %v584_v11  ;;  %v648_v11 = vld [vmem:[%s12984_s26 + $0x278] sm:$0xff] }
 0x175   :  { %7721 = vmatprep.mubr.msk.f32.mxu1 %vm693_vm1, %v585_v12  ;;  %v649_v12 = vld [vmem:[%s12984_s26 + $0x280] sm:$0xff] }
 0x178   :  { %7722 = vmatmul.mubr.msk.f32.gmra.mrb[16].mxu1 %vm693_vm1, %v586_v13  ;;  %v650_v13 = vld [vmem:[%s12984_s26 + $0x288] sm:$0xff] }
 0x179   :  { %7724 = vmatprep.mubr.msk.f32.mxu1 %vm693_vm1, %v587_v14  ;;  %v651_v14 = vld [vmem:[%s12984_s26 + $0x290] sm:$0xff] }
 0x17c   :  { %7725 = vmatmul.mubr.msk.f32.gmra.mrb[18].mxu1 %vm693_vm1, %v588_v15  ;;  %v652_v15 = vld [vmem:[%s12984_s26 + $0x298] sm:$0xff] }
 0x17d   :  { %7727 = vmatprep.mubr.msk.f32.mxu1 %vm693_vm1, %v589_v16  ;;  %v653_v16 = vld [vmem:[%s12984_s26 + $0x2a0] sm:$0xff] }
 0x180   :  { %7728 = vmatmul.mubr.msk.f32.gmra.mrb[20].mxu1 %vm693_vm1, %v590_v17  ;;  %v654_v17 = vld [vmem:[%s12984_s26 + $0x2a8] sm:$0xff] }
 0x181   :  { %7730 = vmatprep.mubr.msk.f32.mxu1 %vm693_vm1, %v591_v18  ;;  %v655_v18 = vld [vmem:[%s12984_s26 + $0x2b0] sm:$0xff] }
 0x184   :  { %7731 = vmatmul.mubr.msk.f32.gmra.mrb[22].mxu1 %vm693_vm1, %v592_v19  ;;  %v656_v19 = vld [vmem:[%s12984_s26 + $0x2b8] sm:$0xff] }
 0x185   :  { %7733 = vmatprep.mubr.msk.f32.mxu1 %vm693_vm1, %v593_v22  ;;  %v657_v22 = vld [vmem:[%s12984_s26 + $0x2c0] sm:$0xff] }
 0x188   :  { %7734 = vmatmul.mubr.msk.f32.gmra.mrb[24].mxu1 %vm693_vm1, %v594_v23  ;;  %v658_v23 = vld [vmem:[%s12984_s26 + $0x2c8] sm:$0xff] }
 0x189   :  { %7736 = vmatprep.mubr.msk.f32.mxu1 %vm693_vm1, %v595_v24  ;;  %v659_v24 = vld [vmem:[%s12984_s26 + $0x2d0] sm:$0xff] }
 0x18c   :  { %7737 = vmatmul.mubr.msk.f32.gmra.mrb[26].mxu1 %vm693_vm1, %v596_v25  ;;  %v660_v25 = vld [vmem:[%s12984_s26 + $0x2d8] sm:$0xff] }
 0x18d   :  { %7739 = vmatprep.mubr.msk.f32.mxu1 %vm693_vm1, %v597_v26  ;;  %v661_v26 = vld [vmem:[%s12984_s26 + $0x2e0] sm:$0xff] }
 0x190   :  { %7740 = vmatmul.mubr.msk.f32.gmra.mrb[28].mxu1 %vm693_vm1, %v598_v27  ;;  %v68_v27 = vld [vmem:[%s12982_s29 + $0x48] sm:$0xff] }
 0x191   :  { %7742 = vmatprep.mubr.msk.f32.mxu1 %vm693_vm1, %v599_v30  ;;  %v105_v30 = vsel %vm77_vm0, %v68_v27, 0.0  ;;  %v688_v27 = vld [vmem:[%s12984_s26 + $0x3b8] sm:$0xff] }
 0x192   :  { %106 = vadd.xlane.f32.xlu1 %v105_v30  ;;  %v1719_v30 = vld [vmem:[%s12959_s3] sm:$0xff] }
 0x194   :  { %7743 = vmatmul.mubr.msk.f32.gmra.mrb[30].mxu1 %vm693_vm1, %v600_v31  ;;  %v67_v31 = vld [vmem:[%s12982_s29 + $0x40] sm:$0xff] }
 0x195   :  { %7745 = vmatprep.mubr.msk.f32.mxu1 %vm693_vm1, %v601_v32  ;;  %v662_v32 = vld [vmem:[%s12984_s26 + $0x2e8] sm:$0xff] }
 0x198   :  { %7746 = vmatmul.mubr.msk.f32.gmra.mrb[32].mxu1 %vm693_vm1, %v602_v33  ;;  %v102_v33 = vsel %vm77_vm0, %v67_v31, 0.0  ;;  %v1743_v31 = vld [vmem:[%s12960_s2] sm:$0xff] }
 0x199   :  { %7748 = vmatprep.mubr.msk.f32.mxu1 %vm693_vm1, %v603_v34  ;;  %v663_v34 = vld [vmem:[%s12984_s26 + $0x2f0] sm:$0xff]  ;;  %103 = vadd.xlane.f32.xlu0 %v102_v33 }
 0x19c   :  { %7749 = vmatmul.mubr.msk.f32.gmra.mrb[34].mxu1 %vm693_vm1, %v604_v35  ;;  %v70_v35 = vld [vmem:[%s12982_s29 + $0x58] sm:$0xff] }
 0x19d   :  { %7751 = vmatprep.mubr.msk.f32.mxu1 %vm693_vm1, %v605_v36  ;;  %v111_v36 = vsel %vm77_vm0, %v70_v35, 0.0 }
 0x19e   :  { %112 = vadd.xlane.f32.xlu1 %v111_v36 }
 0x1a0   :  { %7752 = vmatmul.mubr.msk.f32.gmra.mrb[36].mxu1 %vm693_vm1, %v606_v20  ;;  %v69_v20 = vld [vmem:[%s12982_s29 + $0x50] sm:$0xff] }
 0x1a1   :  { %7754 = vmatprep.mubr.msk.f32.mxu1 %vm693_vm1, %v607_v37  ;;  %v664_v37 = vld [vmem:[%s12984_s26 + $0x2f8] sm:$0xff] }
 0x1a4   :  { %7755 = vmatmul.mubr.msk.f32.gmra.mrb[38].mxu1 %vm693_vm1, %v608_v40  ;;  %v108_v40 = vsel %vm77_vm0, %v69_v20, 0.0  ;;  %v1722_v20 = vld [vmem:[%s12959_s3 + $0x18] sm:$0xff] }
 0x1a5   :  { %7757 = vmatprep.mubr.msk.f32.mxu1 %vm693_vm1, %v609_v41  ;;  %v665_v41 = vld [vmem:[%s12984_s26 + $0x300] sm:$0xff]  ;;  %109 = vadd.xlane.f32.xlu0 %v108_v40  ;;  %v1746_v40 = vld [vmem:[%s12960_s2 + $0x18] sm:$0xff] }
 0x1a8   :  { %7758 = vmatmul.mubr.msk.f32.gmra.mrb[40].mxu1 %vm693_vm1, %v610_v42  ;;  %v72_v42 = vld [vmem:[%s12982_s29 + $0x68] sm:$0xff] }
 0x1a9   :  { %7760 = vmatprep.mubr.msk.f32.mxu1 %vm693_vm1, %v611_v43  ;;  %v117_v43 = vsel %vm77_vm0, %v72_v42, 0.0 }
 0x1aa   :  { %118 = vadd.xlane.f32.xlu1 %v117_v43  ;;  %v1745_v43 = vld [vmem:[%s12960_s2 + $0x10] sm:$0xff] }
 0x1ac   :  { %7761 = vmatmul.mubr.msk.f32.gmra.mrb[42].mxu1 %vm693_vm1, %v612_v44  ;;  %v71_v44 = vld [vmem:[%s12982_s29 + $0x60] sm:$0xff] }
 0x1ad   :  { %7763 = vmatprep.mubr.msk.f32.mxu1 %vm693_vm1, %v613_v45  ;;  %v666_v45 = vld [vmem:[%s12984_s26 + $0x308] sm:$0xff] }
 0x1b0   :  { %7764 = vmatmul.mubr.msk.f32.gmra.mrb[44].mxu1 %vm693_vm1, %v614_v46  ;;  %v114_v46 = vsel %vm77_vm0, %v71_v44, 0.0 }
 0x1b1   :  { %7766 = vmatprep.mubr.msk.f32.mxu1 %vm693_vm1, %v615_v47  ;;  %v667_v47 = vld [vmem:[%s12984_s26 + $0x310] sm:$0xff]  ;;  %115 = vadd.xlane.f32.xlu0 %v114_v46 }
 0x1b4   :  { %7767 = vmatmul.mubr.msk.f32.gmra.mrb[46].mxu1 %vm693_vm1, %v616_v28  ;;  %v74_v28 = vld [vmem:[%s12982_s29 + $0x78] sm:$0xff] }
 0x1b5   :  { %7769 = vmatprep.mubr.msk.f32.mxu1 %vm693_vm1, %v617_v21  ;;  %v123_v21 = vsel %vm77_vm0, %v74_v28, 0.0 }
 0x1b6   :  { %124 = vadd.xlane.f32.xlu1 %v123_v21 }
 0x1b8   :  { %7770 = vmatmul.mubr.msk.f32.gmra.mrb[48].mxu1 %vm693_vm1, %v618_v50  ;;  %v73_v50 = vld [vmem:[%s12982_s29 + $0x70] sm:$0xff] }
 0x1b9   :  { %7772 = vmatprep.mubr.msk.f32.mxu1 %vm693_vm1, %v619_v51 }
 0x1bc   :  { %7773 = vmatmul.mubr.msk.f32.gmra.mrb[50].mxu1 %vm693_vm1, %v620_v52  ;;  %v668_v52 = vld [vmem:[%s12984_s26 + $0x318] sm:$0xff] }
 0x1bd   :  { %7775 = vmatprep.mubr.msk.f32.mxu1 %vm693_vm1, %v621_v53  ;;  %v120_v53 = vsel %vm77_vm0, %v73_v50, 0.0  ;;  %v1724_v50 = vld [vmem:[%s12959_s3 + $0x28] sm:$0xff] }
 0x1be   :  { %121 = vadd.xlane.f32.xlu0 %v120_v53  ;;  %v1748_v53 = vld [vmem:[%s12960_s2 + $0x28] sm:$0xff] }
 0x1c0   :  { %7776 = vmatmul.mubr.msk.f32.gmra.mrb[52].mxu1 %vm693_vm1, %v622_v29 }
 0x1c1   :  { %7778 = vmatprep.mubr.msk.f32.mxu1 %vm693_vm1, %v623_v38  ;;  %v669_v38 = vld [vmem:[%s12984_s26 + $0x320] sm:$0xff] }
 0x1c4   :  { %7779 = vmatmul.mubr.msk.f32.gmra.mrb[54].mxu1 %vm693_vm1, %v624_v54 }
 0x1c5   :  { %7781 = vmatprep.mubr.msk.f32.mxu1 %vm693_vm1, %v625_v55  ;;  %v670_v55 = vld [vmem:[%s12984_s26 + $0x328] sm:$0xff] }
 0x1c8   :  { %7782 = vmatmul.mubr.msk.f32.gmra.mrb[56].mxu1 %vm693_vm1, %v626_v56 }
 0x1c9   :  { %7784 = vmatprep.mubr.msk.f32.mxu1 %vm693_vm1, %v627_v57  ;;  %v671_v57 = vld [vmem:[%s12984_s26 + $0x330] sm:$0xff] }
 0x1cc   :  { %7785 = vmatmul.mubr.msk.f32.gmra.mrb[58].mxu1 %vm693_vm1, %v628_v58 }
 0x1cd   :  { %7787 = vmatprep.mubr.msk.f32.mxu1 %vm693_vm1, %v629_v59  ;;  %v672_v59 = vld [vmem:[%s12984_s26 + $0x338] sm:$0xff] }
 0x1d0   :  { %7788 = vmatmul.mubr.msk.f32.gmra.mrb[60].mxu1 %vm693_vm1, %v630_v39 }
 0x1d1   :  { %7790 = vmatprep.mubr.msk.f32.mxu1 %vm693_vm1, %v631_v60  ;;  %v673_v60 = vld [vmem:[%s12984_s26 + $0x340] sm:$0xff] }
 0x1d4   :  { %7791 = vmatmul.mubr.msk.f32.gmra.mrb[62].mxu1 %vm693_vm1, %v632_v48 }
 0x1d5   :  { %7793 = vmatprep.mubr.msk.f32.mxu1 %vm693_vm1, %v633_v61  ;;  %v674_v61 = vld [vmem:[%s12984_s26 + $0x348] sm:$0xff] }
 0x1d8   :  { %7794 = vmatmul.mubr.msk.f32.gmra.mrb[64].mxu1 %vm693_vm1, %v634_v49 }
 0x1d9   :  { %7796 = vmatprep.mubr.msk.f32.mxu1 %vm693_vm1, %v635_v62  ;;  %v675_v62 = vld [vmem:[%s12984_s26 + $0x350] sm:$0xff] }
 0x1dc   :  { %7797 = vmatmul.mubr.msk.f32.gmra.mrb[66].mxu1 %vm693_vm1, %v636_v63  ;;  %v676_v63 = vld [vmem:[%s12984_s26 + $0x358] sm:$0xff] }
 0x1dd   :  { %7799 = vmatprep.mubr.msk.f32.mxu1 %vm693_vm1, %v637_v0  ;;  %v677_v0 = vld [vmem:[%s12984_s26 + $0x360] sm:$0xff] }
 0x1e0   :  { %7800 = vmatmul.mubr.msk.f32.gmra.mrb[68].mxu1 %vm693_vm1, %v638_v1 }
 0x1e1   :  { %7802 = vmatprep.mubr.msk.f32.mxu1 %vm693_vm1, %v639_v2 }
 0x1e4   :  { %7803 = vmatmul.mubr.msk.f32.gmra.mrb[70].mxu1 %vm693_vm1, %v640_v3  ;;  %v678_v3 = vld [vmem:[%s12984_s26 + $0x368] sm:$0xff] }
 0x1e5   :  { %7805 = vmatprep.mubr.msk.f32.mxu1 %vm693_vm1, %v641_v4  ;;  %v679_v4 = vld [vmem:[%s12984_s26 + $0x370] sm:$0xff] }
 0x1e8   :  { %7806 = vmatmul.mubr.msk.f32.gmra.mrb[72].mxu1 %vm693_vm1, %v642_v5 }
 0x1e9   :  { %7808 = vmatprep.mubr.msk.f32.mxu1 %vm693_vm1, %v643_v6 }
 0x1ec   :  { %7809 = vmatmul.mubr.msk.f32.gmra.mrb[74].mxu1 %vm693_vm1, %v644_v7  ;;  %v680_v7 = vld [vmem:[%s12984_s26 + $0x378] sm:$0xff] }
 0x1ed   :  { %7811 = vmatprep.mubr.msk.f32.mxu1 %vm693_vm1, %v645_v8  ;;  %v681_v8 = vld [vmem:[%s12984_s26 + $0x380] sm:$0xff] }
 0x1f0   :  { %7812 = vmatmul.mubr.msk.f32.gmra.mrb[76].mxu1 %vm693_vm1, %v646_v9 }
 0x1f1   :  { %7814 = vmatprep.mubr.msk.f32.mxu1 %vm693_vm1, %v647_v10 }
 0x1f4   :  { %7815 = vmatmul.mubr.msk.f32.gmra.mrb[78].mxu1 %vm693_vm1, %v648_v11  ;;  %v682_v11 = vld [vmem:[%s12984_s26 + $0x388] sm:$0xff] }
 0x1f5   :  { %7817 = vmatprep.mubr.msk.f32.mxu1 %vm693_vm1, %v649_v12  ;;  %v683_v12 = vld [vmem:[%s12984_s26 + $0x390] sm:$0xff] }
 0x1f8   :  { %7818 = vmatmul.mubr.msk.f32.gmra.mrb[80].mxu1 %vm693_vm1, %v650_v13 }
 0x1f9   :  { %7820 = vmatprep.mubr.msk.f32.mxu1 %vm693_vm1, %v651_v14 }
 0x1fc   :  { %7821 = vmatmul.mubr.msk.f32.gmra.mrb[82].mxu1 %vm693_vm1, %v652_v15  ;;  %v684_v15 = vld [vmem:[%s12984_s26 + $0x398] sm:$0xff] }
 0x1fd   :  { %7823 = vmatprep.mubr.msk.f32.mxu1 %vm693_vm1, %v653_v16  ;;  %v685_v16 = vld [vmem:[%s12984_s26 + $0x3a0] sm:$0xff] }
 0x200   :  { %7824 = vmatmul.mubr.msk.f32.gmra.mrb[84].mxu1 %vm693_vm1, %v654_v17 }
 0x201   :  { %7826 = vmatprep.mubr.msk.f32.mxu1 %vm693_vm1, %v655_v18 }
 0x204   :  { %7827 = vmatmul.mubr.msk.f32.gmra.mrb[86].mxu1 %vm693_vm1, %v656_v19  ;;  %v686_v19 = vld [vmem:[%s12984_s26 + $0x3a8] sm:$0xff] }
 0x205   :  { %7829 = vmatprep.mubr.msk.f32.mxu1 %vm693_vm1, %v657_v22  ;;  %v687_v22 = vld [vmem:[%s12984_s26 + $0x3b0] sm:$0xff] }
 0x208   :  { %7830 = vmatmul.mubr.msk.f32.gmra.mrb[88].mxu1 %vm693_vm1, %v658_v23 }
 0x209   :  { %7832 = vmatprep.mubr.msk.f32.mxu1 %vm693_vm1, %v659_v24 }
 0x20c   :  { %7833 = vmatmul.mubr.msk.f32.gmra.mrb[90].mxu1 %vm693_vm1, %v660_v25  ;;  %v1720_v25 = vld [vmem:[%s12959_s3 + $0x8] sm:$0xff] }
 0x20d   :  { %7835 = vmatprep.mubr.msk.f32.mxu1 %vm693_vm1, %v661_v26  ;;  %v1744_v26 = vld [vmem:[%s12960_s2 + $0x8] sm:$0xff] }
 0x210   :  { %7836 = vmatmul.mubr.msk.f32.gmra.mrb[92].mxu1 %vm693_vm1, %v662_v32 }
 0x211   :  { %7838 = vmatprep.mubr.msk.f32.mxu1 %vm693_vm1, %v663_v34 }
 0x214   :  { %7839 = vmatmul.mubr.msk.f32.gmra.mrb[94].mxu1 %vm693_vm1, %v664_v37 }
 0x215   :  { %7841 = vmatprep.mubr.msk.f32.mxu1 %vm693_vm1, %v665_v41  ;;  %v1721_v41 = vld [vmem:[%s12959_s3 + $0x10] sm:$0xff] }
 0x218   :  { %7842 = vmatmul.mubr.msk.f32.gmra.mrb[96].mxu1 %vm693_vm1, %v666_v45 }
 0x219   :  { %v9919_v51 = vpop.f32.mrb[0].mxu0  ;;  %7844 = vmatprep.mubr.msk.f32.mxu1 %vm693_vm1, %v667_v47 }
 0x21a   :  { %v9926_v29 = vpop.f32.mrb[1].mxu0 }
 0x21c   :  { %7845 = vmatmul.mubr.msk.f32.gmra.mrb[98].mxu1 %vm693_vm1, %v668_v52 }
 0x21d   :  { %v9932_v54 = vpop.f32.mrb[2].mxu0  ;;  %7847 = vmatprep.mubr.msk.f32.mxu1 %vm693_vm1, %v669_v38  ;;  %v1723_v38 = vld [vmem:[%s12959_s3 + $0x20] sm:$0xff] }
 0x21e   :  { %v9938_v56 = vpop.f32.mrb[3].mxu0 }
 0x220   :  { %7848 = vmatmul.mubr.msk.f32.gmra.mrb[100].mxu1 %vm693_vm1, %v670_v55 }
 0x221   :  { %v9944_v58 = vpop.f32.mrb[4].mxu0  ;;  %7850 = vmatprep.mubr.msk.f32.mxu1 %vm693_vm1, %v671_v57  ;;  %v1747_v57 = vld [vmem:[%s12960_s2 + $0x20] sm:$0xff] }
 0x222   :  { %v9950_v39 = vpop.f32.mrb[5].mxu0 }
 0x224   :  { %7851 = vmatmul.mubr.msk.f32.gmra.mrb[102].mxu1 %vm693_vm1, %v672_v59 }
 0x225   :  { %v9956_v48 = vpop.f32.mrb[6].mxu0  ;;  %7853 = vmatprep.mubr.msk.f32.mxu1 %vm693_vm1, %v673_v60 }
 0x226   :  { %v9962_v49 = vpop.f32.mrb[7].mxu0 }
 0x228   :  { %7854 = vmatmul.mubr.msk.f32.gmra.mrb[104].mxu1 %vm693_vm1, %v674_v61 }
 0x229   :  { %7856 = vmatprep.mubr.msk.f32.mxu1 %vm693_vm1, %v675_v62 }
 0x22b   :  { %v7699_v1 = vpop.f32.mrb[0].mxu1 }
 0x22c   :  { %v1120_v2 = vpop.f32.mrb[1].mxu1  ;;  %7857 = vmatmul.mubr.msk.f32.gmra.mrb[106].mxu1 %vm693_vm1, %v676_v63  ;;  %v1732_v33 = vadd.f32 %v7699_v1, %v1720_v25  ;;  %v1726_v1 = vld [vmem:[%s12959_s3 + $0x38] sm:$0xff] }
 0x22d   :  { %7859 = vmatprep.mubr.msk.f32.mxu1 %vm693_vm1, %v677_v0  ;;  %v1731_v36 = vadd.f32 %v1719_v30, %v1120_v2 }
 0x22f   :  { %v7702_v5 = vpop.f32.mrb[2].mxu1 }
 0x230   :  { %v1130_v6 = vpop.f32.mrb[3].mxu1  ;;  %7860 = vmatmul.mubr.msk.f32.gmra.mrb[108].mxu1 %vm693_vm1, %v678_v3  ;;  %v1734_v46 = vadd.f32 %v7702_v5, %v1722_v20  ;;  %v1750_v3 = vld [vmem:[%s12960_s2 + $0x38] sm:$0xff] }
 0x231   :  { %7862 = vmatprep.mubr.msk.f32.mxu1 %vm693_vm1, %v679_v4  ;;  %v1733_v21 = vadd.f32 %v1721_v41, %v1130_v6  ;;  %v1725_v4 = vld [vmem:[%s12959_s3 + $0x30] sm:$0xff] }
 0x232   :  { %v1749_v6 = vld [vmem:[%s12960_s2 + $0x30] sm:$0xff] }
 0x233   :  { %v7705_v9 = vpop.f32.mrb[4].mxu1 }
 0x234   :  { %v1140_v10 = vpop.f32.mrb[5].mxu1  ;;  %7863 = vmatmul.mubr.msk.f32.gmra.mrb[110].mxu1 %vm693_vm1, %v680_v7  ;;  %v1736_v61 = vadd.f32 %v7705_v9, %v1724_v50 }
 0x235   :  { %7865 = vmatprep.mubr.msk.f32.mxu1 %vm693_vm1, %v681_v8  ;;  %v1735_v0 = vadd.f32 %v1723_v38, %v1140_v10 }
 0x237   :  { %v7708_v13 = vpop.f32.mrb[6].mxu1 }
 0x238   :  { %v9999_v14 = vpop.f32.mrb[7].mxu1  ;;  %7866 = vmatmul.mubr.msk.f32.gmra.mrb[112].mxu1 %vm693_vm1, %v682_v11  ;;  %v1738_v9 = vadd.f32 %v7708_v13, %v1726_v1  ;;  %v1751_v13 = vld [vmem:[%s12960_s2 + $0x40] sm:$0xff] }
 0x239   :  { %7868 = vmatprep.mubr.msk.f32.mxu1 %vm693_vm1, %v683_v12  ;;  %v1737_v12 = vadd.f32 %v1725_v4, %v9999_v14  ;;  %v6858_v4 = vld [vmem:[%s12960_s2 + $0x80] sm:$0xff] }
 0x23b   :  { %v10009_v17 = vpop.f32.mrb[8].mxu1 }
 0x23c   :  { %v10011_v18 = vpop.f32.mrb[9].mxu1  ;;  %7869 = vmatmul.mubr.msk.f32.gmra.mrb[114].mxu1 %vm693_vm1, %v684_v15  ;;  %v1728_v15 = vld [vmem:[%s12959_s3 + $0x48] sm:$0xff] }
 0x23d   :  { %7871 = vmatprep.mubr.msk.f32.mxu1 %vm693_vm1, %v685_v16 }
 0x23f   :  { %v10021_v23 = vpop.f32.mrb[10].mxu1 }
 0x240   :  { %v10023_v24 = vpop.f32.mrb[11].mxu1  ;;  %7872 = vmatmul.mubr.msk.f32.gmra.mrb[116].mxu1 %vm693_vm1, %v686_v19  ;;  %v1752_v19 = vld [vmem:[%s12960_s2 + $0x48] sm:$0xff] }
 0x241   :  { %7874 = vmatprep.mubr.msk.f32.mxu1 %vm693_vm1, %v687_v22  ;;  %v1727_v22 = vld [vmem:[%s12959_s3 + $0x40] sm:$0xff] }
 0x243   :  { %v7717_v32 = vpop.f32.mrb[12].mxu1 }
 0x244   :  { %v1756_v34 = vmul.f32 %v7717_v32, %v1744_v26  ;;  %v1180_v35 = vpop.f32.mrb[13].mxu1  ;;  %7875 = vmatmul.mubr.msk.f32.gmra.mrb[118].mxu1 %vm693_vm1, %v688_v27  ;;  %v1740_v27 = vadd.f32 %v10009_v17, %v1728_v15  ;;  %v1739_v32 = vadd.f32 %v1727_v22, %v10011_v18  ;;  %v1753_v17 = vld [vmem:[%s12960_s2 + $0x50] sm:$0xff] }
 0x245   :  { %v1755_v37 = vmul.f32 %v1743_v31, %v1180_v35  ;;  %v1754_v35 = vld [vmem:[%s12960_s2 + $0x58] sm:$0xff] }
 0x246   :  { %v10052_v42 = vadd.f32 %v1756_v34, %v1732_v33  ;;  %v1730_v33 = vld [vmem:[%s12959_s3 + $0x58] sm:$0xff] }
 0x247   :  { %v10057_v44 = vadd.f32 %v1755_v37, %v1731_v36  ;;  %v7720_v45 = vpop.f32.mrb[14].mxu1  ;;  %v1729_v36 = vld [vmem:[%s12959_s3 + $0x50] sm:$0xff] }
 0x248   :  { %v1758_v47 = vmul.f32 %v7720_v45, %v1746_v40  ;;  %v1190_v28 = vpop.f32.mrb[15].mxu1  ;;  %v1742_v40 = vadd.f32 %v10021_v23, %v1730_v33  ;;  %v1741_v45 = vadd.f32 %v1729_v36, %v10023_v24  ;;  %v6857_v23 = vld [vmem:[%s12960_s2 + $0x78] sm:$0xff] }
 0x249   :  { %v1757_v52 = vmul.f32 %v1745_v43, %v1190_v28 }
 0x24a   :  { %v1770_v55 = vadd.f32 %v1758_v47, %v1734_v46  ;;  %v6855_v47 = vld [vmem:[%s12960_s2 + $0x68] sm:$0xff] }
 0x24b   :  { %v1769_v59 = vadd.f32 %v1757_v52, %v1733_v21  ;;  %v7723_v60 = vpop.f32.mrb[16].mxu1  ;;  %v6854_v21 = vld [vmem:[%s12960_s2 + $0x60] sm:$0xff] }
 0x24c   :  { %v1760_v62 = vmul.f32 %v7723_v60, %v1748_v53  ;;  %v1200_v63 = vpop.f32.mrb[17].mxu1  ;;  %v6856_v60 = vld [vmem:[%s12960_s2 + $0x70] sm:$0xff] }
 0x24d   :  { %v1759_v2 = vmul.f32 %v1747_v57, %v1200_v63 }
 0x24e   :  { %v1772_v5 = vadd.f32 %v1760_v62, %v1736_v61 }
 0x24f   :  { %v1771_v7 = vadd.f32 %v1759_v2, %v1735_v0  ;;  %v7726_v8 = vpop.f32.mrb[18].mxu1  ;;  %v6859_v2 = vld [vmem:[%s12960_s2 + $0x88] sm:$0xff] }
 0x250   :  { %v1762_v10 = vmul.f32 %v7726_v8, %v1750_v3  ;;  %v1210_v11 = vpop.f32.mrb[19].mxu1 }
 0x251   :  { %v1761_v16 = vmul.f32 %v1749_v6, %v1210_v11 }
 0x252   :  { %v1774_v25 = vadd.f32 %v1762_v10, %v1738_v9 }
 0x253   :  { %v1773_v26 = vadd.f32 %v1761_v16, %v1737_v12  ;;  %v7729_v14 = vpop.f32.mrb[20].mxu1  ;;  %v6860_v12 = vld [vmem:[%s12960_s2 + $0x90] sm:$0xff] }
 0x254   :  { %v1764_v30 = vmul.f32 %v7729_v14, %v1752_v19  ;;  %v1220_v31 = vpop.f32.mrb[21].mxu1  ;;  %v6862_v14 = vld [vmem:[%s12960_s2 + $0xa0] sm:$0xff] }
 0x255   :  { %v1763_v34 = vmul.f32 %v1751_v13, %v1220_v31 }
 0x256   :  { %v1776_v20 = vadd.f32 %v1764_v30, %v1740_v27 }
 0x257   :  { %v1775_v37 = vadd.f32 %v1763_v34, %v1739_v32  ;;  %v7732_v18 = vpop.f32.mrb[22].mxu1  ;;  %v6864_v34 = vld [vmem:[%s12960_s2 + $0xb0] sm:$0xff] }
 0x258   :  { %v1766_v41 = vmul.f32 %v7732_v18, %v1754_v35  ;;  %v1230_v43 = vpop.f32.mrb[23].mxu1 }
 0x259   :  { %v1765_v46 = vmul.f32 %v1753_v17, %v1230_v43 }
 0x25a   :  { %v1778_v28 = vadd.f32 %v1766_v41, %v1742_v40  ;;  %v6866_v41 = vld [vmem:[%s12960_s2 + $0xc0] sm:$0xff] }
 0x25b   :  { %v1777_v50 = vadd.f32 %v1765_v46, %v1741_v45  ;;  %v7735_v52 = vpop.f32.mrb[24].mxu1 }
 0x25c   :  { %v1793_v53 = vmul.f32 %v7735_v52, %v6855_v47  ;;  %v1240_v38 = vpop.f32.mrb[25].mxu1  ;;  %v6868_v52 = vld [vmem:[%s12960_s2 + $0xd0] sm:$0xff] }
 0x25d   :  { %v1792_v57 = vmul.f32 %v6854_v21, %v1240_v38 }
 0x25e   :  { %v1805_v24 = vadd.f32 %v1793_v53, %v10052_v42 }
 0x25f   :  { %v1804_v61 = vadd.f32 %v1792_v57, %v10057_v44  ;;  %v7738_v62 = vpop.f32.mrb[26].mxu1  ;;  %v6861_v44 = vld [vmem:[%s12960_s2 + $0x98] sm:$0xff] }
 0x260   :  { %v1795_v63 = vmul.f32 %v7738_v62, %v6857_v23  ;;  %v1250_v0 = vpop.f32.mrb[27].mxu1  ;;  %v6870_v62 = vld [vmem:[%s12960_s2 + $0xe0] sm:$0xff] }
 0x261   :  { %v1794_v1 = vmul.f32 %v6856_v60, %v1250_v0 }
 0x262   :  { %v1807_v3 = vadd.f32 %v1795_v63, %v1770_v55 }
 0x263   :  { %v1806_v42 = vadd.f32 %v1794_v1, %v1769_v59  ;;  %v7741_v6 = vpop.f32.mrb[28].mxu1  ;;  %v6863_v59 = vld [vmem:[%s12960_s2 + $0xa8] sm:$0xff] }
 0x264   :  { %v1797_v8 = vmul.f32 %v7741_v6, %v6859_v2  ;;  %v1260_v9 = vpop.f32.mrb[29].mxu1  ;;  %v6872_v6 = vld [vmem:[%s12960_s2 + $0xf0] sm:$0xff] }
 0x265   :  { %v1796_v10 = vmul.f32 %v6858_v4, %v1260_v9 }
 0x266   :  { %v1809_v11 = vadd.f32 %v1797_v8, %v1772_v5 }
 0x267   :  { %v1808_v15 = vadd.f32 %v1796_v10, %v1771_v7  ;;  %v7744_v55 = vpop.f32.mrb[30].mxu1  ;;  %v6865_v7 = vld [vmem:[%s12960_s2 + $0xb8] sm:$0xff] }
 0x268   :  { %v1799_v16 = vmul.f32 %v7744_v55, %v6861_v44  ;;  %v1270_v19 = vpop.f32.mrb[31].mxu1  ;;  %v6874_v55 = vld [vmem:[%s12960_s2 + $0x100] sm:$0xff] }
 0x269   :  { %v1798_v22 = vmul.f32 %v6860_v12, %v1270_v19 }
 0x26a   :  { %v1811_v13 = vadd.f32 %v1799_v16, %v1774_v25 }
 0x26b   :  { %v1810_v27 = vadd.f32 %v1798_v22, %v1773_v26  ;;  %v7747_v5 = vpop.f32.mrb[32].mxu1  ;;  %v6867_v26 = vld [vmem:[%s12960_s2 + $0xc8] sm:$0xff] }
 0x26c   :  { %v1801_v30 = vmul.f32 %v7747_v5, %v6863_v59  ;;  %v1280_v31 = vpop.f32.mrb[33].mxu1  ;;  %v6876_v5 = vld [vmem:[%s12960_s2 + $0x110] sm:$0xff] }
 0x26d   :  { %v1800_v32 = vmul.f32 %v6862_v14, %v1280_v31 }
 0x26e   :  { %v1813_v33 = vadd.f32 %v1801_v30, %v1776_v20 }
 0x26f   :  { %v1812_v35 = vadd.f32 %v1800_v32, %v1775_v37  ;;  %v7750_v25 = vpop.f32.mrb[34].mxu1  ;;  %v6869_v37 = vld [vmem:[%s12960_s2 + $0xd8] sm:$0xff] }
 0x270   :  { %v1803_v36 = vmul.f32 %v7750_v25, %v6865_v7  ;;  %v1290_v17 = vpop.f32.mrb[35].mxu1  ;;  %v6878_v25 = vld [vmem:[%s12960_s2 + $0x120] sm:$0xff] }
 0x271   :  { %v1802_v18 = vmul.f32 %v6864_v34, %v1290_v17 }
 0x272   :  { %v1815_v40 = vadd.f32 %v1803_v36, %v1778_v28 }
 0x273   :  { %v1814_v43 = vadd.f32 %v1802_v18, %v1777_v50  ;;  %v7753_v20 = vpop.f32.mrb[36].mxu1  ;;  %v6871_v50 = vld [vmem:[%s12960_s2 + $0xe8] sm:$0xff] }
 0x274   :  { %v1830_v45 = vmul.f32 %v7753_v20, %v6867_v26  ;;  %v1300_v46 = vpop.f32.mrb[37].mxu1  ;;  %v6880_v20 = vld [vmem:[%s12960_s2 + $0x130] sm:$0xff] }
 0x275   :  { %v1829_v47 = vmul.f32 %v6866_v41, %v1300_v46 }
 0x276   :  { %v1842_v21 = vadd.f32 %v1830_v45, %v1805_v24 }
 0x277   :  { %v1841_v53 = vadd.f32 %v1829_v47, %v1804_v61  ;;  %v7756_v28 = vpop.f32.mrb[38].mxu1  ;;  %v6873_v61 = vld [vmem:[%s12960_s2 + $0xf8] sm:$0xff] }
 0x278   :  { %v1832_v38 = vmul.f32 %v7756_v28, %v6869_v37  ;;  %v1310_v57 = vpop.f32.mrb[39].mxu1  ;;  %v6882_v28 = vld [vmem:[%s12960_s2 + $0x140] sm:$0xff] }
 0x279   :  { %v1831_v23 = vmul.f32 %v6868_v52, %v1310_v57 }
 0x27a   :  { %v1844_v60 = vadd.f32 %v1832_v38, %v1807_v3 }
 0x27b   :  { %v1843_v63 = vadd.f32 %v1831_v23, %v1806_v42  ;;  %v7759_v24 = vpop.f32.mrb[40].mxu1  ;;  %v6875_v42 = vld [vmem:[%s12960_s2 + $0x108] sm:$0xff] }
 0x27c   :  { %v1834_v0 = vmul.f32 %v7759_v24, %v6871_v50  ;;  %v1320_v1 = vpop.f32.mrb[41].mxu1  ;;  %v6884_v24 = vld [vmem:[%s12960_s2 + $0x150] sm:$0xff] }
 0x27d   :  { %v1833_v2 = vmul.f32 %v6870_v62, %v1320_v1 }
 0x27e   :  { %v1846_v4 = vadd.f32 %v1834_v0, %v1809_v11 }
 0x27f   :  { %v1845_v8 = vadd.f32 %v1833_v2, %v1808_v15  ;;  %v7762_v3 = vpop.f32.mrb[42].mxu1  ;;  %v6877_v15 = vld [vmem:[%s12960_s2 + $0x118] sm:$0xff] }
 0x280   :  { %v1836_v9 = vmul.f32 %v7762_v3, %v6873_v61  ;;  %v1330_v10 = vpop.f32.mrb[43].mxu1  ;;  %v6886_v3 = vld [vmem:[%s12960_s2 + $0x160] sm:$0xff] }
 0x281   :  { %v1835_v44 = vmul.f32 %v6872_v6, %v1330_v10 }
 0x282   :  { %v1848_v12 = vadd.f32 %v1836_v9, %v1811_v13 }
 0x283   :  { %v1847_v16 = vadd.f32 %v1835_v44, %v1810_v27  ;;  %v7765_v11 = vpop.f32.mrb[44].mxu1  ;;  %v6879_v27 = vld [vmem:[%s12960_s2 + $0x128] sm:$0xff] }
 0x284   :  { %v1838_v19 = vmul.f32 %v7765_v11, %v6875_v42  ;;  %v1340_v22 = vpop.f32.mrb[45].mxu1  ;;  %v6888_v11 = vld [vmem:[%s12960_s2 + $0x170] sm:$0xff] }
 0x285   :  { %v1837_v59 = vmul.f32 %v6874_v55, %v1340_v22 }
 0x286   :  { %v1850_v14 = vadd.f32 %v1838_v19, %v1813_v33 }
 0x287   :  { %v1849_v30 = vadd.f32 %v1837_v59, %v1812_v35  ;;  %v7768_v13 = vpop.f32.mrb[46].mxu1  ;;  %v6881_v35 = vld [vmem:[%s12960_s2 + $0x138] sm:$0xff] }
 0x288   :  { %v1840_v31 = vmul.f32 %v7768_v13, %v6877_v15  ;;  %v1350_v32 = vpop.f32.mrb[47].mxu1  ;;  %v6890_v13 = vld [vmem:[%s12960_s2 + $0x180] sm:$0xff] }
 0x289   :  { %v1839_v7 = vmul.f32 %v6876_v5, %v1350_v32 }
 0x28a   :  { %v1852_v34 = vadd.f32 %v1840_v31, %v1815_v40 }
 0x28b   :  { %v1851_v36 = vadd.f32 %v1839_v7, %v1814_v43  ;;  %v7771_v33 = vpop.f32.mrb[48].mxu1  ;;  %v6883_v43 = vld [vmem:[%s12960_s2 + $0x148] sm:$0xff] }
 0x28c   :  { %v1867_v17 = vmul.f32 %v7771_v33, %v6879_v27  ;;  %v1360_v18 = vpop.f32.mrb[49].mxu1  ;;  %v6892_v33 = vld [vmem:[%s12960_s2 + $0x190] sm:$0xff] }
 0x28d   :  { %v1866_v26 = vmul.f32 %v6878_v25, %v1360_v18 }
 0x28e   :  { %v1879_v41 = vadd.f32 %v1867_v17, %v1842_v21 }
 0x28f   :  { %v1878_v45 = vadd.f32 %v1866_v26, %v1841_v53  ;;  %v7774_v40 = vpop.f32.mrb[50].mxu1  ;;  %v6885_v53 = vld [vmem:[%s12960_s2 + $0x158] sm:$0xff] }
 0x290   :  { %v1869_v46 = vmul.f32 %v7774_v40, %v6881_v35  ;;  %v1370_v47 = vpop.f32.mrb[51].mxu1  ;;  %v6894_v40 = vld [vmem:[%s12960_s2 + $0x1a0] sm:$0xff] }
 0x291   :  { %v1868_v37 = vmul.f32 %v6880_v20, %v1370_v47 }
 0x292   :  { %v1881_v52 = vadd.f32 %v1869_v46, %v1844_v60 }
 0x293   :  { %v1880_v38 = vadd.f32 %v1868_v37, %v1843_v63  ;;  %v7777_v21 = vpop.f32.mrb[52].mxu1  ;;  %v6887_v63 = vld [vmem:[%s12960_s2 + $0x168] sm:$0xff] }
 0x294   :  { %v1871_v57 = vmul.f32 %v7777_v21, %v6883_v43  ;;  %v1380_v23 = vpop.f32.mrb[53].mxu1  ;;  %v6896_v21 = vld [vmem:[%s12960_s2 + $0x1b0] sm:$0xff] }
 0x295   :  { %v1870_v50 = vmul.f32 %v6882_v28, %v1380_v23 }
 0x296   :  { %v1883_v62 = vadd.f32 %v1871_v57, %v1846_v4 }
 0x297   :  { %v1882_v0 = vadd.f32 %v1870_v50, %v1845_v8  ;;  %v7780_v60 = vpop.f32.mrb[54].mxu1  ;;  %v6889_v8 = vld [vmem:[%s12960_s2 + $0x178] sm:$0xff] }
 0x298   :  { %v1873_v1 = vmul.f32 %v7780_v60, %v6885_v53  ;;  %v1390_v2 = vpop.f32.mrb[55].mxu1  ;;  %v6898_v60 = vld [vmem:[%s12960_s2 + $0x1c0] sm:$0xff] }
 0x299   :  { %v1872_v61 = vmul.f32 %v6884_v24, %v1390_v2 }
 0x29a   :  { %v1885_v6 = vadd.f32 %v1873_v1, %v1848_v12 }
 0x29b   :  { %v1884_v9 = vadd.f32 %v1872_v61, %v1847_v16  ;;  %v7783_v4 = vpop.f32.mrb[56].mxu1  ;;  %v6891_v16 = vld [vmem:[%s12960_s2 + $0x188] sm:$0xff] }
 0x29c   :  { %v1875_v10 = vmul.f32 %v7783_v4, %v6887_v63  ;;  %v1400_v44 = vpop.f32.mrb[57].mxu1  ;;  %v6900_v4 = vld [vmem:[%s12960_s2 + $0x1d0] sm:$0xff] }
 0x29d   :  { %v1874_v42 = vmul.f32 %v6886_v3, %v1400_v44 }
 0x29e   :  { %v1887_v55 = vadd.f32 %v1875_v10, %v1850_v14 }
 0x29f   :  { %v1886_v19 = vadd.f32 %v1874_v42, %v1849_v30  ;;  %v7786_v12 = vpop.f32.mrb[58].mxu1  ;;  %v6893_v30 = vld [vmem:[%s12960_s2 + $0x198] sm:$0xff] }
 0x2a0   :  { %v1877_v22 = vmul.f32 %v7786_v12, %v6889_v8  ;;  %v1410_v59 = vpop.f32.mrb[59].mxu1  ;;  %v6902_v12 = vld [vmem:[%s12960_s2 + $0x1e0] sm:$0xff] }
 0x2a1   :  { %v1876_v15 = vmul.f32 %v6888_v11, %v1410_v59 }
 0x2a2   :  { %v1889_v5 = vadd.f32 %v1877_v22, %v1852_v34 }
 0x2a3   :  { %v1888_v31 = vadd.f32 %v1876_v15, %v1851_v36  ;;  %v7789_v14 = vpop.f32.mrb[60].mxu1  ;;  %v6895_v36 = vld [vmem:[%s12960_s2 + $0x1a8] sm:$0xff] }
 0x2a4   :  { %v1904_v32 = vmul.f32 %v7789_v14, %v6891_v16  ;;  %v1420_v7 = vpop.f32.mrb[61].mxu1  ;;  %v6904_v14 = vld [vmem:[%s12960_s2 + $0x1f0] sm:$0xff] }
 0x2a5   :  { %v1903_v27 = vmul.f32 %v6890_v13, %v1420_v7 }
 0x2a6   :  { %v1916_v25 = vadd.f32 %v1904_v32, %v1879_v41 }
 0x2a7   :  { %v1915_v17 = vadd.f32 %v1903_v27, %v1878_v45  ;;  %v7792_v34 = vpop.f32.mrb[62].mxu1  ;;  %v6897_v45 = vld [vmem:[%s12960_s2 + $0x1b8] sm:$0xff] }
 0x2a8   :  { %v1906_v18 = vmul.f32 %v7792_v34, %v6893_v30  ;;  %v1430_v26 = vpop.f32.mrb[63].mxu1  ;;  %v6906_v34 = vld [vmem:[%s12960_s2 + $0x200] sm:$0xff] }
 0x2a9   :  { %v1905_v35 = vmul.f32 %v6892_v33, %v1430_v26 }
 0x2aa   :  { %v1918_v20 = vadd.f32 %v1906_v18, %v1881_v52 }
 0x2ab   :  { %v1917_v46 = vadd.f32 %v1905_v35, %v1880_v38  ;;  %v7795_v41 = vpop.f32.mrb[64].mxu1  ;;  %v6899_v38 = vld [vmem:[%s12960_s2 + $0x1c8] sm:$0xff] }
 0x2ac   :  { %v1908_v47 = vmul.f32 %v7795_v41, %v6895_v36  ;;  %v1440_v37 = vpop.f32.mrb[65].mxu1  ;;  %v6908_v41 = vld [vmem:[%s12960_s2 + $0x210] sm:$0xff] }
 0x2ad   :  { %v1907_v43 = vmul.f32 %v6894_v40, %v1440_v37 }
 0x2ae   :  { %v1920_v28 = vadd.f32 %v1908_v47, %v1883_v62 }
 0x2af   :  { %v1919_v57 = vadd.f32 %v1907_v43, %v1882_v0  ;;  %v7798_v52 = vpop.f32.mrb[66].mxu1  ;;  %v6901_v0 = vld [vmem:[%s12960_s2 + $0x1d8] sm:$0xff] }
 0x2b0   :  { %v1910_v23 = vmul.f32 %v7798_v52, %v6897_v45  ;;  %v1450_v50 = vpop.f32.mrb[67].mxu1  ;;  %v6910_v52 = vld [vmem:[%s12960_s2 + $0x220] sm:$0xff] }
 0x2b1   :  { %v1909_v53 = vmul.f32 %v6896_v21, %v1450_v50 }
 0x2b2   :  { %v1922_v24 = vadd.f32 %v1910_v23, %v1885_v6 }
 0x2b3   :  { %v1921_v1 = vadd.f32 %v1909_v53, %v1884_v9  ;;  %v7801_v62 = vpop.f32.mrb[68].mxu1  ;;  %v6903_v9 = vld [vmem:[%s12960_s2 + $0x1e8] sm:$0xff] }
 0x2b4   :  { %v1912_v2 = vmul.f32 %v7801_v62, %v6899_v38  ;;  %v1460_v61 = vpop.f32.mrb[69].mxu1  ;;  %v6912_v62 = vld [vmem:[%s12960_s2 + $0x230] sm:$0xff] }
 0x2b5   :  { %v1911_v63 = vmul.f32 %v6898_v60, %v1460_v61 }
 0x2b6   :  { %v1924_v3 = vadd.f32 %v1912_v2, %v1887_v55 }
 0x2b7   :  { %v1923_v10 = vadd.f32 %v1911_v63, %v1886_v19  ;;  %v7804_v6 = vpop.f32.mrb[70].mxu1  ;;  %v6905_v19 = vld [vmem:[%s12960_s2 + $0x1f8] sm:$0xff] }
 0x2b8   :  { %v1914_v44 = vmul.f32 %v7804_v6, %v6901_v0  ;;  %v1470_v42 = vpop.f32.mrb[71].mxu1  ;;  %v6914_v6 = vld [vmem:[%s12960_s2 + $0x240] sm:$0xff] }
 0x2b9   :  { %v1913_v8 = vmul.f32 %v6900_v4, %v1470_v42 }
 0x2ba   :  { %v1926_v11 = vadd.f32 %v1914_v44, %v1889_v5 }
 0x2bb   :  { %v1925_v22 = vadd.f32 %v1913_v8, %v1888_v31  ;;  %v7807_v55 = vpop.f32.mrb[72].mxu1  ;;  %v6907_v31 = vld [vmem:[%s12960_s2 + $0x208] sm:$0xff] }
 0x2bc   :  { %v1941_v59 = vmul.f32 %v7807_v55, %v6903_v9  ;;  %v1480_v15 = vpop.f32.mrb[73].mxu1  ;;  %v6916_v55 = vld [vmem:[%s12960_s2 + $0x250] sm:$0xff] }
 0x2bd   :  { %v1940_v16 = vmul.f32 %v6902_v12, %v1480_v15 }
 0x2be   :  { %v1953_v13 = vadd.f32 %v1941_v59, %v1916_v25 }
 0x2bf   :  { %v1952_v32 = vadd.f32 %v1940_v16, %v1915_v17  ;;  %v7810_v5 = vpop.f32.mrb[74].mxu1  ;;  %v6909_v17 = vld [vmem:[%s12960_s2 + $0x218] sm:$0xff] }
 0x2c0   :  { %v1943_v7 = vmul.f32 %v7810_v5, %v6905_v19  ;;  %v1490_v27 = vpop.f32.mrb[75].mxu1  ;;  %v6918_v5 = vld [vmem:[%s12960_s2 + $0x260] sm:$0xff] }
 0x2c1   :  { %v1942_v30 = vmul.f32 %v6904_v14, %v1490_v27 }
 0x2c2   :  { %v1955_v33 = vadd.f32 %v1943_v7, %v1918_v20 }
 0x2c3   :  { %v1954_v18 = vadd.f32 %v1942_v30, %v1917_v46  ;;  %v7813_v25 = vpop.f32.mrb[76].mxu1  ;;  %v6911_v46 = vld [vmem:[%s12960_s2 + $0x228] sm:$0xff] }
 0x2c4   :  { %v1945_v26 = vmul.f32 %v7813_v25, %v6907_v31  ;;  %v1500_v35 = vpop.f32.mrb[77].mxu1  ;;  %v6920_v25 = vld [vmem:[%s12960_s2 + $0x270] sm:$0xff] }
 0x2c5   :  { %v1944_v36 = vmul.f32 %v6906_v34, %v1500_v35 }
 0x2c6   :  { %v1957_v40 = vadd.f32 %v1945_v26, %v1920_v28 }
 0x2c7   :  { %v1956_v47 = vadd.f32 %v1944_v36, %v1919_v57  ;;  %v7816_v20 = vpop.f32.mrb[78].mxu1  ;;  %v6913_v57 = vld [vmem:[%s12960_s2 + $0x238] sm:$0xff] }
 0x2c8   :  { %v1947_v37 = vmul.f32 %v7816_v20, %v6909_v17  ;;  %v1510_v43 = vpop.f32.mrb[79].mxu1  ;;  %v6922_v20 = vld [vmem:[%s12960_s2 + $0x280] sm:$0xff] }
 0x2c9   :  { %v1946_v45 = vmul.f32 %v6908_v41, %v1510_v43 }
 0x2ca   :  { %v1959_v21 = vadd.f32 %v1947_v37, %v1922_v24 }
 0x2cb   :  { %v1958_v23 = vadd.f32 %v1946_v45, %v1921_v1  ;;  %v7819_v28 = vpop.f32.mrb[80].mxu1  ;;  %v6915_v1 = vld [vmem:[%s12960_s2 + $0x248] sm:$0xff] }
 0x2cc   :  { %v1949_v50 = vmul.f32 %v7819_v28, %v6911_v46  ;;  %v1520_v53 = vpop.f32.mrb[81].mxu1  ;;  %v6924_v28 = vld [vmem:[%s12960_s2 + $0x290] sm:$0xff] }
 0x2cd   :  { %v1948_v38 = vmul.f32 %v6910_v52, %v1520_v53 }
 0x2ce   :  { %v1961_v60 = vadd.f32 %v1949_v50, %v1924_v3 }
 0x2cf   :  { %v1960_v2 = vadd.f32 %v1948_v38, %v1923_v10  ;;  %v7822_v24 = vpop.f32.mrb[82].mxu1  ;;  %v6917_v10 = vld [vmem:[%s12960_s2 + $0x258] sm:$0xff] }
 0x2d0   :  { %v1951_v61 = vmul.f32 %v7822_v24, %v6913_v57  ;;  %v1530_v63 = vpop.f32.mrb[83].mxu1  ;;  %v6926_v24 = vld [vmem:[%s12960_s2 + $0x2a0] sm:$0xff] }
 0x2d1   :  { %v1950_v0 = vmul.f32 %v6912_v62, %v1530_v63 }
 0x2d2   :  { %v1963_v4 = vadd.f32 %v1951_v61, %v1926_v11 }
 0x2d3   :  { %v1962_v44 = vadd.f32 %v1950_v0, %v1925_v22  ;;  %v7825_v3 = vpop.f32.mrb[84].mxu1  ;;  %v6919_v22 = vld [vmem:[%s12960_s2 + $0x268] sm:$0xff] }
 0x2d4   :  { %v1978_v42 = vmul.f32 %v7825_v3, %v6915_v1  ;;  %v1540_v8 = vpop.f32.mrb[85].mxu1  ;;  %v6928_v3 = vld [vmem:[%s12960_s2 + $0x2b0] sm:$0xff] }
 0x2d5   :  { %v1977_v9 = vmul.f32 %v6914_v6, %v1540_v8 }
 0x2d6   :  { %v1990_v12 = vadd.f32 %v1978_v42, %v1953_v13 }
 0x2d7   :  { %v1989_v59 = vadd.f32 %v1977_v9, %v1952_v32  ;;  %v7828_v11 = vpop.f32.mrb[86].mxu1  ;;  %v6921_v32 = vld [vmem:[%s12960_s2 + $0x278] sm:$0xff] }
 0x2d8   :  { %v1980_v15 = vmul.f32 %v7828_v11, %v6917_v10  ;;  %v1550_v16 = vpop.f32.mrb[87].mxu1  ;;  %v6930_v11 = vld [vmem:[%s12960_s2 + $0x2c0] sm:$0xff] }
 0x2d9   :  { %v1979_v19 = vmul.f32 %v6916_v55, %v1550_v16 }
 0x2da   :  { %v1992_v14 = vadd.f32 %v1980_v15, %v1955_v33 }
 0x2db   :  { %v1991_v7 = vadd.f32 %v1979_v19, %v1954_v18  ;;  %v7831_v13 = vpop.f32.mrb[88].mxu1  ;;  %v6923_v18 = vld [vmem:[%s12960_s2 + $0x288] sm:$0xff] }
 0x2dc   :  { %v1982_v27 = vmul.f32 %v7831_v13, %v6919_v22  ;;  %v1560_v30 = vpop.f32.mrb[89].mxu1  ;;  %v6932_v13 = vld [vmem:[%s12960_s2 + $0x2d0] sm:$0xff] }
 0x2dd   :  { %v1981_v31 = vmul.f32 %v6918_v5, %v1560_v30 }
 0x2de   :  { %v1994_v34 = vadd.f32 %v1982_v27, %v1957_v40 }
 0x2df   :  { %v1993_v26 = vadd.f32 %v1981_v31, %v1956_v47  ;;  %v7834_v33 = vpop.f32.mrb[90].mxu1  ;;  %v6925_v47 = vld [vmem:[%s12960_s2 + $0x298] sm:$0xff] }
 0x2e0   :  { %v1984_v35 = vmul.f32 %v7834_v33, %v6921_v32  ;;  %v1570_v36 = vpop.f32.mrb[91].mxu1  ;;  %v6934_v33 = vld [vmem:[%s12960_s2 + $0x2e0] sm:$0xff] }
 0x2e1   :  { %v1983_v17 = vmul.f32 %v6920_v25, %v1570_v36 }
 0x2e2   :  { %v1996_v41 = vadd.f32 %v1984_v35, %v1959_v21 }
 0x2e3   :  { %v1995_v37 = vadd.f32 %v1983_v17, %v1958_v23  ;;  %v7837_v40 = vpop.f32.mrb[92].mxu1  ;;  %v6927_v23 = vld [vmem:[%s12960_s2 + $0x2a8] sm:$0xff] }
 0x2e4   :  { %v1986_v43 = vmul.f32 %v7837_v40, %v6923_v18  ;;  %v1580_v45 = vpop.f32.mrb[93].mxu1  ;;  %v6937_v18 = vld [vmem:[%s12960_s2 + $0x2f8] sm:$0xff] }
 0x2e5   :  { %v1985_v46 = vmul.f32 %v6922_v20, %v1580_v45 }
 0x2e6   :  { %v1998_v52 = vadd.f32 %v1986_v43, %v1961_v60 }
 0x2e7   :  { %v1997_v50 = vadd.f32 %v1985_v46, %v1960_v2  ;;  %v7840_v21 = vpop.f32.mrb[94].mxu1  ;;  %v6929_v2 = vld [vmem:[%s12960_s2 + $0x2b8] sm:$0xff] }
 0x2e8   :  { %v1988_v53 = vmul.f32 %v7840_v21, %v6925_v47  ;;  %v1590_v38 = vpop.f32.mrb[95].mxu1  ;;  %v6939_v47 = vld [vmem:[%s12960_s2 + $0x308] sm:$0xff] }
 0x2e9   :  { %v1987_v57 = vmul.f32 %v6924_v28, %v1590_v38 }
 0x2ea   :  { %v2000_v62 = vadd.f32 %v1988_v53, %v1963_v4 }
 0x2eb   :  { %v1999_v61 = vadd.f32 %v1987_v57, %v1962_v44  ;;  %v7843_v60 = vpop.f32.mrb[96].mxu1  ;;  %v6931_v44 = vld [vmem:[%s12960_s2 + $0x2c8] sm:$0xff] }
 0x2ec   :  { %v2015_v63 = vmul.f32 %v7843_v60, %v6927_v23  ;;  %v1600_v0 = vpop.f32.mrb[97].mxu1  ;;  %v6941_v23 = vld [vmem:[%s12960_s2 + $0x318] sm:$0xff] }
 0x2ed   :  { %v2014_v1 = vmul.f32 %v6926_v24, %v1600_v0  ;;  %v6940_v24 = vld [vmem:[%s12960_s2 + $0x310] sm:$0xff] }
 0x2ee   :  { %v2027_v6 = vadd.f32 %v2015_v63, %v1990_v12 }
 0x2ef   :  { %v2026_v42 = vadd.f32 %v2014_v1, %v1989_v59  ;;  %v7846_v4 = vpop.f32.mrb[98].mxu1  ;;  %v6933_v59 = vld [vmem:[%s12960_s2 + $0x2d8] sm:$0xff] }
 0x2f0   :  { %v2017_v8 = vmul.f32 %v7846_v4, %v6929_v2  ;;  %v1610_v9 = vpop.f32.mrb[99].mxu1  ;;  %v6943_v4 = vld [vmem:[%s12960_s2 + $0x328] sm:$0xff] }
 0x2f1   :  { %v2016_v10 = vmul.f32 %v6928_v3, %v1610_v9  ;;  %v104_v9 = vpop.xlane.xlu0 %103 }
 0x2f2   :  { %v2029_v55 = vadd.f32 %v2017_v8, %v1992_v14  ;;  %v107_v8 = vpop.xlane.xlu1 %106 }
 0x2f3   :  { %v2028_v15 = vadd.f32 %v2016_v10, %v1991_v7  ;;  %v7849_v12 = vpop.f32.mrb[100].mxu1  ;;  %v6935_v7 = vld [vmem:[%s12960_s2 + $0x2e8] sm:$0xff] }
 0x2f4   :  { %v2019_v16 = vmul.f32 %v7849_v12, %v6931_v44  ;;  %v1620_v19 = vpop.f32.mrb[101].mxu1 }
 0x2f5   :  { %v2018_v22 = vmul.f32 %v6930_v11, %v1620_v19 }
 0x2f6   :  { %v2031_v5 = vadd.f32 %v2019_v16, %v1994_v34 }
 0x2f7   :  { %v2030_v27 = vadd.f32 %v2018_v22, %v1993_v26  ;;  %v7852_v14 = vpop.f32.mrb[102].mxu1 }
 0x2f8   :  { %v2021_v30 = vmul.f32 %v7852_v14, %v6933_v59  ;;  %v1630_v31 = vpop.f32.mrb[103].mxu1  ;;  %v6945_v59 = vld [vmem:[%s12960_s2 + $0x338] sm:$0xff] }
 0x2f9   :  { %v2020_v32 = vmul.f32 %v6932_v13, %v1630_v31 }
 0x2fa   :  { %v10357_v25 = vadd.f32 %v2021_v30, %v1996_v41  ;;  %v6936_v41 = vld [vmem:[%s12960_s2 + $0x2f0] sm:$0xff]  ;;  %v113_v30 = vpop.xlane.xlu1 %112 }
 0x2fb   :  { %v10362_v34 = vadd.f32 %v2020_v32, %v1995_v37  ;;  %v7855_v35 = vpop.f32.mrb[104].mxu1 }
 0x2fc   :  { %v2023_v36 = vmul.f32 %v7855_v35, %v6935_v7  ;;  %v1640_v17 = vpop.f32.mrb[105].mxu1 }
 0x2fd   :  { %v2022_v26 = vmul.f32 %v6934_v33, %v1640_v17  ;;  %v110_v33 = vpop.xlane.xlu0 %109 }
 0x2fe   :  { %v10367_v20 = vadd.f32 %v2023_v36, %v1998_v52  ;;  %v6938_v52 = vld [vmem:[%s12960_s2 + $0x300] sm:$0xff] }
 0x2ff   :  { %v10372_v40 = vadd.f32 %v2022_v26, %v1997_v50  ;;  %v7858_v43 = vpop.f32.mrb[106].mxu1  ;;  %v136_v26 = vmul.f32 0.03125, %v107_v8 }
 0x300   :  { %v2025_v45 = vmul.f32 %v7858_v43, %v6937_v18  ;;  %v1650_v37 = vpop.f32.mrb[107].mxu1  ;;  %v135_v43 = vmul.f32 0.03125, %v104_v9 }
 0x301   :  { %v2024_v46 = vmul.f32 %v6936_v41, %v1650_v37 }
 0x302   :  { %v10377_v28 = vadd.f32 %v2025_v45, %v2000_v62 }
 0x303   :  { %v10382_v21 = vadd.f32 %v2024_v46, %v1999_v61  ;;  %v7861_v53 = vpop.f32.mrb[108].mxu1 }
 0x304   :  { %v2052_v38 = vmul.f32 %v7861_v53, %v6939_v47  ;;  %v1660_v50 = vpop.f32.mrb[109].mxu1  ;;  %v119_v53 = vpop.xlane.xlu1 %118 }
 0x305   :  { %v2051_v57 = vmul.f32 %v6938_v52, %v1660_v50 }
 0x306   :  { %v10390_v62 = vadd.f32 %v2052_v38, %v2027_v6  ;;  %v6942_v6 = vld [vmem:[%s12960_s2 + $0x320] sm:$0xff]  ;;  %v9018_v38 = vld [vmem:[%s12982_s29 + $0x48] sm:$0xff] }
 0x307   :  { %v7864_v60 = vpop.f32.mrb[110].mxu1  ;;  %v10392_v63 = vadd.f32 %v2051_v57, %v2026_v42  ;;  %v10451_v50 = vsub.f32 %v9018_v38, %v136_v26 }
 0x308   :  { %v2054_v0 = vmul.f32 %v7864_v60, %v6941_v23  ;;  %v1670_v61 = vpop.f32.mrb[111].mxu1  ;;  %v2080_v1 = vsel %vm77_vm0, %v10390_v62, 0.0  ;;  %v138_v23 = vmul.f32 0.03125, %v113_v30 }
 0x309   :  { %v2053_v2 = vmul.f32 %v6940_v24, %v1670_v61  ;;  %2081 = vadd.xlane.f32.xlu1 %v2080_v1  ;;  %v2077_v3 = vsel %vm77_vm0, %v10392_v63, 0.0  ;;  %v116_v24 = vpop.xlane.xlu0 %115  ;;  %v9019_v61 = vld [vmem:[%s12982_s29 + $0x40] sm:$0xff] }
 0x30a   :  { %2078 = vadd.xlane.f32.xlu0 %v2077_v3  ;;  %v10404_v42 = vadd.f32 %v2054_v0, %v2029_v55  ;;  %v6944_v55 = vld [vmem:[%s12960_s2 + $0x330] sm:$0xff]  ;;  %v10462_v1 = vsub.f32 %v9019_v61, %v135_v43  ;;  %v9024_v43 = vld [vmem:[%s12982_s29 + $0x78] sm:$0xff] }
 0x30b   :  { %v7867_v10 = vpop.f32.mrb[112].mxu1  ;;  %v10406_v44 = vadd.f32 %v2053_v2, %v2028_v15  ;;  %v137_v2 = vmul.f32 0.03125, %v110_v33 }
 0x30c   :  { %v2056_v11 = vmul.f32 %v7867_v10, %v6943_v4  ;;  %v1680_v12 = vpop.f32.mrb[113].mxu1  ;;  %v2086_v16 = vsel %vm77_vm0, %v10404_v42, 0.0 }
 0x30d   :  { %v2055_v19 = vmul.f32 %v6942_v6, %v1680_v12  ;;  %2087 = vadd.xlane.f32.xlu1 %v2086_v16  ;;  %v2083_v22 = vsel %vm77_vm0, %v10406_v44, 0.0  ;;  %v168_v12 = vmul.f32 %v10451_v50, %v10451_v50  ;;  %v122_v30 = vpop.xlane.xlu0 %121 }
 0x30e   :  { %2084 = vadd.xlane.f32.xlu0 %v2083_v22  ;;  %v10418_v15 = vadd.f32 %v2056_v11, %v2031_v5  ;;  %v6947_v5 = vld [vmem:[%s12960_s2 + $0x348] sm:$0xff]  ;;  %v140_v11 = vmul.f32 0.03125, %v119_v53 }
 0x30f   :  { %v7870_v13 = vpop.f32.mrb[114].mxu1  ;;  %v10420_v14 = vadd.f32 %v2055_v19, %v2030_v27  ;;  %v6946_v27 = vld [vmem:[%s12960_s2 + $0x340] sm:$0xff]  ;;  %v9021_v19 = vld [vmem:[%s12982_s29 + $0x50] sm:$0xff] }
 0x310   :  { %v2058_v31 = vmul.f32 %v7870_v13, %v6945_v59  ;;  %v1690_v32 = vpop.f32.mrb[115].mxu1  ;;  %v2092_v7 = vsel %vm77_vm0, %v10418_v15, 0.0  ;;  %v10484_v22 = vsub.f32 %v9021_v19, %v137_v2  ;;  %v167_v59 = vmul.f32 %v10462_v1, %v10462_v1  ;;  %v125_v13 = vpop.xlane.xlu1 %124  ;;  %v689_v2 = vld [vmem:[%s12961_s9] sm:$0xff] }
 0x311   :  { %v2057_v35 = vmul.f32 %v6944_v55, %v1690_v32  ;;  %2093 = vadd.xlane.f32.xlu1 %v2092_v7  ;;  %v2089_v36 = vsel %vm77_vm0, %v10420_v14, 0.0  ;;  %v139_v55 = vmul.f32 0.03125, %v116_v24  ;;  %v202_v7 = vsel %vm77_vm0, %v168_v12, 0.0 }
 0x312   :  { %2090 = vadd.xlane.f32.xlu0 %v2089_v36  ;;  %v10433_v17 = vadd.f32 %v2058_v31, %v10357_v25  ;;  %v6949_v25 = vld [vmem:[%s12960_s2 + $0x358] sm:$0xff]  ;;  %v9022_v31 = vld [vmem:[%s12982_s29 + $0x68] sm:$0xff]  ;;  %v142_v33 = vmul.f32 0.03125, %v125_v13  ;;  %v199_v36 = vsel %vm77_vm0, %v167_v59, 0.0  ;;  %v169_v26 = vmul.f32 %v10484_v22, %v10484_v22 }
 0x313   :  { %v7873_v18 = vpop.f32.mrb[116].mxu1  ;;  %v10436_v41 = vadd.f32 %v2057_v35, %v10362_v34  ;;  %v6948_v34 = vld [vmem:[%s12960_s2 + $0x350] sm:$0xff]  ;;  %v10495_v32 = vsub.f32 %v9022_v31, %v140_v11 }
 0x314   :  { %v2060_v45 = vmul.f32 %v7873_v18, %v6947_v5  ;;  %v1700_v37 = vpop.f32.mrb[117].mxu1  ;;  %v2098_v46 = vsel %vm77_vm0, %v10433_v17, 0.0  ;;  %v9023_v5 = vld [vmem:[%s12982_s29 + $0x60] sm:$0xff]  ;;  %v141_v18 = vmul.f32 0.03125, %v122_v30 }
 0x315   :  { %v2059_v47 = vmul.f32 %v6946_v27, %v1700_v37  ;;  %2099 = vadd.xlane.f32.xlu1 %v2098_v46  ;;  %v2095_v52 = vsel %vm77_vm0, %v10436_v41, 0.0  ;;  %v10504_v27 = vsub.f32 %v9023_v5, %v139_v55  ;;  %v172_v46 = vmul.f32 %v10495_v32, %v10495_v32 }
 0x316   :  { %2096 = vadd.xlane.f32.xlu0 %v2095_v52  ;;  %v10454_v57 = vadd.f32 %v2060_v45, %v10367_v20  ;;  %v10511_v45 = vsub.f32 %v9024_v43, %v142_v33  ;;  %v9025_v52 = vld [vmem:[%s12982_s29 + $0x70] sm:$0xff] }
 0x317   :  { %v7876_v60 = vpop.f32.mrb[118].mxu1  ;;  %v10457_v0 = vadd.f32 %v2059_v47, %v10372_v40  ;;  %v9020_v40 = vld [vmem:[%s12982_s29 + $0x58] sm:$0xff]  ;;  %v205_v47 = vsel %vm77_vm0, %v169_v26, 0.0  ;;  %v171_v53 = vmul.f32 %v10504_v27, %v10504_v27 }
 0x318   :  { %v2062_v3 = vmul.f32 %v7876_v60, %v6949_v25  ;;  %v1710_v4 = vpop.f32.mrb[119].mxu1  ;;  %v2104_v8 = vsel %vm77_vm0, %v10454_v57, 0.0  ;;  %v10471_v9 = vsub.f32 %v9020_v40, %v138_v23  ;;  %v10520_v25 = vsub.f32 %v9025_v52, %v141_v18 }
 0x319   :  { %v2061_v20 = vmul.f32 %v6948_v34, %v1710_v4  ;;  %2105 = vadd.xlane.f32.xlu1 %v2104_v8  ;;  %v2101_v6 = vsel %vm77_vm0, %v10457_v0, 0.0  ;;  %v214_v34 = vsel %vm77_vm0, %v172_v46, 0.0  ;;  %v174_v38 = vmul.f32 %v10511_v45, %v10511_v45 }
 0x31a   :  { %2102 = vadd.xlane.f32.xlu0 %v2101_v6  ;;  %v10474_v10 = vadd.f32 %v2062_v3, %v10377_v28  ;;  %v170_v35 = vmul.f32 %v10471_v9, %v10471_v9  ;;  %v211_v23 = vsel %vm77_vm0, %v171_v53, 0.0  ;;  %v173_v24 = vmul.f32 %v10520_v25, %v10520_v25  ;;  %v690_v3 = vld [vmem:[%s12961_s9 + $0x8] sm:$0xff] }
 0x31b   :  { %v10479_v16 = vadd.f32 %v2061_v20, %v10382_v21  ;;  %v220_v60 = vsel %vm77_vm0, %v174_v38, 0.0  ;;  %v8441_v4 = vpack.c.bf16 %v690_v3, %v689_v2 }
 0x31c   :  { %v2110_v28 = vsel %vm77_vm0, %v10474_v10, 0.0  ;;  %v208_v37 = vsel %vm77_vm0, %v170_v35, 0.0  ;;  %v217_v61 = vsel %vm77_vm0, %v173_v24, 0.0 }
 0x31d   :  { %2111 = vadd.xlane.f32.xlu1 %v2110_v28  ;;  %v2107_v21 = vsel %vm77_vm0, %v10479_v16, 0.0  ;;  %8442 = vmatprep.subr.bf16.mxu0 %v8441_v4 }
 0x31e   :  { %2108 = vadd.xlane.f32.xlu0 %v2107_v21  ;;  %8522 = vmatprep.subr.bf16.mxu1 %v8441_v4 }
 0x31f   :  { %8444 = vmatpush3.bf16.msra.mxu0 %v8441_v4  ;;  %8524 = vmatpush3.bf16.msra.mxu1 %v8441_v4 }
 0x321   :  { %203 = vadd.xlane.f32.xlu1 %v202_v7 }
 0x322   :  { %200 = vadd.xlane.f32.xlu0 %v199_v36 }
 0x325   :  { %209 = vadd.xlane.f32.xlu1 %v208_v37 }
 0x326   :  { %206 = vadd.xlane.f32.xlu0 %v205_v47 }
 0x329   :  { %215 = vadd.xlane.f32.xlu1 %v214_v34 }
 0x32a   :  { %212 = vadd.xlane.f32.xlu0 %v211_v23 }
 0x32d   :  { %221 = vadd.xlane.f32.xlu1 %v220_v60 }
 0x32e   :  { %218 = vadd.xlane.f32.xlu0 %v217_v61 }
 0x396   :  { %v2082_v8 = vpop.xlane.xlu1 %2081 }
 0x397   :  { %v2114_v20 = vmul.f32 0.03125, %v2082_v8  ;;  %v2079_v6 = vpop.xlane.xlu0 %2078 }
 0x398   :  { %v2113_v40 = vmul.f32 0.03125, %v2079_v6 }
 0x399   :  { %v10539_v11 = vsub.f32 %v10390_v62, %v2114_v20 }
 0x39a   :  { %v10542_v12 = vsub.f32 %v10392_v63, %v2113_v40  ;;  %v2088_v19 = vpop.xlane.xlu1 %2087 }
 0x39b   :  { %v2116_v59 = vmul.f32 0.03125, %v2088_v19  ;;  %v2085_v55 = vpop.xlane.xlu0 %2084  ;;  %v2138_v13 = vmul.f32 %v10539_v11, %v10539_v11 }
 0x39c   :  { %v2115_v28 = vmul.f32 0.03125, %v2085_v55  ;;  %v2137_v30 = vmul.f32 %v10542_v12, %v10542_v12 }
 0x39d   :  { %v10549_v21 = vsub.f32 %v10404_v42, %v2116_v59  ;;  %v2152_v31 = vsel %vm77_vm0, %v2138_v13, 0.0 }
 0x39e   :  { %v10553_v62 = vsub.f32 %v10406_v44, %v2115_v28  ;;  %v2094_v63 = vpop.xlane.xlu1 %2093  ;;  %2153 = vadd.xlane.f32.xlu1 %v2152_v31  ;;  %v2149_v7 = vsel %vm77_vm0, %v2137_v30, 0.0 }
 0x39f   :  { %v2118_v33 = vmul.f32 0.03125, %v2094_v63  ;;  %2150 = vadd.xlane.f32.xlu0 %v2149_v7  ;;  %v2091_v35 = vpop.xlane.xlu0 %2090  ;;  %v2140_v36 = vmul.f32 %v10549_v21, %v10549_v21 }
 0x3a0   :  { %v2117_v5 = vmul.f32 0.03125, %v2091_v35  ;;  %v2139_v42 = vmul.f32 %v10553_v62, %v10553_v62 }
 0x3a1   :  { %v10561_v26 = vsub.f32 %v10418_v15, %v2118_v33  ;;  %v2158_v44 = vsel %vm77_vm0, %v2140_v36, 0.0 }
 0x3a2   :  { %v10565_v18 = vsub.f32 %v10420_v14, %v2117_v5  ;;  %v2100_v43 = vpop.xlane.xlu1 %2099  ;;  %2159 = vadd.xlane.f32.xlu1 %v2158_v44  ;;  %v2155_v37 = vsel %vm77_vm0, %v2139_v42, 0.0 }
 0x3a3   :  { %v2120_v46 = vmul.f32 0.03125, %v2100_v43  ;;  %2156 = vadd.xlane.f32.xlu0 %v2155_v37  ;;  %v2097_v47 = vpop.xlane.xlu0 %2096  ;;  %v2142_v52 = vmul.f32 %v10561_v26, %v10561_v26 }
 0x3a4   :  { %v2119_v53 = vmul.f32 0.03125, %v2097_v47  ;;  %v2141_v15 = vmul.f32 %v10565_v18, %v10565_v18 }
 0x3a5   :  { %v10573_v34 = vsub.f32 %v10433_v17, %v2120_v46  ;;  %v2164_v14 = vsel %vm77_vm0, %v2142_v52, 0.0 }
 0x3a6   :  { %v10577_v38 = vsub.f32 %v10436_v41, %v2119_v53  ;;  %v2106_v23 = vpop.xlane.xlu1 %2105  ;;  %2165 = vadd.xlane.f32.xlu1 %v2164_v14  ;;  %v2161_v24 = vsel %vm77_vm0, %v2141_v15, 0.0 }
 0x3a7   :  { %v2122_v60 = vmul.f32 0.03125, %v2106_v23  ;;  %2162 = vadd.xlane.f32.xlu0 %v2161_v24  ;;  %v2103_v61 = vpop.xlane.xlu0 %2102  ;;  %v2144_v2 = vmul.f32 %v10573_v34, %v10573_v34 }
 0x3a8   :  { %v2121_v3 = vmul.f32 0.03125, %v2103_v61  ;;  %v2143_v17 = vmul.f32 %v10577_v38, %v10577_v38 }
 0x3a9   :  { %v10585_v4 = vsub.f32 %v10454_v57, %v2122_v60  ;;  %v2170_v41 = vsel %vm77_vm0, %v2144_v2, 0.0 }
 0x3aa   :  { %v10589_v8 = vsub.f32 %v10457_v0, %v2121_v3  ;;  %2171 = vadd.xlane.f32.xlu1 %v2170_v41  ;;  %v2112_v20 = vpop.xlane.xlu1 %2111  ;;  %v2167_v6 = vsel %vm77_vm0, %v2143_v17, 0.0 }
 0x3ab   :  { %v2124_v40 = vmul.f32 0.03125, %v2112_v20  ;;  %2168 = vadd.xlane.f32.xlu0 %v2167_v6  ;;  %v2109_v19 = vpop.xlane.xlu0 %2108  ;;  %v2146_v59 = vmul.f32 %v10585_v4, %v10585_v4  ;;  %v691_v6 = vld [vmem:[%s12961_s9 + $0x10] sm:$0xff] }
 0x3ac   :  { %v2123_v55 = vmul.f32 0.03125, %v2109_v19  ;;  %v2145_v57 = vmul.f32 %v10589_v8, %v10589_v8 }
 0x3ad   :  { %v10597_v13 = vsub.f32 %v10474_v10, %v2124_v40  ;;  %v2176_v0 = vsel %vm77_vm0, %v2146_v59, 0.0  ;;  %v692_v40 = vld [vmem:[%s12961_s9 + $0x18] sm:$0xff] }
 0x3ae   :  { %v10601_v28 = vsub.f32 %v10479_v16, %v2123_v55  ;;  %2177 = vadd.xlane.f32.xlu1 %v2176_v0  ;;  %v204_v30 = vpop.xlane.xlu1 %203  ;;  %v2173_v31 = vsel %vm77_vm0, %v2145_v57, 0.0  ;;  %v8445_v57 = vpack.c.bf16 %v692_v40, %v691_v6 }
 0x3af   :  { %v232_v63 = vmul.f32 0.03125, %v204_v30  ;;  %2174 = vadd.xlane.f32.xlu0 %v2173_v31  ;;  %v201_v7 = vpop.xlane.xlu0 %200  ;;  %v2148_v33 = vmul.f32 %v10597_v13, %v10597_v13  ;;  %v9026_v30 = vld [vmem:[%s12957_s4] ss:$0 sm:$0xff] }
 0x3b0   :  { %v231_v35 = vmul.f32 0.03125, %v201_v7  ;;  %v2147_v10 = vmul.f32 %v10601_v28, %v10601_v28  ;;  %8446 = vmatprep.subr.bf16.mxu0 %v8445_v57  ;;  %8526 = vmatprep.subr.bf16.mxu1 %v8445_v57 }
 0x3b1   :  { %v248_v36 = vadd.f32 1e-05, %v232_v63  ;;  %v2182_v5 = vsel %vm77_vm0, %v2148_v33, 0.0  ;;  %8448 = vmatpush3.bf16.msra.mxu0 %v8445_v57  ;;  %8528 = vmatpush3.bf16.msra.mxu1 %v8445_v57 }
 0x3b2   :  { %v247_v42 = vadd.f32 1e-05, %v231_v35  ;;  %2183 = vadd.xlane.f32.xlu1 %v2182_v5  ;;  %v210_v16 = vpop.xlane.xlu1 %209  ;;  %v2179_v44 = vsel %vm77_vm0, %v2147_v10, 0.0 }
 0x3b3   :  { %8794 = vrsqrt.f32 %v248_v36  ;;  %v234_v43 = vmul.f32 0.03125, %v210_v16  ;;  %2180 = vadd.xlane.f32.xlu0 %v2179_v44  ;;  %v207_v37 = vpop.xlane.xlu0 %206 }
 0x3b4   :  { %8796 = vrsqrt.f32 %v247_v42  ;;  %v233_v46 = vmul.f32 0.03125, %v207_v37 }
 0x3b5   :  { %v250_v47 = vadd.f32 1e-05, %v234_v43 }
 0x3b6   :  { %v249_v52 = vadd.f32 1e-05, %v233_v46  ;;  %v216_v53 = vpop.xlane.xlu1 %215 }
 0x3b7   :  { %8798 = vrsqrt.f32 %v250_v47  ;;  %v236_v15 = vmul.f32 0.03125, %v216_v53  ;;  %v213_v14 = vpop.xlane.xlu0 %212 }
 0x3b8   :  { %8800 = vrsqrt.f32 %v249_v52  ;;  %v235_v23 = vmul.f32 0.03125, %v213_v14 }
 0x3b9   :  { %v252_v24 = vadd.f32 1e-05, %v236_v15 }
 0x3ba   :  { %v251_v60 = vadd.f32 1e-05, %v235_v23  ;;  %v222_v61 = vpop.xlane.xlu1 %221 }
 0x3bb   :  { %8802 = vrsqrt.f32 %v252_v24  ;;  %v238_v2 = vmul.f32 0.03125, %v222_v61  ;;  %v219_v3 = vpop.xlane.xlu0 %218 }
 0x3bc   :  { %8804 = vrsqrt.f32 %v251_v60  ;;  %v237_v17 = vmul.f32 0.03125, %v219_v3 }
 0x3bd   :  { %v8795_v41 = vpop.eup %8794  ;;  %v254_v20 = vadd.f32 1e-05, %v238_v2 }
 0x3be   :  { %v8797_v19 = vpop.eup %8796  ;;  %v253_v59 = vadd.f32 1e-05, %v237_v17  ;;  %v280_v55 = vmul.f32 %v8795_v41, %v10451_v50  ;;  %v9027_v50 = vld [vmem:[%s12958_s5] ss:$0 sm:$0xff] }
 0x3bf   :  { %8806 = vrsqrt.f32 %v254_v20  ;;  %v279_v0 = vmul.f32 %v8797_v19, %v10462_v1 }
 0x3c0   :  { %8808 = vrsqrt.f32 %v253_v59  ;;  %v302_v31 = vmul.f32 %v9026_v30, %v280_v55 }
 0x3c1   :  { %v8799_v63 = vpop.eup %8798  ;;  %v301_v7 = vmul.f32 %v9026_v30, %v279_v0 }
 0x3c2   :  { %v8801_v33 = vpop.eup %8800  ;;  %v324_v35 = vadd.f32 %v9027_v50, %v302_v31  ;;  %v282_v1 = vmul.f32 %v8799_v63, %v10471_v9 }
 0x3c3   :  { %v323_v10 = vadd.f32 %v9027_v50, %v301_v7  ;;  %v281_v36 = vmul.f32 %v8801_v33, %v10484_v22 }
 0x3c4   :  { %v304_v5 = vmul.f32 %v9026_v30, %v282_v1 }
 0x3c5   :  { %v8803_v42 = vpop.eup %8802  ;;  %7669 = vmatprep.mubr.msk.f32.mxu0 %vm77_vm0, %v323_v10  ;;  %v303_v16 = vmul.f32 %v9026_v30, %v281_v36  ;;  %v10627_v44 = vpack.c.bf16 %v324_v35, %v323_v10 }
 0x3c6   :  { %v8805_v43 = vpop.eup %8804  ;;  %7670 = vmatmul.mubr.msk.f32.gmra.mrb[8].mxu0 %vm77_vm0, %v324_v35  ;;  %v326_v37 = vadd.f32 %v9027_v50, %v304_v5  ;;  %v284_v46 = vmul.f32 %v8803_v42, %v10495_v32 }
 0x3c7   :  { %v325_v47 = vadd.f32 %v9027_v50, %v303_v16  ;;  %v283_v52 = vmul.f32 %v8805_v43, %v10504_v27  ;;  %v10649_v43 = vld [vmem:[%s12962_s7] ss:$0 sm:$0xff] }
 0x3c8   :  { %v306_v9 = vmul.f32 %v9026_v30, %v284_v46 }
 0x3c9   :  { %v8807_v53 = vpop.eup %8806  ;;  %7672 = vmatprep.mubr.msk.f32.mxu0 %vm77_vm0, %v325_v47  ;;  %v305_v22 = vmul.f32 %v9026_v30, %v283_v52  ;;  %v10633_v15 = vpack.c.bf16 %v326_v37, %v325_v47 }
 0x3ca   :  { %v8809_v14 = vpop.eup %8808  ;;  %7673 = vmatmul.mubr.msk.f32.gmra.mrb[10].mxu0 %vm77_vm0, %v326_v37  ;;  %v328_v23 = vadd.f32 %v9027_v50, %v306_v9  ;;  %v286_v24 = vmul.f32 %v8807_v53, %v10511_v45 }
 0x3cb   :  { %v327_v60 = vadd.f32 %v9027_v50, %v305_v22  ;;  %v285_v61 = vmul.f32 %v8809_v14, %v10520_v25 }
 0x3cc   :  { %v308_v32 = vmul.f32 %v9026_v30, %v286_v24 }
 0x3cd   :  { %7675 = vmatprep.mubr.msk.f32.mxu0 %vm77_vm0, %v327_v60  ;;  %v307_v27 = vmul.f32 %v9026_v30, %v285_v61  ;;  %v10639_v2 = vpack.c.bf16 %v328_v23, %v327_v60  ;;  %v10657_v60 = vld [vmem:[%s12963_s8] ss:$0 sm:$0xff] }
 0x3ce   :  { %7676 = vmatmul.mubr.msk.f32.gmra.mrb[12].mxu0 %vm77_vm0, %v328_v23  ;;  %v330_v3 = vadd.f32 %v9027_v50, %v308_v32 }
 0x3cf   :  { %v329_v17 = vadd.f32 %v9027_v50, %v307_v27 }
 0x3d1   :  { %7678 = vmatprep.mubr.msk.f32.mxu0 %vm77_vm0, %v329_v17  ;;  %v10643_v41 = vpack.c.bf16 %v330_v3, %v329_v17 }
 0x3d2   :  { %7679 = vmatmul.mubr.msk.f32.gmra.mrb[14].mxu0 %vm77_vm0, %v330_v3 }
 0x42b   :  { %v2154_v45 = vpop.xlane.xlu1 %2153 }
 0x42c   :  { %v2186_v20 = vmul.f32 0.03125, %v2154_v45  ;;  %v2151_v6 = vpop.xlane.xlu0 %2150 }
 0x42d   :  { %v2185_v25 = vmul.f32 0.03125, %v2151_v6 }
 0x42e   :  { %v2198_v40 = vadd.f32 1e-05, %v2186_v20 }
 0x42f   :  { %v2197_v19 = vadd.f32 1e-05, %v2185_v25  ;;  %v2160_v59 = vpop.xlane.xlu1 %2159 }
 0x430   :  { %8810 = vrsqrt.f32 %v2198_v40  ;;  %v2188_v55 = vmul.f32 0.03125, %v2160_v59  ;;  %v2157_v57 = vpop.xlane.xlu0 %2156 }
 0x431   :  { %8812 = vrsqrt.f32 %v2197_v19  ;;  %v2187_v0 = vmul.f32 0.03125, %v2157_v57 }
 0x432   :  { %v2200_v30 = vadd.f32 1e-05, %v2188_v55 }
 0x433   :  { %v2199_v31 = vadd.f32 1e-05, %v2187_v0  ;;  %v2166_v63 = vpop.xlane.xlu1 %2165 }
 0x434   :  { %8814 = vrsqrt.f32 %v2200_v30  ;;  %v2190_v7 = vmul.f32 0.03125, %v2166_v63  ;;  %v2163_v33 = vpop.xlane.xlu0 %2162 }
 0x435   :  { %8816 = vrsqrt.f32 %v2199_v31  ;;  %v2189_v50 = vmul.f32 0.03125, %v2163_v33 }
 0x436   :  { %v2202_v35 = vadd.f32 1e-05, %v2190_v7 }
 0x437   :  { %v2201_v1 = vadd.f32 1e-05, %v2189_v50  ;;  %v2172_v10 = vpop.xlane.xlu1 %2171 }
 0x438   :  { %8818 = vrsqrt.f32 %v2202_v35  ;;  %v2192_v36 = vmul.f32 0.03125, %v2172_v10  ;;  %v2169_v5 = vpop.xlane.xlu0 %2168 }
 0x439   :  { %8820 = vrsqrt.f32 %v2201_v1  ;;  %v2191_v42 = vmul.f32 0.03125, %v2169_v5  ;;  %v544_v1 = vlaneseq }
 0x43a   :  { %v8811_v16 = vpop.eup %8810  ;;  %v2204_v37 = vadd.f32 1e-05, %v2192_v36 }
 0x43b   :  { %v8813_v46 = vpop.eup %8812  ;;  %v2222_v47 = vmul.f32 %v8811_v16, %v10539_v11  ;;  %v2203_v52 = vadd.f32 1e-05, %v2191_v42  ;;  %v2178_v9 = vpop.xlane.xlu1 %2177 }
 0x43c   :  { %8822 = vrsqrt.f32 %v2204_v37  ;;  %v2194_v53 = vmul.f32 0.03125, %v2178_v9  ;;  %v2175_v22 = vpop.xlane.xlu0 %2174  ;;  %v2221_v14 = vmul.f32 %v8813_v46, %v10542_v12  ;;  %v545_v46 = vshrl.u32 %v544_v1, 7 }
 0x43d   :  { %v2240_v23 = vmul.f32 %v10649_v43, %v2222_v47  ;;  %8824 = vrsqrt.f32 %v2203_v52  ;;  %v2193_v24 = vmul.f32 0.03125, %v2175_v22 }
 0x43e   :  { %v8815_v61 = vpop.eup %8814  ;;  %v2206_v32 = vadd.f32 1e-05, %v2194_v53  ;;  %v2239_v11 = vmul.f32 %v10649_v43, %v2221_v14 }
 0x43f   :  { %v8817_v27 = vpop.eup %8816  ;;  %v2205_v3 = vadd.f32 1e-05, %v2193_v24  ;;  %v2184_v17 = vpop.xlane.xlu1 %2183  ;;  %v2224_v45 = vmul.f32 %v8815_v61, %v10549_v21  ;;  %v2258_v19 = vadd.f32 %v10657_v60, %v2240_v23  ;;  %v10691_v23 = vadd.s32 88, %v545_v46 }
 0x440   :  { %8826 = vrsqrt.f32 %v2206_v32  ;;  %v2196_v12 = vmul.f32 0.03125, %v2184_v17  ;;  %v2181_v20 = vpop.xlane.xlu0 %2180  ;;  %v2257_v6 = vadd.f32 %v10657_v60, %v2239_v11  ;;  %v2223_v25 = vmul.f32 %v8817_v27, %v10553_v62 }
 0x441   :  { %8828 = vrsqrt.f32 %v2205_v3  ;;  %v2195_v40 = vmul.f32 0.03125, %v2181_v20  ;;  %v2242_v59 = vmul.f32 %v10649_v43, %v2224_v45  ;;  %vm568_vm2 = vcmp.lt.s32.totalorder %v10691_v23, 90 }
 0x442   :  { %v8819_v55 = vpop.eup %8818  ;;  %v2208_v57 = vadd.f32 1e-05, %v2196_v12  ;;  %7885 = vmatprep.mubr.msk.f32.mxu0 %vm77_vm0, %v2257_v6  ;;  %v2241_v0 = vmul.f32 %v10649_v43, %v2223_v25 }
 0x443   :  { %v8821_v21 = vpop.eup %8820  ;;  %v2207_v30 = vadd.f32 1e-05, %v2195_v40  ;;  %7886 = vmatmul.mubr.msk.f32.vlgmr.msra.gmra.mrb[16].mxu0 %vm77_vm0, %v2258_v19  ;;  %v2226_v31 = vmul.f32 %v8819_v55, %v10561_v26  ;;  %v2260_v7 = vadd.f32 %v10657_v60, %v2242_v59 }
 0x444   :  { %8830 = vrsqrt.f32 %v2208_v57  ;;  %v2259_v62 = vadd.f32 %v10657_v60, %v2241_v0  ;;  %v2225_v63 = vmul.f32 %v8821_v21, %v10565_v18 }
 0x445   :  { %8832 = vrsqrt.f32 %v2207_v30  ;;  %v2244_v33 = vmul.f32 %v10649_v43, %v2226_v31 }
 0x446   :  { %v8823_v50 = vpop.eup %8822  ;;  %7888 = vmatprep.mubr.msk.f32.mxu0 %vm77_vm0, %v2259_v62  ;;  %v2243_v35 = vmul.f32 %v10649_v43, %v2225_v63 }
 0x447   :  { %v8825_v10 = vpop.eup %8824  ;;  %7889 = vmatmul.mubr.msk.f32.gmra.mrb[18].mxu0 %vm77_vm0, %v2260_v7  ;;  %v2228_v26 = vmul.f32 %v8823_v50, %v10573_v34  ;;  %v2262_v5 = vadd.f32 %v10657_v60, %v2244_v33 }
 0x448   :  { %v2261_v36 = vadd.f32 %v10657_v60, %v2243_v35  ;;  %v2227_v18 = vmul.f32 %v8825_v10, %v10577_v38 }
 0x449   :  { %v2246_v42 = vmul.f32 %v10649_v43, %v2228_v26 }
 0x44a   :  { %v8827_v16 = vpop.eup %8826  ;;  %7891 = vmatprep.mubr.msk.f32.mxu0 %vm77_vm0, %v2261_v36  ;;  %v2245_v37 = vmul.f32 %v10649_v43, %v2227_v18 }
 0x44b   :  { %v8829_v47 = vpop.eup %8828  ;;  %7892 = vmatmul.mubr.msk.f32.gmra.mrb[20].mxu0 %vm77_vm0, %v2262_v5  ;;  %v2230_v52 = vmul.f32 %v8827_v16, %v10585_v4  ;;  %v2264_v38 = vadd.f32 %v10657_v60, %v2246_v42 }
 0x44c   :  { %v2263_v34 = vadd.f32 %v10657_v60, %v2245_v37  ;;  %v2229_v9 = vmul.f32 %v8829_v47, %v10589_v8 }
 0x44d   :  { %v2248_v53 = vmul.f32 %v10649_v43, %v2230_v52 }
 0x44e   :  { %v8831_v22 = vpop.eup %8830  ;;  %7894 = vmatprep.mubr.msk.f32.mxu0 %vm77_vm0, %v2263_v34  ;;  %v2247_v14 = vmul.f32 %v10649_v43, %v2229_v9 }
 0x44f   :  { %v8833_v24 = vpop.eup %8832  ;;  %7895 = vmatmul.mubr.msk.f32.gmra.mrb[22].mxu0 %vm77_vm0, %v2264_v38  ;;  %v2232_v4 = vmul.f32 %v8831_v22, %v10597_v13  ;;  %v2266_v32 = vadd.f32 %v10657_v60, %v2248_v53  ;;  %v528_v53 = vmax.f32 %v9926_v29, 0.0  ;;  %v529_v22 = vmax.f32 %v9919_v51, 0.0 }
 0x450   :  { %v2265_v61 = vadd.f32 %v10657_v60, %v2247_v14  ;;  %v2231_v8 = vmul.f32 %v8833_v24, %v10601_v28  ;;  %v530_v14 = vmax.f32 %v9938_v56, 0.0  ;;  %v531_v24 = vmax.f32 %v9932_v54, 0.0 }
 0x451   :  { %v2250_v11 = vmul.f32 %v10649_v43, %v2232_v4  ;;  %v532_v4 = vmax.f32 %v9950_v39, 0.0 }
 0x452   :  { %7897 = vmatprep.mubr.msk.f32.mxu0 %vm77_vm0, %v2265_v61  ;;  %v2249_v27 = vmul.f32 %v10649_v43, %v2231_v8  ;;  %v533_v61 = vmax.f32 %v9944_v58, 0.0 }
 0x453   :  { %7898 = vmatmul.mubr.msk.f32.gmra.mrb[24].mxu0 %vm77_vm0, %v2266_v32  ;;  %v2268_v3 = vadd.f32 %v10657_v60, %v2250_v11 }
 0x454   :  { %v2267_v13 = vadd.f32 %v10657_v60, %v2249_v27 }
 0x455   :  { %v2304_v17 = vsel %vm568_vm2, %v2268_v3, 0.0 }
 0x456   :  { %7900 = vmatprep.mubr.msk.f32.mxu0 %vm77_vm0, %v2267_v13  ;;  %v534_v13 = vmax.f32 %v9962_v49, 0.0 }
 0x457   :  { %7901 = vmatmul.mubr.msk.f32.gmra.mrb[26].mxu0 %vm77_vm0, %v2304_v17 }
 0x499   :  { %v10709_v28 = vpop.f32.mrb[8].mxu0 }
 0x49a   :  { %v10711_v45 = vpop.f32.mrb[9].mxu0 }
 0x49d   :  { %v10713_v43 = vpop.f32.mrb[10].mxu0 }
 0x49e   :  { %v10715_v12 = vpop.f32.mrb[11].mxu0 }
 0x4a1   :  { %v10717_v20 = vpop.f32.mrb[12].mxu0 }
 0x4a2   :  { %v10719_v6 = vpop.f32.mrb[13].mxu0 }
 0x4a5   :  { %v10721_v60 = vpop.f32.mrb[14].mxu0 }
 0x4a6   :  { %v10723_v25 = vpop.f32.mrb[15].mxu0 }
 0x516   :  { %v7887_v40 = vpop.f32.mrb[16].mxu0 }
 0x517   :  { %v2407_v19 = vpop.f32.mrb[17].mxu0  ;;  %v2467_v18 = vmax.f32 %v7887_v40, 0.0 }
 0x518   :  { %v8686_v59 = vpack.i.bf16 %v7887_v40, %v2407_v19  ;;  %v2466_v36 = vmax.f32 %v2407_v19, 0.0 }
 0x51a   :  { %8657 = vrot.lane.b32.xlu0 %v8686_v59, %s9286_s21  ;;  %v7890_v55 = vpop.f32.mrb[18].mxu0 }
 0x51b   :  { %v2417_v57 = vpop.f32.mrb[19].mxu0  ;;  %v2469_v42 = vmax.f32 %v7890_v55, 0.0 }
 0x51c   :  { %v8691_v0 = vpack.i.bf16 %v7890_v55, %v2417_v57  ;;  %v2468_v5 = vmax.f32 %v2417_v57, 0.0 }
 0x51e   :  { %8662 = vrot.lane.b32.xlu1 %v8691_v0, %s9286_s21  ;;  %v7893_v21 = vpop.f32.mrb[20].mxu0 }
 0x51f   :  { %v2427_v30 = vpop.f32.mrb[21].mxu0  ;;  %v2471_v37 = vmax.f32 %v7893_v21, 0.0 }
 0x520   :  { %v8696_v31 = vpack.i.bf16 %v7893_v21, %v2427_v30  ;;  %v2470_v16 = vmax.f32 %v2427_v30, 0.0 }
 0x522   :  { %8667 = vrot.lane.b32.xlu1 %v8696_v31, %s9286_s21  ;;  %v7896_v62 = vpop.f32.mrb[22].mxu0 }
 0x523   :  { %v2437_v63 = vpop.f32.mrb[23].mxu0  ;;  %v2473_v47 = vmax.f32 %v7896_v62, 0.0 }
 0x524   :  { %v8701_v7 = vpack.i.bf16 %v7896_v62, %v2437_v63  ;;  %v2472_v46 = vmax.f32 %v2437_v63, 0.0 }
 0x526   :  { %8672 = vrot.lane.b32.xlu1 %v8701_v7, %s9286_s21  ;;  %v7899_v33 = vpop.f32.mrb[24].mxu0 }
 0x527   :  { %v2447_v50 = vpop.f32.mrb[25].mxu0  ;;  %v2475_v34 = vmax.f32 %v7899_v33, 0.0 }
 0x528   :  { %v8706_v35 = vpack.i.bf16 %v7899_v33, %v2447_v50  ;;  %v2474_v52 = vmax.f32 %v2447_v50, 0.0 }
 0x52a   :  { %8677 = vrot.lane.b32.xlu0 %v8706_v35, %s9286_s21  ;;  %v7902_v1 = vpop.f32.mrb[26].mxu0 }
 0x52b   :  { %v2457_v10 = vpop.f32.mrb[27].mxu0  ;;  %v2477_v38 = vmax.f32 %v7902_v1, 0.0 }
 0x52c   :  { %v8711_v26 = vpack.i.bf16 %v7902_v1, %v2457_v10  ;;  %v2476_v9 = vmax.f32 %v2457_v10, 0.0 }
 0x52e   :  { %8682 = vrot.lane.b32.xlu1 %v8711_v26, %s9286_s21 }
 0x532   :  { %2906 = vrot.lane.b32.xlu1 %v2466_v36, %s9287_s22 }
 0x536   :  { %2908 = vrot.lane.b32.xlu1 %v2467_v18, %s9287_s22 }
 0x53a   :  { %2910 = vrot.lane.b32.xlu1 %v2468_v5, %s9287_s22 }
 0x53e   :  { %2912 = vrot.lane.b32.xlu1 %v2469_v42, %s9287_s22 }
 0x542   :  { %2914 = vrot.lane.b32.xlu1 %v2470_v16, %s9287_s22 }
 0x546   :  { %2916 = vrot.lane.b32.xlu1 %v2471_v37, %s9287_s22 }
 0x548   :  { %2539 = vxpose.xlu0.b32.start [1/12] (short) (narrow) %v2466_v36, 16 }
 0x54a   :  { %2918 = vrot.lane.b32.xlu1 %v2472_v46, %s9287_s22 }
 0x54c   :  { %2540 = vxpose.xlu0.b32.cont [2/12] (short) (narrow) %v2467_v18, 16 }
 0x54e   :  { %2920 = vrot.lane.b32.xlu1 %v2473_v47, %s9287_s22 }
 0x550   :  { %2541 = vxpose.xlu0.b32.cont [3/12] (short) (narrow) %v2468_v5, 16 }
 0x552   :  { %2922 = vrot.lane.b32.xlu1 %v2474_v52, %s9287_s22 }
 0x554   :  { %2542 = vxpose.xlu0.b32.cont [4/12] (short) (narrow) %v2469_v42, 16 }
 0x556   :  { %2924 = vrot.lane.b32.xlu1 %v2475_v34, %s9287_s22 }
 0x558   :  { %2543 = vxpose.xlu0.b32.cont [5/12] (short) (narrow) %v2470_v16, 16 }
 0x55a   :  { %2926 = vrot.lane.b32.xlu1 %v2476_v9, %s9287_s22 }
 0x55c   :  { %2544 = vxpose.xlu0.b32.cont [6/12] (short) (narrow) %v2471_v37, 16 }
 0x55e   :  { %2928 = vrot.lane.b32.xlu1 %v2477_v38, %s9287_s22 }
 0x560   :  { %2545 = vxpose.xlu0.b32.cont [7/12] (short) (narrow) %v2472_v46, 16 }
 0x562   :  { %8687 = vrot.lane.b32.xlu1 %v8686_v59, %s9288_s1 }
 0x564   :  { %2546 = vxpose.xlu0.b32.cont [8/12] (short) (narrow) %v2473_v47, 16 }
 0x566   :  { %8692 = vrot.lane.b32.xlu1 %v8691_v0, %s9288_s1  ;;  %v535_v0 = vmax.f32 %v9956_v48, 0.0 }
 0x568   :  { %2547 = vxpose.xlu0.b32.cont [9/12] (short) (narrow) %v2474_v52, 16 }
 0x56a   :  { %8697 = vrot.lane.b32.xlu1 %v8696_v31, %s9288_s1 }
 0x56c   :  { %2548 = vxpose.xlu0.b32.cont [10/12] (short) (narrow) %v2475_v34, 16 }
 0x56e   :  { %8702 = vrot.lane.b32.xlu1 %v8701_v7, %s9288_s1 }
 0x570   :  { %2549 = vxpose.xlu0.b32.cont [11/12] (short) (narrow) %v2476_v9, 16 }
 0x572   :  { %8707 = vrot.lane.b32.xlu1 %v8706_v35, %s9288_s1 }
 0x574   :  { %2550 = vxpose.xlu0.b32.end [12/12] (short) (narrow) %v2477_v38, 16 }
 0x576   :  { %8712 = vrot.lane.b32.xlu1 %v8711_v26, %s9288_s1 }
 0x57a   :  { %3055 = vrot.lane.b32.xlu1 %v528_v53, %s9287_s22 }
 0x57e   :  { %3057 = vrot.lane.b32.xlu1 %v529_v22, %s9287_s22 }
 0x582   :  { %3059 = vrot.lane.b32.xlu1 %v530_v14, %s9287_s22 }
 0x586   :  { %3061 = vrot.lane.b32.xlu1 %v531_v24, %s9287_s22 }
 0x58a   :  { %3063 = vrot.lane.b32.xlu1 %v532_v4, %s9287_s22 }
 0x58c   :  { %v8658_v8 = vpop.permute.xlu0 %8657 }
 0x58d   :  { %v8660_v32 = vunpack.i.h.bf16 %v8658_v8  ;;  %v8659_v11 = vunpack.i.l.bf16 %v8658_v8 }
 0x58e   :  { %3065 = vrot.lane.b32.xlu1 %v533_v61, %s9287_s22 }
 0x58f   :  { %v2527_v27 = vsel %vm2526_vm3, %v8659_v11, 1.0  ;;  %v2528_v3 = vsel %vm2526_vm3, %v8660_v32, 1.0 }
 0x590   :  { %v8663_v17 = vpop.permute.xlu1 %8662  ;;  %v8449_v40 = vpack.c.bf16 %v2528_v3, %v2527_v27 }
 0x591   :  { %v8665_v19 = vunpack.i.h.bf16 %v8663_v17  ;;  %v8664_v59 = vunpack.i.l.bf16 %v8663_v17 }
 0x592   :  { %3067 = vrot.lane.b32.xlu1 %v534_v13, %s9287_s22  ;;  %8450 = vmatprep.subr.bf16.mxu0 %v8449_v40 }
 0x593   :  { %8452 = vmatpush3.bf16.msra.mxu0 %v8449_v40  ;;  %v2529_v55 = vsel %vm2526_vm3, %v8664_v59, 1.0  ;;  %v2530_v57 = vsel %vm2526_vm3, %v8665_v19, 1.0 }
 0x594   :  { %v8668_v21 = vpop.permute.xlu1 %8667  ;;  %v8453_v30 = vpack.c.bf16 %v2530_v57, %v2529_v55 }
 0x595   :  { %v8670_v31 = vunpack.i.h.bf16 %v8668_v21  ;;  %v8669_v62 = vunpack.i.l.bf16 %v8668_v21 }
 0x596   :  { %3069 = vrot.lane.b32.xlu1 %v535_v0, %s9287_s22  ;;  %8454 = vmatprep.subr.bf16.mxu0 %v8453_v30 }
 0x597   :  { %8456 = vmatpush3.bf16.msra.mxu0 %v8453_v30  ;;  %v2531_v63 = vsel %vm2526_vm3, %v8669_v62, 1.0  ;;  %v2532_v7 = vsel %vm2526_vm3, %v8670_v31, 1.0 }
 0x598   :  { %v8673_v33 = vpop.permute.xlu1 %8672  ;;  %v8457_v50 = vpack.c.bf16 %v2532_v7, %v2531_v63 }
 0x599   :  { %v8675_v35 = vunpack.i.h.bf16 %v8673_v33  ;;  %v8674_v1 = vunpack.i.l.bf16 %v8673_v33 }
 0x59a   :  { %8458 = vmatprep.subr.bf16.mxu0 %v8457_v50 }
 0x59b   :  { %8460 = vmatpush3.bf16.msra.mxu0 %v8457_v50  ;;  %v2533_v10 = vsel %vm2526_vm3, %v8674_v1, 1.0  ;;  %v2534_v26 = vsel %vm2526_vm3, %v8675_v35, 1.0 }
 0x59c   :  { %v8678_v36 = vpop.permute.xlu0 %8677  ;;  %v8461_v18 = vpack.c.bf16 %v2534_v26, %v2533_v10 }
 0x59d   :  { %v8680_v5 = vunpack.i.h.bf16 %v8678_v36  ;;  %v8679_v42 = vunpack.i.l.bf16 %v8678_v36 }
 0x59e   :  { %8462 = vmatprep.subr.bf16.mxu0 %v8461_v18 }
 0x59f   :  { %8464 = vmatpush3.bf16.msra.mxu0 %v8461_v18  ;;  %v2535_v16 = vsel %vm2526_vm3, %v8679_v42, 1.0  ;;  %v2536_v37 = vsel %vm2526_vm3, %v8680_v5, 1.0 }
 0x5a0   :  { %v8683_v46 = vpop.permute.xlu1 %8682  ;;  %v8465_v47 = vpack.c.bf16 %v2536_v37, %v2535_v16 }
 0x5a1   :  { %v8685_v52 = vunpack.i.h.bf16 %v8683_v46  ;;  %v8684_v34 = vunpack.i.l.bf16 %v8683_v46 }
 0x5a2   :  { %8466 = vmatprep.subr.bf16.mxu0 %v8465_v47 }
 0x5a3   :  { %8468 = vmatpush3.bf16.msra.mxu0 %v8465_v47  ;;  %v2537_v9 = vsel %vm2526_vm3, %v8684_v34, 1.0  ;;  %v2538_v38 = vsel %vm2526_vm3, %v8685_v52, 1.0 }
 0x5a4   :  { %v2907_v8 = vpop.permute.xlu1 %2906  ;;  %v8469_v32 = vpack.c.bf16 %v2538_v38, %v2537_v9 }
 0x5a5   :  { %2942 = vxpose.xlu0.b32.start [1/12] (short) (narrow) %v2907_v8, 16 }
 0x5a6   :  { %8470 = vmatprep.subr.bf16.mxu0 %v8469_v32 }
 0x5a7   :  { %8472 = vmatpush3.bf16.msra.mxu0 %v8469_v32 }
 0x5a8   :  { %v2909_v11 = vpop.permute.xlu1 %2908 }
 0x5a9   :  { %2943 = vxpose.xlu0.b32.cont [2/12] (short) (narrow) %v2909_v11, 16 }
 0x5ac   :  { %v2911_v27 = vpop.permute.xlu1 %2910 }
 0x5ad   :  { %2944 = vxpose.xlu0.b32.cont [3/12] (short) (narrow) %v2911_v27, 16 }
 0x5b0   :  { %v2913_v3 = vpop.permute.xlu1 %2912 }
 0x5b1   :  { %2945 = vxpose.xlu0.b32.cont [4/12] (short) (narrow) %v2913_v3, 16 }
 0x5b4   :  { %v2915_v17 = vpop.permute.xlu1 %2914 }
 0x5b5   :  { %2946 = vxpose.xlu0.b32.cont [5/12] (short) (narrow) %v2915_v17, 16 }
 0x5b8   :  { %v2917_v40 = vpop.permute.xlu1 %2916 }
 0x5b9   :  { %2947 = vxpose.xlu0.b32.cont [6/12] (short) (narrow) %v2917_v40, 16 }
 0x5bc   :  { %v2919_v19 = vpop.permute.xlu1 %2918 }
 0x5bd   :  { %2948 = vxpose.xlu0.b32.cont [7/12] (short) (narrow) %v2919_v19, 16 }
 0x5c0   :  { %v2921_v59 = vpop.permute.xlu1 %2920 }
 0x5c1   :  { %2949 = vxpose.xlu0.b32.cont [8/12] (short) (narrow) %v2921_v59, 16 }
 0x5c4   :  { %v2923_v55 = vpop.permute.xlu1 %2922 }
 0x5c5   :  { %2950 = vxpose.xlu0.b32.cont [9/12] (short) (narrow) %v2923_v55, 16 }
 0x5c8   :  { %v2925_v57 = vpop.permute.xlu1 %2924  ;;  %v2555_v21 = vpop.trf.xlu0 }
 0x5c9   :  { %2951 = vxpose.xlu0.b32.cont [10/12] (short) (narrow) %v2925_v57, 16  ;;  %7927 = vmatprep.mubr.msk.f32.mxu0 %vm2571_vm4, %v2555_v21 }
 0x5cc   :  { %v2927_v30 = vpop.permute.xlu1 %2926  ;;  %v2556_v31 = vpop.trf.xlu0 }
 0x5cd   :  { %2952 = vxpose.xlu0.b32.cont [11/12] (short) (narrow) %v2927_v30, 16  ;;  %7928 = vmatmul.mubr.msk.f32.vlgmr.msra.gmra.mrb[28].mxu0 %vm2571_vm4, %v2556_v31 }
 0x5ce   :  { %7934 = vmatprep.mubr.msk.f32.mxu0 %vm2526_vm3, %v528_v53 }
 0x5d0   :  { %v2929_v62 = vpop.permute.xlu1 %2928 }
 0x5d1   :  { %2953 = vxpose.xlu0.b32.end [12/12] (short) (narrow) %v2929_v62, 16 }
 0x5d4   :  { %v8688_v63 = vpop.permute.xlu1 %8687 }
 0x5d5   :  { %v8690_v50 = vunpack.i.h.bf16 %v8688_v63  ;;  %v8689_v35 = vunpack.i.l.bf16 %v8688_v63 }
 0x5d7   :  { %v2882_v18 = vsel %vm2526_vm3, %v8689_v35, 1.0  ;;  %v2883_v5 = vsel %vm2526_vm3, %v8690_v50, 1.0 }
 0x5d8   :  { %v8693_v7 = vpop.permute.xlu1 %8692  ;;  %v8477_v29 = vpack.c.bf16 %v2883_v5, %v2882_v18  ;;  %v9032_v18 = vld [vmem:[%s12984_s26 + $0x20] sm:$0xff]  ;;  %v9033_v5 = vld [vmem:[%s12984_s26 + $0x28] sm:$0xff] }
 0x5d9   :  { %v8695_v10 = vunpack.i.h.bf16 %v8693_v7  ;;  %v8694_v26 = vunpack.i.l.bf16 %v8693_v7 }
 0x5db   :  { %v2884_v46 = vsel %vm2526_vm3, %v8694_v26, 1.0  ;;  %v2885_v47 = vsel %vm2526_vm3, %v8695_v10, 1.0 }
 0x5dc   :  { %v8698_v33 = vpop.permute.xlu1 %8697  ;;  %v8481_v34 = vpack.c.bf16 %v2885_v47, %v2884_v46  ;;  %v9039_v46 = vld [vmem:[%s12984_s26 + $0x58] sm:$0xff]  ;;  %v9040_v47 = vld [vmem:[%s12984_s26 + $0x60] sm:$0xff] }
 0x5dd   :  { %v8700_v53 = vunpack.i.h.bf16 %v8698_v33  ;;  %v8699_v37 = vunpack.i.l.bf16 %v8698_v33 }
 0x5df   :  { %v2886_v8 = vsel %vm2526_vm3, %v8699_v37, 1.0  ;;  %v2887_v32 = vsel %vm2526_vm3, %v8700_v53, 1.0  ;;  %v9037_v53 = vld [vmem:[%s12984_s26 + $0x48] sm:$0xff]  ;;  %v9038_v37 = vld [vmem:[%s12984_s26 + $0x50] sm:$0xff] }
 0x5e0   :  { %v8703_v42 = vpop.permute.xlu1 %8702  ;;  %v8485_v51 = vpack.c.bf16 %v2887_v32, %v2886_v8  ;;  %v9045_v8 = vld [vmem:[%s12984_s26 + $0x88] sm:$0xff]  ;;  %v9046_v32 = vld [vmem:[%s12984_s26 + $0x90] sm:$0xff] }
 0x5e1   :  { %v8705_v9 = vunpack.i.h.bf16 %v8703_v42  ;;  %v8704_v38 = vunpack.i.l.bf16 %v8703_v42  ;;  %v9034_v42 = vld [vmem:[%s12984_s26 + $0x30] sm:$0xff] }
 0x5e3   :  { %v2888_v56 = vsel %vm2526_vm3, %v8704_v38, 1.0  ;;  %v9044_v38 = vld [vmem:[%s12984_s26 + $0x80] sm:$0xff] }
 0x5e4   :  { %v8708_v52 = vpop.permute.xlu1 %8707 }
 0x5e5   :  { %v8710_v11 = vunpack.i.h.bf16 %v8708_v52 }
 0x5e8   :  { %v8713_v27 = vpop.permute.xlu1 %8712 }
 0x5e9   :  { %v8714_v3 = vunpack.i.l.bf16 %v8713_v27 }
 0x5ec   :  { %v3056_v19 = vpop.permute.xlu1 %3055 }
 0x5f0   :  { %v3058_v57 = vpop.permute.xlu1 %3057 }
 0x5f4   :  { %v3060_v62 = vpop.permute.xlu1 %3059 }
 0x5f8   :  { %v3062_v7 = vpop.permute.xlu1 %3061 }
 0x5fc   :  { %v3064_v50 = vpop.permute.xlu1 %3063 }
 0x600   :  { %v3066_v10 = vpop.permute.xlu1 %3065 }
 0x604   :  { %v3068_v26 = vpop.permute.xlu1 %3067 }
 0x625   :  { %v2958_v17 = vpop.trf.xlu0 }
 0x6a0   :  { %v7929_v1 = vpop.f32.mrb[28].mxu0 }
 0x6a1   :  { %v2644_v36 = vpop.f32.mrb[29].mxu0 }
 0x6a2   :  { %v8473_v16 = vpack.c.bf16 %v7929_v1, %v2644_v36  ;;  %v9028_v36 = vld [vmem:[%s12984_s26] sm:$0xff] }
 0x6a4   :  { %8474 = vmatprep.subr.bf16.mxu0 %v8473_v16 }
 0x6a5   :  { %8476 = vmatpush3.bf16.msra.mxu0 %v8473_v16  ;;  %v9035_v16 = vld [vmem:[%s12984_s26 + $0x38] sm:$0xff] }
 0x6a6   :  { %8478 = vmatprep.subr.bf16.mxu0 %v8477_v29 }
 0x6a8   :  { %7935 = vmatmul.mubr.msk.f32.vlgmr.msra.gmra.mrb[30].mxu0 %vm2526_vm3, %v529_v22  ;;  %v8709_v22 = vunpack.i.l.bf16 %v8708_v52  ;;  %v9041_v52 = vld [vmem:[%s12984_s26 + $0x68] sm:$0xff] }
 0x6a9   :  { %7937 = vmatprep.mubr.msk.f32.mxu0 %vm2526_vm3, %v530_v14  ;;  %8480 = vmatpush3.bf16.msra.mxu0 %v8477_v29  ;;  %v2889_v14 = vsel %vm2526_vm3, %v8705_v9, 1.0  ;;  %v9036_v29 = vld [vmem:[%s12984_s26 + $0x40] sm:$0xff]  ;;  %v9043_v9 = vld [vmem:[%s12984_s26 + $0x78] sm:$0xff] }
 0x6aa   :  { %8482 = vmatprep.subr.bf16.mxu0 %v8481_v34  ;;  %v8489_v54 = vpack.c.bf16 %v2889_v14, %v2888_v56  ;;  %v2890_v39 = vsel %vm2526_vm3, %v8709_v22, 1.0  ;;  %v9049_v22 = vld [vmem:[%s12984_s26 + $0xa8] sm:$0xff]  ;;  %v9050_v56 = vld [vmem:[%s12984_s26 + $0xb0] sm:$0xff]  ;;  %v9051_v14 = vld [vmem:[%s12984_s26 + $0xb8] sm:$0xff] }
 0x6ac   :  { %7938 = vmatmul.mubr.msk.f32.gmra.mrb[32].mxu0 %vm2526_vm3, %v531_v24  ;;  %v8715_v24 = vunpack.i.h.bf16 %v8713_v27  ;;  %v9052_v27 = vld [vmem:[%s12984_s26 + $0xc0] sm:$0xff] }
 0x6ad   :  { %7940 = vmatprep.mubr.msk.f32.mxu0 %vm2526_vm3, %v532_v4  ;;  %8484 = vmatpush3.bf16.msra.mxu0 %v8481_v34  ;;  %v2891_v4 = vsel %vm2526_vm3, %v8710_v11, 1.0  ;;  %v9042_v34 = vld [vmem:[%s12984_s26 + $0x70] sm:$0xff]  ;;  %v9048_v11 = vld [vmem:[%s12984_s26 + $0xa0] sm:$0xff] }
 0x6ae   :  { %8486 = vmatprep.subr.bf16.mxu0 %v8485_v51  ;;  %v8493_v58 = vpack.c.bf16 %v2891_v4, %v2890_v39  ;;  %v2893_v40 = vsel %vm2526_vm3, %v8715_v24, 1.0  ;;  %v9054_v24 = vld [vmem:[%s12984_s26 + $0xd0] sm:$0xff]  ;;  %v9056_v39 = vld [vmem:[%s12984_s26 + $0xe0] sm:$0xff]  ;;  %v9057_v4 = vld [vmem:[%s12984_s26 + $0xe8] sm:$0xff] }
 0x6b0   :  { %7941 = vmatmul.mubr.msk.f32.gmra.mrb[34].mxu0 %vm2526_vm3, %v533_v61  ;;  %v2892_v61 = vsel %vm2526_vm3, %v8714_v3, 1.0  ;;  %v9055_v3 = vld [vmem:[%s12984_s26 + $0xd8] sm:$0xff] }
 0x6b1   :  { %7943 = vmatprep.mubr.msk.f32.mxu0 %vm2526_vm3, %v534_v13  ;;  %8488 = vmatpush3.bf16.msra.mxu0 %v8485_v51  ;;  %v8497_v49 = vpack.c.bf16 %v2893_v40, %v2892_v61  ;;  %v2959_v13 = vpop.trf.xlu0  ;;  %v9047_v51 = vld [vmem:[%s12984_s26 + $0x98] sm:$0xff]  ;;  %v9060_v61 = vld [vmem:[%s12984_s26 + $0x100] sm:$0xff]  ;;  %v9061_v40 = vld [vmem:[%s12984_s26 + $0x108] sm:$0xff] }
 0x6b2   :  { %8490 = vmatprep.subr.bf16.mxu0 %v8489_v54 }
 0x6b4   :  { %7944 = vmatmul.mubr.msk.f32.gmra.mrb[36].mxu0 %vm2526_vm3, %v535_v0 }
 0x6b5   :  { %8492 = vmatpush3.bf16.msra.mxu0 %v8489_v54  ;;  %7970 = vmatprep.mubr.msk.f32.mxu0 %vm2571_vm4, %v2958_v17  ;;  %v9053_v54 = vld [vmem:[%s12984_s26 + $0xc8] sm:$0xff]  ;;  %v9058_v17 = vld [vmem:[%s12984_s26 + $0xf0] sm:$0xff] }
 0x6b6   :  { %8494 = vmatprep.subr.bf16.mxu0 %v8493_v58 }
 0x6b9   :  { %8496 = vmatpush3.bf16.msra.mxu0 %v8493_v58  ;;  %v9059_v58 = vld [vmem:[%s12984_s26 + $0xf8] sm:$0xff] }
 0x6ba   :  { %8498 = vmatprep.subr.bf16.mxu0 %v8497_v49 }
 0x6bd   :  { %8500 = vmatpush3.bf16.msra.mxu0 %v8497_v49  ;;  %v9062_v49 = vld [vmem:[%s12984_s26 + $0x110] sm:$0xff] }
 0x6c0   :  { %7971 = vmatmul.mubr.msk.f32.vlgmr.msra.gmra.mrb[38].mxu0 %vm2571_vm4, %v2959_v13  ;;  %v9063_v13 = vld [vmem:[%s12984_s26 + $0x118] sm:$0xff] }
 0x6c1   :  { %7977 = vmatprep.mubr.msk.f32.mxu0 %vm2526_vm3, %v3056_v19  ;;  %v9064_v19 = vld [vmem:[%s12984_s26 + $0x120] sm:$0xff] }
 0x77b   :  { %v10834_v48 = vpop.f32.mrb[30].mxu0 }
 0x77c   :  { %v10836_v0 = vpop.f32.mrb[31].mxu0 }
 0x77f   :  { %v10838_v59 = vpop.f32.mrb[32].mxu0 }
 0x780   :  { %v10840_v55 = vpop.f32.mrb[33].mxu0 }
 0x783   :  { %v10842_v21 = vpop.f32.mrb[34].mxu0 }
 0x784   :  { %v10844_v30 = vpop.f32.mrb[35].mxu0 }
 0x787   :  { %v10846_v31 = vpop.f32.mrb[36].mxu0 }
 0x788   :  { %v10848_v63 = vpop.f32.mrb[37].mxu0 }
 0x793   :  { %v7972_v33 = vpop.f32.mrb[38].mxu0 }
 0x794   :  { %v3046_v35 = vpop.f32.mrb[39].mxu0 }
 0x795   :  { %v8501_v1 = vpack.c.bf16 %v7972_v33, %v3046_v35  ;;  %v9068_v33 = vld [vmem:[%s12984_s26 + $0x140] sm:$0xff]  ;;  %v9070_v35 = vld [vmem:[%s12984_s26 + $0x150] sm:$0xff] }
 0x797   :  { %8502 = vmatprep.subr.bf16.mxu0 %v8501_v1 }
 0x798   :  { %8504 = vmatpush3.bf16.msra.mxu0 %v8501_v1  ;;  %v9071_v1 = vld [vmem:[%s12984_s26 + $0x158] sm:$0xff] }
 0x799   :  { %8506 = vmatprep.subr.bf16.mxu0 %v10627_v44 }
 0x79b   :  { %7978 = vmatmul.mubr.msk.f32.vlgmr.msra.gmra.mrb[40].mxu0 %vm2526_vm3, %v3058_v57  ;;  %v9065_v57 = vld [vmem:[%s12984_s26 + $0x128] sm:$0xff] }
 0x79c   :  { %7980 = vmatprep.mubr.msk.f32.mxu0 %vm2526_vm3, %v3060_v62  ;;  %8508 = vmatpush3.bf16.msra.mxu0 %v10627_v44  ;;  %v3070_v44 = vpop.permute.xlu1 %3069  ;;  %v9066_v62 = vld [vmem:[%s12984_s26 + $0x130] sm:$0xff] }
 0x79d   :  { %8510 = vmatprep.subr.bf16.mxu0 %v10633_v15 }
 0x79f   :  { %7981 = vmatmul.mubr.msk.f32.gmra.mrb[42].mxu0 %vm2526_vm3, %v3062_v7  ;;  %v9067_v7 = vld [vmem:[%s12984_s26 + $0x138] sm:$0xff] }
 0x7a0   :  { %7983 = vmatprep.mubr.msk.f32.mxu0 %vm2526_vm3, %v3064_v50  ;;  %8512 = vmatpush3.bf16.msra.mxu0 %v10633_v15  ;;  %v9029_v15 = vld [vmem:[%s12984_s26 + $0x8] sm:$0xff] }
 0x7a1   :  { %8514 = vmatprep.subr.bf16.mxu0 %v10639_v2  ;;  %v9069_v50 = vld [vmem:[%s12984_s26 + $0x148] sm:$0xff] }
 0x7a3   :  { %7984 = vmatmul.mubr.msk.f32.gmra.mrb[44].mxu0 %vm2526_vm3, %v3066_v10  ;;  %v9072_v10 = vld [vmem:[%s12984_s26 + $0x160] sm:$0xff] }
 0x7a4   :  { %7986 = vmatprep.mubr.msk.f32.mxu0 %vm2526_vm3, %v3068_v26  ;;  %8516 = vmatpush3.bf16.msra.mxu0 %v10639_v2  ;;  %v9030_v2 = vld [vmem:[%s12984_s26 + $0x10] sm:$0xff]  ;;  %v9073_v26 = vld [vmem:[%s12984_s26 + $0x168] sm:$0xff] }
 0x7a5   :  { %8518 = vmatprep.subr.bf16.mxu0 %v10643_v41 }
 0x7a7   :  { %7987 = vmatmul.mubr.msk.f32.gmra.mrb[46].mxu0 %vm2526_vm3, %v3070_v44  ;;  %v9074_v44 = vld [vmem:[%s12984_s26 + $0x170] sm:$0xff] }
 0x7a8   :  { %8520 = vmatpush3.bf16.msra.mxu0 %v10643_v41  ;;  %8005 = vmatprep.mubr.msk.f32.mxu0 %vm693_vm1, %v9028_v36  ;;  %v9031_v41 = vld [vmem:[%s12984_s26 + $0x18] sm:$0xff] }
 0x7a9   :  { %v9075_v36 = vld [vmem:[%s12984_s26 + $0x178] sm:$0xff] }
 0x7ab   :  { %8006 = vmatmul.mubr.msk.f32.vlgmr.msra.gmra.mrb[48].mxu0 %vm693_vm1, %v9029_v15  ;;  %v9076_v15 = vld [vmem:[%s12984_s26 + $0x180] sm:$0xff] }
 0x7ac   :  { %8008 = vmatprep.mubr.msk.f32.mxu0 %vm693_vm1, %v9030_v2  ;;  %v9077_v2 = vld [vmem:[%s12984_s26 + $0x188] sm:$0xff] }
 0x7af   :  { %8009 = vmatmul.mubr.msk.f32.gmra.mrb[50].mxu0 %vm693_vm1, %v9031_v41  ;;  %v9078_v41 = vld [vmem:[%s12984_s26 + $0x190] sm:$0xff] }
 0x7b0   :  { %8011 = vmatprep.mubr.msk.f32.mxu0 %vm693_vm1, %v9032_v18  ;;  %v9079_v18 = vld [vmem:[%s12984_s26 + $0x198] sm:$0xff] }
 0x7b3   :  { %8012 = vmatmul.mubr.msk.f32.gmra.mrb[52].mxu0 %vm693_vm1, %v9033_v5  ;;  %v9080_v5 = vld [vmem:[%s12984_s26 + $0x1a0] sm:$0xff] }
 0x7b4   :  { %8014 = vmatprep.mubr.msk.f32.mxu0 %vm693_vm1, %v9034_v42  ;;  %v9081_v42 = vld [vmem:[%s12984_s26 + $0x1a8] sm:$0xff] }
 0x7b7   :  { %8015 = vmatmul.mubr.msk.f32.gmra.mrb[54].mxu0 %vm693_vm1, %v9035_v16  ;;  %v9082_v16 = vld [vmem:[%s12984_s26 + $0x1b0] sm:$0xff] }
 0x7b8   :  { %8017 = vmatprep.mubr.msk.f32.mxu0 %vm693_vm1, %v9036_v29  ;;  %v9083_v29 = vld [vmem:[%s12984_s26 + $0x1b8] sm:$0xff] }
 0x7bb   :  { %8018 = vmatmul.mubr.msk.f32.gmra.mrb[56].mxu0 %vm693_vm1, %v9037_v53  ;;  %v9084_v53 = vld [vmem:[%s12984_s26 + $0x1c0] sm:$0xff] }
 0x7bc   :  { %8020 = vmatprep.mubr.msk.f32.mxu0 %vm693_vm1, %v9038_v37  ;;  %v9085_v37 = vld [vmem:[%s12984_s26 + $0x1c8] sm:$0xff] }
 0x7bf   :  { %8021 = vmatmul.mubr.msk.f32.gmra.mrb[58].mxu0 %vm693_vm1, %v9039_v46  ;;  %v9086_v46 = vld [vmem:[%s12984_s26 + $0x1d0] sm:$0xff] }
 0x7c0   :  { %8023 = vmatprep.mubr.msk.f32.mxu0 %vm693_vm1, %v9040_v47  ;;  %v9087_v47 = vld [vmem:[%s12984_s26 + $0x1d8] sm:$0xff] }
 0x7c3   :  { %8024 = vmatmul.mubr.msk.f32.gmra.mrb[60].mxu0 %vm693_vm1, %v9041_v52  ;;  %v9088_v52 = vld [vmem:[%s12984_s26 + $0x1e0] sm:$0xff] }
 0x7c4   :  { %8026 = vmatprep.mubr.msk.f32.mxu0 %vm693_vm1, %v9042_v34  ;;  %v9089_v34 = vld [vmem:[%s12984_s26 + $0x1e8] sm:$0xff] }
 0x7c7   :  { %8027 = vmatmul.mubr.msk.f32.gmra.mrb[62].mxu0 %vm693_vm1, %v9043_v9  ;;  %v9090_v9 = vld [vmem:[%s12984_s26 + $0x1f0] sm:$0xff] }
 0x7c8   :  { %8029 = vmatprep.mubr.msk.f32.mxu0 %vm693_vm1, %v9044_v38  ;;  %v9091_v38 = vld [vmem:[%s12984_s26 + $0x1f8] sm:$0xff] }
 0x7cb   :  { %8030 = vmatmul.mubr.msk.f32.gmra.mrb[64].mxu0 %vm693_vm1, %v9045_v8  ;;  %v9092_v8 = vld [vmem:[%s12984_s26 + $0x200] sm:$0xff] }
 0x7cc   :  { %8032 = vmatprep.mubr.msk.f32.mxu0 %vm693_vm1, %v9046_v32  ;;  %v9093_v32 = vld [vmem:[%s12984_s26 + $0x208] sm:$0xff] }
 0x7cf   :  { %8033 = vmatmul.mubr.msk.f32.gmra.mrb[66].mxu0 %vm693_vm1, %v9047_v51  ;;  %v9094_v51 = vld [vmem:[%s12984_s26 + $0x210] sm:$0xff] }
 0x7d0   :  { %8035 = vmatprep.mubr.msk.f32.mxu0 %vm693_vm1, %v9048_v11  ;;  %v9095_v11 = vld [vmem:[%s12984_s26 + $0x218] sm:$0xff] }
 0x7d3   :  { %8036 = vmatmul.mubr.msk.f32.gmra.mrb[68].mxu0 %vm693_vm1, %v9049_v22  ;;  %v9096_v22 = vld [vmem:[%s12984_s26 + $0x220] sm:$0xff] }
 0x7d4   :  { %8038 = vmatprep.mubr.msk.f32.mxu0 %vm693_vm1, %v9050_v56  ;;  %v9097_v56 = vld [vmem:[%s12984_s26 + $0x228] sm:$0xff] }
 0x7d7   :  { %8039 = vmatmul.mubr.msk.f32.gmra.mrb[70].mxu0 %vm693_vm1, %v9051_v14  ;;  %v9098_v14 = vld [vmem:[%s12984_s26 + $0x230] sm:$0xff] }
 0x7d8   :  { %8041 = vmatprep.mubr.msk.f32.mxu0 %vm693_vm1, %v9052_v27  ;;  %v9099_v27 = vld [vmem:[%s12984_s26 + $0x238] sm:$0xff] }
 0x7db   :  { %8042 = vmatmul.mubr.msk.f32.gmra.mrb[72].mxu0 %vm693_vm1, %v9053_v54  ;;  %v9100_v54 = vld [vmem:[%s12984_s26 + $0x240] sm:$0xff] }
 0x7dc   :  { %8044 = vmatprep.mubr.msk.f32.mxu0 %vm693_vm1, %v9054_v24  ;;  %v9101_v24 = vld [vmem:[%s12984_s26 + $0x248] sm:$0xff] }
 0x7df   :  { %8045 = vmatmul.mubr.msk.f32.gmra.mrb[74].mxu0 %vm693_vm1, %v9055_v3  ;;  %v9102_v3 = vld [vmem:[%s12984_s26 + $0x250] sm:$0xff] }
 0x7e0   :  { %8047 = vmatprep.mubr.msk.f32.mxu0 %vm693_vm1, %v9056_v39  ;;  %v9103_v39 = vld [vmem:[%s12984_s26 + $0x258] sm:$0xff] }
 0x7e3   :  { %8048 = vmatmul.mubr.msk.f32.gmra.mrb[76].mxu0 %vm693_vm1, %v9057_v4  ;;  %v9104_v4 = vld [vmem:[%s12984_s26 + $0x260] sm:$0xff] }
 0x7e4   :  { %8050 = vmatprep.mubr.msk.f32.mxu0 %vm693_vm1, %v9058_v17  ;;  %v9105_v17 = vld [vmem:[%s12984_s26 + $0x268] sm:$0xff] }
 0x7e7   :  { %8051 = vmatmul.mubr.msk.f32.gmra.mrb[78].mxu0 %vm693_vm1, %v9059_v58  ;;  %v9106_v58 = vld [vmem:[%s12984_s26 + $0x270] sm:$0xff] }
 0x7e8   :  { %8053 = vmatprep.mubr.msk.f32.mxu0 %vm693_vm1, %v9060_v61  ;;  %v9107_v61 = vld [vmem:[%s12984_s26 + $0x278] sm:$0xff] }
 0x7eb   :  { %8054 = vmatmul.mubr.msk.f32.gmra.mrb[80].mxu0 %vm693_vm1, %v9061_v40  ;;  %v9108_v40 = vld [vmem:[%s12984_s26 + $0x280] sm:$0xff] }
 0x7ec   :  { %8056 = vmatprep.mubr.msk.f32.mxu0 %vm693_vm1, %v9062_v49  ;;  %v9109_v49 = vld [vmem:[%s12984_s26 + $0x288] sm:$0xff] }
 0x7ef   :  { %8057 = vmatmul.mubr.msk.f32.gmra.mrb[82].mxu0 %vm693_vm1, %v9063_v13  ;;  %v9110_v13 = vld [vmem:[%s12984_s26 + $0x290] sm:$0xff] }
 0x7f0   :  { %8059 = vmatprep.mubr.msk.f32.mxu0 %vm693_vm1, %v9064_v19  ;;  %v9111_v19 = vld [vmem:[%s12984_s26 + $0x298] sm:$0xff] }
 0x7f3   :  { %8060 = vmatmul.mubr.msk.f32.gmra.mrb[84].mxu0 %vm693_vm1, %v9065_v57  ;;  %v9112_v57 = vld [vmem:[%s12984_s26 + $0x2a0] sm:$0xff] }
 0x7f4   :  { %8062 = vmatprep.mubr.msk.f32.mxu0 %vm693_vm1, %v9066_v62  ;;  %v9113_v62 = vld [vmem:[%s12984_s26 + $0x2a8] sm:$0xff] }
 0x7f7   :  { %8063 = vmatmul.mubr.msk.f32.gmra.mrb[86].mxu0 %vm693_vm1, %v9067_v7  ;;  %v9114_v7 = vld [vmem:[%s12984_s26 + $0x2b0] sm:$0xff] }
 0x7f8   :  { %8065 = vmatprep.mubr.msk.f32.mxu0 %vm693_vm1, %v9068_v33  ;;  %v9115_v33 = vld [vmem:[%s12984_s26 + $0x2b8] sm:$0xff] }
 0x7fb   :  { %8066 = vmatmul.mubr.msk.f32.gmra.mrb[88].mxu0 %vm693_vm1, %v9069_v50  ;;  %v9116_v50 = vld [vmem:[%s12984_s26 + $0x2c0] sm:$0xff] }
 0x7fc   :  { %8068 = vmatprep.mubr.msk.f32.mxu0 %vm693_vm1, %v9070_v35  ;;  %v9117_v35 = vld [vmem:[%s12984_s26 + $0x2c8] sm:$0xff] }
 0x7ff   :  { %8069 = vmatmul.mubr.msk.f32.gmra.mrb[90].mxu0 %vm693_vm1, %v9071_v1  ;;  %v9118_v1 = vld [vmem:[%s12984_s26 + $0x2d0] sm:$0xff] }
 0x800   :  { %8071 = vmatprep.mubr.msk.f32.mxu0 %vm693_vm1, %v9072_v10  ;;  %v9119_v10 = vld [vmem:[%s12984_s26 + $0x2d8] sm:$0xff] }
 0x803   :  { %8072 = vmatmul.mubr.msk.f32.gmra.mrb[92].mxu0 %vm693_vm1, %v9073_v26  ;;  %v9120_v26 = vld [vmem:[%s12984_s26 + $0x2e0] sm:$0xff] }
 0x804   :  { %8074 = vmatprep.mubr.msk.f32.mxu0 %vm693_vm1, %v9074_v44  ;;  %v9121_v44 = vld [vmem:[%s12984_s26 + $0x2e8] sm:$0xff] }
 0x807   :  { %8075 = vmatmul.mubr.msk.f32.gmra.mrb[94].mxu0 %vm693_vm1, %v9075_v36  ;;  %v9122_v36 = vld [vmem:[%s12984_s26 + $0x2f0] sm:$0xff] }
 0x808   :  { %8077 = vmatprep.mubr.msk.f32.mxu0 %vm693_vm1, %v9076_v15  ;;  %v9123_v15 = vld [vmem:[%s12984_s26 + $0x2f8] sm:$0xff] }
 0x80b   :  { %8078 = vmatmul.mubr.msk.f32.gmra.mrb[96].mxu0 %vm693_vm1, %v9077_v2  ;;  %v9124_v2 = vld [vmem:[%s12984_s26 + $0x300] sm:$0xff] }
 0x80c   :  { %8080 = vmatprep.mubr.msk.f32.mxu0 %vm693_vm1, %v9078_v41  ;;  %v9125_v41 = vld [vmem:[%s12984_s26 + $0x308] sm:$0xff] }
 0x80f   :  { %8081 = vmatmul.mubr.msk.f32.gmra.mrb[98].mxu0 %vm693_vm1, %v9079_v18  ;;  %v9126_v18 = vld [vmem:[%s12984_s26 + $0x310] sm:$0xff] }
 0x810   :  { %8083 = vmatprep.mubr.msk.f32.mxu0 %vm693_vm1, %v9080_v5 }
 0x813   :  { %8084 = vmatmul.mubr.msk.f32.gmra.mrb[100].mxu0 %vm693_vm1, %v9081_v42 }
 0x814   :  { %8086 = vmatprep.mubr.msk.f32.mxu0 %vm693_vm1, %v9082_v16  ;;  %v9127_v16 = vld [vmem:[%s12984_s26 + $0x318] sm:$0xff] }
 0x817   :  { %8087 = vmatmul.mubr.msk.f32.gmra.mrb[102].mxu0 %vm693_vm1, %v9083_v29  ;;  %v9128_v29 = vld [vmem:[%s12984_s26 + $0x320] sm:$0xff] }
 0x818   :  { %8089 = vmatprep.mubr.msk.f32.mxu0 %vm693_vm1, %v9084_v53 }
 0x81b   :  { %8090 = vmatmul.mubr.msk.f32.gmra.mrb[104].mxu0 %vm693_vm1, %v9085_v37 }
 0x81c   :  { %8092 = vmatprep.mubr.msk.f32.mxu0 %vm693_vm1, %v9086_v46  ;;  %v9129_v46 = vld [vmem:[%s12984_s26 + $0x328] sm:$0xff] }
 0x81f   :  { %8093 = vmatmul.mubr.msk.f32.gmra.mrb[106].mxu0 %vm693_vm1, %v9087_v47  ;;  %v9130_v47 = vld [vmem:[%s12984_s26 + $0x330] sm:$0xff] }
 0x820   :  { %8095 = vmatprep.mubr.msk.f32.mxu0 %vm693_vm1, %v9088_v52 }
 0x823   :  { %8096 = vmatmul.mubr.msk.f32.gmra.mrb[108].mxu0 %vm693_vm1, %v9089_v34 }
 0x824   :  { %8098 = vmatprep.mubr.msk.f32.mxu0 %vm693_vm1, %v9090_v9  ;;  %v9131_v9 = vld [vmem:[%s12984_s26 + $0x338] sm:$0xff] }
 0x827   :  { %8099 = vmatmul.mubr.msk.f32.gmra.mrb[110].mxu0 %vm693_vm1, %v9091_v38  ;;  %v9132_v38 = vld [vmem:[%s12984_s26 + $0x340] sm:$0xff] }
 0x828   :  { %8101 = vmatprep.mubr.msk.f32.mxu0 %vm693_vm1, %v9092_v8 }
 0x82b   :  { %8102 = vmatmul.mubr.msk.f32.gmra.mrb[112].mxu0 %vm693_vm1, %v9093_v32 }
 0x82c   :  { %8104 = vmatprep.mubr.msk.f32.mxu0 %vm693_vm1, %v9094_v51  ;;  %v9133_v51 = vld [vmem:[%s12984_s26 + $0x348] sm:$0xff] }
 0x82f   :  { %8105 = vmatmul.mubr.msk.f32.gmra.mrb[114].mxu0 %vm693_vm1, %v9095_v11  ;;  %v9134_v11 = vld [vmem:[%s12984_s26 + $0x350] sm:$0xff] }
 0x830   :  { %8107 = vmatprep.mubr.msk.f32.mxu0 %vm693_vm1, %v9096_v22 }
 0x833   :  { %8108 = vmatmul.mubr.msk.f32.gmra.mrb[116].mxu0 %vm693_vm1, %v9097_v56 }
 0x834   :  { %8110 = vmatprep.mubr.msk.f32.mxu0 %vm693_vm1, %v9098_v14  ;;  %v9135_v14 = vld [vmem:[%s12984_s26 + $0x358] sm:$0xff] }
 0x837   :  { %8111 = vmatmul.mubr.msk.f32.gmra.mrb[118].mxu0 %vm693_vm1, %v9099_v27  ;;  %v9136_v27 = vld [vmem:[%s12984_s26 + $0x360] sm:$0xff] }
 0x838   :  { %8113 = vmatprep.mubr.msk.f32.mxu0 %vm693_vm1, %v9100_v54 }
 0x83b   :  { %8114 = vmatmul.mubr.msk.f32.gmra.mrb[120].mxu0 %vm693_vm1, %v9101_v24 }
 0x83c   :  { %8116 = vmatprep.mubr.msk.f32.mxu0 %vm693_vm1, %v9102_v3  ;;  %v9137_v3 = vld [vmem:[%s12984_s26 + $0x368] sm:$0xff] }
 0x83f   :  { %8117 = vmatmul.mubr.msk.f32.gmra.mrb[122].mxu0 %vm693_vm1, %v9103_v39  ;;  %v9138_v39 = vld [vmem:[%s12984_s26 + $0x370] sm:$0xff] }
 0x840   :  { %8119 = vmatprep.mubr.msk.f32.mxu0 %vm693_vm1, %v9104_v4 }
 0x843   :  { %8120 = vmatmul.mubr.msk.f32.gmra.mrb[124].mxu0 %vm693_vm1, %v9105_v17 }
 0x844   :  { %8122 = vmatprep.mubr.msk.f32.mxu0 %vm693_vm1, %v9106_v58  ;;  %v9139_v58 = vld [vmem:[%s12984_s26 + $0x378] sm:$0xff] }
 0x847   :  { %8123 = vmatmul.mubr.msk.f32.gmra.mrb[126].mxu0 %vm693_vm1, %v9107_v61  ;;  %v9140_v61 = vld [vmem:[%s12984_s26 + $0x380] sm:$0xff] }
 0x848   :  { %8125 = vmatprep.mubr.msk.f32.mxu0 %vm693_vm1, %v9108_v40 }
 0x84b   :  { %8126 = vmatmul.mubr.msk.f32.gmra.mrb[128].mxu0 %vm693_vm1, %v9109_v49 }
 0x84c   :  { %8128 = vmatprep.mubr.msk.f32.mxu0 %vm693_vm1, %v9110_v13  ;;  %v9141_v13 = vld [vmem:[%s12984_s26 + $0x388] sm:$0xff] }
 0x84f   :  { %8129 = vmatmul.mubr.msk.f32.gmra.mrb[130].mxu0 %vm693_vm1, %v9111_v19  ;;  %v9142_v19 = vld [vmem:[%s12984_s26 + $0x390] sm:$0xff] }
 0x850   :  { %8131 = vmatprep.mubr.msk.f32.mxu0 %vm693_vm1, %v9112_v57 }
 0x853   :  { %8132 = vmatmul.mubr.msk.f32.gmra.mrb[132].mxu0 %vm693_vm1, %v9113_v62 }
 0x854   :  { %8134 = vmatprep.mubr.msk.f32.mxu0 %vm693_vm1, %v9114_v7  ;;  %v9143_v7 = vld [vmem:[%s12984_s26 + $0x398] sm:$0xff] }
 0x857   :  { %8135 = vmatmul.mubr.msk.f32.gmra.mrb[134].mxu0 %vm693_vm1, %v9115_v33  ;;  %v9144_v33 = vld [vmem:[%s12984_s26 + $0x3a0] sm:$0xff] }
 0x858   :  { %8137 = vmatprep.mubr.msk.f32.mxu0 %vm693_vm1, %v9116_v50 }
 0x85b   :  { %8138 = vmatmul.mubr.msk.f32.gmra.mrb[136].mxu0 %vm693_vm1, %v9117_v35 }
 0x85c   :  { %8140 = vmatprep.mubr.msk.f32.mxu0 %vm693_vm1, %v9118_v1  ;;  %v9145_v1 = vld [vmem:[%s12984_s26 + $0x3a8] sm:$0xff] }
 0x85f   :  { %8141 = vmatmul.mubr.msk.f32.gmra.mrb[138].mxu0 %vm693_vm1, %v9119_v10  ;;  %v9146_v10 = vld [vmem:[%s12984_s26 + $0x3b0] sm:$0xff] }
 0x860   :  { %8143 = vmatprep.mubr.msk.f32.mxu0 %vm693_vm1, %v9120_v26 }
 0x863   :  { %8144 = vmatmul.mubr.msk.f32.gmra.mrb[140].mxu0 %vm693_vm1, %v9121_v44  ;;  %v9147_v44 = vld [vmem:[%s12959_s3 + $0x8] sm:$0xff] }
 0x864   :  { %8146 = vmatprep.mubr.msk.f32.mxu0 %vm693_vm1, %v9122_v36 }
 0x867   :  { %8147 = vmatmul.mubr.msk.f32.gmra.mrb[142].mxu0 %vm693_vm1, %v9123_v15  ;;  %v9148_v15 = vld [vmem:[%s12960_s2 + $0x8] sm:$0xff] }
 0x868   :  { %8149 = vmatprep.mubr.msk.f32.mxu0 %vm693_vm1, %v9124_v2 }
 0x86b   :  { %8150 = vmatmul.mubr.msk.f32.gmra.mrb[144].mxu0 %vm693_vm1, %v9125_v41 }
 0x86c   :  { %8152 = vmatprep.mubr.msk.f32.mxu0 %vm693_vm1, %v9126_v18  ;;  %v9149_v18 = vld [vmem:[%s12984_s26 + $0x3b8] sm:$0xff] }
 0x86e   :  { %v11261_v5 = vpop.f32.mrb[40].mxu0 }
 0x86f   :  { %v11263_v42 = vpop.f32.mrb[41].mxu0  ;;  %8153 = vmatmul.mubr.msk.f32.gmra.mrb[146].mxu0 %vm693_vm1, %v9127_v16  ;;  %v9150_v16 = vld [vmem:[%s12959_s3] sm:$0xff] }
 0x870   :  { %8155 = vmatprep.mubr.msk.f32.mxu0 %vm693_vm1, %v9128_v29 }
 0x872   :  { %v11273_v53 = vpop.f32.mrb[42].mxu0 }
 0x873   :  { %v11275_v37 = vpop.f32.mrb[43].mxu0  ;;  %8156 = vmatmul.mubr.msk.f32.gmra.mrb[148].mxu0 %vm693_vm1, %v9129_v46  ;;  %v9151_v46 = vld [vmem:[%s12960_s2] sm:$0xff] }
 0x874   :  { %8158 = vmatprep.mubr.msk.f32.mxu0 %vm693_vm1, %v9130_v47 }
 0x876   :  { %v11285_v52 = vpop.f32.mrb[44].mxu0 }
 0x877   :  { %v11287_v34 = vpop.f32.mrb[45].mxu0  ;;  %8159 = vmatmul.mubr.msk.f32.gmra.mrb[150].mxu0 %vm693_vm1, %v9131_v9 }
 0x878   :  { %8161 = vmatprep.mubr.msk.f32.mxu0 %vm693_vm1, %v9132_v38 }
 0x87a   :  { %v11297_v8 = vpop.f32.mrb[46].mxu0 }
 0x87b   :  { %v11299_v32 = vpop.f32.mrb[47].mxu0  ;;  %8162 = vmatmul.mubr.msk.f32.gmra.mrb[152].mxu0 %vm693_vm1, %v9133_v51 }
 0x87c   :  { %8164 = vmatprep.mubr.msk.f32.mxu0 %vm693_vm1, %v9134_v11  ;;  %v9152_v11 = vld [vmem:[%s12959_s3 + $0x18] sm:$0xff] }
 0x87e   :  { %v8007_v22 = vpop.f32.mrb[48].mxu0 }
 0x87f   :  { %v3362_v56 = vpop.f32.mrb[49].mxu0  ;;  %8165 = vmatmul.mubr.msk.f32.gmra.mrb[154].mxu0 %vm693_vm1, %v9135_v14  ;;  %v3962_v36 = vadd.f32 %v9147_v44, %v8007_v22  ;;  %v9153_v14 = vld [vmem:[%s12960_s2 + $0x18] sm:$0xff] }
 0x880   :  { %8167 = vmatprep.mubr.msk.f32.mxu0 %vm693_vm1, %v9136_v27  ;;  %v3961_v29 = vadd.f32 %v9150_v16, %v3362_v56 }
 0x882   :  { %v8010_v54 = vpop.f32.mrb[50].mxu0 }
 0x883   :  { %v3372_v24 = vpop.f32.mrb[51].mxu0  ;;  %8168 = vmatmul.mubr.msk.f32.gmra.mrb[156].mxu0 %vm693_vm1, %v9137_v3  ;;  %v3964_v22 = vadd.f32 %v9152_v11, %v8010_v54  ;;  %v9154_v3 = vld [vmem:[%s12959_s3 + $0x10] sm:$0xff] }
 0x884   :  { %8170 = vmatprep.mubr.msk.f32.mxu0 %vm693_vm1, %v9138_v39  ;;  %v3963_v39 = vadd.f32 %v9154_v3, %v3372_v24  ;;  %v9163_v11 = vld [vmem:[%s12960_s2 + $0x30] sm:$0xff] }
 0x886   :  { %v8013_v4 = vpop.f32.mrb[52].mxu0 }
 0x887   :  { %v3382_v17 = vpop.f32.mrb[53].mxu0  ;;  %8171 = vmatmul.mubr.msk.f32.gmra.mrb[158].mxu0 %vm693_vm1, %v9139_v58  ;;  %v9155_v58 = vld [vmem:[%s12960_s2 + $0x10] sm:$0xff] }
 0x888   :  { %8173 = vmatprep.mubr.msk.f32.mxu0 %vm693_vm1, %v9140_v61 }
 0x88a   :  { %v8016_v40 = vpop.f32.mrb[54].mxu0 }
 0x88b   :  { %v3392_v49 = vpop.f32.mrb[55].mxu0  ;;  %8174 = vmatmul.mubr.msk.f32.gmra.mrb[160].mxu0 %vm693_vm1, %v9141_v13 }
 0x88c   :  { %8176 = vmatprep.mubr.msk.f32.mxu0 %vm693_vm1, %v9142_v19 }
 0x88e   :  { %v11341_v57 = vpop.f32.mrb[56].mxu0 }
 0x88f   :  { %v11343_v62 = vpop.f32.mrb[57].mxu0  ;;  %8177 = vmatmul.mubr.msk.f32.gmra.mrb[162].mxu0 %vm693_vm1, %v9143_v7  ;;  %v9156_v7 = vld [vmem:[%s12959_s3 + $0x28] sm:$0xff] }
 0x890   :  { %8179 = vmatprep.mubr.msk.f32.mxu0 %vm693_vm1, %v9144_v33  ;;  %v3966_v33 = vadd.f32 %v9156_v7, %v8013_v4  ;;  %v9160_v4 = vld [vmem:[%s12959_s3 + $0x38] sm:$0xff]  ;;  %v9167_v7 = vld [vmem:[%s12960_s2 + $0x40] sm:$0xff] }
 0x891   :  { %v3968_v16 = vadd.f32 %v9160_v4, %v8016_v40  ;;  %v9164_v40 = vld [vmem:[%s12959_s3 + $0x48] sm:$0xff]  ;;  %v9171_v4 = vld [vmem:[%s12960_s2 + $0x50] sm:$0xff] }
 0x892   :  { %v11353_v50 = vpop.f32.mrb[58].mxu0  ;;  %v3970_v3 = vadd.f32 %v9164_v40, %v11341_v57 }
 0x893   :  { %v11355_v35 = vpop.f32.mrb[59].mxu0  ;;  %8180 = vmatmul.mubr.msk.f32.gmra.mrb[164].mxu0 %vm693_vm1, %v9145_v1  ;;  %v9157_v1 = vld [vmem:[%s12960_s2 + $0x28] sm:$0xff] }
 0x894   :  { %8182 = vmatprep.mubr.msk.f32.mxu0 %vm693_vm1, %v9146_v10 }
 0x896   :  { %v8025_v26 = vpop.f32.mrb[60].mxu0 }
 0x897   :  { %v3974_v2 = vmul.f32 %v9148_v15, %v8025_v26  ;;  %v3422_v41 = vpop.f32.mrb[61].mxu0  ;;  %8183 = vmatmul.mubr.msk.f32.gmra.mrb[166].mxu0 %vm693_vm1, %v9149_v18  ;;  %v9158_v26 = vld [vmem:[%s12959_s3 + $0x20] sm:$0xff] }
 0x898   :  { %v3973_v47 = vmul.f32 %v9151_v46, %v3422_v41  ;;  %v3965_v44 = vadd.f32 %v9158_v26, %v3382_v17  ;;  %v9162_v17 = vld [vmem:[%s12959_s3 + $0x30] sm:$0xff] }
 0x899   :  { %v11381_v9 = vadd.f32 %v3974_v2, %v3962_v36  ;;  %v9159_v36 = vld [vmem:[%s12960_s2 + $0x20] sm:$0xff] }
 0x89a   :  { %v11383_v38 = vadd.f32 %v3973_v47, %v3961_v29  ;;  %v8028_v51 = vpop.f32.mrb[62].mxu0  ;;  %v9161_v29 = vld [vmem:[%s12960_s2 + $0x38] sm:$0xff] }
 0x89b   :  { %v3976_v56 = vmul.f32 %v9153_v14, %v8028_v51  ;;  %v3432_v27 = vpop.f32.mrb[63].mxu0  ;;  %v3967_v51 = vadd.f32 %v9162_v17, %v3392_v49 }
 0x89c   :  { %v3975_v61 = vmul.f32 %v9155_v58, %v3432_v27 }
 0x89d   :  { %v11397_v13 = vadd.f32 %v3976_v56, %v3964_v22 }
 0x89e   :  { %v11399_v19 = vadd.f32 %v3975_v61, %v3963_v39  ;;  %v8031_v54 = vpop.f32.mrb[64].mxu0  ;;  %v9165_v39 = vld [vmem:[%s12960_s2 + $0x48] sm:$0xff]  ;;  %v9166_v61 = vld [vmem:[%s12959_s3 + $0x40] sm:$0xff] }
 0x89f   :  { %v3978_v24 = vmul.f32 %v9157_v1, %v8031_v54  ;;  %v3442_v10 = vpop.f32.mrb[65].mxu0  ;;  %v3969_v54 = vadd.f32 %v9166_v61, %v11343_v62 }
 0x8a0   :  { %v3977_v15 = vmul.f32 %v9159_v36, %v3442_v10  ;;  %v9168_v10 = vld [vmem:[%s12959_s3 + $0x58] sm:$0xff] }
 0x8a1   :  { %v3990_v2 = vadd.f32 %v3978_v24, %v3966_v33  ;;  %v3972_v26 = vadd.f32 %v9168_v10, %v11353_v50  ;;  %v9177_v10 = vld [vmem:[%s12960_s2 + $0x80] sm:$0xff] }
 0x8a2   :  { %v3989_v41 = vadd.f32 %v3977_v15, %v3965_v44  ;;  %v8034_v18 = vpop.f32.mrb[66].mxu0  ;;  %v9169_v44 = vld [vmem:[%s12960_s2 + $0x58] sm:$0xff]  ;;  %v9170_v15 = vld [vmem:[%s12959_s3 + $0x50] sm:$0xff] }
 0x8a3   :  { %v3980_v46 = vmul.f32 %v9161_v29, %v8034_v18  ;;  %v3452_v47 = vpop.f32.mrb[67].mxu0  ;;  %v3971_v18 = vadd.f32 %v9170_v15, %v11355_v35 }
 0x8a4   :  { %v3979_v22 = vmul.f32 %v9163_v11, %v3452_v47  ;;  %v9172_v47 = vld [vmem:[%s12960_s2 + $0x68] sm:$0xff]  ;;  %v9173_v11 = vld [vmem:[%s12960_s2 + $0x60] sm:$0xff] }
 0x8a5   :  { %v3992_v14 = vadd.f32 %v3980_v46, %v3968_v16 }
 0x8a6   :  { %v3991_v56 = vadd.f32 %v3979_v22, %v3967_v51  ;;  %v8037_v27 = vpop.f32.mrb[68].mxu0 }
 0x8a7   :  { %v3982_v58 = vmul.f32 %v9165_v39, %v8037_v27  ;;  %v3462_v49 = vpop.f32.mrb[69].mxu0 }
 0x8a8   :  { %v3981_v33 = vmul.f32 %v9167_v7, %v3462_v49  ;;  %v9175_v49 = vld [vmem:[%s12960_s2 + $0x70] sm:$0xff] }
 0x8a9   :  { %v3994_v1 = vadd.f32 %v3982_v58, %v3970_v3  ;;  %v9174_v3 = vld [vmem:[%s12960_s2 + $0x78] sm:$0xff] }
 0x8aa   :  { %v3993_v24 = vadd.f32 %v3981_v33, %v3969_v54  ;;  %v8040_v57 = vpop.f32.mrb[70].mxu0 }
 0x8ab   :  { %v3984_v36 = vmul.f32 %v9169_v44, %v8040_v57  ;;  %v3472_v62 = vpop.f32.mrb[71].mxu0 }
 0x8ac   :  { %v3983_v16 = vmul.f32 %v9171_v4, %v3472_v62 }
 0x8ad   :  { %v3996_v29 = vadd.f32 %v3984_v36, %v3972_v26 }
 0x8ae   :  { %v3995_v46 = vadd.f32 %v3983_v16, %v3971_v18  ;;  %v8043_v50 = vpop.f32.mrb[72].mxu0  ;;  %v9179_v18 = vld [vmem:[%s12960_s2 + $0x90] sm:$0xff] }
 0x8af   :  { %v3998_v17 = vmul.f32 %v9172_v47, %v8043_v50  ;;  %v3482_v51 = vpop.f32.mrb[73].mxu0 }
 0x8b0   :  { %v3997_v22 = vmul.f32 %v9173_v11, %v3482_v51  ;;  %v9181_v51 = vld [vmem:[%s12960_s2 + $0xa0] sm:$0xff] }
 0x8b1   :  { %v4010_v35 = vadd.f32 %v3998_v17, %v11381_v9  ;;  %v9176_v9 = vld [vmem:[%s12960_s2 + $0x88] sm:$0xff] }
 0x8b2   :  { %v4009_v27 = vadd.f32 %v3997_v22, %v11383_v38  ;;  %v8046_v40 = vpop.f32.mrb[74].mxu0 }
 0x8b3   :  { %v4000_v39 = vmul.f32 %v9174_v3, %v8046_v40  ;;  %v3492_v58 = vpop.f32.mrb[75].mxu0 }
 0x8b4   :  { %v3999_v61 = vmul.f32 %v9175_v49, %v3492_v58  ;;  %v9183_v58 = vld [vmem:[%s12960_s2 + $0xb0] sm:$0xff] }
 0x8b5   :  { %v4012_v54 = vadd.f32 %v4000_v39, %v11397_v13  ;;  %v9178_v13 = vld [vmem:[%s12960_s2 + $0x98] sm:$0xff] }
 0x8b6   :  { %v4011_v7 = vadd.f32 %v3999_v61, %v11399_v19  ;;  %v8049_v33 = vpop.f32.mrb[76].mxu0 }
 0x8b7   :  { %v4002_v38 = vmul.f32 %v9176_v9, %v8049_v33  ;;  %v3502_v57 = vpop.f32.mrb[77].mxu0 }
 0x8b8   :  { %v4001_v26 = vmul.f32 %v9177_v10, %v3502_v57  ;;  %v9185_v57 = vld [vmem:[%s12960_s2 + $0xc0] sm:$0xff] }
 0x8b9   :  { %v4014_v44 = vadd.f32 %v4002_v38, %v3990_v2  ;;  %v9180_v2 = vld [vmem:[%s12960_s2 + $0xa8] sm:$0xff] }
 0x8ba   :  { %v4013_v36 = vadd.f32 %v4001_v26, %v3989_v41  ;;  %v8052_v62 = vpop.f32.mrb[78].mxu0 }
 0x8bb   :  { %v4004_v19 = vmul.f32 %v9178_v13, %v8052_v62  ;;  %v3512_v15 = vpop.f32.mrb[79].mxu0 }
 0x8bc   :  { %v4003_v4 = vmul.f32 %v9179_v18, %v3512_v15  ;;  %v9187_v15 = vld [vmem:[%s12960_s2 + $0xd0] sm:$0xff] }
 0x8bd   :  { %v4016_v16 = vadd.f32 %v4004_v19, %v3992_v14  ;;  %v9182_v14 = vld [vmem:[%s12960_s2 + $0xb8] sm:$0xff] }
 0x8be   :  { %v4015_v50 = vadd.f32 %v4003_v4, %v3991_v56  ;;  %v8055_v47 = vpop.f32.mrb[80].mxu0 }
 0x8bf   :  { %v4006_v41 = vmul.f32 %v9180_v2, %v8055_v47  ;;  %v3522_v17 = vpop.f32.mrb[81].mxu0 }
 0x8c0   :  { %v4005_v11 = vmul.f32 %v9181_v51, %v3522_v17  ;;  %v9189_v17 = vld [vmem:[%s12960_s2 + $0xe0] sm:$0xff] }
 0x8c1   :  { %v4018_v22 = vadd.f32 %v4006_v41, %v3994_v1  ;;  %v9184_v1 = vld [vmem:[%s12960_s2 + $0xc8] sm:$0xff] }
 0x8c2   :  { %v4017_v40 = vadd.f32 %v4005_v11, %v3993_v24  ;;  %v8058_v3 = vpop.f32.mrb[82].mxu0 }
 0x8c3   :  { %v4008_v56 = vmul.f32 %v9182_v14, %v8058_v3  ;;  %v3532_v39 = vpop.f32.mrb[83].mxu0 }
 0x8c4   :  { %v4007_v49 = vmul.f32 %v9183_v58, %v3532_v39  ;;  %v9191_v39 = vld [vmem:[%s12960_s2 + $0xf0] sm:$0xff] }
 0x8c5   :  { %v4020_v61 = vadd.f32 %v4008_v56, %v3996_v29  ;;  %v9186_v29 = vld [vmem:[%s12960_s2 + $0xd8] sm:$0xff] }
 0x8c6   :  { %v4019_v33 = vadd.f32 %v4007_v49, %v3995_v46  ;;  %v8061_v9 = vpop.f32.mrb[84].mxu0 }
 0x8c7   :  { %v4022_v24 = vmul.f32 %v9184_v1, %v8061_v9  ;;  %v3542_v38 = vpop.f32.mrb[85].mxu0 }
 0x8c8   :  { %v4021_v10 = vmul.f32 %v9185_v57, %v3542_v38  ;;  %v9193_v38 = vld [vmem:[%s12960_s2 + $0x100] sm:$0xff] }
 0x8c9   :  { %v4034_v26 = vadd.f32 %v4022_v24, %v4010_v35  ;;  %v9188_v35 = vld [vmem:[%s12960_s2 + $0xe8] sm:$0xff] }
 0x8ca   :  { %v4033_v62 = vadd.f32 %v4021_v10, %v4009_v27  ;;  %v8064_v13 = vpop.f32.mrb[86].mxu0 }
 0x8cb   :  { %v4024_v46 = vmul.f32 %v9186_v29, %v8064_v13  ;;  %v3552_v19 = vpop.f32.mrb[87].mxu0 }
 0x8cc   :  { %v4023_v18 = vmul.f32 %v9187_v15, %v3552_v19  ;;  %v9195_v19 = vld [vmem:[%s12960_s2 + $0x110] sm:$0xff] }
 0x8cd   :  { %v4036_v4 = vadd.f32 %v4024_v46, %v4012_v54  ;;  %v9190_v54 = vld [vmem:[%s12960_s2 + $0xf8] sm:$0xff] }
 0x8ce   :  { %v4035_v47 = vadd.f32 %v4023_v18, %v4011_v7  ;;  %v8067_v2 = vpop.f32.mrb[88].mxu0 }
 0x8cf   :  { %v4026_v27 = vmul.f32 %v9188_v35, %v8067_v2  ;;  %v3562_v41 = vpop.f32.mrb[89].mxu0 }
 0x8d0   :  { %v4025_v51 = vmul.f32 %v9189_v17, %v3562_v41  ;;  %v9197_v41 = vld [vmem:[%s12960_s2 + $0x120] sm:$0xff] }
 0x8d1   :  { %v4038_v11 = vadd.f32 %v4026_v27, %v4014_v44  ;;  %v9192_v44 = vld [vmem:[%s12960_s2 + $0x108] sm:$0xff] }
 0x8d2   :  { %v4037_v3 = vadd.f32 %v4025_v51, %v4013_v36  ;;  %v8070_v14 = vpop.f32.mrb[90].mxu0 }
 0x8d3   :  { %v4028_v7 = vmul.f32 %v9190_v54, %v8070_v14  ;;  %v3572_v56 = vpop.f32.mrb[91].mxu0 }
 0x8d4   :  { %v4027_v58 = vmul.f32 %v9191_v39, %v3572_v56  ;;  %v9199_v56 = vld [vmem:[%s12960_s2 + $0x130] sm:$0xff] }
 0x8d5   :  { %v4040_v49 = vadd.f32 %v4028_v7, %v4016_v16  ;;  %v9194_v16 = vld [vmem:[%s12960_s2 + $0x118] sm:$0xff] }
 0x8d6   :  { %v4039_v9 = vadd.f32 %v4027_v58, %v4015_v50  ;;  %v8073_v1 = vpop.f32.mrb[92].mxu0 }
 0x8d7   :  { %v4030_v36 = vmul.f32 %v9192_v44, %v8073_v1  ;;  %v3582_v24 = vpop.f32.mrb[93].mxu0 }
 0x8d8   :  { %v4029_v57 = vmul.f32 %v9193_v38, %v3582_v24  ;;  %v9201_v24 = vld [vmem:[%s12960_s2 + $0x140] sm:$0xff] }
 0x8d9   :  { %v4042_v10 = vadd.f32 %v4030_v36, %v4018_v22  ;;  %v9196_v22 = vld [vmem:[%s12960_s2 + $0x128] sm:$0xff] }
 0x8da   :  { %v4041_v13 = vadd.f32 %v4029_v57, %v4017_v40  ;;  %v8076_v29 = vpop.f32.mrb[94].mxu0 }
 0x8db   :  { %v4032_v50 = vmul.f32 %v9194_v16, %v8076_v29  ;;  %v3592_v46 = vpop.f32.mrb[95].mxu0 }
 0x8dc   :  { %v4031_v15 = vmul.f32 %v9195_v19, %v3592_v46  ;;  %v9203_v46 = vld [vmem:[%s12960_s2 + $0x150] sm:$0xff] }
 0x8dd   :  { %v4044_v18 = vadd.f32 %v4032_v50, %v4020_v61  ;;  %v9198_v61 = vld [vmem:[%s12960_s2 + $0x138] sm:$0xff] }
 0x8de   :  { %v4043_v2 = vadd.f32 %v4031_v15, %v4019_v33  ;;  %v8079_v35 = vpop.f32.mrb[96].mxu0 }
 0x8df   :  { %v4046_v40 = vmul.f32 %v9196_v22, %v8079_v35  ;;  %v3602_v27 = vpop.f32.mrb[97].mxu0 }
 0x8e0   :  { %v4045_v17 = vmul.f32 %v9197_v41, %v3602_v27  ;;  %v9205_v27 = vld [vmem:[%s12960_s2 + $0x160] sm:$0xff] }
 0x8e1   :  { %v4058_v51 = vadd.f32 %v4046_v40, %v4034_v26  ;;  %v9200_v26 = vld [vmem:[%s12960_s2 + $0x148] sm:$0xff] }
 0x8e2   :  { %v4057_v14 = vadd.f32 %v4045_v17, %v4033_v62  ;;  %v8082_v54 = vpop.f32.mrb[98].mxu0 }
 0x8e3   :  { %v4048_v33 = vmul.f32 %v9198_v61, %v8082_v54  ;;  %v3612_v7 = vpop.f32.mrb[99].mxu0 }
 0x8e4   :  { %v4047_v39 = vmul.f32 %v9199_v56, %v3612_v7  ;;  %v9207_v7 = vld [vmem:[%s12960_s2 + $0x170] sm:$0xff] }
 0x8e5   :  { %v4060_v58 = vadd.f32 %v4048_v33, %v4036_v4  ;;  %v9202_v4 = vld [vmem:[%s12960_s2 + $0x158] sm:$0xff] }
 0x8e6   :  { %v4059_v1 = vadd.f32 %v4047_v39, %v4035_v47  ;;  %v8085_v44 = vpop.f32.mrb[100].mxu0 }
 0x8e7   :  { %v4050_v62 = vmul.f32 %v9200_v26, %v8085_v44  ;;  %v3622_v36 = vpop.f32.mrb[101].mxu0 }
 0x8e8   :  { %v4049_v38 = vmul.f32 %v9201_v24, %v3622_v36  ;;  %v9209_v36 = vld [vmem:[%s12960_s2 + $0x180] sm:$0xff] }
 0x8e9   :  { %v4062_v57 = vadd.f32 %v4050_v62, %v4038_v11  ;;  %v9204_v11 = vld [vmem:[%s12960_s2 + $0x168] sm:$0xff] }
 0x8ea   :  { %v4061_v29 = vadd.f32 %v4049_v38, %v4037_v3  ;;  %v8088_v16 = vpop.f32.mrb[102].mxu0 }
 0x8eb   :  { %v4052_v47 = vmul.f32 %v9202_v4, %v8088_v16  ;;  %v3632_v50 = vpop.f32.mrb[103].mxu0 }
 0x8ec   :  { %v4051_v19 = vmul.f32 %v9203_v46, %v3632_v50  ;;  %v9211_v50 = vld [vmem:[%s12960_s2 + $0x190] sm:$0xff] }
 0x8ed   :  { %v4064_v15 = vadd.f32 %v4052_v47, %v4040_v49  ;;  %v9206_v49 = vld [vmem:[%s12960_s2 + $0x178] sm:$0xff] }
 0x8ee   :  { %v4063_v35 = vadd.f32 %v4051_v19, %v4039_v9  ;;  %v8091_v22 = vpop.f32.mrb[104].mxu0 }
 0x8ef   :  { %v4054_v3 = vmul.f32 %v9204_v11, %v8091_v22  ;;  %v3642_v40 = vpop.f32.mrb[105].mxu0 }
 0x8f0   :  { %v4053_v41 = vmul.f32 %v9205_v27, %v3642_v40  ;;  %v9213_v40 = vld [vmem:[%s12960_s2 + $0x1a0] sm:$0xff] }
 0x8f1   :  { %v4066_v17 = vadd.f32 %v4054_v3, %v4042_v10  ;;  %v9208_v10 = vld [vmem:[%s12960_s2 + $0x188] sm:$0xff] }
 0x8f2   :  { %v4065_v54 = vadd.f32 %v4053_v41, %v4041_v13  ;;  %v8094_v61 = vpop.f32.mrb[106].mxu0 }
 0x8f3   :  { %v4056_v9 = vmul.f32 %v9206_v49, %v8094_v61  ;;  %v3652_v33 = vpop.f32.mrb[107].mxu0 }
 0x8f4   :  { %v4055_v56 = vmul.f32 %v9207_v7, %v3652_v33  ;;  %v9215_v33 = vld [vmem:[%s12960_s2 + $0x1b0] sm:$0xff] }
 0x8f5   :  { %v4068_v39 = vadd.f32 %v4056_v9, %v4044_v18  ;;  %v9210_v18 = vld [vmem:[%s12960_s2 + $0x198] sm:$0xff] }
 0x8f6   :  { %v4067_v44 = vadd.f32 %v4055_v56, %v4043_v2  ;;  %v8097_v26 = vpop.f32.mrb[108].mxu0 }
 0x8f7   :  { %v4070_v13 = vmul.f32 %v9208_v10, %v8097_v26  ;;  %v3662_v62 = vpop.f32.mrb[109].mxu0 }
 0x8f8   :  { %v4069_v24 = vmul.f32 %v9209_v36, %v3662_v62  ;;  %v9217_v62 = vld [vmem:[%s12960_s2 + $0x1c0] sm:$0xff] }
 0x8f9   :  { %v4082_v38 = vadd.f32 %v4070_v13, %v4058_v51  ;;  %v9212_v51 = vld [vmem:[%s12960_s2 + $0x1a8] sm:$0xff] }
 0x8fa   :  { %v4081_v16 = vadd.f32 %v4069_v24, %v4057_v14  ;;  %v8100_v4 = vpop.f32.mrb[110].mxu0 }
 0x8fb   :  { %v4072_v2 = vmul.f32 %v9210_v18, %v8100_v4  ;;  %v3672_v47 = vpop.f32.mrb[111].mxu0 }
 0x8fc   :  { %v4071_v46 = vmul.f32 %v9211_v50, %v3672_v47  ;;  %v9219_v47 = vld [vmem:[%s12960_s2 + $0x1d0] sm:$0xff] }
 0x8fd   :  { %v4084_v19 = vadd.f32 %v4072_v2, %v4060_v58  ;;  %v9214_v58 = vld [vmem:[%s12960_s2 + $0x1b8] sm:$0xff] }
 0x8fe   :  { %v4083_v22 = vadd.f32 %v4071_v46, %v4059_v1  ;;  %v8103_v11 = vpop.f32.mrb[112].mxu0 }
 0x8ff   :  { %v4074_v14 = vmul.f32 %v9212_v51, %v8103_v11  ;;  %v3682_v3 = vpop.f32.mrb[113].mxu0 }
 0x900   :  { %v4073_v27 = vmul.f32 %v9213_v40, %v3682_v3  ;;  %v9221_v3 = vld [vmem:[%s12960_s2 + $0x1e0] sm:$0xff] }
 0x901   :  { %v4086_v41 = vadd.f32 %v4074_v14, %v4062_v57  ;;  %v9216_v57 = vld [vmem:[%s12960_s2 + $0x1c8] sm:$0xff] }
 0x902   :  { %v4085_v61 = vadd.f32 %v4073_v27, %v4061_v29  ;;  %v8106_v49 = vpop.f32.mrb[114].mxu0 }
 0x903   :  { %v4076_v1 = vmul.f32 %v9214_v58, %v8106_v49  ;;  %v3692_v9 = vpop.f32.mrb[115].mxu0 }
 0x904   :  { %v4075_v7 = vmul.f32 %v9215_v33, %v3692_v9  ;;  %v9223_v9 = vld [vmem:[%s12960_s2 + $0x1f0] sm:$0xff] }
 0x905   :  { %v4088_v56 = vadd.f32 %v4076_v1, %v4064_v15  ;;  %v9218_v15 = vld [vmem:[%s12960_s2 + $0x1d8] sm:$0xff] }
 0x906   :  { %v4087_v26 = vadd.f32 %v4075_v7, %v4063_v35  ;;  %v8109_v10 = vpop.f32.mrb[116].mxu0 }
 0x907   :  { %v4078_v29 = vmul.f32 %v9216_v57, %v8109_v10  ;;  %v3702_v13 = vpop.f32.mrb[117].mxu0 }
 0x908   :  { %v4077_v36 = vmul.f32 %v9217_v62, %v3702_v13  ;;  %v9225_v13 = vld [vmem:[%s12960_s2 + $0x200] sm:$0xff] }
 0x909   :  { %v4090_v24 = vadd.f32 %v4078_v29, %v4066_v17  ;;  %v9220_v17 = vld [vmem:[%s12960_s2 + $0x1e8] sm:$0xff] }
 0x90a   :  { %v4089_v4 = vadd.f32 %v4077_v36, %v4065_v54  ;;  %v8112_v18 = vpop.f32.mrb[118].mxu0 }
 0x90b   :  { %v4080_v35 = vmul.f32 %v9218_v15, %v8112_v18  ;;  %v3712_v2 = vpop.f32.mrb[119].mxu0 }
 0x90c   :  { %v4079_v50 = vmul.f32 %v9219_v47, %v3712_v2  ;;  %v9227_v2 = vld [vmem:[%s12960_s2 + $0x210] sm:$0xff] }
 0x90d   :  { %v4092_v46 = vadd.f32 %v4080_v35, %v4068_v39  ;;  %v9222_v39 = vld [vmem:[%s12960_s2 + $0x1f8] sm:$0xff] }
 0x90e   :  { %v4091_v11 = vadd.f32 %v4079_v50, %v4067_v44  ;;  %v8115_v51 = vpop.f32.mrb[120].mxu0 }
 0x90f   :  { %v4094_v54 = vmul.f32 %v9220_v17, %v8115_v51  ;;  %v3722_v14 = vpop.f32.mrb[121].mxu0 }
 0x910   :  { %v4093_v40 = vmul.f32 %v9221_v3, %v3722_v14  ;;  %v9229_v14 = vld [vmem:[%s12960_s2 + $0x220] sm:$0xff] }
 0x911   :  { %v4106_v27 = vadd.f32 %v4094_v54, %v4082_v38  ;;  %v9224_v38 = vld [vmem:[%s12960_s2 + $0x208] sm:$0xff] }
 0x912   :  { %v4105_v49 = vadd.f32 %v4093_v40, %v4081_v16  ;;  %v8118_v58 = vpop.f32.mrb[122].mxu0 }
 0x913   :  { %v4096_v44 = vmul.f32 %v9222_v39, %v8118_v58  ;;  %v3732_v1 = vpop.f32.mrb[123].mxu0 }
 0x914   :  { %v4095_v33 = vmul.f32 %v9223_v9, %v3732_v1  ;;  %v9231_v1 = vld [vmem:[%s12960_s2 + $0x230] sm:$0xff] }
 0x915   :  { %v4108_v7 = vadd.f32 %v4096_v44, %v4084_v19  ;;  %v9226_v19 = vld [vmem:[%s12960_s2 + $0x218] sm:$0xff] }
 0x916   :  { %v4107_v10 = vadd.f32 %v4095_v33, %v4083_v22  ;;  %v8121_v57 = vpop.f32.mrb[124].mxu0 }
 0x917   :  { %v4098_v16 = vmul.f32 %v9224_v38, %v8121_v57  ;;  %v3742_v29 = vpop.f32.mrb[125].mxu0 }
 0x918   :  { %v4097_v62 = vmul.f32 %v9225_v13, %v3742_v29  ;;  %v9233_v29 = vld [vmem:[%s12960_s2 + $0x240] sm:$0xff] }
 0x919   :  { %v4110_v36 = vadd.f32 %v4098_v16, %v4086_v41  ;;  %v9228_v41 = vld [vmem:[%s12960_s2 + $0x228] sm:$0xff] }
 0x91a   :  { %v4109_v18 = vadd.f32 %v4097_v62, %v4085_v61  ;;  %v8124_v15 = vpop.f32.mrb[126].mxu0 }
 0x91b   :  { %v4100_v22 = vmul.f32 %v9226_v19, %v8124_v15  ;;  %v3752_v35 = vpop.f32.mrb[127].mxu0 }
 0x91c   :  { %v4099_v47 = vmul.f32 %v9227_v2, %v3752_v35  ;;  %v9235_v35 = vld [vmem:[%s12960_s2 + $0x250] sm:$0xff] }
 0x91d   :  { %v4112_v50 = vadd.f32 %v4100_v22, %v4088_v56  ;;  %v9230_v56 = vld [vmem:[%s12960_s2 + $0x238] sm:$0xff] }
 0x91e   :  { %v4111_v51 = vadd.f32 %v4099_v47, %v4087_v26  ;;  %v8127_v17 = vpop.f32.mrb[128].mxu0 }
 0x91f   :  { %v4102_v61 = vmul.f32 %v9228_v41, %v8127_v17  ;;  %v3762_v54 = vpop.f32.mrb[129].mxu0 }
 0x920   :  { %v4101_v3 = vmul.f32 %v9229_v14, %v3762_v54  ;;  %v9237_v54 = vld [vmem:[%s12960_s2 + $0x260] sm:$0xff] }
 0x921   :  { %v4114_v40 = vadd.f32 %v4102_v61, %v4090_v24  ;;  %v9232_v24 = vld [vmem:[%s12960_s2 + $0x248] sm:$0xff] }
 0x922   :  { %v4113_v58 = vadd.f32 %v4101_v3, %v4089_v4  ;;  %v8130_v39 = vpop.f32.mrb[130].mxu0 }
 0x923   :  { %v4104_v26 = vmul.f32 %v9230_v56, %v8130_v39  ;;  %v3772_v44 = vpop.f32.mrb[131].mxu0 }
 0x924   :  { %v4103_v9 = vmul.f32 %v9231_v1, %v3772_v44  ;;  %v9239_v44 = vld [vmem:[%s12960_s2 + $0x270] sm:$0xff] }
 0x925   :  { %v4116_v33 = vadd.f32 %v4104_v26, %v4092_v46  ;;  %v9234_v46 = vld [vmem:[%s12960_s2 + $0x258] sm:$0xff] }
 0x926   :  { %v4115_v57 = vadd.f32 %v4103_v9, %v4091_v11  ;;  %v8133_v38 = vpop.f32.mrb[132].mxu0 }
 0x927   :  { %v4118_v4 = vmul.f32 %v9232_v24, %v8133_v38  ;;  %v3782_v16 = vpop.f32.mrb[133].mxu0 }
 0x928   :  { %v4117_v13 = vmul.f32 %v9233_v29, %v3782_v16  ;;  %v9241_v16 = vld [vmem:[%s12960_s2 + $0x280] sm:$0xff] }
 0x929   :  { %v4130_v62 = vadd.f32 %v4118_v4, %v4106_v27  ;;  %v9236_v27 = vld [vmem:[%s12960_s2 + $0x268] sm:$0xff] }
 0x92a   :  { %v4129_v15 = vadd.f32 %v4117_v13, %v4105_v49  ;;  %v8136_v19 = vpop.f32.mrb[134].mxu0 }
 0x92b   :  { %v4120_v11 = vmul.f32 %v9234_v46, %v8136_v19  ;;  %v3792_v22 = vpop.f32.mrb[135].mxu0 }
 0x92c   :  { %v4119_v2 = vmul.f32 %v9235_v35, %v3792_v22  ;;  %v9243_v22 = vld [vmem:[%s12960_s2 + $0x290] sm:$0xff] }
 0x92d   :  { %v4132_v47 = vadd.f32 %v4120_v11, %v4108_v7  ;;  %v9238_v7 = vld [vmem:[%s12960_s2 + $0x278] sm:$0xff] }
 0x92e   :  { %v4131_v17 = vadd.f32 %v4119_v2, %v4107_v10  ;;  %v8139_v41 = vpop.f32.mrb[136].mxu0 }
 0x92f   :  { %v4122_v49 = vmul.f32 %v9236_v27, %v8139_v41  ;;  %v3802_v61 = vpop.f32.mrb[137].mxu0 }
 0x930   :  { %v4121_v14 = vmul.f32 %v9237_v54, %v3802_v61  ;;  %v9245_v61 = vld [vmem:[%s12960_s2 + $0x2a0] sm:$0xff] }
 0x931   :  { %v4134_v3 = vadd.f32 %v4122_v49, %v4110_v36  ;;  %v9240_v36 = vld [vmem:[%s12960_s2 + $0x288] sm:$0xff] }
 0x932   :  { %v4133_v39 = vadd.f32 %v4121_v14, %v4109_v18  ;;  %v8142_v56 = vpop.f32.mrb[138].mxu0 }
 0x933   :  { %v4124_v10 = vmul.f32 %v9238_v7, %v8142_v56  ;;  %v3812_v26 = vpop.f32.mrb[139].mxu0 }
 0x934   :  { %v4123_v1 = vmul.f32 %v9239_v44, %v3812_v26  ;;  %v9247_v26 = vld [vmem:[%s12960_s2 + $0x2b0] sm:$0xff] }
 0x935   :  { %v4136_v9 = vadd.f32 %v4124_v10, %v4112_v50  ;;  %v9242_v50 = vld [vmem:[%s12960_s2 + $0x298] sm:$0xff] }
 0x936   :  { %v4135_v38 = vadd.f32 %v4123_v1, %v4111_v51  ;;  %v8145_v24 = vpop.f32.mrb[140].mxu0 }
 0x937   :  { %v4126_v18 = vmul.f32 %v9240_v36, %v8145_v24  ;;  %v3822_v4 = vpop.f32.mrb[141].mxu0 }
 0x938   :  { %v4125_v29 = vmul.f32 %v9241_v16, %v3822_v4  ;;  %v9249_v4 = vld [vmem:[%s12960_s2 + $0x2c0] sm:$0xff] }
 0x939   :  { %v4138_v13 = vadd.f32 %v4126_v18, %v4114_v40  ;;  %v9244_v40 = vld [vmem:[%s12960_s2 + $0x2a8] sm:$0xff] }
 0x93a   :  { %v4137_v19 = vadd.f32 %v4125_v29, %v4113_v58  ;;  %v8148_v46 = vpop.f32.mrb[142].mxu0 }
 0x93b   :  { %v4128_v51 = vmul.f32 %v9242_v50, %v8148_v46  ;;  %v3832_v11 = vpop.f32.mrb[143].mxu0 }
 0x93c   :  { %v4127_v35 = vmul.f32 %v9243_v22, %v3832_v11  ;;  %v9251_v11 = vld [vmem:[%s12960_s2 + $0x2d0] sm:$0xff] }
 0x93d   :  { %v4140_v2 = vadd.f32 %v4128_v51, %v4116_v33  ;;  %v9246_v33 = vld [vmem:[%s12960_s2 + $0x2b8] sm:$0xff] }
 0x93e   :  { %v4139_v41 = vadd.f32 %v4127_v35, %v4115_v57  ;;  %v8151_v27 = vpop.f32.mrb[144].mxu0 }
 0x93f   :  { %v4142_v58 = vmul.f32 %v9244_v40, %v8151_v27  ;;  %v3842_v49 = vpop.f32.mrb[145].mxu0 }
 0x940   :  { %v4141_v54 = vmul.f32 %v9245_v61, %v3842_v49  ;;  %v9253_v49 = vld [vmem:[%s12960_s2 + $0x2e0] sm:$0xff] }
 0x941   :  { %v4154_v14 = vadd.f32 %v4142_v58, %v4130_v62  ;;  %v9248_v62 = vld [vmem:[%s12960_s2 + $0x2c8] sm:$0xff] }
 0x942   :  { %v4153_v56 = vadd.f32 %v4141_v54, %v4129_v15  ;;  %v8154_v7 = vpop.f32.mrb[146].mxu0 }
 0x943   :  { %v4144_v57 = vmul.f32 %v9246_v33, %v8154_v7  ;;  %v3852_v10 = vpop.f32.mrb[147].mxu0 }
 0x944   :  { %v4143_v44 = vmul.f32 %v9247_v26, %v3852_v10  ;;  %v9255_v10 = vld [vmem:[%s12960_s2 + $0x2f0] sm:$0xff] }
 0x945   :  { %v4156_v1 = vadd.f32 %v4144_v57, %v4132_v47  ;;  %v9250_v47 = vld [vmem:[%s12960_s2 + $0x2d8] sm:$0xff] }
 0x946   :  { %v4155_v24 = vadd.f32 %v4143_v44, %v4131_v17  ;;  %v8157_v36 = vpop.f32.mrb[148].mxu0 }
 0x947   :  { %v4146_v15 = vmul.f32 %v9248_v62, %v8157_v36  ;;  %v3862_v18 = vpop.f32.mrb[149].mxu0 }
 0x948   :  { %v4145_v16 = vmul.f32 %v9249_v4, %v3862_v18  ;;  %v9257_v18 = vld [vmem:[%s12960_s2 + $0x300] sm:$0xff] }
 0x949   :  { %v4158_v29 = vadd.f32 %v4146_v15, %v4134_v3  ;;  %v9252_v3 = vld [vmem:[%s12960_s2 + $0x2e8] sm:$0xff] }
 0x94a   :  { %v4157_v46 = vadd.f32 %v4145_v16, %v4133_v39  ;;  %v8160_v50 = vpop.f32.mrb[150].mxu0 }
 0x94b   :  { %v4148_v17 = vmul.f32 %v9250_v47, %v8160_v50  ;;  %v3872_v51 = vpop.f32.mrb[151].mxu0 }
 0x94c   :  { %v4147_v22 = vmul.f32 %v9251_v11, %v3872_v51  ;;  %v9259_v11 = vld [vmem:[%s12960_s2 + $0x310] sm:$0xff] }
 0x94d   :  { %v4160_v35 = vadd.f32 %v4148_v17, %v4136_v9  ;;  %v9254_v9 = vld [vmem:[%s12960_s2 + $0x2f8] sm:$0xff] }
 0x94e   :  { %v4159_v27 = vadd.f32 %v4147_v22, %v4135_v38  ;;  %v8163_v40 = vpop.f32.mrb[152].mxu0 }
 0x94f   :  { %v4150_v39 = vmul.f32 %v9252_v3, %v8163_v40  ;;  %v3882_v58 = vpop.f32.mrb[153].mxu0 }
 0x950   :  { %v4149_v61 = vmul.f32 %v9253_v49, %v3882_v58 }
 0x951   :  { %v4162_v54 = vadd.f32 %v4150_v39, %v4138_v13  ;;  %v9256_v13 = vld [vmem:[%s12960_s2 + $0x308] sm:$0xff] }
 0x952   :  { %v4161_v7 = vadd.f32 %v4149_v61, %v4137_v19  ;;  %v8166_v33 = vpop.f32.mrb[154].mxu0  ;;  %v9260_v39 = vld [vmem:[%s12960_s2 + $0x328] sm:$0xff] }
 0x953   :  { %v4152_v38 = vmul.f32 %v9254_v9, %v8166_v33  ;;  %v3892_v57 = vpop.f32.mrb[155].mxu0  ;;  %v9261_v33 = vld [vmem:[%s12960_s2 + $0x320] sm:$0xff] }
 0x954   :  { %v4151_v26 = vmul.f32 %v9255_v10, %v3892_v57  ;;  %v9262_v57 = vld [vmem:[%s12960_s2 + $0x338] sm:$0xff] }
 0x955   :  { %v4164_v44 = vadd.f32 %v4152_v38, %v4140_v2  ;;  %v9258_v2 = vld [vmem:[%s12960_s2 + $0x318] sm:$0xff] }
 0x956   :  { %v4163_v36 = vadd.f32 %v4151_v26, %v4139_v41  ;;  %v8169_v62 = vpop.f32.mrb[156].mxu0 }
 0x957   :  { %v4166_v19 = vmul.f32 %v9256_v13, %v8169_v62  ;;  %v3902_v15 = vpop.f32.mrb[157].mxu0  ;;  %v9263_v62 = vld [vmem:[%s12960_s2 + $0x330] sm:$0xff] }
 0x958   :  { %v4165_v4 = vmul.f32 %v9257_v18, %v3902_v15  ;;  %v9264_v18 = vld [vmem:[%s12960_s2 + $0x348] sm:$0xff] }
 0x959   :  { %v11715_v16 = vadd.f32 %v4166_v19, %v4154_v14 }
 0x95a   :  { %v11717_v50 = vadd.f32 %v4165_v4, %v4153_v56  ;;  %v8172_v47 = vpop.f32.mrb[158].mxu0 }
 0x95b   :  { %v4168_v41 = vmul.f32 %v9258_v2, %v8172_v47  ;;  %v3912_v17 = vpop.f32.mrb[159].mxu0  ;;  %v4192_v51 = vsel %vm77_vm0, %v11715_v16, 0.0  ;;  %v9265_v2 = vld [vmem:[%s12960_s2 + $0x340] sm:$0xff] }
 0x95c   :  { %v4167_v22 = vmul.f32 %v9259_v11, %v3912_v17  ;;  %4193 = vadd.xlane.f32.xlu0 %v4192_v51  ;;  %v4189_v14 = vsel %vm77_vm0, %v11717_v50, 0.0  ;;  %v9266_v11 = vld [vmem:[%s12960_s2 + $0x358] sm:$0xff] }
 0x95d   :  { %v11729_v56 = vadd.f32 %v4168_v41, %v4156_v1  ;;  %4190 = vadd.xlane.f32.xlu1 %v4189_v14 }
 0x95e   :  { %v11731_v40 = vadd.f32 %v4167_v22, %v4155_v24  ;;  %v8175_v3 = vpop.f32.mrb[160].mxu0 }
 0x95f   :  { %v4170_v58 = vmul.f32 %v9260_v39, %v8175_v3  ;;  %v3922_v49 = vpop.f32.mrb[161].mxu0  ;;  %v4198_v61 = vsel %vm77_vm0, %v11729_v56, 0.0  ;;  %v9267_v3 = vld [vmem:[%s12960_s2 + $0x350] sm:$0xff] }
 0x960   :  { %v4169_v9 = vmul.f32 %v9261_v33, %v3922_v49  ;;  %v4195_v19 = vsel %vm77_vm0, %v11731_v40, 0.0 }
 0x961   :  { %v11741_v1 = vadd.f32 %v4170_v58, %v4158_v29  ;;  %4199 = vadd.xlane.f32.xlu1 %v4198_v61 }
 0x962   :  { %v11743_v24 = vadd.f32 %v4169_v9, %v4157_v46  ;;  %v8178_v38 = vpop.f32.mrb[162].mxu0 }
 0x963   :  { %v4172_v10 = vmul.f32 %v9262_v57, %v8178_v38  ;;  %v3932_v26 = vpop.f32.mrb[163].mxu0  ;;  %v4204_v17 = vsel %vm77_vm0, %v11741_v1, 0.0 }
 0x964   :  { %v4171_v13 = vmul.f32 %v9263_v62, %v3932_v26  ;;  %v4201_v58 = vsel %vm77_vm0, %v11743_v24, 0.0 }
 0x965   :  { %v11753_v29 = vadd.f32 %v4172_v10, %v4160_v35  ;;  %4196 = vadd.xlane.f32.xlu1 %v4195_v19 }
 0x966   :  { %v11755_v46 = vadd.f32 %v4171_v13, %v4159_v27  ;;  %v8181_v15 = vpop.f32.mrb[164].mxu0 }
 0x967   :  { %v4174_v4 = vmul.f32 %v9264_v18, %v8181_v15  ;;  %v3942_v47 = vpop.f32.mrb[165].mxu0  ;;  %v4210_v61 = vsel %vm77_vm0, %v11753_v29, 0.0 }
 0x968   :  { %v4173_v41 = vmul.f32 %v9265_v2, %v3942_v47  ;;  %v4207_v9 = vsel %vm77_vm0, %v11755_v46, 0.0 }
 0x969   :  { %v11765_v35 = vadd.f32 %v4174_v4, %v4162_v54  ;;  %4205 = vadd.xlane.f32.xlu1 %v4204_v17 }
 0x96a   :  { %v8184_v27 = vpop.f32.mrb[166].mxu0  ;;  %v11767_v51 = vadd.f32 %v4173_v41, %v4161_v7 }
 0x96b   :  { %v4176_v22 = vmul.f32 %v9266_v11, %v8184_v27  ;;  %v3952_v14 = vpop.f32.mrb[167].mxu0 }
 0x96c   :  { %v4175_v39 = vmul.f32 %v9267_v3, %v3952_v14  ;;  %v4213_v54 = vsel %vm77_vm0, %v11767_v51, 0.0 }
 0x96d   :  { %v11779_v49 = vadd.f32 %v4176_v22, %v4164_v44  ;;  %4202 = vadd.xlane.f32.xlu1 %v4201_v58  ;;  %4214 = vadd.xlane.f32.xlu0 %v4213_v54  ;;  %v4216_v44 = vsel %vm77_vm0, %v11765_v35, 0.0 }
 0x96e   :  { %v11781_v7 = vadd.f32 %v4175_v39, %v4163_v36 }
 0x96f   :  { %v4222_v36 = vsel %vm77_vm0, %v11779_v49, 0.0 }
 0x970   :  { %v4219_v33 = vsel %vm77_vm0, %v11781_v7, 0.0 }
 0x971   :  { %4211 = vadd.xlane.f32.xlu1 %v4210_v61  ;;  %4220 = vadd.xlane.f32.xlu0 %v4219_v33 }
 0x975   :  { %4208 = vadd.xlane.f32.xlu1 %v4207_v9 }
 0x979   :  { %4217 = vadd.xlane.f32.xlu1 %v4216_v44 }
 0x97d   :  { %4223 = vadd.xlane.f32.xlu1 %v4222_v36 }
 0x9e9   :  { %v4194_v38 = vpop.xlane.xlu0 %4193 }
 0x9ea   :  { %v4226_v57 = vmul.f32 0.03125, %v4194_v38  ;;  %v4191_v10 = vpop.xlane.xlu1 %4190 }
 0x9eb   :  { %v4225_v26 = vmul.f32 0.03125, %v4191_v10 }
 0x9ec   :  { %v11794_v62 = vsub.f32 %v11715_v16, %v4226_v57 }
 0x9ed   :  { %v11797_v13 = vsub.f32 %v11717_v50, %v4225_v26 }
 0x9ee   :  { %v4200_v19 = vpop.xlane.xlu1 %4199  ;;  %v4250_v15 = vmul.f32 %v11794_v62, %v11794_v62 }
 0x9ef   :  { %v4228_v18 = vmul.f32 0.03125, %v4200_v19  ;;  %v4249_v4 = vmul.f32 %v11797_v13, %v11797_v13 }
 0x9f0   :  { %v4264_v47 = vsel %vm77_vm0, %v4250_v15, 0.0 }
 0x9f1   :  { %v11805_v2 = vsub.f32 %v11729_v56, %v4228_v18  ;;  %4265 = vadd.xlane.f32.xlu1 %v4264_v47  ;;  %v4261_v16 = vsel %vm77_vm0, %v4249_v4, 0.0 }
 0x9f2   :  { %v4197_v41 = vpop.xlane.xlu1 %4196  ;;  %4262 = vadd.xlane.f32.xlu0 %v4261_v16 }
 0x9f3   :  { %v4227_v50 = vmul.f32 0.03125, %v4197_v41  ;;  %v4252_v17 = vmul.f32 %v11805_v2, %v11805_v2 }
 0x9f5   :  { %v11811_v27 = vsub.f32 %v11731_v40, %v4227_v50  ;;  %v4270_v11 = vsel %vm77_vm0, %v4252_v17, 0.0 }
 0x9f6   :  { %v4206_v22 = vpop.xlane.xlu1 %4205  ;;  %4271 = vadd.xlane.f32.xlu1 %v4270_v11 }
 0x9f7   :  { %v4230_v14 = vmul.f32 0.03125, %v4206_v22  ;;  %v4251_v56 = vmul.f32 %v11811_v27, %v11811_v27 }
 0x9f9   :  { %v11817_v3 = vsub.f32 %v11741_v1, %v4230_v14  ;;  %v4267_v39 = vsel %vm77_vm0, %v4251_v56, 0.0 }
 0x9fa   :  { %v4203_v58 = vpop.xlane.xlu1 %4202  ;;  %4268 = vadd.xlane.f32.xlu0 %v4267_v39  ;;  %v4215_v61 = vpop.xlane.xlu0 %4214 }
 0x9fb   :  { %v4229_v54 = vmul.f32 0.03125, %v4203_v58  ;;  %v4254_v40 = vmul.f32 %v11817_v3, %v11817_v3  ;;  %v4233_v38 = vmul.f32 0.03125, %v4215_v61 }
 0x9fd   :  { %v11823_v33 = vsub.f32 %v11743_v24, %v4229_v54  ;;  %v4276_v9 = vsel %vm77_vm0, %v4254_v40, 0.0  ;;  %v11835_v18 = vsub.f32 %v11767_v51, %v4233_v38 }
 0x9fe   :  { %v4212_v44 = vpop.xlane.xlu1 %4211  ;;  %4277 = vadd.xlane.f32.xlu1 %v4276_v9  ;;  %v4221_v26 = vpop.xlane.xlu0 %4220 }
 0x9ff   :  { %v4232_v36 = vmul.f32 0.03125, %v4212_v44  ;;  %v4253_v1 = vmul.f32 %v11823_v33, %v11823_v33  ;;  %v4235_v4 = vmul.f32 0.03125, %v4221_v26 }
 0xa01   :  { %v11829_v57 = vsub.f32 %v11753_v29, %v4232_v36  ;;  %v4273_v10 = vsel %vm77_vm0, %v4253_v1, 0.0  ;;  %v11844_v17 = vsub.f32 %v11781_v7, %v4235_v4 }
 0xa02   :  { %v4209_v19 = vpop.xlane.xlu1 %4208  ;;  %4274 = vadd.xlane.f32.xlu0 %v4273_v10 }
 0xa03   :  { %v4231_v15 = vmul.f32 0.03125, %v4209_v19  ;;  %v4256_v24 = vmul.f32 %v11829_v57, %v11829_v57 }
 0xa05   :  { %v11838_v47 = vsub.f32 %v11755_v46, %v4231_v15  ;;  %v4282_v16 = vsel %vm77_vm0, %v4256_v24, 0.0  ;;  %v4257_v46 = vmul.f32 %v11835_v18, %v11835_v18 }
 0xa06   :  { %v4218_v29 = vpop.xlane.xlu1 %4217  ;;  %4283 = vadd.xlane.f32.xlu1 %v4282_v16 }
 0xa07   :  { %v4234_v41 = vmul.f32 0.03125, %v4218_v29  ;;  %v4255_v50 = vmul.f32 %v11838_v47, %v11838_v47  ;;  %v4285_v58 = vsel %vm77_vm0, %v4257_v46, 0.0 }
 0xa09   :  { %v11847_v11 = vsub.f32 %v11765_v35, %v4234_v41  ;;  %v4279_v51 = vsel %vm77_vm0, %v4255_v50, 0.0  ;;  %v4259_v35 = vmul.f32 %v11844_v17, %v11844_v17 }
 0xa0a   :  { %v4224_v22 = vpop.xlane.xlu1 %4223  ;;  %4280 = vadd.xlane.f32.xlu0 %v4279_v51 }
 0xa0b   :  { %v4236_v14 = vmul.f32 0.03125, %v4224_v22  ;;  %v4258_v56 = vmul.f32 %v11847_v11, %v11847_v11  ;;  %v4291_v61 = vsel %vm77_vm0, %v4259_v35, 0.0 }
 0xa0d   :  { %v11855_v39 = vsub.f32 %v11779_v49, %v4236_v14  ;;  %v4288_v7 = vsel %vm77_vm0, %v4258_v56, 0.0  ;;  %v11870_v56 = vld [vmem:[%s12962_s7] ss:$0 sm:$0xff] }
 0xa0e   :  { %4289 = vadd.xlane.f32.xlu1 %v4288_v7  ;;  %4286 = vadd.xlane.f32.xlu0 %v4285_v58 }
 0xa0f   :  { %v4260_v54 = vmul.f32 %v11855_v39, %v11855_v39 }
 0xa11   :  { %v4294_v40 = vsel %vm77_vm0, %v4260_v54, 0.0 }
 0xa12   :  { %4295 = vadd.xlane.f32.xlu1 %v4294_v40  ;;  %4292 = vadd.xlane.f32.xlu0 %v4291_v61 }
 0xa7e   :  { %v4266_v49 = vpop.xlane.xlu1 %4265 }
 0xa7f   :  { %v4298_v9 = vmul.f32 0.03125, %v4266_v49  ;;  %v4263_v44 = vpop.xlane.xlu0 %4262 }
 0xa80   :  { %v4297_v36 = vmul.f32 0.03125, %v4263_v44 }
 0xa81   :  { %v4310_v1 = vadd.f32 1e-05, %v4298_v9 }
 0xa82   :  { %v4309_v38 = vadd.f32 1e-05, %v4297_v36 }
 0xa83   :  { %8834 = vrsqrt.f32 %v4310_v1  ;;  %v4272_v10 = vpop.xlane.xlu1 %4271 }
 0xa84   :  { %8836 = vrsqrt.f32 %v4309_v38  ;;  %v4300_v26 = vmul.f32 0.03125, %v4272_v10 }
 0xa86   :  { %v4312_v19 = vadd.f32 1e-05, %v4300_v26 }
 0xa87   :  { %v4269_v15 = vpop.xlane.xlu0 %4268 }
 0xa88   :  { %8838 = vrsqrt.f32 %v4312_v19  ;;  %v4299_v24 = vmul.f32 0.03125, %v4269_v15 }
 0xa8a   :  { %v4311_v4 = vadd.f32 1e-05, %v4299_v24 }
 0xa8b   :  { %v4278_v16 = vpop.xlane.xlu1 %4277 }
 0xa8c   :  { %8840 = vrsqrt.f32 %v4311_v4  ;;  %v4302_v29 = vmul.f32 0.03125, %v4278_v16 }
 0xa8d   :  { %v8835_v41 = vpop.eup %8834 }
 0xa8e   :  { %v8837_v50 = vpop.eup %8836  ;;  %v4334_v51 = vmul.f32 %v8835_v41, %v11794_v62  ;;  %v4314_v46 = vadd.f32 1e-05, %v4302_v29  ;;  %v11877_v62 = vld [vmem:[%s12963_s8] ss:$0 sm:$0xff] }
 0xa8f   :  { %v4275_v22 = vpop.xlane.xlu0 %4274  ;;  %v4333_v14 = vmul.f32 %v8837_v50, %v11797_v13 }
 0xa90   :  { %v4346_v7 = vmul.f32 %v11870_v56, %v4334_v51  ;;  %8842 = vrsqrt.f32 %v4314_v46  ;;  %v4301_v58 = vmul.f32 0.03125, %v4275_v22 }
 0xa91   :  { %v4345_v35 = vmul.f32 %v11870_v56, %v4333_v14 }
 0xa92   :  { %v8839_v54 = vpop.eup %8838  ;;  %v4313_v40 = vadd.f32 1e-05, %v4301_v58  ;;  %v4358_v44 = vadd.f32 %v11877_v62, %v4346_v7 }
 0xa93   :  { %v4284_v61 = vpop.xlane.xlu1 %4283  ;;  %v4357_v13 = vadd.f32 %v11877_v62, %v4345_v35  ;;  %v4336_v49 = vmul.f32 %v8839_v54, %v11805_v2 }
 0xa94   :  { %8844 = vrsqrt.f32 %v4313_v40  ;;  %v4304_v9 = vmul.f32 0.03125, %v4284_v61 }
 0xa95   :  { %8193 = vmatprep.mubr.msk.f32.mxu1 %vm77_vm0, %v4357_v13  ;;  %v4348_v26 = vmul.f32 %v11870_v56, %v4336_v49 }
 0xa96   :  { %v8841_v36 = vpop.eup %8840  ;;  %v4316_v1 = vadd.f32 1e-05, %v4304_v9  ;;  %8194 = vmatmul.mubr.msk.f32.vlgmr.msra.gmra.mrb[120].mxu1 %vm77_vm0, %v4358_v44 }
 0xa97   :  { %v4281_v38 = vpop.xlane.xlu0 %4280  ;;  %v4335_v10 = vmul.f32 %v8841_v36, %v11811_v27  ;;  %v4360_v41 = vadd.f32 %v11877_v62, %v4348_v26 }
 0xa98   :  { %8846 = vrsqrt.f32 %v4316_v1  ;;  %v4303_v19 = vmul.f32 0.03125, %v4281_v38 }
 0xa99   :  { %v4347_v15 = vmul.f32 %v11870_v56, %v4335_v10 }
 0xa9a   :  { %v8843_v2 = vpop.eup %8842  ;;  %v4315_v24 = vadd.f32 1e-05, %v4303_v19 }
 0xa9b   :  { %v4290_v4 = vpop.xlane.xlu1 %4289  ;;  %v4287_v16 = vpop.xlane.xlu0 %4286  ;;  %v4359_v29 = vadd.f32 %v11877_v62, %v4347_v15  ;;  %v4338_v46 = vmul.f32 %v8843_v2, %v11817_v3 }
 0xa9c   :  { %8848 = vrsqrt.f32 %v4315_v24  ;;  %v4306_v50 = vmul.f32 0.03125, %v4290_v4  ;;  %v4305_v51 = vmul.f32 0.03125, %v4287_v16 }
 0xa9d   :  { %8196 = vmatprep.mubr.msk.f32.mxu1 %vm77_vm0, %v4359_v29  ;;  %v4350_v61 = vmul.f32 %v11870_v56, %v4338_v46 }
 0xa9e   :  { %v8845_v27 = vpop.eup %8844  ;;  %v4318_v22 = vadd.f32 1e-05, %v4306_v50  ;;  %v4317_v14 = vadd.f32 1e-05, %v4305_v51  ;;  %8197 = vmatmul.mubr.msk.f32.gmra.mrb[122].mxu1 %vm77_vm0, %v4360_v41 }
 0xa9f   :  { %v4296_v7 = vpop.xlane.xlu1 %4295  ;;  %v4293_v58 = vpop.xlane.xlu0 %4292  ;;  %v4337_v35 = vmul.f32 %v8845_v27, %v11823_v33  ;;  %v4362_v36 = vadd.f32 %v11877_v62, %v4350_v61  ;;  %v9289_v61 = vmov 16  }
 0xaa0   :  { %8850 = vrsqrt.f32 %v4318_v22  ;;  %v4308_v54 = vmul.f32 0.03125, %v4296_v7  ;;  %v4307_v40 = vmul.f32 0.03125, %v4293_v58  ;;  %8776 = vset.pattern.permute.xlu1 %v9289_v61 }
 0xaa1   :  { %8852 = vrsqrt.f32 %v4317_v14  ;;  %v4349_v13 = vmul.f32 %v11870_v56, %v4337_v35 }
 0xaa2   :  { %v8847_v3 = vpop.eup %8846  ;;  %v4320_v49 = vadd.f32 1e-05, %v4308_v54  ;;  %v4319_v9 = vadd.f32 1e-05, %v4307_v40 }
 0xaa3   :  { %v4361_v44 = vadd.f32 %v11877_v62, %v4349_v13  ;;  %v4340_v1 = vmul.f32 %v8847_v3, %v11829_v57 }
 0xaa4   :  { %8854 = vrsqrt.f32 %v4320_v49 }
 0xaa5   :  { %8856 = vrsqrt.f32 %v4319_v9  ;;  %8199 = vmatprep.mubr.msk.f32.mxu1 %vm77_vm0, %v4361_v44  ;;  %v4352_v10 = vmul.f32 %v11870_v56, %v4340_v1 }
 0xaa6   :  { %v8849_v33 = vpop.eup %8848  ;;  %8200 = vmatmul.mubr.msk.f32.gmra.mrb[124].mxu1 %vm77_vm0, %v4362_v36 }
 0xaa7   :  { %v4339_v38 = vmul.f32 %v8849_v33, %v11838_v47  ;;  %v4364_v57 = vadd.f32 %v11877_v62, %v4352_v10 }
 0xaa9   :  { %v4351_v26 = vmul.f32 %v11870_v56, %v4339_v38 }
 0xaaa   :  { %v8851_v19 = vpop.eup %8850 }
 0xaab   :  { %v8853_v15 = vpop.eup %8852  ;;  %v4363_v2 = vadd.f32 %v11877_v62, %v4351_v26  ;;  %v4342_v24 = vmul.f32 %v8851_v19, %v11847_v11 }
 0xaac   :  { %v4341_v4 = vmul.f32 %v8853_v15, %v11835_v18 }
 0xaad   :  { %8202 = vmatprep.mubr.msk.f32.mxu1 %vm77_vm0, %v4363_v2  ;;  %v4354_v16 = vmul.f32 %v11870_v56, %v4342_v24 }
 0xaae   :  { %v8855_v29 = vpop.eup %8854  ;;  %8203 = vmatmul.mubr.msk.f32.gmra.mrb[126].mxu1 %vm77_vm0, %v4364_v57  ;;  %v4353_v47 = vmul.f32 %v11870_v56, %v4341_v4 }
 0xaaf   :  { %v8857_v41 = vpop.eup %8856  ;;  %v4366_v50 = vadd.f32 %v11877_v62, %v4354_v16  ;;  %v4344_v51 = vmul.f32 %v8855_v29, %v11855_v39 }
 0xab0   :  { %v4365_v11 = vadd.f32 %v11877_v62, %v4353_v47  ;;  %v4343_v46 = vmul.f32 %v8857_v41, %v11844_v17 }
 0xab1   :  { %v4356_v18 = vmul.f32 %v11870_v56, %v4344_v51  ;;  %v537_v51 = vmax.f32 %v10709_v28, 0.0 }
 0xab2   :  { %8205 = vmatprep.mubr.msk.f32.mxu1 %vm77_vm0, %v4365_v11  ;;  %v4355_v27 = vmul.f32 %v11870_v56, %v4343_v46  ;;  %v538_v46 = vmax.f32 %v10715_v12, 0.0 }
 0xab3   :  { %8206 = vmatmul.mubr.msk.f32.gmra.mrb[128].mxu1 %vm77_vm0, %v4366_v50  ;;  %v4368_v22 = vadd.f32 %v11877_v62, %v4356_v18  ;;  %v536_v50 = vmax.f32 %v10711_v45, 0.0 }
 0xab4   :  { %v4367_v14 = vadd.f32 %v11877_v62, %v4355_v27 }
 0xab5   :  { %v4380_v7 = vsel %vm568_vm2, %v4368_v22, 0.0 }
 0xab6   :  { %8208 = vmatprep.mubr.msk.f32.mxu1 %vm77_vm0, %v4367_v14 }
 0xab7   :  { %8209 = vmatmul.mubr.msk.f32.gmra.mrb[130].mxu1 %vm77_vm0, %v4380_v7 }
 0xb69   :  { %v8195_v17 = vpop.f32.mrb[120].mxu1 }
 0xb6a   :  { %v4483_v39 = vpop.f32.mrb[121].mxu1  ;;  %v4543_v26 = vmax.f32 %v8195_v17, 0.0 }
 0xb6b   :  { %v8746_v58 = vpack.i.bf16 %v8195_v17, %v4483_v39  ;;  %v4542_v10 = vmax.f32 %v4483_v39, 0.0  ;;  %v539_v17 = vmax.f32 %v10713_v43, 0.0 }
 0xb6d   :  { %8717 = vrot.lane.b32.xlu0 %v8746_v58, %s9286_s21 }
 0xb71   :  { %v8198_v35 = vpop.f32.mrb[122].mxu1 }
 0xb72   :  { %v4493_v56 = vpop.f32.mrb[123].mxu1  ;;  %v4545_v15 = vmax.f32 %v8198_v35, 0.0 }
 0xb73   :  { %v8751_v54 = vpack.i.bf16 %v8198_v35, %v4493_v56  ;;  %v4544_v19 = vmax.f32 %v4493_v56, 0.0 }
 0xb75   :  { %8722 = vrot.lane.b32.xlu1 %v8751_v54, %s9286_s21 }
 0xb79   :  { %v8201_v40 = vpop.f32.mrb[124].mxu1 }
 0xb7a   :  { %v4503_v23 = vpop.f32.mrb[125].mxu1  ;;  %v4547_v24 = vmax.f32 %v8201_v40, 0.0 }
 0xb7b   :  { %v8756_v62 = vpack.i.bf16 %v8201_v40, %v4503_v23  ;;  %v4546_v2 = vmax.f32 %v4503_v23, 0.0 }
 0xb7d   :  { %8727 = vrot.lane.b32.xlu1 %v8756_v62, %s9286_s21 }
 0xb81   :  { %v8204_v13 = vpop.f32.mrb[126].mxu1 }
 0xb82   :  { %v4513_v3 = vpop.f32.mrb[127].mxu1  ;;  %v4549_v4 = vmax.f32 %v8204_v13, 0.0 }
 0xb83   :  { %v8761_v49 = vpack.i.bf16 %v8204_v13, %v4513_v3  ;;  %v4548_v57 = vmax.f32 %v4513_v3, 0.0  ;;  %v542_v3 = vmax.f32 %v10723_v25, 0.0 }
 0xb85   :  { %8732 = vrot.lane.b32.xlu1 %v8761_v49, %s9286_s21 }
 0xb86   :  { %v8207_v9 = vpop.f32.mrb[128].mxu1 }
 0xb87   :  { %v4523_v44 = vpop.f32.mrb[129].mxu1  ;;  %v4551_v29 = vmax.f32 %v8207_v9, 0.0 }
 0xb88   :  { %v8766_v36 = vpack.i.bf16 %v8207_v9, %v4523_v44  ;;  %v4550_v16 = vmax.f32 %v4523_v44, 0.0 }
 0xb8a   :  { %8737 = vrot.lane.b32.xlu0 %v8766_v36, %s9286_s21  ;;  %v8210_v1 = vpop.f32.mrb[130].mxu1 }
 0xb8b   :  { %v4533_v33 = vpop.f32.mrb[131].mxu1  ;;  %v4553_v41 = vmax.f32 %v8210_v1, 0.0 }
 0xb8c   :  { %v8771_v38 = vpack.i.bf16 %v8210_v1, %v4533_v33  ;;  %v4552_v47 = vmax.f32 %v4533_v33, 0.0  ;;  %v543_v33 = vmax.f32 %v10721_v60, 0.0 }
 0xb8e   :  { %8742 = vrot.lane.b32.xlu1 %v8771_v38, %s9286_s21 }
 0xb92   :  { %4980 = vrot.lane.b32.xlu1 %v4542_v10, %s9287_s22 }
 0xb96   :  { %4982 = vrot.lane.b32.xlu1 %v4543_v26, %s9287_s22 }
 0xb9a   :  { %4984 = vrot.lane.b32.xlu1 %v4544_v19, %s9287_s22 }
 0xb9e   :  { %4986 = vrot.lane.b32.xlu1 %v4545_v15, %s9287_s22 }
 0xba2   :  { %4988 = vrot.lane.b32.xlu1 %v4546_v2, %s9287_s22 }
 0xba6   :  { %4990 = vrot.lane.b32.xlu1 %v4547_v24, %s9287_s22 }
 0xba8   :  { %4614 = vxpose.xlu0.b32.start [1/12] (short) (narrow) %v4542_v10, 16  ;;  %v3192_v10 = vadd.f32 1e-15, %v11263_v42 }
 0xbaa   :  { %4992 = vrot.lane.b32.xlu1 %v4548_v57, %s9287_s22 }
 0xbac   :  { %4615 = vxpose.xlu0.b32.cont [2/12] (short) (narrow) %v4543_v26, 16 }
 0xbae   :  { %4994 = vrot.lane.b32.xlu1 %v4549_v4, %s9287_s22 }
 0xbb0   :  { %4616 = vxpose.xlu0.b32.cont [3/12] (short) (narrow) %v4544_v19, 16 }
 0xbb2   :  { %4996 = vrot.lane.b32.xlu1 %v4550_v16, %s9287_s22 }
 0xbb4   :  { %4617 = vxpose.xlu0.b32.cont [4/12] (short) (narrow) %v4545_v15, 16 }
 0xbb6   :  { %4998 = vrot.lane.b32.xlu1 %v4551_v29, %s9287_s22 }
 0xbb8   :  { %4618 = vxpose.xlu0.b32.cont [5/12] (short) (narrow) %v4546_v2, 16 }
 0xbba   :  { %5000 = vrot.lane.b32.xlu1 %v4552_v47, %s9287_s22 }
 0xbbc   :  { %4619 = vxpose.xlu0.b32.cont [6/12] (short) (narrow) %v4547_v24, 16 }
 0xbbe   :  { %5002 = vrot.lane.b32.xlu1 %v4553_v41, %s9287_s22 }
 0xbc0   :  { %4620 = vxpose.xlu0.b32.cont [7/12] (short) (narrow) %v4548_v57, 16  ;;  %v3193_v57 = vadd.f32 1e-15, %v11261_v5 }
 0xbc2   :  { %8747 = vrot.lane.b32.xlu1 %v8746_v58, %s9288_s1  ;;  %v540_v58 = vmax.f32 %v10719_v6, 0.0 }
 0xbc4   :  { %4621 = vxpose.xlu0.b32.cont [8/12] (short) (narrow) %v4549_v4, 16 }
 0xbc6   :  { %8752 = vrot.lane.b32.xlu1 %v8751_v54, %s9288_s1 }
 0xbc8   :  { %4622 = vxpose.xlu0.b32.cont [9/12] (short) (narrow) %v4550_v16, 16 }
 0xbca   :  { %8757 = vrot.lane.b32.xlu1 %v8756_v62, %s9288_s1  ;;  %v541_v62 = vmax.f32 %v10717_v20, 0.0 }
 0xbcc   :  { %4623 = vxpose.xlu0.b32.cont [10/12] (short) (narrow) %v4551_v29, 16 }
 0xbce   :  { %8762 = vrot.lane.b32.xlu1 %v8761_v49, %s9288_s1 }
 0xbd0   :  { %4624 = vxpose.xlu0.b32.cont [11/12] (short) (narrow) %v4552_v47, 16 }
 0xbd2   :  { %8767 = vrot.lane.b32.xlu1 %v8766_v36, %s9288_s1 }
 0xbd4   :  { %4625 = vxpose.xlu0.b32.end [12/12] (short) (narrow) %v4553_v41, 16 }
 0xbd6   :  { %8772 = vrot.lane.b32.xlu1 %v8771_v38, %s9288_s1 }
 0xbda   :  { %5129 = vrot.lane.b32.xlu1 %v536_v50, %s9287_s22 }
 0xbde   :  { %5131 = vrot.lane.b32.xlu1 %v537_v51, %s9287_s22 }
 0xbdf   :  { %v8718_v11 = vpop.permute.xlu0 %8717 }
 0xbe0   :  { %v8720_v18 = vunpack.i.h.bf16 %v8718_v11  ;;  %v8719_v27 = vunpack.i.l.bf16 %v8718_v11  ;;  %v3194_v11 = vadd.f32 1e-15, %v11275_v37 }
 0xbe2   :  { %v4603_v22 = vsel %vm2526_vm3, %v8720_v18, 1.0  ;;  %v4602_v14 = vsel %vm2526_vm3, %v8719_v27, 1.0  ;;  %5133 = vrot.lane.b32.xlu1 %v538_v46, %s9287_s22 }
 0xbe3   :  { %v8529_v7 = vpack.c.bf16 %v4603_v22, %v4602_v14 }
 0xbe5   :  { %8530 = vmatprep.subr.bf16.mxu1 %v8529_v7 }
 0xbe6   :  { %5135 = vrot.lane.b32.xlu1 %v539_v17, %s9287_s22  ;;  %8532 = vmatpush3.bf16.msra.mxu1 %v8529_v7 }
 0xbe7   :  { %v8723_v39 = vpop.permute.xlu1 %8722 }
 0xbe8   :  { %v8725_v35 = vunpack.i.h.bf16 %v8723_v39  ;;  %v8724_v56 = vunpack.i.l.bf16 %v8723_v39 }
 0xbea   :  { %5137 = vrot.lane.b32.xlu1 %v540_v58, %s9287_s22  ;;  %v4604_v54 = vsel %vm2526_vm3, %v8724_v56, 1.0  ;;  %v4605_v40 = vsel %vm2526_vm3, %v8725_v35, 1.0  ;;  %v3195_v35 = vadd.f32 1e-15, %v11273_v53 }
 0xbeb   :  { %v8533_v23 = vpack.c.bf16 %v4605_v40, %v4604_v54  ;;  %v3197_v40 = vadd.f32 1e-15, %v11285_v52 }
 0xbed   :  { %8534 = vmatprep.subr.bf16.mxu1 %v8533_v23 }
 0xbee   :  { %5139 = vrot.lane.b32.xlu1 %v541_v62, %s9287_s22  ;;  %8536 = vmatpush3.bf16.msra.mxu1 %v8533_v23 }
 0xbef   :  { %v8728_v13 = vpop.permute.xlu1 %8727 }
 0xbf0   :  { %v8730_v49 = vunpack.i.h.bf16 %v8728_v13  ;;  %v8729_v9 = vunpack.i.l.bf16 %v8728_v13  ;;  %v3198_v13 = vadd.f32 1e-15, %v11299_v32 }
 0xbf2   :  { %5141 = vrot.lane.b32.xlu1 %v542_v3, %s9287_s22  ;;  %v4606_v44 = vsel %vm2526_vm3, %v8729_v9, 1.0  ;;  %v4607_v36 = vsel %vm2526_vm3, %v8730_v49, 1.0  ;;  %v3199_v9 = vadd.f32 1e-15, %v11297_v8 }
 0xbf3   :  { %v8537_v1 = vpack.c.bf16 %v4607_v36, %v4606_v44 }
 0xbf5   :  { %8538 = vmatprep.subr.bf16.mxu1 %v8537_v1 }
 0xbf6   :  { %5143 = vrot.lane.b32.xlu1 %v543_v33, %s9287_s22  ;;  %8540 = vmatpush3.bf16.msra.mxu1 %v8537_v1 }
 0xbf7   :  { %v8733_v38 = vpop.permute.xlu1 %8732 }
 0xbf8   :  { %v8735_v26 = vunpack.i.h.bf16 %v8733_v38  ;;  %v8734_v19 = vunpack.i.l.bf16 %v8733_v38 }
 0xbfa   :  { %3202 = vperm.xlu1 %8776, %v3192_v10   ;;  %v4608_v15 = vsel %vm2526_vm3, %v8734_v19, 1.0  ;;  %v4609_v2 = vsel %vm2526_vm3, %v8735_v26, 1.0 }
 0xbfb   :  { %v8541_v24 = vpack.c.bf16 %v4609_v2, %v4608_v15 }
 0xbfc   :  { %v8738_v4 = vpop.permute.xlu0 %8737 }
 0xbfd   :  { %v8740_v16 = vunpack.i.h.bf16 %v8738_v4  ;;  %v8739_v29 = vunpack.i.l.bf16 %v8738_v4  ;;  %8542 = vmatprep.subr.bf16.mxu1 %v8541_v24  ;;  %v3196_v4 = vadd.f32 1e-15, %v11287_v34 }
 0xbfe   :  { %3207 = vperm.xlu1 %8776, %v3193_v57   ;;  %8544 = vmatpush3.bf16.msra.mxu1 %v8541_v24 }
 0xbff   :  { %v4611_v47 = vsel %vm2526_vm3, %v8740_v16, 1.0  ;;  %v4610_v41 = vsel %vm2526_vm3, %v8739_v29, 1.0 }
 0xc00   :  { %v8743_v18 = vpop.permute.xlu1 %8742  ;;  %v8545_v27 = vpack.c.bf16 %v4611_v47, %v4610_v41 }
 0xc01   :  { %v8745_v22 = vunpack.i.h.bf16 %v8743_v18  ;;  %v8744_v14 = vunpack.i.l.bf16 %v8743_v18 }
 0xc02   :  { %3212 = vperm.xlu1 %8776, %v3194_v11   ;;  %8546 = vmatprep.subr.bf16.mxu1 %v8545_v27 }
 0xc03   :  { %8548 = vmatpush3.bf16.msra.mxu1 %v8545_v27  ;;  %v4612_v7 = vsel %vm2526_vm3, %v8744_v14, 1.0  ;;  %v4613_v39 = vsel %vm2526_vm3, %v8745_v22, 1.0 }
 0xc04   :  { %v4981_v56 = vpop.permute.xlu1 %4980  ;;  %v8549_v54 = vpack.c.bf16 %v4613_v39, %v4612_v7 }
 0xc05   :  { %5016 = vxpose.xlu0.b32.start [1/12] (short) (narrow) %v4981_v56, 16 }
 0xc06   :  { %3217 = vperm.xlu1 %8776, %v3195_v35   ;;  %8550 = vmatprep.subr.bf16.mxu1 %v8549_v54 }
 0xc07   :  { %8552 = vmatpush3.bf16.msra.mxu1 %v8549_v54 }
 0xc08   :  { %v4983_v23 = vpop.permute.xlu1 %4982 }
 0xc09   :  { %5017 = vxpose.xlu0.b32.cont [2/12] (short) (narrow) %v4983_v23, 16 }
 0xc0a   :  { %3227 = vperm.xlu1 %8776, %v3197_v40  }
 0xc0c   :  { %v4985_v49 = vpop.permute.xlu1 %4984 }
 0xc0d   :  { %5018 = vxpose.xlu0.b32.cont [3/12] (short) (narrow) %v4985_v49, 16 }
 0xc0e   :  { %3232 = vperm.xlu1 %8776, %v3198_v13  }
 0xc10   :  { %v4987_v44 = vpop.permute.xlu1 %4986 }
 0xc11   :  { %5019 = vxpose.xlu0.b32.cont [4/12] (short) (narrow) %v4987_v44, 16 }
 0xc12   :  { %3237 = vperm.xlu1 %8776, %v3199_v9  }
 0xc14   :  { %v4989_v36 = vpop.permute.xlu1 %4988 }
 0xc15   :  { %5020 = vxpose.xlu0.b32.cont [5/12] (short) (narrow) %v4989_v36, 16 }
 0xc18   :  { %v4991_v1 = vpop.permute.xlu1 %4990 }
 0xc19   :  { %5021 = vxpose.xlu0.b32.cont [6/12] (short) (narrow) %v4991_v1, 16 }
 0xc1c   :  { %v4993_v38 = vpop.permute.xlu1 %4992 }
 0xc1d   :  { %5022 = vxpose.xlu0.b32.cont [7/12] (short) (narrow) %v4993_v38, 16 }
 0xc20   :  { %v4995_v10 = vpop.permute.xlu1 %4994 }
 0xc21   :  { %5023 = vxpose.xlu0.b32.cont [8/12] (short) (narrow) %v4995_v10, 16 }
 0xc24   :  { %v4997_v26 = vpop.permute.xlu1 %4996 }
 0xc25   :  { %5024 = vxpose.xlu0.b32.cont [9/12] (short) (narrow) %v4997_v26, 16 }
 0xc28   :  { %v4999_v19 = vpop.permute.xlu1 %4998  ;;  %v4630_v15 = vpop.trf.xlu0 }
 0xc29   :  { %5025 = vxpose.xlu0.b32.cont [10/12] (short) (narrow) %v4999_v19, 16  ;;  %8235 = vmatprep.mubr.msk.f32.mxu1 %vm2571_vm4, %v4630_v15 }
 0xc2c   :  { %v5001_v2 = vpop.permute.xlu1 %5000  ;;  %v4631_v24 = vpop.trf.xlu0 }
 0xc2d   :  { %5026 = vxpose.xlu0.b32.cont [11/12] (short) (narrow) %v5001_v2, 16  ;;  %8236 = vmatmul.mubr.msk.f32.vlgmr.msra.gmra.mrb[132].mxu1 %vm2571_vm4, %v4631_v24 }
 0xc2e   :  { %8242 = vmatprep.mubr.msk.f32.mxu1 %vm2526_vm3, %v536_v50 }
 0xc30   :  { %v5003_v57 = vpop.permute.xlu1 %5002 }
 0xc31   :  { %5027 = vxpose.xlu0.b32.end [12/12] (short) (narrow) %v5003_v57, 16 }
 0xc34   :  { %v8748_v16 = vpop.permute.xlu1 %8747 }
 0xc35   :  { %v8750_v41 = vunpack.i.h.bf16 %v8748_v16  ;;  %v8749_v11 = vunpack.i.l.bf16 %v8748_v16 }
 0xc37   :  { %v4956_v45 = vsel %vm2526_vm3, %v8749_v11, 1.0  ;;  %v4957_v50 = vsel %vm2526_vm3, %v8750_v41, 1.0 }
 0xc38   :  { %v8753_v29 = vpop.permute.xlu1 %8752  ;;  %v8557_v35 = vpack.c.bf16 %v4957_v50, %v4956_v45 }
 0xc39   :  { %v8755_v27 = vunpack.i.h.bf16 %v8753_v29  ;;  %v8754_v22 = vunpack.i.l.bf16 %v8753_v29 }
 0xc3b   :  { %v4958_v54 = vsel %vm2526_vm3, %v8754_v22, 1.0  ;;  %v4959_v40 = vsel %vm2526_vm3, %v8755_v27, 1.0 }
 0xc3c   :  { %v8758_v47 = vpop.permute.xlu1 %8757  ;;  %v8561_v13 = vpack.c.bf16 %v4959_v40, %v4958_v54 }
 0xc3d   :  { %v8760_v56 = vunpack.i.h.bf16 %v8758_v47 }
 0xc3f   :  { %v4961_v36 = vsel %vm2526_vm3, %v8760_v56, 1.0 }
 0xc40   :  { %v8763_v7 = vpop.permute.xlu1 %8762 }
 0xc41   :  { %v8765_v49 = vunpack.i.h.bf16 %v8763_v7  ;;  %v8764_v9 = vunpack.i.l.bf16 %v8763_v7 }
 0xc43   :  { %v4962_v12 = vsel %vm2526_vm3, %v8764_v9, 1.0 }
 0xc44   :  { %v8768_v23 = vpop.permute.xlu1 %8767 }
 0xc45   :  { %v8770_v1 = vunpack.i.h.bf16 %v8768_v23 }
 0xc48   :  { %v8773_v38 = vpop.permute.xlu1 %8772 }
 0xc49   :  { %v8774_v10 = vunpack.i.l.bf16 %v8773_v38 }
 0xc4c   :  { %v5130_v15 = vpop.permute.xlu1 %5129 }
 0xc50   :  { %v5132_v57 = vpop.permute.xlu1 %5131 }
 0xc5a   :  { %8777 = vset.pattern.permute.xlu0 %v9289_v61  ;;  %v8759_v61 = vunpack.i.l.bf16 %v8758_v47  ;;  %v5134_v47 = vpop.permute.xlu1 %5133 }
 0xc5b   :  { %3222 = vperm.xlu0 %8777, %v3196_v4  }
 0xc5c   :  { %v4960_v44 = vsel %vm2526_vm3, %v8759_v61, 1.0 }
 0xc5d   :  { %v8565_v28 = vpack.c.bf16 %v4961_v36, %v4960_v44 }
 0xc5e   :  { %v5136_v11 = vpop.permute.xlu1 %5135 }
 0xc62   :  { %v5138_v27 = vpop.permute.xlu1 %5137 }
 0xc66   :  { %v5140_v45 = vpop.permute.xlu1 %5139 }
 0xc6a   :  { %v5142_v50 = vpop.permute.xlu1 %5141 }
 0xc6e   :  { %v5144_v7 = vpop.permute.xlu1 %5143 }
 0xc85   :  { %v5032_v26 = vpop.trf.xlu0 }
 0xd00   :  { %v8237_v18 = vpop.f32.mrb[132].mxu1 }
 0xd01   :  { %v4718_v14 = vpop.f32.mrb[133].mxu1 }
 0xd02   :  { %v8553_v39 = vpack.c.bf16 %v8237_v18, %v4718_v14 }
 0xd04   :  { %8554 = vmatprep.subr.bf16.mxu1 %v8553_v39 }
 0xd05   :  { %8556 = vmatpush3.bf16.msra.mxu1 %v8553_v39 }
 0xd06   :  { %8558 = vmatprep.subr.bf16.mxu1 %v8557_v35 }
 0xd08   :  { %8243 = vmatmul.mubr.msk.f32.vlgmr.msra.gmra.mrb[134].mxu1 %vm2526_vm3, %v537_v51  ;;  %v8769_v51 = vunpack.i.l.bf16 %v8768_v23 }
 0xd09   :  { %8245 = vmatprep.mubr.msk.f32.mxu1 %vm2526_vm3, %v538_v46  ;;  %8560 = vmatpush3.bf16.msra.mxu1 %v8557_v35  ;;  %v4963_v46 = vsel %vm2526_vm3, %v8765_v49, 1.0 }
 0xd0a   :  { %8562 = vmatprep.subr.bf16.mxu1 %v8561_v13  ;;  %v8569_v43 = vpack.c.bf16 %v4963_v46, %v4962_v12  ;;  %v4964_v6 = vsel %vm2526_vm3, %v8769_v51, 1.0  ;;  %v2783_v12 = vadd.f32 1e-15, %v10834_v48 }
 0xd0c   :  { %8246 = vmatmul.mubr.msk.f32.gmra.mrb[136].mxu1 %vm2526_vm3, %v539_v17  ;;  %v8775_v17 = vunpack.i.h.bf16 %v8773_v38  ;;  %v2785_v38 = vadd.f32 1e-15, %v10838_v59 }
 0xd0d   :  { %8248 = vmatprep.mubr.msk.f32.mxu1 %vm2526_vm3, %v540_v58  ;;  %8564 = vmatpush3.bf16.msra.mxu1 %v8561_v13  ;;  %v4965_v58 = vsel %vm2526_vm3, %v8770_v1, 1.0  ;;  %v3203_v13 = vpop.permute.xlu1 %3202 }
 0xd0e   :  { %8566 = vmatprep.subr.bf16.mxu1 %v8565_v28  ;;  %v8573_v20 = vpack.c.bf16 %v4965_v58, %v4964_v6  ;;  %v4967_v19 = vsel %vm2526_vm3, %v8775_v17, 1.0  ;;  %8858 = vrcp.f32 %v3203_v13 }
 0xd10   :  { %8249 = vmatmul.mubr.msk.f32.gmra.mrb[138].mxu1 %vm2526_vm3, %v541_v62  ;;  %v4966_v62 = vsel %vm2526_vm3, %v8774_v10, 1.0  ;;  %v2787_v10 = vadd.f32 1e-15, %v10842_v21 }
 0xd11   :  { %8251 = vmatprep.mubr.msk.f32.mxu1 %vm2526_vm3, %v542_v3  ;;  %8568 = vmatpush3.bf16.msra.mxu1 %v8565_v28  ;;  %v8577_v25 = vpack.c.bf16 %v4967_v19, %v4966_v62  ;;  %v5033_v3 = vpop.trf.xlu0  ;;  %v3208_v51 = vpop.permute.xlu1 %3207  ;;  %v2784_v62 = vadd.f32 1e-15, %v10840_v55 }
 0xd12   :  { %8570 = vmatprep.subr.bf16.mxu1 %v8569_v43  ;;  %8860 = vrcp.f32 %v3208_v51 }
 0xd14   :  { %8252 = vmatmul.mubr.msk.f32.gmra.mrb[140].mxu1 %vm2526_vm3, %v543_v33 }
 0xd15   :  { %8572 = vmatpush3.bf16.msra.mxu1 %v8569_v43  ;;  %8278 = vmatprep.mubr.msk.f32.mxu1 %vm2571_vm4, %v5032_v26  ;;  %v3213_v43 = vpop.permute.xlu1 %3212  ;;  %v2782_v26 = vadd.f32 1e-15, %v10836_v0 }
 0xd16   :  { %8574 = vmatprep.subr.bf16.mxu1 %v8573_v20  ;;  %8862 = vrcp.f32 %v3213_v43 }
 0xd19   :  { %8576 = vmatpush3.bf16.msra.mxu1 %v8573_v20  ;;  %v3218_v58 = vpop.permute.xlu1 %3217  ;;  %v2789_v20 = vadd.f32 1e-15, %v10846_v31 }
 0xd1a   :  { %8578 = vmatprep.subr.bf16.mxu1 %v8577_v25  ;;  %8864 = vrcp.f32 %v3218_v58 }
 0xd1d   :  { %8580 = vmatpush3.bf16.msra.mxu1 %v8577_v25  ;;  %v3228_v19 = vpop.permute.xlu1 %3227 }
 0xd20   :  { %8279 = vmatmul.mubr.msk.f32.vlgmr.msra.gmra.mrb[142].mxu1 %vm2571_vm4, %v5033_v3  ;;  %v2786_v3 = vadd.f32 1e-15, %v10844_v30 }
 0xd21   :  { %8285 = vmatprep.mubr.msk.f32.mxu1 %vm2526_vm3, %v5130_v15 }
 0xddb   :  { %v12044_v60 = vpop.f32.mrb[134].mxu1 }
 0xddc   :  { %v12046_v33 = vpop.f32.mrb[135].mxu1  ;;  %v4857_v25 = vadd.f32 1e-15, %v12044_v60 }
 0xddf   :  { %v12048_v2 = vpop.f32.mrb[136].mxu1 }
 0xde0   :  { %v12050_v24 = vpop.f32.mrb[137].mxu1 }
 0xde1   :  { %v4858_v15 = vadd.f32 1e-15, %v12050_v24 }
 0xde3   :  { %v12052_v4 = vpop.f32.mrb[138].mxu1 }
 0xde4   :  { %v12054_v16 = vpop.f32.mrb[139].mxu1 }
 0xde7   :  { %v12056_v29 = vpop.f32.mrb[140].mxu1 }
 0xde8   :  { %v12058_v41 = vpop.f32.mrb[141].mxu1  ;;  %v4863_v43 = vadd.f32 1e-15, %v12056_v29 }
 0xdf3   :  { %v8280_v18 = vpop.f32.mrb[142].mxu1 }
 0xdf4   :  { %v5120_v22 = vpop.f32.mrb[143].mxu1 }
 0xdf5   :  { %v8581_v14 = vpack.c.bf16 %v8280_v18, %v5120_v22  ;;  %v4860_v22 = vadd.f32 1e-15, %v12054_v16 }
 0xdf7   :  { %8582 = vmatprep.subr.bf16.mxu1 %v8581_v14 }
 0xdf8   :  { %8584 = vmatpush3.bf16.msra.mxu1 %v8581_v14  ;;  %v8859_v14 = vpop.eup %8858 }
 0xdf9   :  { %v3241_v13 = vmul.f32 %v8859_v14, %v11263_v42 }
 0xdfb   :  { %8286 = vmatmul.mubr.msk.f32.vlgmr.msra.gmra.mrb[144].mxu1 %vm2526_vm3, %v5132_v57  ;;  %v3233_v57 = vpop.permute.xlu1 %3232 }
 0xdfc   :  { %8288 = vmatprep.mubr.msk.f32.mxu1 %vm2526_vm3, %v5134_v47  ;;  %v2788_v47 = vadd.f32 1e-15, %v10848_v63 }
 0xdff   :  { %8289 = vmatmul.mubr.msk.f32.gmra.mrb[146].mxu1 %vm2526_vm3, %v5136_v11  ;;  %v4859_v11 = vadd.f32 1e-15, %v12048_v2  ;;  %v3238_v18 = vpop.permute.xlu1 %3237 }
 0xe00   :  { %8291 = vmatprep.mubr.msk.f32.mxu1 %vm2526_vm3, %v5138_v27  ;;  %v4856_v27 = vadd.f32 1e-15, %v12046_v33  ;;  %8866 = vrcp.f32 %v3238_v18 }
 0xe03   :  { %8292 = vmatmul.mubr.msk.f32.gmra.mrb[148].mxu1 %vm2526_vm3, %v5140_v45  ;;  %v5370_v45 = vld [vmem:[%s12964_s10] sm:$0xff] }
 0xe04   :  { %8294 = vmatprep.mubr.msk.f32.mxu1 %vm2526_vm3, %v5142_v50  ;;  %v5371_v50 = vld [vmem:[%s12964_s10 + $0x8] sm:$0xff] }
 0xe07   :  { %8295 = vmatmul.mubr.msk.f32.gmra.mrb[150].mxu1 %vm2526_vm3, %v5144_v7  ;;  %v8585_v7 = vpack.c.bf16 %v5371_v50, %v5370_v45 }
 0xe09   :  { %8586 = vmatprep.subr.bf16.mxu1 %v8585_v7 }
 0xe0a   :  { %8588 = vmatpush3.bf16.msra.mxu1 %v8585_v7 }
 0xece   :  { %v12067_v39 = vpop.f32.mrb[144].mxu1 }
 0xecf   :  { %v5267_v35 = vadd.f32 1e-15, %v12067_v39  ;;  %v12070_v56 = vpop.f32.mrb[145].mxu1 }
 0xed0   :  { %v5266_v54 = vadd.f32 1e-15, %v12070_v56 }
 0xed1   :  { %5281 = vperm.xlu1 %8776, %v5267_v35   ;;  %v3223_v35 = vpop.permute.xlu0 %3222 }
 0xed2   :  { %v12072_v61 = vpop.f32.mrb[146].mxu1  ;;  %8868 = vrcp.f32 %v3223_v35 }
 0xed3   :  { %v12075_v40 = vpop.f32.mrb[147].mxu1  ;;  %v5269_v49 = vadd.f32 1e-15, %v12072_v61  ;;  %8870 = vrcp.f32 %v3228_v19 }
 0xed4   :  { %v5268_v36 = vadd.f32 1e-15, %v12075_v40  ;;  %8872 = vrcp.f32 %v3233_v57 }
 0xed5   :  { %5276 = vperm.xlu1 %8776, %v5266_v54   ;;  %v4861_v54 = vadd.f32 1e-15, %v12052_v4 }
 0xed6   :  { %v12077_v23 = vpop.f32.mrb[148].mxu1 }
 0xed7   :  { %v12080_v9 = vpop.f32.mrb[149].mxu1  ;;  %v5271_v46 = vadd.f32 1e-15, %v12077_v23 }
 0xed8   :  { %v5270_v17 = vadd.f32 1e-15, %v12080_v9 }
 0xed9   :  { %5291 = vperm.xlu1 %8776, %v5269_v49   ;;  %v8861_v49 = vpop.eup %8860 }
 0xeda   :  { %v12082_v44 = vpop.f32.mrb[150].mxu1  ;;  %v3243_v42 = vmul.f32 %v8861_v49, %v11261_v5 }
 0xedb   :  { %v5273_v28 = vadd.f32 1e-15, %v12082_v44  ;;  %v12086_v1 = vpop.f32.mrb[151].mxu1 }
 0xedc   :  { %v5272_v6 = vadd.f32 1e-15, %v12086_v1 }
 0xedd   :  { %5311 = vperm.xlu0 %8777, %v5273_v28   ;;  %5286 = vperm.xlu1 %8776, %v5268_v36   ;;  %v5372_v36 = vld [vmem:[%s12964_s10 + $0x10] sm:$0xff]  ;;  %v5373_v28 = vld [vmem:[%s12964_s10 + $0x18] sm:$0xff] }
 0xede   :  { %v8589_v51 = vpack.c.bf16 %v5373_v28, %v5372_v36 }
 0xee0   :  { %8590 = vmatprep.subr.bf16.mxu1 %v8589_v51 }
 0xee1   :  { %2797 = vperm.xlu0 %8777, %v2783_v12   ;;  %5301 = vperm.xlu1 %8776, %v5271_v46   ;;  %v4862_v12 = vadd.f32 1e-15, %v12058_v41  ;;  %v8863_v46 = vpop.eup %8862 }
 0xee2   :  { %8592 = vmatpush3.bf16.msra.mxu1 %v8589_v51 }
 0xee5   :  { %2807 = vperm.xlu0 %8777, %v2785_v38   ;;  %5296 = vperm.xlu1 %8776, %v5270_v17   ;;  %v8865_v38 = vpop.eup %8864  ;;  %v3245_v17 = vmul.f32 %v8863_v46, %v11275_v37 }
 0xee6   :  { %v3247_v5 = vmul.f32 %v8865_v38, %v11273_v53 }
 0xee9   :  { %2817 = vperm.xlu0 %8777, %v2787_v10   ;;  %5306 = vperm.xlu1 %8776, %v5272_v6   ;;  %v8867_v10 = vpop.eup %8866 }
 0xeea   :  { %v3255_v6 = vmul.f32 %v8867_v10, %v11297_v8  ;;  %v8869_v58 = vpop.eup %8868 }
 0xeed   :  { %2827 = vperm.xlu0 %8777, %v2789_v20   ;;  %2792 = vperm.xlu1 %8776, %v2782_v26   ;;  %v3249_v26 = vmul.f32 %v8869_v58, %v11287_v34  ;;  %v8871_v20 = vpop.eup %8870 }
 0xeee   :  { %v3251_v37 = vmul.f32 %v8871_v20, %v11285_v52 }
 0xef1   :  { %4871 = vperm.xlu0 %8777, %v4857_v25   ;;  %2802 = vperm.xlu1 %8776, %v2784_v62   ;;  %v8873_v62 = vpop.eup %8872 }
 0xef2   :  { %v3253_v19 = vmul.f32 %v8873_v62, %v11299_v32 }
 0xef5   :  { %4876 = vperm.xlu0 %8777, %v4858_v15   ;;  %2812 = vperm.xlu1 %8776, %v2786_v3  }
 0xef9   :  { %4881 = vperm.xlu0 %8777, %v4859_v11   ;;  %2822 = vperm.xlu1 %8776, %v2788_v47  }
 0xefd   :  { %4886 = vperm.xlu0 %8777, %v4860_v22   ;;  %4866 = vperm.xlu1 %8776, %v4856_v27  }
 0xf01   :  { %4891 = vperm.xlu0 %8777, %v4861_v54   ;;  %3264 = vrot.lane.b32.xlu1 %v3241_v13, %s9290_s25 }
 0xf05   :  { %4896 = vperm.xlu0 %8777, %v4862_v12   ;;  %3266 = vrot.lane.b32.xlu1 %v3243_v42, %s9290_s25 }
 0xf09   :  { %4901 = vperm.xlu0 %8777, %v4863_v43   ;;  %3268 = vrot.lane.b32.xlu1 %v3245_v17, %s9290_s25 }
 0xf0d   :  { %3278 = vrot.lane.b32.xlu0 %v3255_v6, %s9290_s25  ;;  %3270 = vrot.lane.b32.xlu1 %v3247_v5, %s9290_s25 }
 0xf11   :  { %3272 = vrot.lane.b32.xlu1 %v3249_v26, %s9290_s25 }
 0xf15   :  { %3274 = vrot.lane.b32.xlu1 %v3251_v37, %s9290_s25 }
 0xf19   :  { %3276 = vrot.lane.b32.xlu1 %v3253_v19, %s9290_s25 }
 0xf50   :  { %v5282_v53 = vpop.permute.xlu1 %5281 }
 0xf51   :  { %8874 = vrcp.f32 %v5282_v53 }
 0xf54   :  { %v5277_v8 = vpop.permute.xlu1 %5276 }
 0xf55   :  { %8876 = vrcp.f32 %v5277_v8 }
 0xf58   :  { %v5292_v25 = vpop.permute.xlu1 %5291 }
 0xf59   :  { %8878 = vrcp.f32 %v5292_v25 }
 0xf5b   :  { %v8875_v3 = vpop.eup %8874 }
 0xf5c   :  { %v5312_v34 = vpop.permute.xlu0 %5311  ;;  %v5287_v15 = vpop.permute.xlu1 %5286  ;;  %v5317_v57 = vmul.f32 %v8875_v3, %v12067_v39 }
 0xf5d   :  { %8880 = vrcp.f32 %v5287_v15 }
 0xf5e   :  { %5340 = vrot.lane.b32.xlu0 %v5317_v57, %s9290_s25 }
 0xf5f   :  { %v8877_v52 = vpop.eup %8876 }
 0xf60   :  { %v2798_v47 = vpop.permute.xlu0 %2797  ;;  %v5302_v11 = vpop.permute.xlu1 %5301  ;;  %v5315_v32 = vmul.f32 %v8877_v52, %v12070_v56 }
 0xf61   :  { %8882 = vrcp.f32 %v5302_v11 }
 0xf62   :  { %5338 = vrot.lane.b32.xlu1 %v5315_v32, %s9290_s25  ;;  %8884 = vrcp.f32 %v5312_v34 }
 0xf63   :  { %v8879_v18 = vpop.eup %8878 }
 0xf64   :  { %v2808_v27 = vpop.permute.xlu0 %2807  ;;  %v5297_v22 = vpop.permute.xlu1 %5296  ;;  %v5321_v14 = vmul.f32 %v8879_v18, %v12072_v61 }
 0xf65   :  { %8886 = vrcp.f32 %v5297_v22 }
 0xf66   :  { %5344 = vrot.lane.b32.xlu0 %v5321_v14, %s9290_s25 }
 0xf67   :  { %v8881_v39 = vpop.eup %8880 }
 0xf68   :  { %v2818_v45 = vpop.permute.xlu0 %2817  ;;  %v5307_v50 = vpop.permute.xlu1 %5306  ;;  %v5319_v7 = vmul.f32 %v8881_v39, %v12075_v40 }
 0xf69   :  { %8888 = vrcp.f32 %v5307_v50 }
 0xf6a   :  { %5342 = vrot.lane.b32.xlu1 %v5319_v7, %s9290_s25 }
 0xf6b   :  { %v8883_v56 = vpop.eup %8882 }
 0xf6c   :  { %v12143_v35 = vpop.permute.xlu0 %2827  ;;  %v2793_v54 = vpop.permute.xlu1 %2792  ;;  %v5325_v13 = vmul.f32 %v8883_v56, %v12077_v23 }
 0xf6d   :  { %v8885_v49 = vpop.eup %8884 }
 0xf6e   :  { %5348 = vrot.lane.b32.xlu0 %v5325_v13, %s9290_s25  ;;  %v5329_v51 = vmul.f32 %v8885_v49, %v12082_v44 }
 0xf6f   :  { %v8887_v61 = vpop.eup %8886 }
 0xf70   :  { %v4872_v36 = vpop.permute.xlu0 %4871  ;;  %v2803_v28 = vpop.permute.xlu1 %2802  ;;  %v5323_v40 = vmul.f32 %v8887_v61, %v12080_v9 }
 0xf71   :  { %8890 = vrcp.f32 %v4872_v36 }
 0xf72   :  { %8892 = vrcp.f32 %v2793_v54  ;;  %5352 = vrot.lane.b32.xlu0 %v5329_v51, %s9290_s25  ;;  %5346 = vrot.lane.b32.xlu1 %v5323_v40, %s9290_s25 }
 0xf73   :  { %v8889_v12 = vpop.eup %8888 }
 0xf74   :  { %v4877_v42 = vpop.permute.xlu0 %4876  ;;  %v2813_v46 = vpop.permute.xlu1 %2812  ;;  %v5327_v23 = vmul.f32 %v8889_v12, %v12086_v1 }
 0xf75   :  { %8894 = vrcp.f32 %v4877_v42 }
 0xf76   :  { %8896 = vrcp.f32 %v2798_v47  ;;  %5350 = vrot.lane.b32.xlu1 %v5327_v23, %s9290_s25 }
 0xf78   :  { %v4882_v38 = vpop.permute.xlu0 %4881  ;;  %v2823_v43 = vpop.permute.xlu1 %2822 }
 0xf79   :  { %8898 = vrcp.f32 %v4882_v38 }
 0xf7a   :  { %8900 = vrcp.f32 %v2803_v28 }
 0xf7b   :  { %v8891_v44 = vpop.eup %8890  ;;  %8902 = vrcp.f32 %v2808_v27 }
 0xf7c   :  { %v8893_v9 = vpop.eup %8892  ;;  %v4887_v17 = vpop.permute.xlu0 %4886  ;;  %v12154_v6 = vmul.f32 %v8891_v44, %v12044_v60 }
 0xf7d   :  { %v4867_v10 = vpop.permute.xlu1 %4866  ;;  %8904 = vrcp.f32 %v4887_v17  ;;  %v2831_v1 = vmul.f32 %v8893_v9, %v10836_v0 }
 0xf7e   :  { %8906 = vrcp.f32 %v4867_v10 }
 0xf7f   :  { %v8895_v5 = vpop.eup %8894 }
 0xf80   :  { %v8897_v58 = vpop.eup %8896  ;;  %v4892_v26 = vpop.permute.xlu0 %4891  ;;  %v12158_v37 = vmul.f32 %v8895_v5, %v12050_v24 }
 0xf81   :  { %v3265_v20 = vpop.permute.xlu1 %3264  ;;  %8908 = vrcp.f32 %v4892_v26  ;;  %v2833_v60 = vmul.f32 %v8897_v58, %v10834_v48  ;;  %v9270_v58 = vld [vmem:[%s12982_s29 + $0x8] sm:$0xff] }
 0xf82   :  { %v3288_v62 = vsel %vm2526_vm3, %v2831_v1, %v3265_v20  ;;  %8910 = vrcp.f32 %v2813_v46  ;;  %v12211_v1 = vld [vmem:[%s12965_s11] ss:$0 sm:$0xff] }
 0xf83   :  { %8305 = vmatprep.mubr.msk.f32.mxu1 %vm77_vm0, %v3288_v62  ;;  %v8899_v19 = vpop.eup %8898 }
 0xf84   :  { %v8901_v53 = vpop.eup %8900  ;;  %v4897_v8 = vpop.permute.xlu0 %4896  ;;  %v4911_v0 = vmul.f32 %v8899_v19, %v12048_v2 }
 0xf85   :  { %v3267_v25 = vpop.permute.xlu1 %3266  ;;  %8912 = vrcp.f32 %v4897_v8  ;;  %v8903_v34 = vpop.eup %8902  ;;  %v2835_v15 = vmul.f32 %v8901_v53, %v10840_v55 }
 0xf86   :  { %v3289_v3 = vsel %vm2526_vm3, %v2833_v60, %v3267_v25  ;;  %8914 = vrcp.f32 %v2818_v45  ;;  %v2837_v18 = vmul.f32 %v8903_v34, %v10838_v59 }
 0xf87   :  { %8306 = vmatmul.mubr.msk.f32.vlgmr.msra.gmra.mrb[152].mxu1 %vm77_vm0, %v3289_v3  ;;  %v8905_v24 = vpop.eup %8904 }
 0xf88   :  { %v8907_v57 = vpop.eup %8906  ;;  %v4902_v52 = vpop.permute.xlu0 %4901  ;;  %v4913_v48 = vmul.f32 %v8905_v24, %v12054_v16  ;;  %v9273_v24 = vld [vmem:[%s12982_s29 + $0x10] sm:$0xff] }
 0xf89   :  { %v3269_v47 = vpop.permute.xlu1 %3268  ;;  %8916 = vrcp.f32 %v4902_v52  ;;  %v4905_v2 = vmul.f32 %v8907_v57, %v12046_v33 }
 0xf8a   :  { %v3290_v11 = vsel %vm2526_vm3, %v2835_v15, %v3269_v47  ;;  %8918 = vrcp.f32 %v2823_v43 }
 0xf8b   :  { %8308 = vmatprep.mubr.msk.f32.mxu1 %vm77_vm0, %v3290_v11  ;;  %v8909_v32 = vpop.eup %8908  ;;  %8920 = vrcp.f32 %v12143_v35 }
 0xf8c   :  { %v8911_v27 = vpop.eup %8910  ;;  %v4915_v22 = vmul.f32 %v8909_v32, %v12052_v4 }
 0xf8d   :  { %v3271_v55 = vpop.permute.xlu1 %3270  ;;  %v2839_v39 = vmul.f32 %v8911_v27, %v10844_v30  ;;  %v3279_v30 = vpop.permute.xlu0 %3278  ;;  %v9275_v27 = vld [vmem:[%s12982_s29 + $0x20] sm:$0xff] }
 0xf8e   :  { %v3291_v14 = vsel %vm2526_vm3, %v2837_v18, %v3271_v55 }
 0xf8f   :  { %8309 = vmatmul.mubr.msk.f32.gmra.mrb[154].mxu1 %vm77_vm0, %v3291_v14  ;;  %v8913_v16 = vpop.eup %8912 }
 0xf90   :  { %v8915_v33 = vpop.eup %8914  ;;  %v4917_v50 = vmul.f32 %v8913_v16, %v12058_v41 }
 0xf91   :  { %v3273_v45 = vpop.permute.xlu1 %3272  ;;  %v2841_v56 = vmul.f32 %v8915_v33, %v10842_v21  ;;  %v9276_v33 = vld [vmem:[%s12982_s29 + $0x38] sm:$0xff] }
 0xf92   :  { %v3292_v7 = vsel %vm2526_vm3, %v2839_v39, %v3273_v45 }
 0xf93   :  { %8311 = vmatprep.mubr.msk.f32.mxu1 %vm77_vm0, %v3292_v7  ;;  %v8917_v59 = vpop.eup %8916 }
 0xf94   :  { %v8919_v35 = vpop.eup %8918  ;;  %v4919_v54 = vmul.f32 %v8917_v59, %v12056_v29  ;;  %v9277_v59 = vld [vmem:[%s12982_s29 + $0x30] sm:$0xff] }
 0xf95   :  { %v3275_v4 = vpop.permute.xlu1 %3274  ;;  %v8921_v13 = vpop.eup %8920  ;;  %v2843_v61 = vmul.f32 %v8919_v35, %v10848_v63 }
 0xf96   :  { %v3293_v49 = vsel %vm2526_vm3, %v2841_v56, %v3275_v4  ;;  %v2845_v41 = vmul.f32 %v8921_v13, %v10846_v31  ;;  %v5860_v4 = vld [vmem:[%s12966_s14] sm:$0xff] }
 0xf97   :  { %8312 = vmatmul.mubr.msk.f32.gmra.mrb[156].mxu1 %vm77_vm0, %v3293_v49 }
 0xf98   :  { %v3295_v51 = vsel %vm2526_vm3, %v2845_v41, %v3279_v30 }
 0xf99   :  { %v3277_v36 = vpop.permute.xlu1 %3276 }
 0xf9a   :  { %v3294_v28 = vsel %vm2526_vm3, %v2843_v61, %v3277_v36  ;;  %v9278_v36 = vld [vmem:[%s12982_s29 + $0x48] sm:$0xff] }
 0xf9b   :  { %8314 = vmatprep.mubr.msk.f32.mxu1 %vm77_vm0, %v3294_v28 }
 0xf9c   :  { %8315 = vmatmul.mubr.msk.f32.gmra.mrb[158].mxu1 %vm77_vm0, %v3295_v51 }
 0xfd0   :  { %v5341_v21 = vpop.permute.xlu0 %5340 }
 0xfd1   :  { %v5363_v12 = vsel %vm2526_vm3, %v12154_v6, %v5341_v21  ;;  %v9279_v21 = vld [vmem:[%s12982_s29 + $0x40] sm:$0xff] }
 0xfd4   :  { %v5339_v29 = vpop.permute.xlu1 %5338 }
 0xfd5   :  { %v5362_v40 = vsel %vm2526_vm3, %v4905_v2, %v5339_v29  ;;  %v9274_v2 = vld [vmem:[%s12982_s29 + $0x28] sm:$0xff] }
 0xfd6   :  { %8317 = vmatprep.mubr.msk.f32.mxu1 %vm77_vm0, %v5362_v40 }
 0xfd7   :  { %8318 = vmatmul.mubr.msk.f32.gmra.mrb[160].mxu1 %vm77_vm0, %v5363_v12 }
 0xfd8   :  { %v5345_v31 = vpop.permute.xlu0 %5344 }
 0xfd9   :  { %v5365_v46 = vsel %vm2526_vm3, %v4911_v0, %v5345_v31  ;;  %v9272_v0 = vld [vmem:[%s12982_s29 + $0x18] sm:$0xff] }
 0xfdc   :  { %v5343_v63 = vpop.permute.xlu1 %5342 }
 0xfdd   :  { %v5364_v42 = vsel %vm2526_vm3, %v12158_v37, %v5343_v63  ;;  %v9271_v37 = vld [vmem:[%s12982_s29] sm:$0xff] }
 0xfde   :  { %8320 = vmatprep.mubr.msk.f32.mxu1 %vm77_vm0, %v5364_v42 }
 0xfdf   :  { %8321 = vmatmul.mubr.msk.f32.gmra.mrb[162].mxu1 %vm77_vm0, %v5365_v46  ;;  %v9280_v46 = vld [vmem:[%s12982_s29 + $0x58] sm:$0xff] }
 0xfe0   :  { %v5349_v23 = vpop.permute.xlu0 %5348 }
 0xfe1   :  { %v5367_v44 = vsel %vm2526_vm3, %v4915_v22, %v5349_v23 }
 0xfe4   :  { %v5347_v38 = vpop.permute.xlu1 %5346  ;;  %v5353_v9 = vpop.permute.xlu0 %5352 }
 0xfe5   :  { %v5366_v43 = vsel %vm2526_vm3, %v4913_v48, %v5347_v38  ;;  %v5369_v6 = vsel %vm2526_vm3, %v4919_v54, %v5353_v9  ;;  %v5861_v54 = vld [vmem:[%s12966_s14 + $0x8] sm:$0xff] }
 0xfe6   :  { %8323 = vmatprep.mubr.msk.f32.mxu1 %vm77_vm0, %v5366_v43  ;;  %v8593_v49 = vpack.c.bf16 %v5861_v54, %v5860_v4  ;;  %v9281_v43 = vld [vmem:[%s12982_s29 + $0x50] sm:$0xff] }
 0xfe7   :  { %8324 = vmatmul.mubr.msk.f32.gmra.mrb[164].mxu1 %vm77_vm0, %v5367_v44 }
 0xfe8   :  { %v5351_v17 = vpop.permute.xlu1 %5350  ;;  %8594 = vmatprep.subr.bf16.mxu0 %v8593_v49 }
 0xfe9   :  { %v5368_v10 = vsel %vm2526_vm3, %v4917_v50, %v5351_v17  ;;  %8596 = vmatpush3.bf16.msra.mxu0 %v8593_v49 }
 0xfea   :  { %8326 = vmatprep.mubr.msk.f32.mxu1 %vm77_vm0, %v5368_v10 }
 0xfeb   :  { %8327 = vmatmul.mubr.msk.f32.gmra.mrb[166].mxu1 %vm77_vm0, %v5369_v6 }
0x105a   :  { %v8307_v5 = vpop.f32.mrb[152].mxu1 }
0x105b   :  { %v5568_v26 = vadd.f32 %v9270_v58, %v8307_v5  ;;  %v5488_v20 = vpop.f32.mrb[153].mxu1  ;;  %v9282_v58 = vld [vmem:[%s12982_s29 + $0x68] sm:$0xff] }
0x105c   :  { %v5567_v62 = vadd.f32 %v9271_v37, %v5488_v20  ;;  %v9283_v37 = vld [vmem:[%s12982_s29 + $0x60] sm:$0xff] }
0x105d   :  { %v12220_v19 = vadd.f32 %v12211_v1, %v5568_v26 }
0x105e   :  { %v12223_v60 = vadd.f32 %v12211_v1, %v5567_v62 }
0x105f   :  { %v5611_v53 = vsel %vm77_vm0, %v12220_v19, 0.0 }
0x1060   :  { %5612 = vadd.xlane.f32.xlu0 %v5611_v53  ;;  %v5608_v8 = vsel %vm77_vm0, %v12223_v60, 0.0 }
0x1061   :  { %5609 = vadd.xlane.f32.xlu1 %v5608_v8 }
0x1062   :  { %v8310_v25 = vpop.f32.mrb[154].mxu1 }
0x1063   :  { %v5570_v3 = vadd.f32 %v9272_v0, %v8310_v25  ;;  %v5498_v34 = vpop.f32.mrb[155].mxu1  ;;  %v9284_v0 = vld [vmem:[%s12982_s29 + $0x78] sm:$0xff] }
0x1064   :  { %v5569_v15 = vadd.f32 %v9273_v24, %v5498_v34 }
0x1065   :  { %v12236_v57 = vadd.f32 %v12211_v1, %v5570_v3 }
0x1066   :  { %v12239_v52 = vadd.f32 %v12211_v1, %v5569_v15  ;;  %v9285_v15 = vld [vmem:[%s12982_s29 + $0x70] sm:$0xff] }
0x1067   :  { %v5617_v47 = vsel %vm77_vm0, %v12236_v57, 0.0 }
0x1068   :  { %5618 = vadd.xlane.f32.xlu1 %v5617_v47  ;;  %v5614_v48 = vsel %vm77_vm0, %v12239_v52, 0.0 }
0x1069   :  { %5615 = vadd.xlane.f32.xlu0 %v5614_v48 }
0x106a   :  { %v8313_v11 = vpop.f32.mrb[156].mxu1 }
0x106b   :  { %v5572_v32 = vadd.f32 %v9274_v2, %v8313_v11  ;;  %v5508_v18 = vpop.f32.mrb[157].mxu1 }
0x106c   :  { %v5571_v55 = vadd.f32 %v9275_v27, %v5508_v18  ;;  %v5862_v27 = vld [vmem:[%s12966_s14 + $0x10] sm:$0xff] }
0x106d   :  { %v12252_v22 = vadd.f32 %v12211_v1, %v5572_v32 }
0x106e   :  { %v12255_v14 = vadd.f32 %v12211_v1, %v5571_v55  ;;  %v5863_v55 = vld [vmem:[%s12966_s14 + $0x18] sm:$0xff] }
0x106f   :  { %v8316_v16 = vpop.f32.mrb[158].mxu1  ;;  %v5623_v39 = vsel %vm77_vm0, %v12252_v22, 0.0 }
0x1070   :  { %v5574_v45 = vadd.f32 %v9276_v33, %v8316_v16  ;;  %5624 = vadd.xlane.f32.xlu1 %v5623_v39  ;;  %v5518_v50 = vpop.f32.mrb[159].mxu1  ;;  %v5620_v7 = vsel %vm77_vm0, %v12255_v14, 0.0  ;;  %v8597_v16 = vpack.c.bf16 %v5863_v55, %v5862_v27 }
0x1071   :  { %v5573_v56 = vadd.f32 %v9277_v59, %v5518_v50  ;;  %5621 = vadd.xlane.f32.xlu0 %v5620_v7 }
0x1072   :  { %v12268_v35 = vadd.f32 %v12211_v1, %v5574_v45  ;;  %8598 = vmatprep.subr.bf16.mxu0 %v8597_v16 }
0x1073   :  { %v12277_v13 = vadd.f32 %v12211_v1, %v5573_v56  ;;  %8600 = vmatpush3.bf16.msra.mxu0 %v8597_v16 }
0x1074   :  { %v5629_v30 = vsel %vm77_vm0, %v12268_v35, 0.0 }
0x1075   :  { %5630 = vadd.xlane.f32.xlu1 %v5629_v30  ;;  %v5626_v61 = vsel %vm77_vm0, %v12277_v13, 0.0 }
0x1076   :  { %5627 = vadd.xlane.f32.xlu0 %v5626_v61 }
0x10aa   :  { %v8319_v41 = vpop.f32.mrb[160].mxu1 }
0x10ab   :  { %v5576_v28 = vadd.f32 %v9278_v36, %v8319_v41  ;;  %v5528_v51 = vpop.f32.mrb[161].mxu1 }
0x10ac   :  { %v5575_v29 = vadd.f32 %v9279_v21, %v5528_v51 }
0x10ad   :  { %v12290_v40 = vadd.f32 %v12211_v1, %v5576_v28 }
0x10ae   :  { %v12293_v12 = vadd.f32 %v12211_v1, %v5575_v29 }
0x10af   :  { %v5635_v31 = vsel %vm77_vm0, %v12290_v40, 0.0 }
0x10b0   :  { %5636 = vadd.xlane.f32.xlu1 %v5635_v31  ;;  %v5632_v63 = vsel %vm77_vm0, %v12293_v12, 0.0 }
0x10b1   :  { %5633 = vadd.xlane.f32.xlu0 %v5632_v63 }
0x10b2   :  { %v8322_v42 = vpop.f32.mrb[162].mxu1 }
0x10b3   :  { %v5578_v23 = vadd.f32 %v9280_v46, %v8322_v42  ;;  %v5538_v38 = vpop.f32.mrb[163].mxu1 }
0x10b4   :  { %v5577_v44 = vadd.f32 %v9281_v43, %v5538_v38 }
0x10b5   :  { %v12306_v9 = vadd.f32 %v12211_v1, %v5578_v23 }
0x10b6   :  { %v12309_v17 = vadd.f32 %v12211_v1, %v5577_v44 }
0x10b7   :  { %v5641_v10 = vsel %vm77_vm0, %v12306_v9, 0.0 }
0x10b8   :  { %5642 = vadd.xlane.f32.xlu1 %v5641_v10  ;;  %v5638_v6 = vsel %vm77_vm0, %v12309_v17, 0.0 }
0x10b9   :  { %5639 = vadd.xlane.f32.xlu0 %v5638_v6 }
0x10ba   :  { %v8325_v5 = vpop.f32.mrb[164].mxu1 }
0x10bb   :  { %v5580_v26 = vadd.f32 %v9282_v58, %v8325_v5  ;;  %v5548_v20 = vpop.f32.mrb[165].mxu1 }
0x10bc   :  { %v5579_v62 = vadd.f32 %v9283_v37, %v5548_v20 }
0x10bd   :  { %v12322_v53 = vadd.f32 %v12211_v1, %v5580_v26 }
0x10be   :  { %v12325_v8 = vadd.f32 %v12211_v1, %v5579_v62  ;;  %v8328_v25 = vpop.f32.mrb[166].mxu1 }
0x10bf   :  { %v5582_v3 = vadd.f32 %v9284_v0, %v8328_v25  ;;  %v5558_v34 = vpop.f32.mrb[167].mxu1  ;;  %v5647_v24 = vsel %vm77_vm0, %v12322_v53, 0.0 }
0x10c0   :  { %v5581_v47 = vadd.f32 %v9285_v15, %v5558_v34  ;;  %5648 = vadd.xlane.f32.xlu1 %v5647_v24  ;;  %v5644_v48 = vsel %vm77_vm0, %v12325_v8, 0.0 }
0x10c1   :  { %v12338_v11 = vadd.f32 %v12211_v1, %v5582_v3  ;;  %5645 = vadd.xlane.f32.xlu0 %v5644_v48 }
0x10c2   :  { %v12341_v2 = vadd.f32 %v12211_v1, %v5581_v47 }
0x10c3   :  { %v5653_v32 = vsel %vm77_vm0, %v12338_v11, 0.0 }
0x10c4   :  { %12985 = vst [vmem:[#allocation2_spill] sm:$0xff] %v12341_v2  ;;  %5654 = vadd.xlane.f32.xlu1 %v5653_v32  ;;  %v5650_v18 = vsel %vm77_vm0, %v12341_v2, 0.0 }
0x10c5   :  { %5651 = vadd.xlane.f32.xlu0 %v5650_v18 }
0x10ed   :  { %v5613_v1 = vpop.xlane.xlu0 %5612 }
0x10ee   :  { %v5657_v39 = vmul.f32 0.03125, %v5613_v1  ;;  %v5610_v33 = vpop.xlane.xlu1 %5609 }
0x10ef   :  { %v5656_v45 = vmul.f32 0.03125, %v5610_v33 }
0x10f0   :  { %v12354_v50 = vsub.f32 %v12220_v19, %v5657_v39 }
0x10f1   :  { %v12357_v7 = vsub.f32 %v12223_v60, %v5656_v45 }
0x10f2   :  { %v5689_v59 = vmul.f32 %v12354_v50, %v12354_v50 }
0x10f3   :  { %v5688_v56 = vmul.f32 %v12357_v7, %v12357_v7 }
0x10f4   :  { %v5707_v4 = vsel %vm77_vm0, %v5689_v59, 0.0 }
0x10f5   :  { %5708 = vadd.xlane.f32.xlu1 %v5707_v4  ;;  %v5619_v54 = vpop.xlane.xlu1 %5618  ;;  %v5704_v49 = vsel %vm77_vm0, %v5688_v56, 0.0 }
0x10f6   :  { %v5659_v30 = vmul.f32 0.03125, %v5619_v54  ;;  %v5616_v61 = vpop.xlane.xlu0 %5615  ;;  %5705 = vadd.xlane.f32.xlu0 %v5704_v49 }
0x10f7   :  { %v5658_v41 = vmul.f32 0.03125, %v5616_v61 }
0x10f8   :  { %v12366_v36 = vsub.f32 %v12236_v57, %v5659_v30 }
0x10f9   :  { %v12369_v28 = vsub.f32 %v12239_v52, %v5658_v41 }
0x10fa   :  { %v5691_v51 = vmul.f32 %v12366_v36, %v12366_v36 }
0x10fb   :  { %v5690_v21 = vmul.f32 %v12369_v28, %v12369_v28 }
0x10fc   :  { %v5713_v29 = vsel %vm77_vm0, %v5691_v51, 0.0 }
0x10fd   :  { %5714 = vadd.xlane.f32.xlu1 %v5713_v29  ;;  %v5625_v31 = vpop.xlane.xlu1 %5624  ;;  %v5710_v63 = vsel %vm77_vm0, %v5690_v21, 0.0 }
0x10fe   :  { %v5661_v42 = vmul.f32 0.03125, %v5625_v31  ;;  %v5622_v46 = vpop.xlane.xlu0 %5621  ;;  %5711 = vadd.xlane.f32.xlu0 %v5710_v63 }
0x10ff   :  { %v5660_v23 = vmul.f32 0.03125, %v5622_v46 }
0x1100   :  { %v12378_v38 = vsub.f32 %v12252_v22, %v5661_v42 }
0x1101   :  { %v12381_v43 = vsub.f32 %v12255_v14, %v5660_v23 }
0x1102   :  { %v5631_v44 = vpop.xlane.xlu1 %5630  ;;  %v5693_v10 = vmul.f32 %v12378_v38, %v12378_v38 }
0x1103   :  { %v5663_v6 = vmul.f32 0.03125, %v5631_v44  ;;  %v5628_v5 = vpop.xlane.xlu0 %5627  ;;  %v5692_v58 = vmul.f32 %v12381_v43, %v12381_v43 }
0x1104   :  { %v5662_v26 = vmul.f32 0.03125, %v5628_v5  ;;  %v5719_v20 = vsel %vm77_vm0, %v5693_v10, 0.0 }
0x1105   :  { %v12389_v37 = vsub.f32 %v12268_v35, %v5663_v6  ;;  %5720 = vadd.xlane.f32.xlu1 %v5719_v20  ;;  %v5716_v62 = vsel %vm77_vm0, %v5692_v58, 0.0 }
0x1106   :  { %v12393_v25 = vsub.f32 %v12277_v13, %v5662_v26  ;;  %5717 = vadd.xlane.f32.xlu0 %v5716_v62 }
0x1107   :  { %v5695_v0 = vmul.f32 %v12389_v37, %v12389_v37 }
0x1108   :  { %v5694_v3 = vmul.f32 %v12393_v25, %v12393_v25 }
0x1109   :  { %v5725_v34 = vsel %vm77_vm0, %v5695_v0, 0.0 }
0x110a   :  { %5726 = vadd.xlane.f32.xlu1 %v5725_v34  ;;  %v5722_v24 = vsel %vm77_vm0, %v5694_v3, 0.0 }
0x110b   :  { %5723 = vadd.xlane.f32.xlu0 %v5722_v24 }
0x113d   :  { %v5637_v15 = vpop.xlane.xlu1 %5636 }
0x113e   :  { %v5665_v47 = vmul.f32 0.03125, %v5637_v15  ;;  %v5634_v48 = vpop.xlane.xlu0 %5633 }
0x113f   :  { %v5664_v32 = vmul.f32 0.03125, %v5634_v48 }
0x1140   :  { %v12402_v18 = vsub.f32 %v12290_v40, %v5665_v47 }
0x1141   :  { %v12405_v27 = vsub.f32 %v12293_v12, %v5664_v32 }
0x1142   :  { %v5697_v55 = vmul.f32 %v12402_v18, %v12402_v18 }
0x1143   :  { %v5696_v16 = vmul.f32 %v12405_v27, %v12405_v27 }
0x1144   :  { %v5731_v1 = vsel %vm77_vm0, %v5697_v55, 0.0 }
0x1145   :  { %5732 = vadd.xlane.f32.xlu1 %v5731_v1  ;;  %v5728_v39 = vsel %vm77_vm0, %v5696_v16, 0.0  ;;  %v5643_v33 = vpop.xlane.xlu1 %5642 }
0x1146   :  { %5729 = vadd.xlane.f32.xlu0 %v5728_v39  ;;  %v5667_v45 = vmul.f32 0.03125, %v5643_v33  ;;  %v5640_v59 = vpop.xlane.xlu0 %5639 }
0x1147   :  { %v5666_v56 = vmul.f32 0.03125, %v5640_v59 }
0x1148   :  { %v12414_v4 = vsub.f32 %v12306_v9, %v5667_v45 }
0x1149   :  { %v12417_v54 = vsub.f32 %v12309_v17, %v5666_v56 }
0x114a   :  { %v5699_v49 = vmul.f32 %v12414_v4, %v12414_v4 }
0x114b   :  { %v5698_v30 = vmul.f32 %v12417_v54, %v12417_v54 }
0x114c   :  { %v5737_v61 = vsel %vm77_vm0, %v5699_v49, 0.0 }
0x114d   :  { %5738 = vadd.xlane.f32.xlu1 %v5737_v61  ;;  %v5649_v41 = vpop.xlane.xlu1 %5648  ;;  %v5734_v51 = vsel %vm77_vm0, %v5698_v30, 0.0  ;;  %v12452_v30 = vld [vmem:[%s12967_s12] ss:$0 sm:$0xff] }
0x114e   :  { %v5669_v21 = vmul.f32 0.03125, %v5649_v41  ;;  %v5646_v29 = vpop.xlane.xlu0 %5645  ;;  %5735 = vadd.xlane.f32.xlu0 %v5734_v51 }
0x114f   :  { %v5668_v31 = vmul.f32 0.03125, %v5646_v29 }
0x1150   :  { %v12426_v63 = vsub.f32 %v12322_v53, %v5669_v21 }
0x1151   :  { %v12429_v42 = vsub.f32 %v12325_v8, %v5668_v31  ;;  %v5655_v46 = vpop.xlane.xlu1 %5654 }
0x1152   :  { %v5671_v23 = vmul.f32 0.03125, %v5655_v46  ;;  %v5652_v44 = vpop.xlane.xlu0 %5651  ;;  %v5701_v10 = vmul.f32 %v12426_v63, %v12426_v63  ;;  %v12459_v46 = vld [vmem:[%s12968_s13] ss:$0 sm:$0xff] }
0x1153   :  { %v5670_v6 = vmul.f32 0.03125, %v5652_v44  ;;  %v5700_v5 = vmul.f32 %v12429_v42, %v12429_v42 }
0x1154   :  { %v12436_v58 = vsub.f32 %v12338_v11, %v5671_v23  ;;  %v5743_v26 = vsel %vm77_vm0, %v5701_v10, 0.0 }
0x1155   :  { %v12440_v20 = vsub.f32 %v12341_v2, %v5670_v6  ;;  %5744 = vadd.xlane.f32.xlu1 %v5743_v26  ;;  %v5740_v62 = vsel %vm77_vm0, %v5700_v5, 0.0 }
0x1156   :  { %5741 = vadd.xlane.f32.xlu0 %v5740_v62  ;;  %v5703_v0 = vmul.f32 %v12436_v58, %v12436_v58 }
0x1157   :  { %v5702_v3 = vmul.f32 %v12440_v20, %v12440_v20 }
0x1158   :  { %v5749_v34 = vsel %vm77_vm0, %v5703_v0, 0.0 }
0x1159   :  { %5750 = vadd.xlane.f32.xlu1 %v5749_v34  ;;  %v5746_v24 = vsel %vm77_vm0, %v5702_v3, 0.0 }
0x115a   :  { %5747 = vadd.xlane.f32.xlu0 %v5746_v24 }
0x1182   :  { %v5709_v15 = vpop.xlane.xlu1 %5708 }
0x1183   :  { %v5753_v47 = vmul.f32 0.03125, %v5709_v15  ;;  %v5706_v48 = vpop.xlane.xlu0 %5705 }
0x1184   :  { %v5752_v32 = vmul.f32 0.03125, %v5706_v48 }
0x1185   :  { %v5769_v55 = vadd.f32 1e-05, %v5753_v47 }
0x1186   :  { %v5768_v16 = vadd.f32 1e-05, %v5752_v32 }
0x1187   :  { %8922 = vrsqrt.f32 %v5769_v55 }
0x1188   :  { %8924 = vrsqrt.f32 %v5768_v16 }
0x118a   :  { %v5715_v1 = vpop.xlane.xlu1 %5714 }
0x118b   :  { %v5755_v39 = vmul.f32 0.03125, %v5715_v1  ;;  %v5712_v33 = vpop.xlane.xlu0 %5711 }
0x118c   :  { %v5754_v45 = vmul.f32 0.03125, %v5712_v33 }
0x118d   :  { %v5771_v59 = vadd.f32 1e-05, %v5755_v39 }
0x118e   :  { %v5770_v56 = vadd.f32 1e-05, %v5754_v45 }
0x118f   :  { %8926 = vrsqrt.f32 %v5771_v59 }
0x1190   :  { %8928 = vrsqrt.f32 %v5770_v56 }
0x1191   :  { %v8923_v49 = vpop.eup %8922 }
0x1192   :  { %v8925_v61 = vpop.eup %8924  ;;  %v5801_v41 = vmul.f32 %v8923_v49, %v12354_v50  ;;  %v5721_v51 = vpop.xlane.xlu1 %5720 }
0x1193   :  { %v5757_v21 = vmul.f32 0.03125, %v5721_v51  ;;  %v5718_v29 = vpop.xlane.xlu0 %5717  ;;  %v5800_v31 = vmul.f32 %v8925_v61, %v12357_v7 }
0x1194   :  { %v5823_v23 = vmul.f32 %v12452_v30, %v5801_v41  ;;  %v5756_v44 = vmul.f32 0.03125, %v5718_v29 }
0x1195   :  { %v5773_v10 = vadd.f32 1e-05, %v5757_v21  ;;  %v5822_v6 = vmul.f32 %v12452_v30, %v5800_v31 }
0x1196   :  { %v5772_v5 = vadd.f32 1e-05, %v5756_v44  ;;  %v5845_v62 = vadd.f32 %v12459_v46, %v5823_v23 }
0x1197   :  { %8930 = vrsqrt.f32 %v5773_v10  ;;  %v5727_v26 = vpop.xlane.xlu1 %5726  ;;  %v5844_v50 = vadd.f32 %v12459_v46, %v5822_v6 }
0x1198   :  { %8932 = vrsqrt.f32 %v5772_v5  ;;  %v5759_v7 = vmul.f32 0.03125, %v5727_v26  ;;  %v5724_v0 = vpop.xlane.xlu0 %5723 }
0x1199   :  { %v8927_v3 = vpop.eup %8926  ;;  %v5758_v34 = vmul.f32 0.03125, %v5724_v0  ;;  %8337 = vmatprep.mubr.msk.f32.mxu0 %vm77_vm0, %v5844_v50 }
0x119a   :  { %v8929_v24 = vpop.eup %8928  ;;  %v5775_v15 = vadd.f32 1e-05, %v5759_v7  ;;  %8338 = vmatmul.mubr.msk.f32.vlgmr.msra.gmra.mrb[168].mxu0 %vm77_vm0, %v5845_v62  ;;  %v5803_v47 = vmul.f32 %v8927_v3, %v12366_v36 }
0x119b   :  { %v5774_v48 = vadd.f32 1e-05, %v5758_v34  ;;  %v5802_v32 = vmul.f32 %v8929_v24, %v12369_v28 }
0x119c   :  { %8934 = vrsqrt.f32 %v5775_v15  ;;  %v5825_v55 = vmul.f32 %v12452_v30, %v5803_v47 }
0x119d   :  { %8936 = vrsqrt.f32 %v5774_v48  ;;  %v5824_v16 = vmul.f32 %v12452_v30, %v5802_v32 }
0x119e   :  { %v5847_v39 = vadd.f32 %v12459_v46, %v5825_v55 }
0x119f   :  { %v5846_v1 = vadd.f32 %v12459_v46, %v5824_v16 }
0x11a1   :  { %v8931_v33 = vpop.eup %8930  ;;  %8340 = vmatprep.mubr.msk.f32.mxu0 %vm77_vm0, %v5846_v1 }
0x11a2   :  { %v8933_v45 = vpop.eup %8932  ;;  %8341 = vmatmul.mubr.msk.f32.gmra.mrb[170].mxu0 %vm77_vm0, %v5847_v39  ;;  %v5805_v36 = vmul.f32 %v8931_v33, %v12378_v38 }
0x11a3   :  { %v5804_v28 = vmul.f32 %v8933_v45, %v12381_v43 }
0x11a4   :  { %v5827_v59 = vmul.f32 %v12452_v30, %v5805_v36 }
0x11a5   :  { %v5826_v56 = vmul.f32 %v12452_v30, %v5804_v28 }
0x11a6   :  { %v8935_v49 = vpop.eup %8934  ;;  %v5849_v21 = vadd.f32 %v12459_v46, %v5827_v59 }
0x11a7   :  { %v8937_v61 = vpop.eup %8936  ;;  %v5848_v41 = vadd.f32 %v12459_v46, %v5826_v56  ;;  %v5807_v51 = vmul.f32 %v8935_v49, %v12389_v37 }
0x11a8   :  { %v5806_v29 = vmul.f32 %v8937_v61, %v12393_v25 }
0x11a9   :  { %8343 = vmatprep.mubr.msk.f32.mxu0 %vm77_vm0, %v5848_v41  ;;  %v5829_v38 = vmul.f32 %v12452_v30, %v5807_v51 }
0x11aa   :  { %8344 = vmatmul.mubr.msk.f32.gmra.mrb[172].mxu0 %vm77_vm0, %v5849_v21  ;;  %v5828_v43 = vmul.f32 %v12452_v30, %v5806_v29 }
0x11ab   :  { %v5851_v23 = vadd.f32 %v12459_v46, %v5829_v38 }
0x11ac   :  { %v5850_v31 = vadd.f32 %v12459_v46, %v5828_v43 }
0x11ae   :  { %8346 = vmatprep.mubr.msk.f32.mxu0 %vm77_vm0, %v5850_v31 }
0x11af   :  { %8347 = vmatmul.mubr.msk.f32.gmra.mrb[174].mxu0 %vm77_vm0, %v5851_v23 }
0x11d2   :  { %v5733_v37 = vpop.xlane.xlu1 %5732 }
0x11d3   :  { %v5761_v44 = vmul.f32 0.03125, %v5733_v37  ;;  %v5730_v10 = vpop.xlane.xlu0 %5729 }
0x11d4   :  { %v5760_v25 = vmul.f32 0.03125, %v5730_v10 }
0x11d5   :  { %v5777_v6 = vadd.f32 1e-05, %v5761_v44 }
0x11d6   :  { %v5776_v5 = vadd.f32 1e-05, %v5760_v25 }
0x11d7   :  { %8938 = vrsqrt.f32 %v5777_v6 }
0x11d8   :  { %8940 = vrsqrt.f32 %v5776_v5 }
0x11da   :  { %v5739_v26 = vpop.xlane.xlu1 %5738 }
0x11db   :  { %v5763_v50 = vmul.f32 0.03125, %v5739_v26  ;;  %v5736_v62 = vpop.xlane.xlu0 %5735 }
0x11dc   :  { %v5762_v7 = vmul.f32 0.03125, %v5736_v62 }
0x11dd   :  { %v5779_v0 = vadd.f32 1e-05, %v5763_v50 }
0x11de   :  { %v5778_v3 = vadd.f32 1e-05, %v5762_v7 }
0x11df   :  { %8942 = vrsqrt.f32 %v5779_v0 }
0x11e0   :  { %8944 = vrsqrt.f32 %v5778_v3 }
0x11e1   :  { %v8939_v34 = vpop.eup %8938 }
0x11e2   :  { %v8941_v24 = vpop.eup %8940  ;;  %v5809_v15 = vmul.f32 %v8939_v34, %v12402_v18  ;;  %v5745_v47 = vpop.xlane.xlu1 %5744 }
0x11e3   :  { %v5808_v48 = vmul.f32 %v8941_v24, %v12405_v27  ;;  %v5765_v32 = vmul.f32 0.03125, %v5745_v47  ;;  %v5742_v55 = vpop.xlane.xlu0 %5741  ;;  %v6501_v47 = vld [vmem:[%s12969_s16 + $0x28] sm:$0xff] }
0x11e4   :  { %v5831_v16 = vmul.f32 %v12452_v30, %v5809_v15  ;;  %v5764_v1 = vmul.f32 0.03125, %v5742_v55  ;;  %v6500_v15 = vld [vmem:[%s12969_s16 + $0x20] sm:$0xff]  ;;  %v6503_v55 = vld [vmem:[%s12969_s16 + $0x38] sm:$0xff] }
0x11e5   :  { %v5830_v39 = vmul.f32 %v12452_v30, %v5808_v48  ;;  %v5781_v33 = vadd.f32 1e-05, %v5765_v32  ;;  %v8609_v48 = vpack.c.bf16 %v6501_v47, %v6500_v15  ;;  %v6502_v32 = vld [vmem:[%s12969_s16 + $0x30] sm:$0xff] }
0x11e6   :  { %v5780_v45 = vadd.f32 1e-05, %v5764_v1  ;;  %v5751_v36 = vpop.xlane.xlu1 %5750  ;;  %v5853_v18 = vadd.f32 %v12459_v46, %v5831_v16  ;;  %v8613_v16 = vpack.c.bf16 %v6503_v55, %v6502_v32  ;;  %v6504_v1 = vld [vmem:[%s12969_s16 + $0x40] sm:$0xff] }
0x11e7   :  { %v5852_v28 = vadd.f32 %v12459_v46, %v5830_v39  ;;  %8946 = vrsqrt.f32 %v5781_v33  ;;  %v5767_v59 = vmul.f32 0.03125, %v5751_v36  ;;  %v5748_v56 = vpop.xlane.xlu0 %5747  ;;  %v6505_v39 = vld [vmem:[%s12969_s16 + $0x48] sm:$0xff]  ;;  %v6507_v36 = vld [vmem:[%s12969_s16 + $0x58] sm:$0xff] }
0x11e8   :  { %8948 = vrsqrt.f32 %v5780_v45  ;;  %v5766_v49 = vmul.f32 0.03125, %v5748_v56  ;;  %v8617_v33 = vpack.c.bf16 %v6505_v39, %v6504_v1  ;;  %v6506_v45 = vld [vmem:[%s12969_s16 + $0x50] sm:$0xff]  ;;  %v6509_v56 = vld [vmem:[%s12969_s16 + $0x68] sm:$0xff] }
0x11e9   :  { %8349 = vmatprep.mubr.msk.f32.mxu0 %vm77_vm0, %v5852_v28  ;;  %v8943_v27 = vpop.eup %8942  ;;  %v5783_v61 = vadd.f32 1e-05, %v5767_v59  ;;  %v8621_v28 = vpack.c.bf16 %v6507_v36, %v6506_v45  ;;  %v6508_v59 = vld [vmem:[%s12969_s16 + $0x60] sm:$0xff] }
0x11ea   :  { %8350 = vmatmul.mubr.msk.f32.gmra.mrb[176].mxu0 %vm77_vm0, %v5853_v18  ;;  %v8945_v41 = vpop.eup %8944  ;;  %v5782_v51 = vadd.f32 1e-05, %v5766_v49  ;;  %v5811_v21 = vmul.f32 %v8943_v27, %v12414_v4  ;;  %v8625_v18 = vpack.c.bf16 %v6509_v56, %v6508_v59  ;;  %v6510_v49 = vld [vmem:[%s12969_s16 + $0x70] sm:$0xff]  ;;  %v6511_v27 = vld [vmem:[%s12969_s16 + $0x78] sm:$0xff] }
0x11eb   :  { %8950 = vrsqrt.f32 %v5783_v61  ;;  %v5810_v29 = vmul.f32 %v8945_v41, %v12417_v54  ;;  %v8629_v61 = vpack.c.bf16 %v6511_v27, %v6510_v49  ;;  %v12574_v41 = vld [vmem:[%s12970_s15] ss:$0 sm:$0xff] }
0x11ec   :  { %8952 = vrsqrt.f32 %v5782_v51  ;;  %v5833_v38 = vmul.f32 %v12452_v30, %v5811_v21 }
0x11ed   :  { %v5832_v43 = vmul.f32 %v12452_v30, %v5810_v29 }
0x11ee   :  { %v5855_v23 = vadd.f32 %v12459_v46, %v5833_v38 }
0x11ef   :  { %v5854_v31 = vadd.f32 %v12459_v46, %v5832_v43 }
0x11f1   :  { %v8947_v37 = vpop.eup %8946  ;;  %8352 = vmatprep.mubr.msk.f32.mxu0 %vm77_vm0, %v5854_v31 }
0x11f2   :  { %v8949_v44 = vpop.eup %8948  ;;  %8353 = vmatmul.mubr.msk.f32.gmra.mrb[178].mxu0 %vm77_vm0, %v5855_v23  ;;  %v5813_v4 = vmul.f32 %v8947_v37, %v12426_v63 }
0x11f3   :  { %v5812_v10 = vmul.f32 %v8949_v44, %v12429_v42 }
0x11f4   :  { %v5835_v54 = vmul.f32 %v12452_v30, %v5813_v4 }
0x11f5   :  { %v8951_v25 = vpop.eup %8950  ;;  %v5834_v6 = vmul.f32 %v12452_v30, %v5812_v10 }
0x11f6   :  { %v8953_v5 = vpop.eup %8952  ;;  %v5815_v26 = vmul.f32 %v8951_v25, %v12436_v58  ;;  %v5857_v7 = vadd.f32 %v12459_v46, %v5835_v54  ;;  %v6496_v58 = vld [vmem:[%s12969_s16] sm:$0xff] }
0x11f7   :  { %v5856_v50 = vadd.f32 %v12459_v46, %v5834_v6  ;;  %v5814_v62 = vmul.f32 %v8953_v5, %v12440_v20  ;;  %v6497_v20 = vld [vmem:[%s12969_s16 + $0x8] sm:$0xff] }
0x11f8   :  { %v5837_v0 = vmul.f32 %v12452_v30, %v5815_v26  ;;  %v8601_v34 = vpack.c.bf16 %v6497_v20, %v6496_v58 }
0x11f9   :  { %8355 = vmatprep.mubr.msk.f32.mxu0 %vm77_vm0, %v5856_v50  ;;  %v5836_v63 = vmul.f32 %v12452_v30, %v5814_v62  ;;  %v6498_v30 = vld [vmem:[%s12969_s16 + $0x10] sm:$0xff] }
0x11fa   :  { %8356 = vmatmul.mubr.msk.f32.gmra.mrb[180].mxu0 %vm77_vm0, %v5857_v7  ;;  %v5859_v3 = vadd.f32 %v12459_v46, %v5837_v0  ;;  %8602 = vmatprep.subr.bf16.mxu0 %v8601_v34 }
0x11fb   :  { %v5858_v42 = vadd.f32 %v12459_v46, %v5836_v63  ;;  %8633 = vmatprep.subr.bf16.mxu1 %v8601_v34  ;;  %8604 = vmatpush3.bf16.msra.mxu0 %v8601_v34  ;;  %v6499_v46 = vld [vmem:[%s12969_s16 + $0x18] sm:$0xff] }
0x11fc   :  { %8641 = vmatpush3.bf16.msra.mxu1 %v8601_v34  ;;  %v8605_v24 = vpack.c.bf16 %v6499_v46, %v6498_v30 }
0x11fd   :  { %8358 = vmatprep.mubr.msk.f32.mxu0 %vm77_vm0, %v5858_v42 }
0x11fe   :  { %8359 = vmatmul.mubr.msk.f32.gmra.mrb[182].mxu0 %vm77_vm0, %v5859_v3  ;;  %8606 = vmatprep.subr.bf16.mxu0 %v8605_v24 }
0x11ff   :  { %8634 = vmatprep.subr.bf16.mxu1 %v8605_v24  ;;  %8608 = vmatpush3.bf16.msra.mxu0 %v8605_v24 }
0x1200   :  { %8642 = vmatpush3.bf16.msra.mxu1 %v8605_v24  ;;  %8610 = vmatprep.subr.bf16.mxu0 %v8609_v48 }
0x1201   :  { %8635 = vmatprep.subr.bf16.mxu1 %v8609_v48 }
0x1203   :  { %8612 = vmatpush3.bf16.msra.mxu0 %v8609_v48 }
0x1204   :  { %8643 = vmatpush3.bf16.msra.mxu1 %v8609_v48  ;;  %8614 = vmatprep.subr.bf16.mxu0 %v8613_v16 }
0x1205   :  { %8636 = vmatprep.subr.bf16.mxu1 %v8613_v16 }
0x1207   :  { %8616 = vmatpush3.bf16.msra.mxu0 %v8613_v16 }
0x1208   :  { %8644 = vmatpush3.bf16.msra.mxu1 %v8613_v16  ;;  %8618 = vmatprep.subr.bf16.mxu0 %v8617_v33 }
0x1209   :  { %8637 = vmatprep.subr.bf16.mxu1 %v8617_v33 }
0x120b   :  { %8620 = vmatpush3.bf16.msra.mxu0 %v8617_v33 }
0x120c   :  { %8645 = vmatpush3.bf16.msra.mxu1 %v8617_v33  ;;  %8622 = vmatprep.subr.bf16.mxu0 %v8621_v28 }
0x120d   :  { %8638 = vmatprep.subr.bf16.mxu1 %v8621_v28 }
0x120f   :  { %8624 = vmatpush3.bf16.msra.mxu0 %v8621_v28 }
0x1210   :  { %8646 = vmatpush3.bf16.msra.mxu1 %v8621_v28  ;;  %8626 = vmatprep.subr.bf16.mxu0 %v8625_v18 }
0x1211   :  { %8639 = vmatprep.subr.bf16.mxu1 %v8625_v18 }
0x1213   :  { %8628 = vmatpush3.bf16.msra.mxu0 %v8625_v18 }
0x1214   :  { %8647 = vmatpush3.bf16.msra.mxu1 %v8625_v18  ;;  %8630 = vmatprep.subr.bf16.mxu0 %v8629_v61 }
0x1215   :  { %8640 = vmatprep.subr.bf16.mxu1 %v8629_v61 }
0x1217   :  { %8632 = vmatpush3.bf16.msra.mxu0 %v8629_v61 }
0x1218   :  { %8648 = vmatpush3.bf16.msra.mxu1 %v8629_v61 }
0x126d   :  { %v8339_v51 = vpop.f32.mrb[168].mxu0 }
0x126e   :  { %v5991_v21 = vadd.f32 %v8339_v51, %v12574_v41  ;;  %v5985_v29 = vpop.f32.mrb[169].mxu0 }
0x126f   :  { %v5986_v38 = vadd.f32 %v12574_v41, %v5985_v29 }
0x1270   :  { %v6081_v43 = vmul.f32 0.70710677, %v5991_v21  ;;  %v12612_v56 = vmul.f32 0.5, %v5991_v21 }
0x1271   :  { %v6080_v31 = vmul.f32 0.70710677, %v5986_v38 }
0x1272   :  { %v6129_v23 = vand.u32 2147483647, %v6081_v43  ;;  %vm6097_vm5 = vcmp.ge.f32.partialorder %v6081_v43, 0.0 }
0x1273   :  { %v6128_v37 = vand.u32 2147483647, %v6080_v31  ;;  %vm6096_vm6 = vcmp.ge.f32.partialorder %v6080_v31, 0.0 }
0x1274   :  { %v6145_v44 = vmul.f32 0.3275911, %v6129_v23  ;;  %v6353_v58 = vsub.f32 0.0, %v6129_v23 }
0x1275   :  { %v6144_v4 = vmul.f32 0.3275911, %v6128_v37  ;;  %v8342_v10 = vpop.f32.mrb[170].mxu0  ;;  %v6352_v15 = vsub.f32 0.0, %v6128_v37 }
0x1276   :  { %v6161_v54 = vadd.f32 1.0, %v6145_v44  ;;  %v6001_v25 = vadd.f32 %v8342_v10, %v12574_v41  ;;  %v5995_v6 = vpop.f32.mrb[171].mxu0  ;;  %v6369_v55 = vmul.f32 %v6353_v58, %v6129_v23 }
0x1277   :  { %v12580_v5 = vadd.f32 %v12574_v41, %v5995_v6  ;;  %v6160_v50 = vadd.f32 1.0, %v6144_v4  ;;  %v6368_v45 = vmul.f32 %v6352_v15, %v6128_v37  ;;  %v12976_v37 = vmov -1.0  }
0x1278   :  { %8954 = vrcp.f32 %v6161_v54  ;;  %v12582_v26 = vmul.f32 0.70710677, %v6001_v25  ;;  %v6386_v27 = vmul.f32 1.442695, %v6369_v55  ;;  %v12624_v44 = vsel %vm6097_vm5, 1.0, %v12976_v37 }
0x1279   :  { %v12585_v62 = vmul.f32 0.70710677, %v12580_v5  ;;  %8956 = vrcp.f32 %v6160_v50  ;;  %v12627_v4 = vmul.f32 0.5, %v5986_v38  ;;  %v6384_v54 = vmul.f32 1.442695, %v6368_v45 }
0x127a   :  { %v6131_v7 = vand.u32 2147483647, %v12582_v26  ;;  %vm6099_vm7 = vcmp.ge.f32.partialorder %v12582_v26, 0.0 }
0x127b   :  { %v12589_v0 = vand.u32 2147483647, %v12585_v62  ;;  %vm6098_vm8 = vcmp.ge.f32.partialorder %v12585_v62, 0.0 }
0x127c   :  { %v6147_v63 = vmul.f32 0.3275911, %v6131_v7  ;;  %v6355_v36 = vsub.f32 0.0, %v6131_v7 }
0x127d   :  { %v6146_v42 = vmul.f32 0.3275911, %v12589_v0  ;;  %v8345_v3 = vpop.f32.mrb[172].mxu0  ;;  %v6354_v38 = vsub.f32 0.0, %v12589_v0 }
0x127e   :  { %v6163_v20 = vadd.f32 1.0, %v6147_v63  ;;  %v12593_v34 = vadd.f32 %v8345_v3, %v12574_v41  ;;  %v6005_v30 = vpop.f32.mrb[173].mxu0  ;;  %v6371_v6 = vmul.f32 %v6355_v36, %v6131_v7  ;;  %v12636_v3 = vmul.f32 0.5, %v6001_v25 }
0x127f   :  { %v6162_v46 = vadd.f32 1.0, %v6146_v42  ;;  %v12596_v24 = vadd.f32 %v12574_v41, %v6005_v30  ;;  %v12634_v42 = vsel %vm6096_vm6, 1.0, %v12976_v37  ;;  %v6370_v36 = vmul.f32 %v6354_v38, %v12589_v0 }
0x1280   :  { %8958 = vrcp.f32 %v6163_v20  ;;  %v12599_v47 = vmul.f32 0.70710677, %v12593_v34  ;;  %v6390_v15 = vmul.f32 1.442695, %v6371_v6 }
0x1281   :  { %v12602_v48 = vmul.f32 0.70710677, %v12596_v24  ;;  %8960 = vrcp.f32 %v6162_v46 }
0x1282   :  { %v12604_v32 = vpop.eup %8954  ;;  %v12607_v16 = vand.u32 2147483647, %v12599_v47  ;;  %v8348_v1 = vpop.f32.mrb[174].mxu0  ;;  %vm6101_vm9 = vcmp.ge.f32.partialorder %v12599_v47, 0.0 }
0x1283   :  { %v6209_v39 = vmul.f32 1.0614054, %v12604_v32  ;;  %v6015_v33 = vpop.f32.mrb[175].mxu0  ;;  %v6132_v59 = vand.u32 2147483647, %v12602_v48  ;;  %v12615_v49 = vadd.f32 %v8348_v1, %v12574_v41  ;;  %v12620_v23 = vpop.eup %8956  ;;  %vm6100_vm10 = vcmp.ge.f32.partialorder %v12602_v48, 0.0 }
0x1284   :  { %v6149_v28 = vmul.f32 0.3275911, %v12607_v16  ;;  %v12618_v29 = vadd.f32 %v12574_v41, %v6015_v33  ;;  %v6208_v7 = vmul.f32 1.0614054, %v12620_v23  ;;  %v6357_v33 = vsub.f32 0.0, %v12607_v16 }
0x1285   :  { %v6225_v18 = vadd.f32 -1.4531521, %v6209_v39  ;;  %v6148_v51 = vmul.f32 0.3275911, %v6132_v59  ;;  %v12630_v10 = vmul.f32 0.70710677, %v12615_v49 }
0x1286   :  { %v6165_v61 = vadd.f32 1.0, %v6149_v28  ;;  %v12643_v20 = vmul.f32 0.70710677, %v12618_v29  ;;  %v6356_v28 = vsub.f32 0.0, %v6132_v59  ;;  %v6373_v0 = vmul.f32 %v6357_v33, %v12607_v16 }
0x1287   :  { %v6241_v21 = vmul.f32 %v12604_v32, %v6225_v18  ;;  %v6164_v50 = vadd.f32 1.0, %v6148_v51  ;;  %v6135_v43 = vand.u32 2147483647, %v12630_v10  ;;  %vm6103_vm11 = vcmp.ge.f32.partialorder %v12630_v10, 0.0 }
0x1288   :  { %8962 = vrcp.f32 %v6165_v61  ;;  %v12652_v55 = vand.u32 2147483647, %v12643_v20  ;;  %vm6102_vm12 = vcmp.ge.f32.partialorder %v12643_v20, 0.0 }
0x1289   :  { %v6257_v63 = vadd.f32 1.4214138, %v6241_v21  ;;  %8964 = vpow2.f32 %v6386_v27  ;;  %v6151_v46 = vmul.f32 0.3275911, %v6135_v43  ;;  %v6224_v27 = vadd.f32 -1.4531521, %v6208_v7 }
0x128a   :  { %v12639_v58 = vpop.eup %8958  ;;  %8966 = vrcp.f32 %v6164_v50  ;;  %v6150_v18 = vmul.f32 0.3275911, %v12652_v55  ;;  %v6388_v7 = vmul.f32 1.442695, %v6370_v36  ;;  %v6394_v36 = vmul.f32 1.442695, %v6373_v0 }
0x128b   :  { %v6273_v30 = vmul.f32 %v12604_v32, %v6257_v63  ;;  %v6211_v31 = vmul.f32 1.0614054, %v12639_v58  ;;  %v12648_v25 = vpop.eup %8960  ;;  %8968 = vpow2.f32 %v6384_v54  ;;  %v6167_v45 = vadd.f32 1.0, %v6151_v46 }
0x128c   :  { %v6210_v21 = vmul.f32 1.0614054, %v12648_v25  ;;  %v6359_v54 = vsub.f32 0.0, %v6135_v43  ;;  %v6166_v6 = vadd.f32 1.0, %v6150_v18  ;;  %v6240_v50 = vmul.f32 %v12620_v23, %v6224_v27 }
0x128d   :  { %v6289_v1 = vadd.f32 -0.28449672, %v6273_v30  ;;  %v6227_v39 = vadd.f32 -1.4531521, %v6211_v31  ;;  %8970 = vrcp.f32 %v6167_v45  ;;  %v6372_v46 = vmul.f32 %v6356_v28, %v6132_v59 }
0x128e   :  { %v6226_v38 = vadd.f32 -1.4531521, %v6210_v21  ;;  %8972 = vpow2.f32 %v6390_v15  ;;  %v12986_v27 = vmov -1.0   ;;  %v6375_v28 = vmul.f32 %v6359_v54, %v6135_v43 }
0x128f   :  { %v6305_v61 = vmul.f32 %v12604_v32, %v6289_v1  ;;  %v6243_v51 = vmul.f32 %v12639_v58, %v6227_v39  ;;  %v6256_v1 = vadd.f32 1.4214138, %v6240_v50  ;;  %8974 = vrcp.f32 %v6166_v6 }
0x1290   :  { %v6242_v18 = vmul.f32 %v12648_v25, %v6226_v38  ;;  %v12674_v16 = vsel %vm6098_vm8, 1.0, %v12986_v27  ;;  %8976 = vpow2.f32 %v6388_v7  ;;  %v6398_v7 = vmul.f32 1.442695, %v6375_v28 }
0x1291   :  { %v6321_v63 = vadd.f32 0.2548296, %v6305_v61  ;;  %v6259_v30 = vadd.f32 1.4214138, %v6243_v51  ;;  %v6115_v61 = vsel %vm6099_vm7, 1.0, %v12986_v27  ;;  %v6272_v59 = vmul.f32 %v12620_v23, %v6256_v1 }
0x1292   :  { %v12663_v31 = vpop.eup %8962  ;;  %v6258_v51 = vadd.f32 1.4214138, %v6242_v18  ;;  %v6358_v1 = vsub.f32 0.0, %v12652_v55  ;;  %8978 = vpow2.f32 %v6394_v36 }
0x1293   :  { %v6337_v39 = vmul.f32 %v12604_v32, %v6321_v63  ;;  %v6275_v45 = vmul.f32 %v12639_v58, %v6259_v30  ;;  %v8965_v37 = vpop.eup %8964  ;;  %v6213_v15 = vmul.f32 1.0614054, %v12663_v31  ;;  %v6288_v6 = vadd.f32 -0.28449672, %v6272_v59 }
0x1294   :  { %v12678_v32 = vpop.eup %8966  ;;  %v6392_v30 = vmul.f32 1.442695, %v6372_v46  ;;  %v6274_v38 = vmul.f32 %v12648_v25, %v6258_v51 }
0x1295   :  { %v6291_v33 = vadd.f32 -0.28449672, %v6275_v45  ;;  %v8969_v21 = vpop.eup %8968  ;;  %v6212_v26 = vmul.f32 1.0614054, %v12678_v32  ;;  %v6229_v50 = vadd.f32 -1.4531521, %v6213_v15  ;;  %v6417_v63 = vmul.f32 %v8965_v37, %v6337_v39 }
0x1296   :  { %v6304_v2 = vmul.f32 %v12620_v23, %v6288_v6  ;;  %v6290_v18 = vadd.f32 -0.28449672, %v6274_v38  ;;  %8980 = vpow2.f32 %v6392_v30  ;;  %v6374_v38 = vmul.f32 %v6358_v1, %v12652_v55 }
0x1297   :  { %v6307_v62 = vmul.f32 %v12639_v58, %v6291_v33  ;;  %v6228_v45 = vadd.f32 -1.4531521, %v6212_v26  ;;  %v6245_v43 = vmul.f32 %v12663_v31, %v6229_v50  ;;  %v12686_v54 = vpop.eup %8970  ;;  %v6433_v15 = vsub.f32 1.0, %v6417_v63 }
0x1298   :  { %v6320_v59 = vadd.f32 0.2548296, %v6304_v2  ;;  %v6215_v46 = vmul.f32 1.0614054, %v12686_v54  ;;  %v6306_v51 = vmul.f32 %v12648_v25, %v6290_v18  ;;  %v8973_v6 = vpop.eup %8972  ;;  %8982 = vpow2.f32 %v6398_v7 }
0x1299   :  { %v6323_v0 = vadd.f32 0.2548296, %v6307_v62  ;;  %v6244_v37 = vmul.f32 %v12678_v32, %v6228_v45  ;;  %v6261_v39 = vadd.f32 1.4214138, %v6245_v43  ;;  %v12694_v62 = vpop.eup %8974 }
0x129a   :  { %v6336_v26 = vmul.f32 %v12620_v23, %v6320_v59  ;;  %v6231_v28 = vadd.f32 -1.4531521, %v6215_v46  ;;  %v6322_v45 = vadd.f32 0.2548296, %v6306_v51  ;;  %v6214_v43 = vmul.f32 1.0614054, %v12694_v62 }
0x129b   :  { %v6339_v33 = vmul.f32 %v12639_v58, %v6323_v0  ;;  %v6260_v50 = vadd.f32 1.4214138, %v6244_v37  ;;  %v6277_v36 = vmul.f32 %v12663_v31, %v6261_v39  ;;  %v6449_v0 = vmul.f32 %v6433_v15, %v12624_v44  ;;  %v8977_v37 = vpop.eup %8976 }
0x129c   :  { %v6416_v63 = vmul.f32 %v8969_v21, %v6336_v26  ;;  %v6338_v18 = vmul.f32 %v12648_v25, %v6322_v45  ;;  %v6247_v59 = vmul.f32 %v12686_v54, %v6231_v28  ;;  %v6230_v55 = vadd.f32 -1.4531521, %v6214_v43  ;;  %v8979_v25 = vpop.eup %8978 }
0x129d   :  { %v6419_v2 = vmul.f32 %v8973_v6, %v6339_v33  ;;  %v6276_v58 = vmul.f32 %v12678_v32, %v6260_v50  ;;  %v6293_v30 = vadd.f32 -0.28449672, %v6277_v36  ;;  %v6396_v21 = vmul.f32 1.442695, %v6374_v38 }
0x129e   :  { %v6432_v39 = vsub.f32 1.0, %v6416_v63  ;;  %v6418_v33 = vmul.f32 %v8977_v37, %v6338_v18  ;;  %v6263_v51 = vadd.f32 1.4214138, %v6247_v59  ;;  %v6246_v15 = vmul.f32 %v12694_v62, %v6230_v55 }
0x129f   :  { %v6435_v23 = vsub.f32 1.0, %v6419_v2  ;;  %v6292_v46 = vadd.f32 -0.28449672, %v6276_v58  ;;  %v6309_v7 = vmul.f32 %v12663_v31, %v6293_v30  ;;  %v6465_v50 = vadd.f32 1.0, %v6449_v0 }
0x12a0   :  { %v6448_v6 = vmul.f32 %v6432_v39, %v12634_v42  ;;  %v6434_v36 = vsub.f32 1.0, %v6418_v33  ;;  %v6279_v28 = vmul.f32 %v12686_v54, %v6263_v51  ;;  %v6262_v38 = vadd.f32 1.4214138, %v6246_v15  ;;  %v8981_v63 = vpop.eup %8980 }
0x12a1   :  { %v6451_v1 = vmul.f32 %v6435_v23, %v6115_v61  ;;  %v6308_v26 = vmul.f32 %v12678_v32, %v6292_v46  ;;  %v6325_v44 = vadd.f32 0.2548296, %v6309_v7  ;;  %8984 = vpow2.f32 %v6396_v21 }
0x12a2   :  { %v6464_v2 = vadd.f32 1.0, %v6448_v6  ;;  %v6450_v42 = vmul.f32 %v6434_v36, %v12674_v16  ;;  %v6295_v30 = vadd.f32 -0.28449672, %v6279_v28  ;;  %v6278_v18 = vmul.f32 %v12694_v62, %v6262_v38  ;;  %v8983_v59 = vpop.eup %8982 }
0x12a3   :  { %v6324_v45 = vadd.f32 0.2548296, %v6308_v26  ;;  %v6341_v61 = vmul.f32 %v12663_v31, %v6325_v44  ;;  %v6467_v58 = vadd.f32 1.0, %v6451_v1  ;;  %v6481_v37 = vmul.f32 %v6465_v50, %v12612_v56 }
0x12a4   :  { %v6480_v43 = vmul.f32 %v6464_v2, %v12627_v4  ;;  %v6066_v39 = vmul.f32 0.5, %v12580_v5  ;;  %v6466_v31 = vadd.f32 1.0, %v6450_v42  ;;  %v6311_v46 = vmul.f32 %v12686_v54, %v6295_v30 }
0x12a5   :  { %v6340_v0 = vmul.f32 %v12678_v32, %v6324_v45  ;;  %v6421_v23 = vmul.f32 %v8979_v25, %v6341_v61  ;;  %v6294_v55 = vadd.f32 -0.28449672, %v6278_v18  ;;  %v6117_v4 = vsel %vm6101_vm9, 1.0, %v12986_v27 }
0x12a6   :  { %8393 = vmatprep.mubr.f32.mxu0 %v6480_v43  ;;  %v6482_v32 = vmul.f32 %v6466_v31, %v6066_v39  ;;  %v6327_v1 = vadd.f32 0.2548296, %v6311_v46  ;;  %v6483_v56 = vmul.f32 %v6467_v58, %v12636_v3  ;;  %v6116_v51 = vsel %vm6100_vm10, 1.0, %v12986_v27 }
0x12a7   :  { %v6420_v16 = vmul.f32 %v8981_v63, %v6340_v0  ;;  %v6437_v7 = vsub.f32 1.0, %v6421_v23  ;;  %8394 = vmatmul.mubr.f32.vlgmr.msra.gmra.mrb[184].mxu0 %v6481_v37  ;;  %v6310_v33 = vmul.f32 %v12694_v62, %v6294_v55  ;;  %v6068_v15 = vmul.f32 0.5, %v12596_v24 }
0x12a8   :  { %8396 = vmatprep.mubr.f32.mxu1 %v6482_v32  ;;  %v6343_v48 = vmul.f32 %v12686_v54, %v6327_v1  ;;  %v6069_v36 = vmul.f32 0.5, %v12593_v34  ;;  %v6119_v2 = vsel %vm6103_vm11, 1.0, %v12986_v27  ;;  %v6118_v63 = vsel %vm6102_vm12, 1.0, %v12986_v27 }
0x12a9   :  { %v6436_v21 = vsub.f32 1.0, %v6420_v16  ;;  %v6453_v5 = vmul.f32 %v6437_v7, %v6117_v4  ;;  %8397 = vmatmul.mubr.f32.vlgmr.msra.gmra.mrb[168].mxu1 %v6483_v56  ;;  %v6326_v26 = vadd.f32 0.2548296, %v6310_v33  ;;  %v6071_v34 = vmul.f32 0.5, %v12615_v49 }
0x12aa   :  { %v6423_v44 = vmul.f32 %v8983_v59, %v6343_v48 }
0x12ab   :  { %v6452_v6 = vmul.f32 %v6436_v21, %v6116_v51  ;;  %v6469_v47 = vadd.f32 1.0, %v6453_v5  ;;  %v6342_v3 = vmul.f32 %v12694_v62, %v6326_v26  ;;  %v8985_v50 = vpop.eup %8984  ;;  %v6070_v62 = vmul.f32 0.5, %v12618_v29 }
0x12ac   :  { %v6439_v28 = vsub.f32 1.0, %v6423_v44 }
0x12ad   :  { %v6468_v25 = vadd.f32 1.0, %v6452_v6  ;;  %v6422_v45 = vmul.f32 %v8985_v50, %v6342_v3  ;;  %v6485_v61 = vmul.f32 %v6469_v47, %v6069_v36 }
0x12ae   :  { %v6455_v38 = vmul.f32 %v6439_v28, %v6119_v2 }
0x12af   :  { %v6484_v54 = vmul.f32 %v6468_v25, %v6068_v15  ;;  %v6438_v10 = vsub.f32 1.0, %v6422_v45 }
0x12b0   :  { %v6471_v58 = vadd.f32 1.0, %v6455_v38 }
0x12b1   :  { %8399 = vmatprep.mubr.f32.mxu1 %v6484_v54  ;;  %v6454_v24 = vmul.f32 %v6438_v10, %v6118_v63 }
0x12b2   :  { %8400 = vmatmul.mubr.f32.gmra.mrb[170].mxu1 %v6485_v61  ;;  %v6487_v43 = vmul.f32 %v6471_v58, %v6071_v34 }
0x12b3   :  { %v6470_v42 = vadd.f32 1.0, %v6454_v24 }
0x12b5   :  { %v6486_v30 = vmul.f32 %v6470_v42, %v6070_v62 }
0x12b7   :  { %8402 = vmatprep.mubr.f32.mxu1 %v6486_v30 }
0x12b8   :  { %8403 = vmatmul.mubr.f32.gmra.mrb[172].mxu1 %v6487_v43 }
0x12bd   :  { %v8351_v20 = vpop.f32.mrb[176].mxu0 }
0x12be   :  { %v6031_v0 = vadd.f32 %v8351_v20, %v12574_v41  ;;  %v6025_v23 = vpop.f32.mrb[177].mxu0 }
0x12bf   :  { %v6026_v18 = vadd.f32 %v12574_v41, %v6025_v23 }
0x12c0   :  { %v6089_v59 = vmul.f32 0.70710677, %v6031_v0  ;;  %v12757_v61 = vmul.f32 0.5, %v6031_v0 }
0x12c1   :  { %v6088_v37 = vmul.f32 0.70710677, %v6026_v18  ;;  %v12765_v62 = vmul.f32 0.5, %v6026_v18 }
0x12c2   :  { %v6137_v39 = vand.u32 2147483647, %v6089_v59  ;;  %vm6105_vm13 = vcmp.ge.f32.partialorder %v6089_v59, 0.0 }
0x12c3   :  { %v6136_v31 = vand.u32 2147483647, %v6088_v37  ;;  %vm6104_vm14 = vcmp.ge.f32.partialorder %v6088_v37, 0.0  ;;  %v12769_v30 = vsel %vm6105_vm13, 1.0, %v12986_v27 }
0x12c4   :  { %v6153_v46 = vmul.f32 0.3275911, %v6137_v39  ;;  %v6361_v5 = vsub.f32 0.0, %v6137_v39  ;;  %v12772_v43 = vsel %vm6104_vm14, 1.0, %v12986_v27 }
0x12c5   :  { %v6152_v16 = vmul.f32 0.3275911, %v6136_v31  ;;  %v8354_v7 = vpop.f32.mrb[178].mxu0  ;;  %v6360_v51 = vsub.f32 0.0, %v6136_v31 }
0x12c6   :  { %v6169_v29 = vadd.f32 1.0, %v6153_v46  ;;  %v6041_v49 = vadd.f32 %v8354_v7, %v12574_v41  ;;  %v6035_v4 = vpop.f32.mrb[179].mxu0  ;;  %v6377_v25 = vmul.f32 %v6361_v5, %v6137_v39 }
0x12c7   :  { %v6168_v55 = vadd.f32 1.0, %v6152_v16  ;;  %v6036_v32 = vadd.f32 %v12574_v41, %v6035_v4  ;;  %v6376_v36 = vmul.f32 %v6360_v51, %v6136_v31 }
0x12c8   :  { %8986 = vrcp.f32 %v6169_v29  ;;  %v12737_v1 = vmul.f32 0.70710677, %v6041_v49  ;;  %v6402_v58 = vmul.f32 1.442695, %v6377_v25  ;;  %v12774_v23 = vmul.f32 0.5, %v6041_v49 }
0x12c9   :  { %8988 = vrcp.f32 %v6168_v55  ;;  %v12739_v56 = vmul.f32 0.70710677, %v6036_v32  ;;  %v6400_v20 = vmul.f32 1.442695, %v6376_v36  ;;  %v12786_v49 = vmul.f32 0.5, %v6036_v32 }
0x12ca   :  { %v6139_v21 = vand.u32 2147483647, %v12737_v1  ;;  %vm6107_vm15 = vcmp.ge.f32.partialorder %v12737_v1, 0.0 }
0x12cb   :  { %v6138_v33 = vand.u32 2147483647, %v12739_v56  ;;  %vm6106_vm1 = vcmp.ge.f32.partialorder %v12739_v56, 0.0  ;;  %v12797_v32 = vsel %vm6107_vm15, 1.0, %v12986_v27 }
0x12cc   :  { %v6155_v48 = vmul.f32 0.3275911, %v6139_v21  ;;  %v6363_v42 = vsub.f32 0.0, %v6139_v21 }
0x12cd   :  { %v6154_v6 = vmul.f32 0.3275911, %v6138_v33  ;;  %v8357_v26 = vpop.f32.mrb[180].mxu0  ;;  %v6362_v59 = vsub.f32 0.0, %v6138_v33 }
0x12ce   :  { %v6171_v47 = vadd.f32 1.0, %v6155_v48  ;;  %v12744_v44 = vadd.f32 %v8357_v26, %v12574_v41  ;;  %v6045_v15 = vpop.f32.mrb[181].mxu0  ;;  %v6379_v29 = vmul.f32 %v6363_v42, %v6139_v21 }
0x12cf   :  { %v6170_v3 = vadd.f32 1.0, %v6154_v6  ;;  %v12747_v50 = vadd.f32 %v12574_v41, %v6045_v15  ;;  %v6378_v48 = vmul.f32 %v6362_v59, %v6138_v33 }
0x12d0   :  { %8990 = vrcp.f32 %v6171_v47  ;;  %v12750_v28 = vmul.f32 0.70710677, %v12744_v44  ;;  %v6406_v1 = vmul.f32 1.442695, %v6379_v29 }
0x12d1   :  { %8992 = vrcp.f32 %v6170_v3  ;;  %v12753_v2 = vmul.f32 0.70710677, %v12747_v50  ;;  %v8360_v54 = vpop.f32.mrb[182].mxu0 }
0x12d2   :  { %v12755_v45 = vpop.eup %8986  ;;  %v6141_v38 = vand.u32 2147483647, %v12750_v28  ;;  %v12761_v10 = vadd.f32 %v8360_v54, %v12574_v41  ;;  %v6055_v63 = vpop.f32.mrb[183].mxu0  ;;  %8994 = vpow2.f32 %v6402_v58  ;;  %vm6109_vm2 = vcmp.ge.f32.partialorder %v12750_v28, 0.0 }
0x12d3   :  { %v12763_v24 = vpop.eup %8988  ;;  %v6140_v34 = vand.u32 2147483647, %v12753_v2  ;;  %v12780_v31 = vadd.f32 %v12574_v41, %v6055_v63  ;;  %v6217_v16 = vmul.f32 1.0614054, %v12755_v45  ;;  %v12806_v63 = vsel %vm6106_vm1, 1.0, %v12986_v27 }
0x12d4   :  { %v6157_v0 = vmul.f32 0.3275911, %v6141_v38  ;;  %v12777_v39 = vmul.f32 0.70710677, %v12761_v10  ;;  %v6216_v46 = vmul.f32 1.0614054, %v12763_v24 }
0x12d5   :  { %v6156_v37 = vmul.f32 0.3275911, %v6140_v34  ;;  %v6365_v4 = vsub.f32 0.0, %v6141_v38  ;;  %v6364_v41 = vsub.f32 0.0, %v6140_v34  ;;  %v12792_v6 = vmul.f32 0.70710677, %v12780_v31 }
0x12d6   :  { %v6173_v18 = vadd.f32 1.0, %v6157_v0  ;;  %v6143_v55 = vand.u32 2147483647, %v12777_v39  ;;  %v6232_v21 = vadd.f32 -1.4531521, %v6216_v46  ;;  %vm6108_vm3 = vcmp.ge.f32.partialorder %v12753_v2, 0.0 }
0x12d7   :  { %v6172_v7 = vadd.f32 1.0, %v6156_v37  ;;  %v6233_v26 = vadd.f32 -1.4531521, %v6217_v16  ;;  %v6381_v3 = vmul.f32 %v6365_v4, %v6141_v38  ;;  %v6142_v36 = vand.u32 2147483647, %v12792_v6 }
0x12d8   :  { %8996 = vrcp.f32 %v6173_v18  ;;  %v6159_v5 = vmul.f32 0.3275911, %v6143_v55  ;;  %v6248_v54 = vmul.f32 %v12763_v24, %v6232_v21  ;;  %v6367_v58 = vsub.f32 0.0, %v6143_v55 }
0x12d9   :  { %8998 = vrcp.f32 %v6172_v7  ;;  %v6249_v33 = vmul.f32 %v12755_v45, %v6233_v26  ;;  %v6404_v0 = vmul.f32 1.442695, %v6378_v48  ;;  %v6380_v59 = vmul.f32 %v6364_v41, %v6140_v34 }
0x12da   :  { %v12789_v51 = vpop.eup %8990  ;;  %v6175_v15 = vadd.f32 1.0, %v6159_v5  ;;  %v6158_v37 = vmul.f32 0.3275911, %v6142_v36  ;;  %v6264_v18 = vadd.f32 1.4214138, %v6248_v54  ;;  %v6383_v5 = vmul.f32 %v6367_v58, %v6143_v55 }
0x12db   :  { %v12794_v47 = vpop.eup %8992  ;;  %v6219_v25 = vmul.f32 1.0614054, %v12789_v51  ;;  %v6265_v38 = vadd.f32 1.4214138, %v6249_v33  ;;  %v6410_v29 = vmul.f32 1.442695, %v6381_v3 }
0x12dc   :  { %9000 = vrcp.f32 %v6175_v15  ;;  %v6218_v42 = vmul.f32 1.0614054, %v12794_v47  ;;  %v6174_v7 = vadd.f32 1.0, %v6158_v37  ;;  %v6280_v4 = vmul.f32 %v12763_v24, %v6264_v18  ;;  %v8995_v56 = vpop.eup %8994 }
0x12dd   :  { %9002 = vpow2.f32 %v6400_v20  ;;  %v6235_v16 = vadd.f32 -1.4531521, %v6219_v25  ;;  %v6281_v21 = vmul.f32 %v12755_v45, %v6265_v38  ;;  %v6408_v41 = vmul.f32 1.442695, %v6380_v59 }
0x12de   :  { %v6234_v46 = vadd.f32 -1.4531521, %v6218_v42  ;;  %9004 = vpow2.f32 %v6406_v1  ;;  %v6366_v20 = vsub.f32 0.0, %v6142_v36  ;;  %v6296_v15 = vadd.f32 -0.28449672, %v6280_v4 }
0x12df   :  { %v6251_v48 = vmul.f32 %v12789_v51, %v6235_v16  ;;  %9006 = vrcp.f32 %v6174_v7  ;;  %v6297_v1 = vadd.f32 -0.28449672, %v6281_v21  ;;  %v6414_v42 = vmul.f32 1.442695, %v6383_v5 }
0x12e0   :  { %v6250_v26 = vmul.f32 %v12794_v47, %v6234_v46  ;;  %9008 = vpow2.f32 %v6404_v0  ;;  %v6312_v55 = vmul.f32 %v12763_v24, %v6296_v15  ;;  %v6125_v28 = vsel %vm6109_vm2, 1.0, %v12986_v27 }
0x12e1   :  { %v6267_v54 = vadd.f32 1.4214138, %v6251_v48  ;;  %9010 = vpow2.f32 %v6410_v29  ;;  %v6313_v37 = vmul.f32 %v12755_v45, %v6297_v1  ;;  %v6382_v29 = vmul.f32 %v6366_v20, %v6142_v36 }
0x12e2   :  { %v12813_v34 = vpop.eup %8996  ;;  %v6266_v3 = vadd.f32 1.4214138, %v6250_v26  ;;  %9012 = vpow2.f32 %v6408_v41  ;;  %v6328_v38 = vadd.f32 0.2548296, %v6312_v55  ;;  %vm6111_vm4 = vcmp.ge.f32.partialorder %v12777_v39, 0.0 }
0x12e3   :  { %v12815_v25 = vpop.eup %8998  ;;  %v6221_v58 = vmul.f32 1.0614054, %v12813_v34  ;;  %v6283_v18 = vmul.f32 %v12789_v51, %v6267_v54  ;;  %v6329_v7 = vadd.f32 0.2548296, %v6313_v37  ;;  %9014 = vpow2.f32 %v6414_v42 }
0x12e4   :  { %v6220_v33 = vmul.f32 1.0614054, %v12815_v25  ;;  %v6282_v59 = vmul.f32 %v12794_v47, %v6266_v3  ;;  %v6344_v26 = vmul.f32 %v12763_v24, %v6328_v38  ;;  %v6412_v24 = vmul.f32 1.442695, %v6382_v29 }
0x12e5   :  { %v6237_v46 = vadd.f32 -1.4531521, %v6221_v58  ;;  %v6299_v21 = vadd.f32 -0.28449672, %v6283_v18  ;;  %v6345_v41 = vmul.f32 %v12755_v45, %v6329_v7  ;;  %vm6110_vm5 = vcmp.ge.f32.partialorder %v12792_v6, 0.0 }
0x12e6   :  { %v6236_v0 = vadd.f32 -1.4531521, %v6220_v33  ;;  %v12823_v16 = vpop.eup %9000  ;;  %v6298_v4 = vadd.f32 -0.28449672, %v6282_v59  ;;  %9016 = vpow2.f32 %v6412_v24  ;;  %v6126_v39 = vsel %vm6110_vm5, 1.0, %v12986_v27 }
0x12e7   :  { %v6253_v48 = vmul.f32 %v12813_v34, %v6237_v46  ;;  %v6223_v15 = vmul.f32 1.0614054, %v12823_v16  ;;  %v9003_v1 = vpop.eup %9002  ;;  %v6315_v54 = vmul.f32 %v12789_v51, %v6299_v21  ;;  %v6425_v37 = vmul.f32 %v8995_v56, %v6345_v41 }
0x12e8   :  { %v6252_v5 = vmul.f32 %v12815_v25, %v6236_v0  ;;  %v6314_v3 = vmul.f32 %v12794_v47, %v6298_v4  ;;  %v9005_v36 = vpop.eup %9004  ;;  %v6424_v20 = vmul.f32 %v9003_v1, %v6344_v26 }
0x12e9   :  { %v6269_v33 = vadd.f32 1.4214138, %v6253_v48  ;;  %v6239_v58 = vadd.f32 -1.4531521, %v6223_v15  ;;  %v6331_v18 = vadd.f32 0.2548296, %v6315_v54  ;;  %v12832_v38 = vpop.eup %9006 }
0x12ea   :  { %v6268_v55 = vadd.f32 1.4214138, %v6252_v5  ;;  %v6330_v59 = vadd.f32 0.2548296, %v6314_v3  ;;  %v6440_v0 = vsub.f32 1.0, %v6424_v20  ;;  %v9009_v7 = vpop.eup %9008  ;;  %v6441_v4 = vsub.f32 1.0, %v6425_v37 }
0x12eb   :  { %v6285_v45 = vmul.f32 %v12813_v34, %v6269_v33  ;;  %v6255_v46 = vmul.f32 %v12823_v16, %v6239_v58  ;;  %v6347_v26 = vmul.f32 %v12789_v51, %v6331_v18  ;;  %v6222_v29 = vmul.f32 1.0614054, %v12832_v38  ;;  %v9011_v56 = vpop.eup %9010 }
0x12ec   :  { %v6284_v42 = vmul.f32 %v12815_v25, %v6268_v55  ;;  %v6346_v21 = vmul.f32 %v12794_v47, %v6330_v59  ;;  %v6456_v5 = vmul.f32 %v6440_v0, %v12772_v43  ;;  %v6457_v41 = vmul.f32 %v6441_v4, %v12769_v30  ;;  %v9013_v55 = vpop.eup %9012 }
0x12ed   :  { %v6301_v15 = vadd.f32 -0.28449672, %v6285_v45  ;;  %v6271_v1 = vadd.f32 1.4214138, %v6255_v46  ;;  %v6427_v54 = vmul.f32 %v9005_v36, %v6347_v26  ;;  %v6238_v20 = vadd.f32 -1.4531521, %v6222_v29  ;;  %v9015_v36 = vpop.eup %9014 }
0x12ee   :  { %v6300_v48 = vadd.f32 -0.28449672, %v6284_v42  ;;  %v6426_v3 = vmul.f32 %v9009_v7, %v6346_v21  ;;  %v6472_v33 = vadd.f32 1.0, %v6456_v5  ;;  %v6473_v37 = vadd.f32 1.0, %v6457_v41 }
0x12ef   :  { %v6317_v47 = vmul.f32 %v12813_v34, %v6301_v15  ;;  %v6287_v51 = vmul.f32 %v12823_v16, %v6271_v1  ;;  %v6443_v18 = vsub.f32 1.0, %v6427_v54  ;;  %v6254_v43 = vmul.f32 %v12832_v38, %v6238_v20 }
0x12f0   :  { %v6316_v58 = vmul.f32 %v12815_v25, %v6300_v48  ;;  %v6442_v59 = vsub.f32 1.0, %v6426_v3  ;;  %v6488_v0 = vmul.f32 %v6472_v33, %v12765_v62  ;;  %v6489_v46 = vmul.f32 %v6473_v37, %v12757_v61  ;;  %v9017_v37 = vpop.eup %9016 }
0x12f1   :  { %v6333_v30 = vadd.f32 0.2548296, %v6317_v47  ;;  %v6303_v45 = vadd.f32 -0.28449672, %v6287_v51  ;;  %v6459_v4 = vmul.f32 %v6443_v18, %v12797_v32  ;;  %v6270_v21 = vadd.f32 1.4214138, %v6254_v43 }
0x12f2   :  { %v6332_v42 = vadd.f32 0.2548296, %v6316_v58  ;;  %v6458_v7 = vmul.f32 %v6442_v59, %v12806_v63  ;;  %8405 = vmatprep.mubr.f32.mxu1 %v6488_v0  ;;  %v6124_v54 = vsel %vm6108_vm3, 1.0, %v12986_v27  ;;  %v6127_v18 = vsel %vm6111_vm4, 1.0, %v12986_v27 }
0x12f3   :  { %v6349_v29 = vmul.f32 %v12813_v34, %v6333_v30  ;;  %v6319_v5 = vmul.f32 %v12823_v16, %v6303_v45  ;;  %8406 = vmatmul.mubr.f32.gmra.mrb[174].mxu1 %v6489_v46  ;;  %v6475_v48 = vadd.f32 1.0, %v6459_v4  ;;  %v6286_v61 = vmul.f32 %v12832_v38, %v6270_v21  ;;  %v7172_v4 = vld [vmem:[%s12971_s17] ss:$0 sm:$0xff] }
0x12f4   :  { %v6348_v26 = vmul.f32 %v12815_v25, %v6332_v42  ;;  %v6474_v62 = vadd.f32 1.0, %v6458_v7 }
0x12f5   :  { %v6429_v32 = vmul.f32 %v9011_v56, %v6349_v29  ;;  %v6335_v15 = vadd.f32 0.2548296, %v6319_v5  ;;  %v6302_v1 = vadd.f32 -0.28449672, %v6286_v61  ;;  %v6491_v25 = vmul.f32 %v6475_v48, %v12774_v23 }
0x12f6   :  { %v6428_v63 = vmul.f32 %v9013_v55, %v6348_v26  ;;  %v6490_v24 = vmul.f32 %v6474_v62, %v12786_v49  ;;  %v6076_v49 = vmul.f32 0.5, %v12747_v50 }
0x12f7   :  { %v6445_v41 = vsub.f32 1.0, %v6429_v32  ;;  %v6351_v3 = vmul.f32 %v12823_v16, %v6335_v15  ;;  %v6318_v20 = vmul.f32 %v12832_v38, %v6302_v1  ;;  %v6077_v16 = vmul.f32 0.5, %v12744_v44 }
0x12f8   :  { %v6444_v34 = vsub.f32 1.0, %v6428_v63  ;;  %8408 = vmatprep.mubr.f32.mxu1 %v6490_v24  ;;  %v6078_v44 = vmul.f32 0.5, %v12780_v31 }
0x12f9   :  { %8409 = vmatmul.mubr.f32.gmra.mrb[176].mxu1 %v6491_v25  ;;  %v6461_v56 = vmul.f32 %v6445_v41, %v6125_v28  ;;  %v6431_v55 = vmul.f32 %v9015_v36, %v6351_v3  ;;  %v6334_v33 = vadd.f32 0.2548296, %v6318_v20 }
0x12fa   :  { %v6460_v2 = vmul.f32 %v6444_v34, %v6124_v54 }
0x12fb   :  { %v6477_v58 = vadd.f32 1.0, %v6461_v56  ;;  %v6447_v47 = vsub.f32 1.0, %v6431_v55  ;;  %v6350_v51 = vmul.f32 %v12832_v38, %v6334_v33  ;;  %v6079_v38 = vmul.f32 0.5, %v12761_v10 }
0x12fc   :  { %v6476_v23 = vadd.f32 1.0, %v6460_v2 }
0x12fd   :  { %v6493_v43 = vmul.f32 %v6477_v58, %v6077_v16  ;;  %v6430_v0 = vmul.f32 %v9017_v37, %v6350_v51  ;;  %v6463_v50 = vmul.f32 %v6447_v47, %v6127_v18 }
0x12fe   :  { %v6492_v59 = vmul.f32 %v6476_v23, %v6076_v49 }
0x12ff   :  { %v6446_v42 = vsub.f32 1.0, %v6430_v0  ;;  %v6479_v45 = vadd.f32 1.0, %v6463_v50 }
0x1300   :  { %8411 = vmatprep.mubr.f32.mxu1 %v6492_v59 }
0x1301   :  { %8412 = vmatmul.mubr.f32.gmra.mrb[178].mxu1 %v6493_v43  ;;  %v6462_v30 = vmul.f32 %v6446_v42, %v6126_v39  ;;  %v6495_v7 = vmul.f32 %v6479_v45, %v6079_v38 }
0x1303   :  { %v6478_v36 = vadd.f32 1.0, %v6462_v30 }
0x1305   :  { %v6494_v46 = vmul.f32 %v6478_v36, %v6078_v44 }
0x1307   :  { %8414 = vmatprep.mubr.f32.mxu1 %v6494_v46 }
0x1308   :  { %8415 = vmatmul.mubr.f32.gmra.mrb[180].mxu1 %v6495_v7 }
0x137a   :  { %v8395_v6 = vpop.f32.mrb[184].mxu0 }
0x137b   :  { %v6658_v21 = vadd.f32 %v8395_v6, %v12220_v19  ;;  %v6578_v26 = vpop.f32.mrb[185].mxu0 }
0x137c   :  { %v6657_v27 = vadd.f32 %v6578_v26, %v12223_v60  ;;  %v8398_v5 = vpop.f32.mrb[168].mxu1 }
0x137d   :  { %v6681_v29 = vadd.f32 %v7172_v4, %v6658_v21  ;;  %v6660_v62 = vadd.f32 %v8398_v5, %v12236_v57  ;;  %v6588_v10 = vpop.f32.mrb[169].mxu1 }
0x137e   :  { %v6680_v31 = vadd.f32 %v7172_v4, %v6657_v27  ;;  %v6659_v48 = vadd.f32 %v6588_v10, %v12239_v52 }
0x137f   :  { %6697 = vst.msk [vmem:[%s12972_s18 + $0x8] sm:$0xff] %vm77_vm0, %v6681_v29  ;;  %v6683_v19 = vadd.f32 %v7172_v4, %v6660_v62 }
0x1380   :  { %6696 = vst.msk [vmem:[%s12972_s18] sm:$0xff] %vm77_vm0, %v6680_v31  ;;  %v6682_v60 = vadd.f32 %v7172_v4, %v6659_v48 }
0x1381   :  { %6699 = vst.msk [vmem:[%s12972_s18 + $0x18] sm:$0xff] %vm77_vm0, %v6683_v19 }
0x1382   :  { %6698 = vst.msk [vmem:[%s12972_s18 + $0x10] sm:$0xff] %vm77_vm0, %v6682_v60 }
0x1385   :  { %v8401_v57 = vpop.f32.mrb[170].mxu1 }
0x1386   :  { %v6662_v52 = vadd.f32 %v8401_v57, %v12252_v22  ;;  %v6598_v61 = vpop.f32.mrb[171].mxu1 }
0x1387   :  { %v6661_v63 = vadd.f32 %v6598_v61, %v12255_v14 }
0x1388   :  { %v6685_v32 = vadd.f32 %v7172_v4, %v6662_v52 }
0x1389   :  { %v6684_v15 = vadd.f32 %v7172_v4, %v6661_v63 }
0x138a   :  { %6701 = vst.msk [vmem:[%s12972_s18 + $0x28] sm:$0xff] %vm77_vm0, %v6685_v32 }
0x138b   :  { %6700 = vst.msk [vmem:[%s12972_s18 + $0x20] sm:$0xff] %vm77_vm0, %v6684_v15  ;;  %v8404_v24 = vpop.f32.mrb[172].mxu1 }
0x138c   :  { %v6664_v1 = vadd.f32 %v8404_v24, %v12268_v35  ;;  %v6608_v25 = vpop.f32.mrb[173].mxu1 }
0x138d   :  { %v6663_v22 = vadd.f32 %v6608_v25, %v12277_v13 }
0x138e   :  { %v6687_v34 = vadd.f32 %v7172_v4, %v6664_v1 }
0x138f   :  { %v6686_v14 = vadd.f32 %v7172_v4, %v6663_v22 }
0x1390   :  { %6703 = vst.msk [vmem:[%s12972_s18 + $0x38] sm:$0xff] %vm77_vm0, %v6687_v34 }
0x1391   :  { %6702 = vst.msk [vmem:[%s12972_s18 + $0x30] sm:$0xff] %vm77_vm0, %v6686_v14 }
0x13c6   :  { %v8407_v41 = vpop.f32.mrb[174].mxu1 }
0x13c7   :  { %v6666_v3 = vadd.f32 %v8407_v41, %v12290_v40  ;;  %v6618_v28 = vpop.f32.mrb[175].mxu1 }
0x13c8   :  { %v6665_v35 = vadd.f32 %v6618_v28, %v12293_v12 }
0x13c9   :  { %v6689_v54 = vadd.f32 %v7172_v4, %v6666_v3 }
0x13ca   :  { %v6688_v13 = vadd.f32 %v7172_v4, %v6665_v35 }
0x13cb   :  { %6705 = vst.msk [vmem:[%s12972_s18 + $0x48] sm:$0xff] %vm77_vm0, %v6689_v54 }
0x13cc   :  { %v8410_v20 = vpop.f32.mrb[176].mxu1  ;;  %6704 = vst.msk [vmem:[%s12972_s18 + $0x40] sm:$0xff] %vm77_vm0, %v6688_v13 }
0x13cd   :  { %v6668_v2 = vadd.f32 %v8410_v20, %v12306_v9  ;;  %v6628_v56 = vpop.f32.mrb[177].mxu1 }
0x13ce   :  { %v6667_v40 = vadd.f32 %v6628_v56, %v12309_v17 }
0x13cf   :  { %v6691_v55 = vadd.f32 %v7172_v4, %v6668_v2 }
0x13d0   :  { %v6690_v12 = vadd.f32 %v7172_v4, %v6667_v40 }
0x13d1   :  { %6707 = vst.msk [vmem:[%s12972_s18 + $0x58] sm:$0xff] %vm77_vm0, %v6691_v55 }
0x13d2   :  { %6706 = vst.msk [vmem:[%s12972_s18 + $0x50] sm:$0xff] %vm77_vm0, %v6690_v12 }
0x13d4   :  { %v8413_v49 = vpop.f32.mrb[178].mxu1 }
0x13d5   :  { %v6670_v33 = vadd.f32 %v8413_v49, %v12322_v53  ;;  %v6638_v23 = vpop.f32.mrb[179].mxu1  ;;  %v12987_v53 = vld [vmem:[#allocation2_spill] sm:$0xff] }
0x13d6   :  { %v6669_v9 = vadd.f32 %v6638_v23, %v12325_v8 }
0x13d7   :  { %v6693_v58 = vadd.f32 %v7172_v4, %v6670_v33 }
0x13d8   :  { %v6692_v17 = vadd.f32 %v7172_v4, %v6669_v9 }
0x13d9   :  { %6709 = vst.msk [vmem:[%s12972_s18 + $0x68] sm:$0xff] %vm77_vm0, %v6693_v58 }
0x13da   :  { %6708 = vst.msk [vmem:[%s12972_s18 + $0x60] sm:$0xff] %vm77_vm0, %v6692_v17 }
0x13db   :  { %v8416_v47 = vpop.f32.mrb[180].mxu1 }
0x13dc   :  { %v6672_v16 = vadd.f32 %v8416_v47, %v12338_v11  ;;  %v6648_v51 = vpop.f32.mrb[181].mxu1 }
0x13dd   :  { %v6671_v37 = vadd.f32 %v6648_v51, %v12987_v53 }
0x13de   :  { %v6695_v59 = vadd.f32 %v7172_v4, %v6672_v16 }
0x13df   :  { %v6694_v8 = vadd.f32 %v7172_v4, %v6671_v37 }
0x13e0   :  { %6711 = vst.msk [vmem:[%s12972_s18 + $0x78] sm:$0xff] %vm77_vm0, %v6695_v59 }
0x13e1   :  { %6710 = vst.msk [vmem:[%s12972_s18 + $0x70] sm:$0xff] %vm77_vm0, %v6694_v8 }

</bundles_post_ra>
